<compile_context>
chip_gen: v5e
topology: v5e:2x2
jax: 0.10.0
libtpu: 0.0.40
codegen_flags: <defaults>
</compile_context>

<pallas_src>
import jax
import jax.numpy as jnp
from jax.experimental import pallas as pl
from jax.experimental.pallas import tpu as pltpu


def _elu(x):
    # ELU(alpha=1): x if x > 0 else exp(x) - 1.  exp arg clamped so garbage / padded
    # columns can never overflow.  (exp has a guaranteed Mosaic lowering; expm1 is
    # intentionally avoided.)
    return jnp.where(x > 0.0, x, jnp.exp(jnp.minimum(x, 0.0)) - 1.0)


# ----------------------------------------------------------------------------
# Fused Pallas kernel (grid = (batch_tiles, point_tiles), channels-first)
# ----------------------------------------------------------------------------
def _make_encoder_kernel(n_layers, b_tile, n_points, tile_pts, n_tiles, eps):
    """refs layout:
      inputs : x (B_TILE, f_in, P),
               (W_0 (h0,f_in), b_0 (h0,1)), ..., (W_{L-1}, b_{L-1}),
               fc_w (out_f, h_last), fc_b (out_f,1), ln_g (out_f,1), ln_b (out_f,1)
      outputs: out (1, out_f, B_TILE), idx (1, h_last, B_TILE)
      scratch: run_max (h_last, B_TILE) f32, run_idx (h_last, B_TILE) i32
    """
    needs_mask = (n_tiles * tile_pts != n_points)

    def kernel(*refs):
        x_ref = refs[0]
        layer_refs = refs[1:1 + 2 * n_layers]
        fc_w_ref, fc_b_ref, ln_g_ref, ln_b_ref = refs[1 + 2 * n_layers:5 + 2 * n_layers]
        out_ref, idx_ref = refs[5 + 2 * n_layers:7 + 2 * n_layers]
        run_max_ref, run_idx_ref = refs[7 + 2 * n_layers:9 + 2 * n_layers]

        h_last = run_max_ref.shape[0]
        t = pl.program_id(1)

        if n_tiles > 1:
            @pl.when(t == 0)
            def _init():
                run_max_ref[...] = jnp.full_like(run_max_ref, -jnp.inf)
                run_idx_ref[...] = jnp.zeros_like(run_idx_ref)

        # Lane-index iota / validity mask, hoisted out of the per-batch loop.
        cols = jax.lax.broadcasted_iota(jnp.int32, (h_last, tile_pts), 1)
        if needs_mask:
            valid = (cols + t * tile_pts) < n_points

        w0_ref, b0_ref = layer_refs[0], layer_refs[1]
        f_in = w0_ref.shape[1]

        for bi in range(b_tile):                        # unrolled batch sub-loop
            x_t = x_ref[bi]                             # (f_in, P), channels-first

            # ---- layer 0 -----------------------------------------------------
            if f_in <= 8:
                # Tiny K: outer-product VPU MAC, accumulator seeded with
                # feature 0 + bias (no zero-fill, no separate bias add).
                w0 = w0_ref[...]
                h = w0[:, 0:1] * x_t[0:1, :] + b0_ref[...]
                for f in range(1, f_in):
                    h = h + w0[:, f:f + 1] * x_t[f:f + 1, :]
            else:
                h = jnp.dot(w0_ref[...], x_t, preferred_element_type=jnp.float32)
                h = h + b0_ref[...]
            if n_layers > 1:
                h = _elu(h)

            # ---- layers 1 .. L-1 (last layer's ELU deferred: monotonic) -------
            for i in range(1, n_layers):
                w_ref, b_ref = layer_refs[2 * i], layer_refs[2 * i + 1]
                h = jnp.dot(w_ref[...], h, preferred_element_type=jnp.float32)
                h = h + b_ref[...]
                if i < n_layers - 1:
                    h = _elu(h)
            # TODO(synk): nn.Dropout is identity at inference (p=0.0 / eval);
            # training-mode PRNG dropout is not implemented.

            # ---- max / argmax over the point (lane) axis on pre-activation ----
            z = h                                        # (h_last, P)
            if needs_mask:
                z = jnp.where(valid, z, -jnp.inf)        # mask once, reuse below
            tile_max = jnp.max(z, axis=-1, keepdims=True)               # (h_last,1)
            first_hit = jnp.where(z == tile_max, cols, tile_pts)        # int32
            tile_arg = jnp.min(first_hit, axis=-1, keepdims=True)       # (h_last,1)

            if n_tiles > 1:
                tile_arg = tile_arg + t * tile_pts       # global point index
                prev_max = run_max_ref[:, bi:bi + 1]
                better = tile_max > prev_max             # strict > keeps first index
                run_max_ref[:, bi:bi + 1] = jnp.where(better, tile_max, prev_max)
                run_idx_ref[:, bi:bi + 1] = jnp.where(
                    better, tile_arg, run_idx_ref[:, bi:bi + 1])
            else:
                run_max_ref[:, bi:bi + 1] = tile_max
                run_idx_ref[:, bi:bi + 1] = tile_arg

        # ---- fused head: ELU(pooled) -> Linear -> LayerNorm -> Tanh ------------
        def _finalize():
            pooled = _elu(run_max_ref[...])              # ELU once, (h_last, B_TILE)
            y = jnp.dot(fc_w_ref[...], pooled, preferred_element_type=jnp.float32)
            y = y + fc_b_ref[...]                        # (out_f, B_TILE)
            mean = jnp.mean(y, axis=0, keepdims=True)
            var = jnp.mean((y - mean) ** 2, axis=0, keepdims=True)
            y = (y - mean) * jax.lax.rsqrt(var + eps)
            y = jnp.tanh(y * ln_g_ref[...] + ln_b_ref[...])
            out_ref[...] = y.reshape(out_ref.shape)
            idx_ref[...] = run_idx_ref[...].reshape(idx_ref.shape)

        if n_tiles > 1:
            pl.when(t == n_tiles - 1)(_finalize)
        else:
            _finalize()

    return kernel


# ----------------------------------------------------------------------------
# Forward wrapper
# ----------------------------------------------------------------------------
def point_cloud_encoder_forward(x, params, *, tile_points=2048, eps=1e-5):
    """x: (..., N, in_features) -> (out (..., out_features), indices (..., h_last))."""
    x = x.astype(jnp.float32)
    lead = x.shape[:-2]
    n_pts, f_in = x.shape[-2], x.shape[-1]
    xb = x.reshape((-1, n_pts, f_in))
    n_batch = xb.shape[0]

    layer_params = params["layers"]
    n_layers = len(layer_params)
    h_last = layer_params[-1][0].shape[0]
    out_f = params["fc_w"].shape[0]

    # Channels-first cloud: dense tile_pts*4-byte DMA rows, no lane-padding waste.
    x_cf = jnp.swapaxes(xb, -1, -2)                      # (n_batch, f_in, n_pts)

    # Batch blocking; keep >=2 batch tiles so "parallel" can feed both v7x TCs.
    b_tile = min(8, pl.cdiv(n_batch, 2)) if n_batch >= 2 else 1
    n_bt = pl.cdiv(n_batch, b_tile)
    pad_b = n_bt * b_tile - n_batch
    if pad_b:
        x_cf = jnp.pad(x_cf, ((0, pad_b), (0, 0), (0, 0)))

    # Point tiling: one full-extent tile when it fits (no streaming phases),
    # otherwise multiple-of-128 tiles with an in-kernel ragged mask.
    if n_pts <= tile_points:
        tile_pts, n_tiles = n_pts, 1
    else:
        tile_pts = max(128, (tile_points // 128) * 128)
        n_tiles = pl.cdiv(n_pts, tile_pts)

    inputs = [x_cf]
    in_specs = [pl.BlockSpec((b_tile, f_in, tile_pts), lambda bt, t: (bt, 0, t))]
    for w, bias in layer_params:
        inputs += [w, bias]
        in_specs += [pl.BlockSpec(w.shape, lambda bt, t: (0, 0)),
                     pl.BlockSpec(bias.shape, lambda bt, t: (0, 0))]
    for name in ("fc_w", "fc_b", "ln_g", "ln_b"):
        inputs.append(params[name])
        in_specs.append(pl.BlockSpec(params[name].shape, lambda bt, t: (0, 0)))

    out_shape = (jax.ShapeDtypeStruct((n_bt, out_f, b_tile), jnp.float32),
                 jax.ShapeDtypeStruct((n_bt, h_last, b_tile), jnp.int32))
    out_specs = [pl.BlockSpec((1, out_f, b_tile), lambda bt, t: (bt, 0, 0)),
                 pl.BlockSpec((1, h_last, b_tile), lambda bt, t: (bt, 0, 0))]

    out, idx = pl.pallas_call(
        _make_encoder_kernel(n_layers, b_tile, n_pts, tile_pts, n_tiles, eps),
        out_shape=out_shape,
        grid_spec=pltpu.PrefetchScalarGridSpec(
            num_scalar_prefetch=0,
            grid=(n_bt, n_tiles),
            in_specs=in_specs,
            out_specs=out_specs,
            scratch_shapes=[pltpu.VMEM((h_last, b_tile), jnp.float32),
                            pltpu.VMEM((h_last, b_tile), jnp.int32)]),
        compiler_params=pltpu.CompilerParams(
            dimension_semantics=("parallel", "arbitrary"),
            vmem_limit_bytes=32 * 1024 * 1024),
    )(*inputs)

    out = out.transpose(0, 2, 1).reshape(n_bt * b_tile, out_f)[:n_batch]
    idx = idx.transpose(0, 2, 1).reshape(n_bt * b_tile, h_last)[:n_batch]
    return out.reshape(lead + (out_f,)), idx.reshape(lead + (h_last,))


# ----------------------------------------------------------------------------
# Parameters (torch-native (out, in) weights; biases / LN params as (out, 1))
# ----------------------------------------------------------------------------
def init_point_cloud_encoder_params(key, in_features=3, layers=(64, 128),
                                    out_features=32):
    sizes = (in_features,) + tuple(layers)
    keys = jax.random.split(key, 2 * len(layers) + 2)
    params = {"layers": []}
    for i in range(len(sizes) - 1):
        bound = float(sizes[i]) ** -0.5
        w = jax.random.uniform(keys[2 * i], (sizes[i + 1], sizes[i]), jnp.float32,
                               -bound, bound)
        b = jax.random.uniform(keys[2 * i + 1], (sizes[i + 1], 1), jnp.float32,
                               -bound, bound)
        params["layers"].append((w, b))
    bound = float(sizes[-1]) ** -0.5
    params["fc_w"] = jax.random.uniform(keys[-2], (out_features, sizes[-1]),
                                        jnp.float32, -bound, bound)
    params["fc_b"] = jax.random.uniform(keys[-1], (out_features, 1), jnp.float32,
                                        -bound, bound)
    params["ln_g"] = jnp.ones((out_features, 1), jnp.float32)
    params["ln_b"] = jnp.zeros((out_features, 1), jnp.float32)
    return params


# ----------------------------------------------------------------------------
# Pure-JAX reference (torch semantics) for validation
# ----------------------------------------------------------------------------
def _ref_forward(x, params, eps=1e-5):
    h = x.astype(jnp.float32)
    for w, b in params["layers"]:
        h = h @ w.T + b[:, 0]
        h = jnp.where(h > 0.0, h, jnp.exp(jnp.minimum(h, 0.0)) - 1.0)
    values = jnp.max(h, axis=-2)
    indices = jnp.argmax(h, axis=-2).astype(jnp.int32)
    y = values @ params["fc_w"].T + params["fc_b"][:, 0]
    mean = y.mean(-1, keepdims=True)
    var = ((y - mean) ** 2).mean(-1, keepdims=True)
    y = (y - mean) / jnp.sqrt(var + eps) * params["ln_g"][:, 0] + params["ln_b"][:, 0]
    return jnp.tanh(y), indices, h


def _check(out, idx, x, params, n_points, h_last, out_features):
    assert idx.dtype == jnp.int32
    assert bool(jnp.all(jnp.isfinite(out)))
    assert bool(jnp.all((idx >= 0) & (idx < n_points)))
    ref_out, ref_idx, ref_hidden = _ref_forward(x, params)
    max_err = float(jnp.max(jnp.abs(out - ref_out)))
    assert bool(jnp.allclose(out, ref_out, atol=2e-3, rtol=2e-3)), max_err
    # Indices must point at the per-channel maximum of the last hidden layer
    # (robust to float ties) and agree with the reference argmax.
    ref_vals = jnp.max(ref_hidden, axis=-2)
    picked = jnp.take_along_axis(ref_hidden, idx[..., None, :].astype(jnp.int32),
                                 axis=-2)[..., 0, :]
    assert bool(jnp.allclose(picked, ref_vals, atol=1e-5, rtol=1e-5))
    match_frac = float(jnp.mean((idx == ref_idx).astype(jnp.float32)))
    assert match_frac >= 0.99, match_frac


if __name__ == "__main__":
    in_features, out_features = 3, 32
    hidden_layers = (64, 128)
    seq_len, batch, n_points = 2, 2, 1024

    key = jax.random.PRNGKey(0)
    k_x, k_p = jax.random.split(key)
    x = jax.random.normal(k_x, (seq_len, batch, n_points, in_features), jnp.float32)
    params = init_point_cloud_encoder_params(k_p, in_features, hidden_layers,
                                             out_features)

    # --- default config: single full-extent point tile per batch-tile ----------
    fwd = jax.jit(point_cloud_encoder_forward)
    out, idx = fwd(x, params)
    out = jax.block_until_ready(out)
    idx = jax.block_until_ready(idx)
    assert out.shape == (seq_len, batch, out_features), out.shape
    assert idx.shape == (seq_len, batch, hidden_layers[-1]), idx.shape
    _check(out, idx, x, params, n_points, hidden_layers[-1], out_features)

    # --- small forced-tiling config: streaming max/argmax + ragged mask path ---
    n_points2 = 1000                      # not a multiple of 128 -> ragged last tile
    x2 = jax.random.normal(jax.random.PRNGKey(1), (3, n_points2, in_features),
                           jnp.float32)
    fwd2 = jax.jit(lambda a, p: point_cloud_encoder_forward(a, p, tile_points=256))
    out2, idx2 = fwd2(x2, params)
    out2 = jax.block_until_ready(out2)
    idx2 = jax.block_until_ready(idx2)
    assert out2.shape == (3, out_features), out2.shape
    assert idx2.shape == (3, hidden_layers[-1]), idx2.shape
    _check(out2, idx2, x2, params, n_points2, hidden_layers[-1], out_features)

    print("KERNEL_OK")
</pallas_src>

<mosaic_0001>
module attributes {stable_mosaic.version = 11 : i64} {
  func.func @kernel(%arg0: i32, %arg1: i32, %arg2: memref<2x3x1024xf32, #tpu.memory_space<vmem>>, %arg3: memref<64x3xf32, #tpu.memory_space<vmem>>, %arg4: memref<64x1xf32, #tpu.memory_space<vmem>>, %arg5: memref<128x64xf32, #tpu.memory_space<vmem>>, %arg6: memref<128x1xf32, #tpu.memory_space<vmem>>, %arg7: memref<32x128xf32, #tpu.memory_space<vmem>>, %arg8: memref<32x1xf32, #tpu.memory_space<vmem>>, %arg9: memref<32x1xf32, #tpu.memory_space<vmem>>, %arg10: memref<32x1xf32, #tpu.memory_space<vmem>>, %arg11: memref<1x32x2xf32, #tpu.memory_space<vmem>>, %arg12: memref<1x128x2xi32, #tpu.memory_space<vmem>>, %arg13: memref<128x2xf32, #tpu.memory_space<vmem>>, %arg14: memref<128x2xi32, #tpu.memory_space<vmem>>) attributes {dimension_semantics = [#tpu.dimension_semantics<parallel>, #tpu.dimension_semantics<arbitrary>], iteration_bounds = array<i64: 2, 1>, scalar_prefetch = 0 : i64, scratch_operands = 2 : i64, tpu.core_type = #tpu.core_type<tc>, window_params = [{transform_indices = @transform_0, window_bounds = array<i64: 2, 3, 1024>}, {pipeline_mode = #tpu.pipeline_mode<synchronous>, transform_indices = @transform_1, window_bounds = array<i64: 64, 3>}, {pipeline_mode = #tpu.pipeline_mode<synchronous>, transform_indices = @transform_2, window_bounds = array<i64: 64, 1>}, {pipeline_mode = #tpu.pipeline_mode<synchronous>, transform_indices = @transform_3, window_bounds = array<i64: 128, 64>}, {pipeline_mode = #tpu.pipeline_mode<synchronous>, transform_indices = @transform_4, window_bounds = array<i64: 128, 1>}, {pipeline_mode = #tpu.pipeline_mode<synchronous>, transform_indices = @transform_5, window_bounds = array<i64: 32, 128>}, {pipeline_mode = #tpu.pipeline_mode<synchronous>, transform_indices = @transform_6, window_bounds = array<i64: 32, 1>}, {pipeline_mode = #tpu.pipeline_mode<synchronous>, transform_indices = @transform_7, window_bounds = array<i64: 32, 1>}, {pipeline_mode = #tpu.pipeline_mode<synchronous>, transform_indices = @transform_8, window_bounds = array<i64: 32, 1>}, {transform_indices = @transform_9, window_bounds = array<i64: 1, 32, 2>}, {transform_indices = @transform_10, window_bounds = array<i64: 1, 128, 2>}]} {
    %0 = tpu.iota {dimensions = array<i32: 1>} : vector<128x1024xi32>
    %c0 = arith.constant 0 : index
    %c0_0 = arith.constant 0 : index
    %c0_1 = arith.constant 0 : index
    %1 = vector.load %arg2[%c0, %c0_0, %c0_1] : memref<2x3x1024xf32, #tpu.memory_space<vmem>>, vector<1x3x1024xf32>
    %2 = vector.shape_cast %1 : vector<1x3x1024xf32> to vector<3x1024xf32>
    %c0_2 = arith.constant 0 : index
    %c0_3 = arith.constant 0 : index
    %3 = vector.load %arg3[%c0_2, %c0_3] : memref<64x3xf32, #tpu.memory_space<vmem>>, vector<64x3xf32>
    %4 = vector.extract_strided_slice %3 {offsets = [0, 0], sizes = [64, 1], strides = [1, 1]} : vector<64x3xf32> to vector<64x1xf32>
    %5 = vector.extract_strided_slice %2 {offsets = [0, 0], sizes = [1, 1024], strides = [1, 1]} : vector<3x1024xf32> to vector<1x1024xf32>
    %6 = vector.broadcast %4 : vector<64x1xf32> to vector<64x1024xf32>
    %7 = vector.broadcast %5 : vector<1x1024xf32> to vector<64x1024xf32>
    %8 = arith.mulf %6, %7 : vector<64x1024xf32>
    %c0_4 = arith.constant 0 : index
    %c0_5 = arith.constant 0 : index
    %9 = vector.load %arg4[%c0_4, %c0_5] : memref<64x1xf32, #tpu.memory_space<vmem>>, vector<64x1xf32>
    %10 = vector.broadcast %9 : vector<64x1xf32> to vector<64x1024xf32>
    %11 = arith.addf %8, %10 : vector<64x1024xf32>
    %12 = vector.extract_strided_slice %3 {offsets = [0, 1], sizes = [64, 1], strides = [1, 1]} : vector<64x3xf32> to vector<64x1xf32>
    %13 = vector.extract_strided_slice %2 {offsets = [1, 0], sizes = [1, 1024], strides = [1, 1]} : vector<3x1024xf32> to vector<1x1024xf32>
    %14 = vector.broadcast %12 : vector<64x1xf32> to vector<64x1024xf32>
    %15 = vector.broadcast %13 : vector<1x1024xf32> to vector<64x1024xf32>
    %16 = arith.mulf %14, %15 : vector<64x1024xf32>
    %17 = arith.addf %11, %16 : vector<64x1024xf32>
    %18 = vector.extract_strided_slice %3 {offsets = [0, 2], sizes = [64, 1], strides = [1, 1]} : vector<64x3xf32> to vector<64x1xf32>
    %19 = vector.extract_strided_slice %2 {offsets = [2, 0], sizes = [1, 1024], strides = [1, 1]} : vector<3x1024xf32> to vector<1x1024xf32>
    %20 = vector.broadcast %18 : vector<64x1xf32> to vector<64x1024xf32>
    %21 = vector.broadcast %19 : vector<1x1024xf32> to vector<64x1024xf32>
    %22 = arith.mulf %20, %21 : vector<64x1024xf32>
    %23 = arith.addf %17, %22 : vector<64x1024xf32>
    %cst = arith.constant 0.000000e+00 : f32
    %24 = vector.broadcast %cst : f32 to vector<64x1024xf32>
    %25 = arith.cmpf ogt, %23, %24 : vector<64x1024xf32>
    %cst_6 = arith.constant 0.000000e+00 : f32
    %26 = vector.broadcast %cst_6 : f32 to vector<64x1024xf32>
    %27 = arith.minimumf %23, %26 : vector<64x1024xf32>
    %28 = math.exp %27 : vector<64x1024xf32>
    %cst_7 = arith.constant 1.000000e+00 : f32
    %29 = vector.broadcast %cst_7 : f32 to vector<64x1024xf32>
    %30 = arith.subf %28, %29 : vector<64x1024xf32>
    %31 = arith.select %25, %23, %30 : vector<64x1024xi1>, vector<64x1024xf32>
    %c0_8 = arith.constant 0 : index
    %c0_9 = arith.constant 0 : index
    %32 = vector.load %arg5[%c0_8, %c0_9] : memref<128x64xf32, #tpu.memory_space<vmem>>, vector<128x64xf32>
    %cst_10 = arith.constant dense<0.000000e+00> : vector<128x1024xf32>
    %33 = tpu.matmul %32, %31, %cst_10 {dimension_numbers = #tpu.dot_dimension_numbers<[1], [0], [0], [1], [0, 0, 1, 1], [], []>} : vector<128x64xf32>, vector<64x1024xf32>, vector<128x1024xf32> -> vector<128x1024xf32>
    %c0_11 = arith.constant 0 : index
    %c0_12 = arith.constant 0 : index
    %34 = vector.load %arg6[%c0_11, %c0_12] : memref<128x1xf32, #tpu.memory_space<vmem>>, vector<128x1xf32>
    %35 = vector.broadcast %34 : vector<128x1xf32> to vector<128x1024xf32>
    %36 = arith.addf %33, %35 : vector<128x1024xf32>
    %cst_13 = arith.constant dense<0xFF800000> : vector<128xf32>
    %37 = vector.multi_reduction <maximumf>, %36, %cst_13 [1] : vector<128x1024xf32> to vector<128xf32>
    %38 = vector.shape_cast %37 : vector<128xf32> to vector<128x1xf32>
    %39 = vector.broadcast %38 : vector<128x1xf32> to vector<128x1024xf32>
    %40 = arith.cmpf oeq, %36, %39 : vector<128x1024xf32>
    %c1024_i32 = arith.constant 1024 : i32
    %41 = vector.broadcast %c1024_i32 : i32 to vector<128x1024xi32>
    %42 = arith.select %40, %0, %41 : vector<128x1024xi1>, vector<128x1024xi32>
    %cst_14 = arith.constant dense<2147483647> : vector<128xi32>
    %43 = vector.multi_reduction <minsi>, %42, %cst_14 [1] : vector<128x1024xi32> to vector<128xi32>
    %44 = vector.shape_cast %43 : vector<128xi32> to vector<128x1xi32>
    %c0_15 = arith.constant 0 : index
    %c0_16 = arith.constant 0 : index
    %45 = vector.load %arg13[%c0_15, %c0_16] : memref<128x2xf32, #tpu.memory_space<vmem>>, vector<128x1xf32>
    tpu.vector_store %arg13[%c0_15, %c0_16], %38 {strides = array<i32>} : memref<128x2xf32, #tpu.memory_space<vmem>>, vector<128x1xf32>,
    %c0_17 = arith.constant 0 : index
    %c0_18 = arith.constant 0 : index
    %46 = vector.load %arg14[%c0_17, %c0_18] : memref<128x2xi32, #tpu.memory_space<vmem>>, vector<128x1xi32>
    tpu.vector_store %arg14[%c0_17, %c0_18], %44 {strides = array<i32>} : memref<128x2xi32, #tpu.memory_space<vmem>>, vector<128x1xi32>,
    %c1 = arith.constant 1 : index
    %c0_19 = arith.constant 0 : index
    %c0_20 = arith.constant 0 : index
    %47 = vector.load %arg2[%c1, %c0_19, %c0_20] : memref<2x3x1024xf32, #tpu.memory_space<vmem>>, vector<1x3x1024xf32>
    %48 = vector.shape_cast %47 : vector<1x3x1024xf32> to vector<3x1024xf32>
    %c0_21 = arith.constant 0 : index
    %c0_22 = arith.constant 0 : index
    %49 = vector.load %arg3[%c0_21, %c0_22] : memref<64x3xf32, #tpu.memory_space<vmem>>, vector<64x3xf32>
    %50 = vector.extract_strided_slice %49 {offsets = [0, 0], sizes = [64, 1], strides = [1, 1]} : vector<64x3xf32> to vector<64x1xf32>
    %51 = vector.extract_strided_slice %48 {offsets = [0, 0], sizes = [1, 1024], strides = [1, 1]} : vector<3x1024xf32> to vector<1x1024xf32>
    %52 = vector.broadcast %50 : vector<64x1xf32> to vector<64x1024xf32>
    %53 = vector.broadcast %51 : vector<1x1024xf32> to vector<64x1024xf32>
    %54 = arith.mulf %52, %53 : vector<64x1024xf32>
    %c0_23 = arith.constant 0 : index
    %c0_24 = arith.constant 0 : index
    %55 = vector.load %arg4[%c0_23, %c0_24] : memref<64x1xf32, #tpu.memory_space<vmem>>, vector<64x1xf32>
    %56 = vector.broadcast %55 : vector<64x1xf32> to vector<64x1024xf32>
    %57 = arith.addf %54, %56 : vector<64x1024xf32>
    %58 = vector.extract_strided_slice %49 {offsets = [0, 1], sizes = [64, 1], strides = [1, 1]} : vector<64x3xf32> to vector<64x1xf32>
    %59 = vector.extract_strided_slice %48 {offsets = [1, 0], sizes = [1, 1024], strides = [1, 1]} : vector<3x1024xf32> to vector<1x1024xf32>
    %60 = vector.broadcast %58 : vector<64x1xf32> to vector<64x1024xf32>
    %61 = vector.broadcast %59 : vector<1x1024xf32> to vector<64x1024xf32>
    %62 = arith.mulf %60, %61 : vector<64x1024xf32>
    %63 = arith.addf %57, %62 : vector<64x1024xf32>
    %64 = vector.extract_strided_slice %49 {offsets = [0, 2], sizes = [64, 1], strides = [1, 1]} : vector<64x3xf32> to vector<64x1xf32>
    %65 = vector.extract_strided_slice %48 {offsets = [2, 0], sizes = [1, 1024], strides = [1, 1]} : vector<3x1024xf32> to vector<1x1024xf32>
    %66 = vector.broadcast %64 : vector<64x1xf32> to vector<64x1024xf32>
    %67 = vector.broadcast %65 : vector<1x1024xf32> to vector<64x1024xf32>
    %68 = arith.mulf %66, %67 : vector<64x1024xf32>
    %69 = arith.addf %63, %68 : vector<64x1024xf32>
    %cst_25 = arith.constant 0.000000e+00 : f32
    %70 = vector.broadcast %cst_25 : f32 to vector<64x1024xf32>
    %71 = arith.cmpf ogt, %69, %70 : vector<64x1024xf32>
    %cst_26 = arith.constant 0.000000e+00 : f32
    %72 = vector.broadcast %cst_26 : f32 to vector<64x1024xf32>
    %73 = arith.minimumf %69, %72 : vector<64x1024xf32>
    %74 = math.exp %73 : vector<64x1024xf32>
    %cst_27 = arith.constant 1.000000e+00 : f32
    %75 = vector.broadcast %cst_27 : f32 to vector<64x1024xf32>
    %76 = arith.subf %74, %75 : vector<64x1024xf32>
    %77 = arith.select %71, %69, %76 : vector<64x1024xi1>, vector<64x1024xf32>
    %c0_28 = arith.constant 0 : index
    %c0_29 = arith.constant 0 : index
    %78 = vector.load %arg5[%c0_28, %c0_29] : memref<128x64xf32, #tpu.memory_space<vmem>>, vector<128x64xf32>
    %cst_30 = arith.constant dense<0.000000e+00> : vector<128x1024xf32>
    %79 = tpu.matmul %78, %77, %cst_30 {dimension_numbers = #tpu.dot_dimension_numbers<[1], [0], [0], [1], [0, 0, 1, 1], [], []>} : vector<128x64xf32>, vector<64x1024xf32>, vector<128x1024xf32> -> vector<128x1024xf32>
    %c0_31 = arith.constant 0 : index
    %c0_32 = arith.constant 0 : index
    %80 = vector.load %arg6[%c0_31, %c0_32] : memref<128x1xf32, #tpu.memory_space<vmem>>, vector<128x1xf32>
    %81 = vector.broadcast %80 : vector<128x1xf32> to vector<128x1024xf32>
    %82 = arith.addf %79, %81 : vector<128x1024xf32>
    %cst_33 = arith.constant dense<0xFF800000> : vector<128xf32>
    %83 = vector.multi_reduction <maximumf>, %82, %cst_33 [1] : vector<128x1024xf32> to vector<128xf32>
    %84 = vector.shape_cast %83 : vector<128xf32> to vector<128x1xf32>
    %85 = vector.broadcast %84 : vector<128x1xf32> to vector<128x1024xf32>
    %86 = arith.cmpf oeq, %82, %85 : vector<128x1024xf32>
    %c1024_i32_34 = arith.constant 1024 : i32
    %87 = vector.broadcast %c1024_i32_34 : i32 to vector<128x1024xi32>
    %88 = arith.select %86, %0, %87 : vector<128x1024xi1>, vector<128x1024xi32>
    %cst_35 = arith.constant dense<2147483647> : vector<128xi32>
    %89 = vector.multi_reduction <minsi>, %88, %cst_35 [1] : vector<128x1024xi32> to vector<128xi32>
    %90 = vector.shape_cast %89 : vector<128xi32> to vector<128x1xi32>
    %c0_36 = arith.constant 0 : index
    %c1_37 = arith.constant 1 : index
    %91 = vector.load %arg13[%c0_36, %c1_37] : memref<128x2xf32, #tpu.memory_space<vmem>>, vector<128x1xf32>
    tpu.vector_store %arg13[%c0_36, %c1_37], %84 {strides = array<i32>} : memref<128x2xf32, #tpu.memory_space<vmem>>, vector<128x1xf32>,
    %c0_38 = arith.constant 0 : index
    %c1_39 = arith.constant 1 : index
    %92 = vector.load %arg14[%c0_38, %c1_39] : memref<128x2xi32, #tpu.memory_space<vmem>>, vector<128x1xi32>
    tpu.vector_store %arg14[%c0_38, %c1_39], %90 {strides = array<i32>} : memref<128x2xi32, #tpu.memory_space<vmem>>, vector<128x1xi32>,
    %c0_40 = arith.constant 0 : index
    %c0_41 = arith.constant 0 : index
    %93 = vector.load %arg13[%c0_40, %c0_41] : memref<128x2xf32, #tpu.memory_space<vmem>>, vector<128x2xf32>
    %cst_42 = arith.constant 0.000000e+00 : f32
    %94 = vector.broadcast %cst_42 : f32 to vector<128x2xf32>
    %95 = arith.cmpf ogt, %93, %94 : vector<128x2xf32>
    %cst_43 = arith.constant 0.000000e+00 : f32
    %96 = vector.broadcast %cst_43 : f32 to vector<128x2xf32>
    %97 = arith.minimumf %93, %96 : vector<128x2xf32>
    %98 = math.exp %97 : vector<128x2xf32>
    %cst_44 = arith.constant 1.000000e+00 : f32
    %99 = vector.broadcast %cst_44 : f32 to vector<128x2xf32>
    %100 = arith.subf %98, %99 : vector<128x2xf32>
    %101 = arith.select %95, %93, %100 : vector<128x2xi1>, vector<128x2xf32>
    %c0_45 = arith.constant 0 : index
    %c0_46 = arith.constant 0 : index
    %102 = vector.load %arg7[%c0_45, %c0_46] : memref<32x128xf32, #tpu.memory_space<vmem>>, vector<32x128xf32>
    %cst_47 = arith.constant dense<0.000000e+00> : vector<32x2xf32>
    %103 = tpu.matmul %102, %101, %cst_47 {dimension_numbers = #tpu.dot_dimension_numbers<[1], [0], [0], [1], [0, 0, 1, 1], [], []>} : vector<32x128xf32>, vector<128x2xf32>, vector<32x2xf32> -> vector<32x2xf32>
    %c0_48 = arith.constant 0 : index
    %c0_49 = arith.constant 0 : index
    %104 = vector.load %arg8[%c0_48, %c0_49] : memref<32x1xf32, #tpu.memory_space<vmem>>, vector<32x1xf32>
    %105 = vector.broadcast %104 : vector<32x1xf32> to vector<32x2xf32>
    %106 = arith.addf %103, %105 : vector<32x2xf32>
    %cst_50 = arith.constant dense<0.000000e+00> : vector<2xf32>
    %107 = vector.multi_reduction <add>, %106, %cst_50 [0] : vector<32x2xf32> to vector<2xf32>
    %108 = vector.shape_cast %107 : vector<2xf32> to vector<1x2xf32>
    %cst_51 = arith.constant 3.200000e+01 : f32
    %109 = vector.broadcast %cst_51 : f32 to vector<1x2xf32>
    %110 = arith.divf %108, %109 : vector<1x2xf32>
    %111 = vector.broadcast %110 : vector<1x2xf32> to vector<32x2xf32>
    %112 = arith.subf %106, %111 : vector<32x2xf32>
    %113 = arith.mulf %112, %112 : vector<32x2xf32>
    %cst_52 = arith.constant dense<0.000000e+00> : vector<2xf32>
    %114 = vector.multi_reduction <add>, %113, %cst_52 [0] : vector<32x2xf32> to vector<2xf32>
    %115 = vector.shape_cast %114 : vector<2xf32> to vector<1x2xf32>
    %cst_53 = arith.constant 3.200000e+01 : f32
    %116 = vector.broadcast %cst_53 : f32 to vector<1x2xf32>
    %117 = arith.divf %115, %116 : vector<1x2xf32>
    %118 = vector.broadcast %110 : vector<1x2xf32> to vector<32x2xf32>
    %119 = arith.subf %106, %118 : vector<32x2xf32>
    %cst_54 = arith.constant 9.99999974E-6 : f32
    %120 = vector.broadcast %cst_54 : f32 to vector<1x2xf32>
    %121 = arith.addf %117, %120 : vector<1x2xf32>
    %122 = math.rsqrt %121 : vector<1x2xf32>
    %123 = vector.broadcast %122 : vector<1x2xf32> to vector<32x2xf32>
    %124 = arith.mulf %119, %123 : vector<32x2xf32>
    %c0_55 = arith.constant 0 : index
    %c0_56 = arith.constant 0 : index
    %125 = vector.load %arg9[%c0_55, %c0_56] : memref<32x1xf32, #tpu.memory_space<vmem>>, vector<32x1xf32>
    %126 = vector.broadcast %125 : vector<32x1xf32> to vector<32x2xf32>
    %127 = arith.mulf %124, %126 : vector<32x2xf32>
    %c0_57 = arith.constant 0 : index
    %c0_58 = arith.constant 0 : index
    %128 = vector.load %arg10[%c0_57, %c0_58] : memref<32x1xf32, #tpu.memory_space<vmem>>, vector<32x1xf32>
    %129 = vector.broadcast %128 : vector<32x1xf32> to vector<32x2xf32>
    %130 = arith.addf %127, %129 : vector<32x2xf32>
    %131 = math.tanh %130 : vector<32x2xf32>
    %132 = vector.shape_cast %131 : vector<32x2xf32> to vector<1x32x2xf32>
    %c0_59 = arith.constant 0 : index
    %c0_60 = arith.constant 0 : index
    %c0_61 = arith.constant 0 : index
    %133 = vector.load %arg11[%c0_59, %c0_60, %c0_61] : memref<1x32x2xf32, #tpu.memory_space<vmem>>, vector<1x32x2xf32>
    tpu.vector_store %arg11[%c0_59, %c0_60, %c0_61], %132 {strides = array<i32>} : memref<1x32x2xf32, #tpu.memory_space<vmem>>, vector<1x32x2xf32>,
    %c0_62 = arith.constant 0 : index
    %c0_63 = arith.constant 0 : index
    %134 = vector.load %arg14[%c0_62, %c0_63] : memref<128x2xi32, #tpu.memory_space<vmem>>, vector<128x2xi32>
    %135 = vector.shape_cast %134 : vector<128x2xi32> to vector<1x128x2xi32>
    %c0_64 = arith.constant 0 : index
    %c0_65 = arith.constant 0 : index
    %c0_66 = arith.constant 0 : index
    %136 = vector.load %arg12[%c0_64, %c0_65, %c0_66] : memref<1x128x2xi32, #tpu.memory_space<vmem>>, vector<1x128x2xi32>
    tpu.vector_store %arg12[%c0_64, %c0_65, %c0_66], %135 {strides = array<i32>} : memref<1x128x2xi32, #tpu.memory_space<vmem>>, vector<1x128x2xi32>,
    return
  }
  func.func @transform_0(%arg0: i32, %arg1: i32) -> (i32, i32, i32) {
    %c0_i32 = arith.constant 0 : i32
    %c0_i32_0 = arith.constant 0 : i32
    return %arg0, %c0_i32, %arg1 : i32, i32, i32
  }
  func.func @transform_1(%arg0: i32, %arg1: i32) -> (i32, i32) {
    %c0_i32 = arith.constant 0 : i32
    %c0_i32_0 = arith.constant 0 : i32
    %c0_i32_1 = arith.constant 0 : i32
    return %c0_i32, %c0_i32_0 : i32, i32
  }
  func.func @transform_2(%arg0: i32, %arg1: i32) -> (i32, i32) {
    %c0_i32 = arith.constant 0 : i32
    %c0_i32_0 = arith.constant 0 : i32
    %c0_i32_1 = arith.constant 0 : i32
    return %c0_i32, %c0_i32_0 : i32, i32
  }
  func.func @transform_3(%arg0: i32, %arg1: i32) -> (i32, i32) {
    %c0_i32 = arith.constant 0 : i32
    %c0_i32_0 = arith.constant 0 : i32
    %c0_i32_1 = arith.constant 0 : i32
    return %c0_i32, %c0_i32_0 : i32, i32
  }
  func.func @transform_4(%arg0: i32, %arg1: i32) -> (i32, i32) {
    %c0_i32 = arith.constant 0 : i32
    %c0_i32_0 = arith.constant 0 : i32
    %c0_i32_1 = arith.constant 0 : i32
    return %c0_i32, %c0_i32_0 : i32, i32
  }
  func.func @transform_5(%arg0: i32, %arg1: i32) -> (i32, i32) {
    %c0_i32 = arith.constant 0 : i32
    %c0_i32_0 = arith.constant 0 : i32
    %c0_i32_1 = arith.constant 0 : i32
    return %c0_i32, %c0_i32_0 : i32, i32
  }
  func.func @transform_6(%arg0: i32, %arg1: i32) -> (i32, i32) {
    %c0_i32 = arith.constant 0 : i32
    %c0_i32_0 = arith.constant 0 : i32
    %c0_i32_1 = arith.constant 0 : i32
    return %c0_i32, %c0_i32_0 : i32, i32
  }
  func.func @transform_7(%arg0: i32, %arg1: i32) -> (i32, i32) {
    %c0_i32 = arith.constant 0 : i32
    %c0_i32_0 = arith.constant 0 : i32
    %c0_i32_1 = arith.constant 0 : i32
    return %c0_i32, %c0_i32_0 : i32, i32
  }
  func.func @transform_8(%arg0: i32, %arg1: i32) -> (i32, i32) {
    %c0_i32 = arith.constant 0 : i32
    %c0_i32_0 = arith.constant 0 : i32
    %c0_i32_1 = arith.constant 0 : i32
    return %c0_i32, %c0_i32_0 : i32, i32
  }
  func.func @transform_9(%arg0: i32, %arg1: i32) -> (i32, i32, i32) {
    %c0_i32 = arith.constant 0 : i32
    %c0_i32_0 = arith.constant 0 : i32
    %c0_i32_1 = arith.constant 0 : i32
    return %arg0, %c0_i32, %c0_i32_0 : i32, i32, i32
  }
  func.func @transform_10(%arg0: i32, %arg1: i32) -> (i32, i32, i32) {
    %c0_i32 = arith.constant 0 : i32
    %c0_i32_0 = arith.constant 0 : i32
    %c0_i32_1 = arith.constant 0 : i32
    return %arg0, %c0_i32, %c0_i32_0 : i32, i32, i32
  }
}

</mosaic_0001>

<bundles_post_ra>
// kernel: point_cloud_encoder_forward.1
= control target key start
LH: loop header
LB: loop body
LE: loop exit
PB: predicated region body
PF: predicated region fallthrough
CT: control target
= control target key end

     0   :  { %s6899_s13 = smov 0   ;;  %s6901_s14 = smov 0   ;;  %s13444_s0 = inlined_call_operand.vmem [shape: f32[4,3,1024], index: 0, kind: input, shape index: {}]   ;;  %s13445_s1 = inlined_call_operand.vmem [shape: f32[64,3], index: 1, kind: input, shape index: {}]   ;;  %s13446_s2 = inlined_call_operand.vmem [shape: f32[64,1], index: 2, kind: input, shape index: {}]   ;;  %s13447_s3 = inlined_call_operand.vmem [shape: f32[128,64], index: 3, kind: input, shape index: {}]   ;;  %s13448_s4 = inlined_call_operand.vmem [shape: f32[128,1], index: 4, kind: input, shape index: {}]   ;;  %s13449_s5 = inlined_call_operand.vmem [shape: f32[32,128], index: 5, kind: input, shape index: {}]   ;;  %s13450_s6 = inlined_call_operand.vmem [shape: f32[32,1], index: 6, kind: input, shape index: {}]   ;;  %s13451_s7 = inlined_call_operand.vmem [shape: f32[32,1], index: 7, kind: input, shape index: {}]   ;;  %s13452_s8 = inlined_call_operand.vmem [shape: f32[32,1], index: 8, kind: input, shape index: {}]   ;;  %s13453_s9 = inlined_call_operand.vmem [shape: f32[2,32,2], index: 9, kind: output, shape index: {0}]   ;;  %s13454_s10 = inlined_call_operand.vmem [shape: s32[2,128,2], index: 10, kind: output, shape index: {1}]  }
   0x1   :  { %s6903_s15 = smov 0  }
   0x2 LB: > { %s33_s16 = sadd.s32 1, %s6834_s14  ;;  %p5985_p0 = scmp.ge.s32.totalorder %s6838_s15, 1  ;;  %s6838_s15 = sphi %s6903_s15, %s21_s15   ;;  %s6834_s14 = sphi %s6901_s14, %s14770_s14   ;;  %s6830_s13 = sphi %s6899_s13, %s14769_s13  }
   0x3   : > { %p35_p1 = scmp.ge.s32.totalorder %s33_s16, 2  ;;  %p336_p2 = scmp.lt.s32.totalorder %s6838_s15, 3 }
   0x5   : > { %s14772_s16 = smov (%p35_p1, %s33_s16), 0  ;;  %p337_p3 = pnand %p5985_p0, %p336_p2 }
   0x7   : > { %340 = sbr.rel (%p337_p3) target bundleno = 1840 (0x730), region = 56 }
   0xc   : > { %v6922_v0 = vld [vmem:[%s13446_s2 + $0x38] sm:$0xff]  ;;  %v6927_v1 = vld [vmem:[%s13445_s1 + $0x30] sm:$0xff]  ;;  %v6932_v2 = vld [vmem:[%s13445_s1 + $0x28] sm:$0xff]  ;;  %v13457_v3 = vmov 1   ;;  %v13459_v4 = vmov 0   ;;  %v13455_v8 = vmov 2  }
   0xd   : > { %6449 = vset.pattern.permute.xlu0 %v13457_v3  ;;  %6448 = vset.pattern.permute.xlu2 %v13459_v4  ;;  %v565_v5 = vld [vmem:[%s13446_s2 + $0x30] sm:$0xff]  ;;  %v6946_v6 = vld [vmem:[%s13445_s1 + $0x38] sm:$0xff]  ;;  %v6955_v7 = vld [vmem:[%s13445_s1 + $0x20] sm:$0xff]  ;;  %s5986_s17 = sshll.u32 %s6830_s13, 1  ;;  %p396_p5 = scmp.lt.s32.totalorder %s6830_s13, 1 }
   0xe   : > { %6446 = vset.pattern.permute.xlu1 %v13459_v4  ;;  %696 = vperm.xlu0 %6449, %v6927_v1   ;;  %v6964_v9 = vld [vmem:[%s13445_s1 + $0x10] sm:$0xff]  ;;  %v6970_v10 = vld [vmem:[%s13446_s2 + $0x28] sm:$0xff]  ;;  %v6982_v12 = vld [vmem:[%s13446_s2 + $0x20] sm:$0xff]  ;;  %p386_p4 = scmp.lt.s32.totalorder %s5986_s17, 3 }
   0xf   : > { %604 = vperm.xlu1 %6446, %v6922_v0   ;;  %454 = vperm.xlu2 %6448, %v6932_v2   ;;  %13894 = vst [vmem:[#allocation4_spill] sm:$0xff] %v6964_v9  ;;  %v561_v11 = vld [vmem:[%s13446_s2 + $0x10] sm:$0xff]  ;;  %v6987_v13 = vld [vmem:[%s13445_s1 + $0x18] sm:$0xff]  ;;  %v6995_v14 = vld [vmem:[%s13445_s1] sm:$0xff]  ;;  %s14776_s13 = smov (!%p396_p5, %s6830_s13), 1 }
  0x10   : > { %13895 = vst [vmem:[#allocation5_spill] sm:$0xff] %v6995_v14  ;;  %v7007_v15 = vld [vmem:[%s13446_s2 + $0x18] sm:$0xff]  ;;  %v7016_v16 = vld [vmem:[%s13445_s1 + $0x8] sm:$0xff]  ;;  %v7042_v18 = vld [vmem:[%s13446_s2] sm:$0xff]  ;;  %s14774_s17 = smov (!%p386_p4, %s5986_s17), 3  ;;  %s6401_s23 = sshll.u32 %s14776_s13, 7 }
  0x11   : > { %13896 = vst [vmem:[#allocation6_spill] sm:$0xff] %v7016_v16  ;;  %v7032_v17 = vld [vmem:[%s13446_s2 + $0x8] sm:$0xff]  ;;  %s6399_s18 = sshll.u32 %s14774_s17, 5  ;;  %s6400_s17 = sshll.u32 %s14776_s13, 5 }
  0x12   : > { %13897 = vst [vmem:[#allocation7_spill] sm:$0xff] %v7032_v17  ;;  %s7066_s21 = scalar_lea.vmem %s13444_s0, %s6399_s18  ;;  %s13346_s22 = scalar_lea.vmem %s13453_s9, %s6400_s17 }
  0x13   : > { %13898 = vst [vmem:[#allocation8_spill] sm:$0xff] %v7042_v18  ;;  %v415_v24 = vld [vmem:[%s7066_s21] sm:$0x77]  ;;  %v416_v25 = vld [vmem:[%s7066_s21 + $0x8] sm:$0x77]  ;;  %s13355_s26 = scalar_lea.vmem %s13454_s10, %s6401_s23 }
  0x14   : > { %v7080_v26 = vld [vmem:[%s7066_s21 + $0x10] sm:$0x77]  ;;  %v7083_v27 = vld [vmem:[%s7066_s21 + $0x18] sm:$0x77]  ;;  %v471_v28 = vperm.slane %v415_v24, 0  ;;  %v474_v29 = vperm.slane %v416_v25, 4 }
  0x15   : > { %13904 = vst [vmem:[#allocation14_spill] sm:$0xff] %v7080_v26  ;;  %v472_v31 = vperm.slane %v415_v24, 4  ;;  %v473_v32 = vperm.slane %v416_v25, 0  ;;  %v703_v33 = vperm.slane %v415_v24, 1  ;;  %v475_v34 = vperm.slane %v7080_v26, 0 }
  0x16   : > { %6450 = vset.pattern.permute.xlu0 %v13459_v4  ;;  %v478_v35 = vperm.slane %v7083_v27, 4  ;;  %v706_v36 = vperm.slane %v416_v25, 5  ;;  %v704_v37 = vperm.slane %v415_v24, 5  ;;  %v7090_v38 = vperm.slane %v471_v28, 0 }
  0x17   : > { %6447 = vset.pattern.permute.xlu1 %v13457_v3  ;;  %599 = vperm.xlu2 %6448, %v565_v5   ;;  %v7092_v39 = vperm.slane %v474_v29, 0  ;;  %v887_v40 = vperm.slane %v415_v24, 2  ;;  %v7095_v41 = vperm.slane %v472_v31, 0  ;;  %v7097_v42 = vperm.slane %v473_v32, 0 }
  0x18   : > { %700 = vperm.xlu1 %6447, %v6946_v6   ;;  %464 = vperm.xlu0 %6450, %v6946_v6   ;;  %v705_v43 = vperm.slane %v416_v25, 1  ;;  %v7104_v46 = vperm.slane %v703_v33, 1  ;;  %v890_v47 = vperm.slane %v416_v25, 6  ;;  %v7106_v48 = vperm.slane %v475_v34, 0 }
  0x19   : > { %13906 = vst [vmem:[#allocation16_spill] sm:$0xff] %v7095_v41  ;;  %v7108_v49 = vperm.slane %v478_v35, 0  ;;  %v7114_v52 = vperm.slane %v706_v36, 1  ;;  %v7117_v53 = vperm.slane %v704_v37, 1  ;;  %v888_v55 = vperm.slane %v415_v24, 6 }
  0x1a   : > { %13907 = vst [vmem:[#allocation17_spill] sm:$0xff] %v7097_v42  ;;  %v889_v56 = vperm.slane %v416_v25, 2  ;;  %v707_v57 = vperm.slane %v7080_v26, 1  ;;  %v7122_v58 = vperm.slane %v887_v40, 2  ;;  %v7126_v60 = vperm.slane %v705_v43, 1 }
  0x1b   : > { %13910 = vst [vmem:[#allocation20_spill] sm:$0xff] %v7106_v48  ;;  %v710_v61 = vperm.slane %v7083_v27, 5  ;;  %v894_v25 = vperm.slane %v7083_v27, 6  ;;  %v7146_v31 = vperm.slane %v888_v55, 2 }
  0x1c   : > { %13911 = vst [vmem:[#allocation21_spill] sm:$0xff] %v7108_v49  ;;  %v7148_v32 = vperm.slane %v889_v56, 2  ;;  %v7154_v35 = vperm.slane %v707_v57, 1 }
  0x1d   : > { %13912 = vst [vmem:[#allocation22_spill] sm:$0xff] %v7117_v53  ;;  %v7156_v27 = vperm.slane %v710_v61, 1  ;;  %v7172_v56 = vperm.slane %v894_v25, 2 }
  0x1e   : > { %13913 = vst [vmem:[#allocation23_spill] sm:$0xff] %v7126_v60 }
  0x1f   : > { %449 = vperm.xlu2 %6448, %v6955_v7   ;;  %13915 = vst [vmem:[#allocation25_spill] sm:$0xff] %v7148_v32 }
  0x20   : > { %6451 = vset.pattern.permute.xlu1 %v13455_v8  ;;  %459 = vperm.xlu0 %6450, %v6927_v1   ;;  %13916 = vst [vmem:[#allocation26_spill] sm:$0xff] %v7154_v35 }
  0x21   : > { %884 = vperm.xlu1 %6451, %v6946_v6   ;;  %13917 = vst [vmem:[#allocation27_spill] sm:$0xff] %v7156_v27 }
  0x22   : > { %13921 = vst [vmem:[#allocation31_spill] sm:$0xff] %v7172_v56 }
  0x27   : > { %6453 = vset.pattern.permute.xlu2 %v13457_v3 }
  0x28   : > { %692 = vperm.xlu2 %6453, %v6932_v2   ;;  %439 = vperm.xlu0 %6450, %v6964_v9  }
  0x29   : > { %6452 = vset.pattern.permute.xlu1 %v13459_v4 }
  0x2a   : > { %594 = vperm.xlu1 %6452, %v6970_v10  }
  0x30   : > { %6454 = vset.pattern.permute.xlu2 %v13459_v4  ;;  %579 = vperm.xlu0 %6450, %v561_v11  }
  0x31   : > { %589 = vperm.xlu2 %6454, %v6982_v12  }
  0x32   : > { %444 = vperm.xlu1 %6452, %v6987_v13  }
  0x38   : > { %429 = vperm.xlu0 %6450, %v6995_v14  }
  0x39   : > { %6456 = vset.pattern.permute.xlu2 %v13455_v8 }
  0x3a   : > { %6455 = vset.pattern.permute.xlu1 %v13457_v3  ;;  %876 = vperm.xlu2 %6456, %v6932_v2  }
  0x3b   : > { %688 = vperm.xlu1 %6455, %v6955_v7  }
  0x40   : > { %6463 = vset.pattern.permute.xlu0 %v13455_v8 }
  0x41   : > { %880 = vperm.xlu0 %6463, %v6927_v1  }
  0x42   : > { %6458 = vset.pattern.permute.xlu2 %v13457_v3 }
  0x43   : > { %6457 = vset.pattern.permute.xlu1 %v13459_v4  ;;  %684 = vperm.xlu2 %6458, %v6987_v13  }
  0x44   : > { %584 = vperm.xlu1 %6457, %v7007_v15  }
  0x49   : > { %864 = vperm.xlu0 %6463, %v6964_v9  }
  0x4b   : > { %6460 = vset.pattern.permute.xlu2 %v13459_v4 }
  0x4c   : > { %6459 = vset.pattern.permute.xlu1 %v13455_v8  ;;  %434 = vperm.xlu2 %6460, %v7016_v16  }
  0x4d   : > { %872 = vperm.xlu1 %6459, %v6955_v7  }
  0x51   : > { %6468 = vset.pattern.permute.xlu0 %v13459_v4 }
  0x52   : > { %3035 = vperm.xlu0 %6468, %v6946_v6  }
  0x54   : > { %6462 = vset.pattern.permute.xlu2 %v13455_v8 }
  0x55   : > { %6461 = vset.pattern.permute.xlu1 %v13457_v3  ;;  %868 = vperm.xlu2 %6462, %v6987_v13  }
  0x56   : > { %680 = vperm.xlu1 %6461, %v6964_v9  }
  0x5a   : > { %3170 = vperm.xlu0 %6468, %v565_v5  }
  0x5d   : > { %6465 = vset.pattern.permute.xlu2 %v13457_v3 }
  0x5e   : > { %6464 = vset.pattern.permute.xlu1 %v13459_v4  ;;  %676 = vperm.xlu2 %6465, %v7016_v16  }
  0x5f   : > { %574 = vperm.xlu1 %6464, %v7032_v17  }
  0x62   : > { %3020 = vperm.xlu0 %6468, %v6955_v7  }
  0x66   : > { %672 = vperm.xlu2 %6465, %v6995_v14  }
  0x67   : > { %569 = vperm.xlu1 %6464, %v7042_v18  }
  0x69   : > { %v7046_v19 = vpop.permute.xlu2 %454 }
  0x6a   : > { %13899 = vst [vmem:[#allocation9_spill] sm:$0xff] %v7046_v19  ;;  %3010 = vperm.xlu0 %6468, %v6964_v9  }
  0x6e   : > { %6467 = vset.pattern.permute.xlu2 %v13455_v8 }
  0x6f   : > { %6466 = vset.pattern.permute.xlu1 %v13455_v8  ;;  %856 = vperm.xlu2 %6467, %v6995_v14  }
  0x70   : > { %860 = vperm.xlu1 %6466, %v7016_v16  }
  0x71   : > { %v7054_v20 = vpop.permute.xlu2 %599 }
  0x72   : > { %13900 = vst [vmem:[#allocation10_spill] sm:$0xff] %v7054_v20  ;;  %3150 = vperm.xlu0 %6468, %v561_v11  }
  0x77   : > { %6470 = vset.pattern.permute.xlu2 %v13459_v4 }
  0x78   : > { %6469 = vset.pattern.permute.xlu1 %v13459_v4  ;;  %3175 = vperm.xlu2 %6470, %v6922_v0   ;;  %v7131_v0 = vperm.slane %v890_v47, 2 }
  0x79   : > { %3030 = vperm.xlu1 %6469, %v6927_v1   ;;  %v7061_v21 = vpop.permute.xlu2 %449 }
  0x7a   : > { %3000 = vperm.xlu0 %6468, %v6995_v14   ;;  %13901 = vst [vmem:[#allocation11_spill] sm:$0xff] %v7061_v21 }
  0x80   : > { %v7068_v22 = vpop.permute.xlu0 %696  ;;  %3025 = vperm.xlu2 %6470, %v6932_v2  }
  0x81   : > { %13902 = vst [vmem:[#allocation12_spill] sm:$0xff] %v7068_v22  ;;  %v7071_v23 = vpop.permute.xlu1 %604  ;;  %6471 = vset.pattern.permute.xlu1 %v13457_v3  ;;  %v7265_v16 = vmul.f32 %v7154_v35, %v7068_v22 }
  0x82   : > { %13903 = vst [vmem:[#allocation13_spill] sm:$0xff] %v7071_v23  ;;  %3271 = vperm.xlu1 %6471, %v6946_v6   ;;  %6484 = vset.pattern.permute.xlu0 %v13455_v8  ;;  %v7085_v30 = vpop.permute.xlu2 %692 }
  0x83   : > { %3451 = vperm.xlu0 %6484, %v6927_v1   ;;  %13905 = vst [vmem:[#allocation15_spill] sm:$0xff] %v7085_v30 }
  0x88   : > { %6472 = vset.pattern.permute.xlu2 %v13455_v8 }
  0x89   : > { %3455 = vperm.xlu2 %6472, %v6946_v6  }
  0x8a   : > { %v7099_v44 = vpop.permute.xlu1 %700  ;;  %v7101_v45 = vpop.permute.xlu0 %464  ;;  %3267 = vperm.xlu1 %6471, %v6927_v1   ;;  %v891_v1 = vperm.slane %v7080_v26, 2 }
  0x8b   : > { %13908 = vst [vmem:[#allocation18_spill] sm:$0xff] %v7099_v44  ;;  %v551_v50 = vmul.f32 %v7090_v38, %v7101_v45  ;;  %v554_v51 = vmul.f32 %v7092_v39, %v7101_v45  ;;  %3435 = vperm.xlu0 %6484, %v6964_v9   ;;  %v552_v54 = vmul.f32 %v7095_v41, %v7101_v45  ;;  %v7134_v5 = vpop.permute.xlu2 %589 }
  0x8c   : > { %13909 = vst [vmem:[#allocation19_spill] sm:$0xff] %v7101_v45  ;;  %v553_v59 = vmul.f32 %v7097_v42, %v7101_v45  ;;  %v555_v11 = vmul.f32 %v7106_v48, %v7101_v45  ;;  %v558_v24 = vmul.f32 %v7108_v49, %v7101_v45  ;;  %v783_v28 = vmul.f32 %v7104_v46, %v7099_v44 }
  0x8d   : > { %v663_v62 = vadd.f32 %v7071_v23, %v551_v50  ;;  %v666_v63 = vadd.f32 %v7071_v23, %v554_v51  ;;  %13914 = vst [vmem:[#allocation24_spill] sm:$0xff] %v7134_v5  ;;  %v664_v6 = vadd.f32 %v7071_v23, %v552_v54  ;;  %v786_v29 = vmul.f32 %v7114_v52, %v7099_v44 }
  0x8e   : > { %v784_v33 = vmul.f32 %v7117_v53, %v7099_v44  ;;  %v665_v34 = vadd.f32 %v7071_v23, %v553_v59  ;;  %v785_v43 = vmul.f32 %v7126_v60, %v7099_v44  ;;  %v7164_v47 = vperm.slane %v891_v1, 2 }
  0x8f   : > { %v847_v37 = vadd.f32 %v783_v28, %v663_v62  ;;  %v850_v40 = vadd.f32 %v786_v29, %v666_v63  ;;  %v667_v54 = vadd.f32 %v7071_v23, %v555_v11  ;;  %v670_v55 = vadd.f32 %v7071_v23, %v558_v24 }
  0x90   : > { %13919 = vst [vmem:[#allocation29_spill] sm:$0xff] %v7164_v47  ;;  %v848_v51 = vadd.f32 %v784_v33, %v664_v6  ;;  %v849_v62 = vadd.f32 %v785_v43, %v665_v34  ;;  %v787_v63 = vmul.f32 %v7154_v35, %v7099_v44  ;;  %v790_v24 = vmul.f32 %v7156_v27, %v7099_v44 }
  0x91   : > { %6474 = vset.pattern.permute.xlu2 %v13457_v3  ;;  %v535_v28 = vmul.f32 %v7090_v38, %v7046_v19  ;;  %v775_v44 = vmul.f32 %v7104_v46, %v7068_v22  ;;  %v7247_v45 = vmul.f32 %v7117_v53, %v7068_v22 }
  0x92   : > { %v7158_v36 = vpop.permute.xlu0 %459  ;;  %6473 = vset.pattern.permute.xlu1 %v13459_v4  ;;  %3263 = vperm.xlu2 %6474, %v6932_v2   ;;  %v851_v43 = vadd.f32 %v787_v63, %v667_v54  ;;  %v767_v63 = vmul.f32 %v7104_v46, %v7085_v30 }
  0x93   : > { %13918 = vst [vmem:[#allocation28_spill] sm:$0xff] %v7158_v36  ;;  %v7166_v50 = vpop.permute.xlu1 %884  ;;  %3165 = vperm.xlu1 %6473, %v6970_v10   ;;  %6489 = vset.pattern.permute.xlu0 %v13459_v4 }
  0x94   : > { %13920 = vst [vmem:[#allocation30_spill] sm:$0xff] %v7166_v50  ;;  %v967_v57 = vmul.f32 %v7122_v58, %v7166_v50  ;;  %v970_v59 = vmul.f32 %v7131_v0, %v7166_v50  ;;  %v968_v61 = vmul.f32 %v7146_v31, %v7166_v50  ;;  %v969_v10 = vmul.f32 %v7148_v32, %v7166_v50  ;;  %v7192_v25 = vpop.permute.xlu2 %876 }
  0x95   : > { %13922 = vst [vmem:[#allocation32_spill] sm:$0xff] %v7192_v25  ;;  %v971_v33 = vmul.f32 %v7164_v47, %v7166_v50  ;;  %v974_v34 = vmul.f32 %v7172_v56, %v7166_v50  ;;  %v954_v17 = vmul.f32 %v7131_v0, %v7192_v25  ;;  %v13928_v47 = vmov 2  }
  0x96   : > { %v7184_v1 = vadd.f32 %v967_v57, %v847_v37  ;;  %v7186_v6 = vadd.f32 %v970_v59, %v850_v40  ;;  %v7188_v11 = vadd.f32 %v968_v61, %v848_v51  ;;  %v7196_v29 = vadd.f32 %v969_v10, %v849_v62 }
  0x97   : > { %v854_v51 = vadd.f32 %v790_v24, %v670_v55  ;;  %v538_v57 = vmul.f32 %v7092_v39, %v7046_v19  ;;  %v7209_v61 = vmul.f32 %v7095_v41, %v7046_v19  ;;  %v7213_v10 = vmul.f32 %v7097_v42, %v7046_v19 }
  0x98   : > { %v1159_v37 = vmin.f32 %v7184_v1, 0.0  ;;  %v1162_v40 = vmin.f32 %v7186_v6, 0.0  ;;  %v1160_v59 = vmin.f32 %v7188_v11, 0.0  ;;  %v7218_v54 = vadd.f32 %v971_v33, %v851_v43 }
  0x99   : > { %v7220_v55 = vadd.f32 %v974_v34, %v854_v51  ;;  %v527_v24 = vmul.f32 %v7090_v38, %v7061_v21  ;;  %v951_v33 = vmul.f32 %v7122_v58, %v7192_v25  ;;  %vm1095_vm0 = vcmp.gt.f32.partialorder %v7184_v1, 0.0 }
  0x9a   : > { %v7215_v62 = vpop.permute.xlu0 %439  ;;  %v1279_v8 = vmul.f32 1.442695, %v1159_v37  ;;  %v1285_v3 = vmul.f32 1.442695, %v1162_v40  ;;  %6475 = vset.pattern.permute.xlu2 %v13459_v4  ;;  %v530_v37 = vmul.f32 %v7092_v39, %v7061_v21  ;;  %v1161_v40 = vmin.f32 %v7196_v29, 0.0 }
  0x9b   : > { %13923 = vst [vmem:[#allocation33_spill] sm:$0xff] %v7215_v62  ;;  %3015 = vperm.xlu1 %6473, %v6987_v13   ;;  %3160 = vperm.xlu2 %6475, %v6982_v12   ;;  %v770_v12 = vmul.f32 %v7114_v52, %v7085_v30  ;;  %v1163_v34 = vmin.f32 %v7218_v54, 0.0  ;;  %v1166_v50 = vmin.f32 %v7220_v55, 0.0  ;;  %v1281_v23 = vmul.f32 1.442695, %v1160_v59 }
  0x9c   : > { %v7231_v4 = vpop.permute.xlu1 %594  ;;  %6492 = vpow2.f32 %v1279_v8  ;;  %v778_v8 = vmul.f32 %v7114_v52, %v7068_v22  ;;  %v1283_v14 = vmul.f32 1.442695, %v1161_v40  ;;  %v7259_v59 = vmul.f32 %v7126_v60, %v7068_v22 }
  0x9d   : > { %13924 = vst [vmem:[#allocation34_spill] sm:$0xff] %v7231_v4  ;;  %6494 = vpow2.f32 %v1285_v3  ;;  %v647_v43 = vadd.f32 %v7231_v4, %v535_v28  ;;  %v650_v51 = vadd.f32 %v7231_v4, %v538_v57  ;;  %v7249_v26 = vpop.permute.xlu2 %684  ;;  %v543_v3 = vmul.f32 %v7090_v38, %v7158_v36 }
  0x9e   : > { %13925 = vst [vmem:[#allocation35_spill] sm:$0xff] %v7249_v26  ;;  %v546_v28 = vmul.f32 %v7092_v39, %v7158_v36  ;;  %v1287_v21 = vmul.f32 1.442695, %v1163_v34  ;;  %v1293_v56 = vmul.f32 1.442695, %v1166_v50  ;;  %6496 = vpow2.f32 %v1281_v23 }
  0x9f   : > { %v831_v57 = vadd.f32 %v767_v63, %v647_v43  ;;  %v834_v18 = vadd.f32 %v770_v12, %v650_v51  ;;  %v7269_v63 = vmul.f32 %v7106_v48, %v7046_v19  ;;  %v544_v34 = vmul.f32 %v7095_v41, %v7158_v36 }
  0xa0   : > { %v7281_v50 = vmul.f32 %v7108_v49, %v7046_v19  ;;  %v13927_v51 = vmov 1   ;;  %v655_v35 = vadd.f32 %v7054_v20, %v543_v3  ;;  %v658_v23 = vadd.f32 %v7054_v20, %v546_v28 }
  0xa1   : > { %v7261_v9 = vadd.f32 %v951_v33, %v831_v57  ;;  %v7277_v33 = vmul.f32 %v7156_v27, %v7068_v22  ;;  %6498 = vpow2.f32 %v1283_v14  ;;  %v7292_v19 = vadd.f32 %v954_v17, %v834_v18 }
  0xa2   : > { %v6493_v40 = vpop.eup %6492  ;;  %v7271_v12 = vpop.permute.xlu0 %579  ;;  %6500 = vpow2.f32 %v1287_v21  ;;  %vm1098_vm1 = vcmp.gt.f32.partialorder %v7186_v6, 0.0  ;;  %v7299_v28 = vadd.f32 %v7134_v5, %v527_v24  ;;  %v768_v17 = vmul.f32 %v7117_v53, %v7085_v30 }
  0xa3   : > { %13926 = vst [vmem:[#allocation36_spill] sm:$0xff] %v7271_v12  ;;  %v6495_v43 = vpop.eup %6494  ;;  %6476 = vset.pattern.permute.xlu1 %v13927_v51  ;;  %v6049_v57 = vadd.f32 -1.0, %v6493_v40  ;;  %6477 = vset.pattern.permute.xlu2 %v13928_v47  ;;  %v1143_v3 = vmin.f32 %v7261_v9, 0.0  ;;  %6502 = vpow2.f32 %v1293_v56  ;;  %v769_v18 = vmul.f32 %v7126_v60, %v7085_v30 }
  0xa4   : > { %v7287_v41 = vpop.permute.xlu1 %444  ;;  %3259 = vperm.xlu1 %6476, %v6955_v7   ;;  %v6052_v22 = vadd.f32 -1.0, %v6495_v43  ;;  %3447 = vperm.xlu2 %6477, %v6932_v2   ;;  %v7302_v43 = vadd.f32 %v7134_v5, %v530_v37  ;;  %v7304_v2 = vadd.f32 %v775_v44, %v655_v35  ;;  %v6497_v21 = vpop.eup %6496  ;;  %v1146_v56 = vmin.f32 %v7292_v19, 0.0 }
  0xa5   : > { %13929 = vst [vmem:[#allocation37_spill] sm:$0xff] %v7287_v41  ;;  %v1415_v40 = vsel %vm1095_vm0, %v7184_v1, %v6049_v57  ;;  %v545_v1 = vmul.f32 %v7097_v42, %v7158_v36  ;;  %v7318_v35 = vadd.f32 %v778_v8, %v658_v23  ;;  %v1247_v37 = vmul.f32 1.442695, %v1143_v3 }
  0xa6   : > { %1592 = vmatpush.msra.mxu0 %v1415_v40  ;;  %6402 = vmatpush.msra.mxu1 %v1415_v40  ;;  %v1418_v14 = vsel %vm1098_vm1, %v7186_v6, %v6052_v22  ;;  %13930 = vst [vmem:[#allocation38_spill] sm:$0xff] %v7302_v43  ;;  %v656_v22 = vadd.f32 %v7054_v20, %v544_v34  ;;  %v7316_v44 = vpop.permute.xlu2 %434  ;;  %vm1096_vm2 = vcmp.gt.f32.partialorder %v7188_v11, 0.0  ;;  %vm1097_vm3 = vcmp.gt.f32.partialorder %v7196_v29, 0.0 }
  0xa7   : > { %6403 = vmatpush.msra.mxu2 %v1415_v40  ;;  %1787 = vmatpush.msra.mxu3 %v1418_v14  ;;  %v547_v6 = vmul.f32 %v7106_v48, %v7158_v36  ;;  %v6499_v24 = vpop.eup %6498  ;;  %13931 = vst [vmem:[#allocation39_spill] sm:$0xff] %v7316_v44  ;;  %v511_v34 = vmul.f32 %v7090_v38, %v7215_v62  ;;  %vm1099_vm4 = vcmp.gt.f32.partialorder %v7218_v54, 0.0  ;;  %vm1102_vm5 = vcmp.gt.f32.partialorder %v7220_v55, 0.0 }
  0xa8   : > { %v6501_v57 = vpop.eup %6500  ;;  %v514_v14 = vmul.f32 %v7092_v39, %v7215_v62  ;;  %v7332_v23 = vmul.f32 %v7104_v46, %v7249_v26  ;;  %v7336_v3 = vmul.f32 %v7114_v52, %v7249_v26  ;;  %v550_v5 = vmul.f32 %v7108_v49, %v7158_v36 }
  0xa9   : > { %v6503_v8 = vpop.eup %6502  ;;  %v648_v60 = vadd.f32 %v7231_v4, %v7209_v61  ;;  %v13933_v62 = vmov 0   ;;  %v1253_v53 = vmul.f32 1.442695, %v1146_v56  ;;  %v7345_v48 = vadd.f32 %v7247_v45, %v656_v22 }
  0xaa   : > { %v7322_v40 = vpop.permute.xlu0 %429  ;;  %v657_v42 = vadd.f32 %v7054_v20, %v545_v1  ;;  %v659_v27 = vadd.f32 %v7054_v20, %v547_v6  ;;  %6504 = vpow2.f32 %v1247_v37  ;;  %v6050_v61 = vadd.f32 -1.0, %v6497_v21 }
  0xab   : > { %13932 = vst [vmem:[#allocation40_spill] sm:$0xff] %v7322_v40  ;;  %v6051_v36 = vadd.f32 -1.0, %v6499_v24  ;;  %v6053_v49 = vadd.f32 -1.0, %v6501_v57  ;;  %v519_v56 = vmul.f32 %v7090_v38, %v7287_v41  ;;  %v7356_v45 = vadd.f32 %v7271_v12, %v511_v34 }
  0xac   : > { %6478 = vset.pattern.permute.xlu1 %v13933_v62  ;;  %6479 = vset.pattern.permute.xlu2 %v13927_v51  ;;  %v7359_v22 = vadd.f32 %v7271_v12, %v514_v14  ;;  %v6056_v1 = vadd.f32 -1.0, %v6503_v8  ;;  %v662_v6 = vadd.f32 %v7054_v20, %v550_v5  ;;  %v832_v43 = vadd.f32 %v768_v17, %v648_v60  ;;  %v13942_v8 = vld [vmem:[#allocation29_spill] sm:$0xff]  ;;  %v13944_v20 = vld [vmem:[#allocation6_spill] sm:$0xff] }
  0xad   : > { %v7349_v26 = vpop.permute.xlu1 %688  ;;  %3155 = vperm.xlu1 %6478, %v7007_v15   ;;  %3255 = vperm.xlu2 %6479, %v6987_v13   ;;  %v952_v15 = vmul.f32 %v7146_v31, %v7192_v25  ;;  %v649_v21 = vadd.f32 %v7231_v4, %v7213_v10  ;;  %6506 = vpow2.f32 %v1253_v53  ;;  %v522_v24 = vmul.f32 %v7092_v39, %v7287_v41 }
  0xae   : > { %13934 = vst [vmem:[#allocation41_spill] sm:$0xff] %v7349_v26  ;;  %v7370_v37 = vmul.f32 %v7090_v38, %v7316_v44  ;;  %v7374_v57 = vmul.f32 %v7092_v39, %v7316_v44  ;;  %v7379_v60 = vsel %vm1096_vm2, %v7188_v11, %v6050_v61  ;;  %v7384_v53 = vsel %vm1097_vm3, %v7196_v29, %v6051_v36 }
  0xaf   : > { %13935 = vst [vmem:[#allocation42_spill] sm:$0xff] %v7379_v60  ;;  %v7389_v5 = vsel %vm1099_vm4, %v7218_v54, %v6053_v49  ;;  %v841_v10 = vadd.f32 %v7259_v59, %v657_v42  ;;  %v7394_v17 = vmul.f32 %v7090_v38, %v7322_v40  ;;  %v7398_v11 = vmul.f32 %v7092_v39, %v7322_v40  ;;  %v7408_v54 = vpop.permute.xlu2 %868 }
  0xb0   : > { %13936 = vst [vmem:[#allocation43_spill] sm:$0xff] %v7384_v53  ;;  %v7403_v36 = vsel %vm1102_vm5, %v7220_v55, %v6056_v1  ;;  %v843_v29 = vadd.f32 %v7265_v16, %v659_v27  ;;  %v6505_v34 = vpop.eup %6504  ;;  %v7411_v42 = vadd.f32 %v7277_v33, %v662_v6  ;;  %v7413_v38 = vadd.f32 %v952_v15, %v832_v43  ;;  %v13941_v43 = vld [vmem:[#allocation26_spill] sm:$0xff] }
  0xb1   : > { %13937 = vst [vmem:[#allocation44_spill] sm:$0xff] %v7389_v5  ;;  %v833_v59 = vadd.f32 %v769_v18, %v649_v21  ;;  %v953_v39 = vmul.f32 %v7148_v32, %v7192_v25  ;;  %v651_v14 = vadd.f32 %v7231_v4, %v7269_v63  ;;  %vm1079_vm6 = vcmp.gt.f32.partialorder %v7261_v9, 0.0 }
  0xb2   : > { %13938 = vst [vmem:[#allocation45_spill] sm:$0xff] %v7403_v36  ;;  %v759_v33 = vmul.f32 %v7104_v46, %v7349_v26  ;;  %v771_v18 = vmul.f32 %v13941_v43, %v7085_v30  ;;  %v955_v61 = vmul.f32 %v13942_v8, %v7192_v25  ;;  %v6033_v21 = vadd.f32 -1.0, %v6505_v34 }
  0xb3   : > { %v7406_v49 = vpop.permute.xlu0 %880  ;;  %13940 = vst [vmem:[#allocation47_spill] sm:$0xff] %v7408_v54  ;;  %v6507_v1 = vpop.eup %6506  ;;  %vm1082_vm7 = vcmp.gt.f32.partialorder %v7292_v19, 0.0  ;;  %v935_v40 = vmul.f32 %v7122_v58, %v7408_v54  ;;  %v1144_v53 = vmin.f32 %v7413_v38, 0.0  ;;  %vm1080_vm10 = vcmp.gt.f32.partialorder %v7413_v38, 0.0 }
  0xb4   : > { %13939 = vst [vmem:[#allocation46_spill] sm:$0xff] %v7406_v49  ;;  %v959_v55 = vmul.f32 %v7122_v58, %v7406_v49  ;;  %v962_v16 = vmul.f32 %v7131_v0, %v7406_v49  ;;  %v960_v27 = vmul.f32 %v7146_v31, %v7406_v49  ;;  %v6036_v5 = vadd.f32 -1.0, %v6507_v1  ;;  %v13948_v1 = vld [vmem:[#allocation4_spill] sm:$0xff] }
  0xb5   : > { %6480 = vset.pattern.permute.xlu1 %v13928_v47  ;;  %6481 = vset.pattern.permute.xlu2 %v13933_v62 }
  0xb6   : > { %v7434_v6 = vpop.permute.xlu1 %584  ;;  %3443 = vperm.xlu1 %6480, %v6955_v7   ;;  %v7438_v63 = vadd.f32 %v959_v55, %v7304_v2  ;;  %v7441_v15 = vadd.f32 %v962_v16, %v7318_v35  ;;  %3005 = vperm.xlu2 %6481, %v13944_v20   ;;  %v938_v7 = vmul.f32 %v7131_v0, %v7408_v54 }
  0xb7   : > { %13943 = vst [vmem:[#allocation26_spill] sm:$0xff] %v7434_v6  ;;  %v631_v44 = vadd.f32 %v7434_v6, %v519_v56  ;;  %v634_v36 = vadd.f32 %v7434_v6, %v522_v24  ;;  %v961_v2 = vmul.f32 %v7148_v32, %v7406_v49  ;;  %v762_v55 = vmul.f32 %v7114_v52, %v7349_v26 }
  0xb8   : > { %v1151_v35 = vmin.f32 %v7438_v63, 0.0  ;;  %v1154_v34 = vmin.f32 %v7441_v15, 0.0  ;;  %v7458_v16 = vadd.f32 %v960_v27, %v7345_v48  ;;  %v963_v54 = vmul.f32 %v13942_v8, %v7406_v49 }
  0xb9   : > { %v815_v56 = vadd.f32 %v7332_v23, %v631_v44  ;;  %v818_v24 = vadd.f32 %v7336_v3, %v634_v36  ;;  %v7465_v6 = vadd.f32 %v953_v39, %v833_v59  ;;  %v7471_v48 = vadd.f32 %v961_v2, %v841_v10  ;;  %v13945_v23 = vld [vmem:[#allocation31_spill] sm:$0xff]  ;;  %v13946_v39 = vld [vmem:[#allocation38_spill] sm:$0xff] }
  0xba   : > { %v1263_v60 = vmul.f32 1.442695, %v1151_v35  ;;  %v1269_v12 = vmul.f32 1.442695, %v1154_v34  ;;  %v835_v27 = vadd.f32 %v771_v18, %v651_v14  ;;  %v1152_v44 = vmin.f32 %v7458_v16, 0.0 }
  0xbb   : > { %v7467_v32 = vadd.f32 %v935_v40, %v815_v56  ;;  %v7469_v41 = vadd.f32 %v938_v7, %v818_v24  ;;  %v966_v3 = vmul.f32 %v13945_v23, %v7406_v49  ;;  %v7478_v36 = vadd.f32 %v7231_v4, %v7281_v50  ;;  %v13957_v49 = vld [vmem:[#allocation8_spill] sm:$0xff] }
  0xbc   : > { %6508 = vpow2.f32 %v1263_v60  ;;  %v7483_v40 = vsel %vm1079_vm6, %v7261_v9, %v6033_v21  ;;  %v1249_v59 = vmul.f32 1.442695, %v1144_v53  ;;  %v823_v60 = vadd.f32 %v759_v33, %v7299_v28  ;;  %v7501_v53 = vpop.permute.xlu2 %676 }
  0xbd   : > { %6510 = vpow2.f32 %v1269_v12  ;;  %v1127_v10 = vmin.f32 %v7467_v32, 0.0  ;;  %v826_v14 = vadd.f32 %v762_v55, %v13946_v39  ;;  %v1130_v18 = vmin.f32 %v7469_v41, 0.0  ;;  %13949 = vst [vmem:[#allocation6_spill] sm:$0xff] %v7501_v53 }
  0xbe   : > { %6482 = vset.pattern.permute.xlu1 %v13927_v51  ;;  %6483 = vset.pattern.permute.xlu2 %v13928_v47  ;;  %v7491_v50 = vadd.f32 %v963_v54, %v843_v29  ;;  %v7499_v9 = vsel %vm1082_vm7, %v7292_v19, %v6036_v5  ;;  %v1153_v28 = vmin.f32 %v7471_v48, 0.0  ;;  %v1145_v33 = vmin.f32 %v7465_v6, 0.0 }
  0xbf   : > { %v7493_v12 = vpop.permute.xlu1 %872  ;;  %3251 = vperm.xlu1 %6482, %v13948_v1   ;;  %3439 = vperm.xlu2 %6483, %v6987_v13   ;;  %v7506_v21 = vadd.f32 %v955_v61, %v835_v27  ;;  %v1265_v7 = vmul.f32 1.442695, %v1152_v44  ;;  %v7513_v19 = vadd.f32 %v966_v3, %v7411_v42  ;;  %v1215_v5 = vmul.f32 1.442695, %v1127_v10  ;;  %v13950_v13 = vld [vmem:[#allocation27_spill] sm:$0xff]  ;;  %v1439_v44 = vld [vmem:[%s13448_s4] sm:$0xff] }
  0xc0   : > { %13947 = vst [vmem:[#allocation29_spill] sm:$0xff] %v7493_v12  ;;  %v943_v29 = vmul.f32 %v7122_v58, %v7493_v12  ;;  %v946_v54 = vmul.f32 %v7131_v0, %v7493_v12  ;;  %6512 = vpow2.f32 %v1249_v59  ;;  %v774_v2 = vmul.f32 %v13950_v13, %v7085_v30  ;;  %v13951_v10 = vld [vmem:[#allocation11_spill] sm:$0xff]  ;;  %v13952_v59 = vld [vmem:[#allocation16_spill] sm:$0xff]  ;;  %1457 = vperm.xlu0 %6489, %v1439_v44  }
  0xc1   : > { %v7519_v35 = vmul.f32 %v13945_v23, %v7192_v25  ;;  %v1221_v56 = vmul.f32 1.442695, %v1130_v18  ;;  %v1155_v24 = vmin.f32 %v7491_v50, 0.0  ;;  %vm1087_vm8 = vcmp.gt.f32.partialorder %v7438_v63, 0.0 }
  0xc2   : > { %v6509_v61 = vpop.eup %6508  ;;  %v7521_v34 = vadd.f32 %v943_v29, %v823_v60  ;;  %v7523_v55 = vadd.f32 %v946_v54, %v826_v14  ;;  %v1267_v3 = vmul.f32 1.442695, %v1153_v28  ;;  %v7532_v39 = vmul.f32 %v13952_v59, %v13951_v10  ;;  %v7538_v29 = vpop.permute.xlu0 %864 }
  0xc3   : > { %v6511_v27 = vpop.eup %6510  ;;  %v6041_v42 = vadd.f32 -1.0, %v6509_v61  ;;  %6514 = vpow2.f32 %v1265_v7  ;;  %v1158_v18 = vmin.f32 %v7513_v19, 0.0  ;;  %vm1090_vm9 = vcmp.gt.f32.partialorder %v7441_v15, 0.0 }
  0xc4   : > { %v6044_v60 = vadd.f32 -1.0, %v6511_v27  ;;  %v1135_v14 = vmin.f32 %v7521_v34, 0.0  ;;  %v1138_v54 = vmin.f32 %v7523_v55, 0.0  ;;  %6516 = vpow2.f32 %v1215_v5 }
  0xc5   : > { %v1407_v1 = vsel %vm1087_vm8, %v7438_v63, %v6041_v42  ;;  %6518 = vpow2.f32 %v1221_v56  ;;  %v1271_v27 = vmul.f32 1.442695, %v1155_v24  ;;  %v1251_v63 = vmul.f32 1.442695, %v1145_v33  ;;  %v13953_v24 = vld [vmem:[#allocation7_spill] sm:$0xff]  ;;  %v7552_v33 = vpop.permute.xlu2 %672 }
  0xc6   : > { %1593 = vmatpush.msra.mxu0 %v1407_v1  ;;  %6404 = vmatpush.msra.mxu1 %v1407_v1  ;;  %v1410_v28 = vsel %vm1090_vm9, %v7441_v15, %v6044_v60  ;;  %v1231_v61 = vmul.f32 1.442695, %v1135_v14  ;;  %v6513_v44 = vpop.eup %6512  ;;  %v1237_v7 = vmul.f32 1.442695, %v1138_v54  ;;  %6520 = vpow2.f32 %v1267_v3  ;;  %13954 = vst [vmem:[#allocation31_spill] sm:$0xff] %v7552_v33  ;;  %v13956_v54 = vld [vmem:[#allocation20_spill] sm:$0xff] }
  0xc7   : > { %6405 = vmatpush.msra.mxu2 %v1407_v1  ;;  %1788 = vmatpush.msra.mxu3 %v1410_v28  ;;  %v1147_v42 = vmin.f32 %v7506_v21, 0.0  ;;  %v927_v15 = vmul.f32 %v7122_v58, %v7538_v29  ;;  %v1277_v5 = vmul.f32 1.442695, %v1158_v18  ;;  %v838_v56 = vadd.f32 %v774_v2, %v7478_v36  ;;  %v13955_v2 = vld [vmem:[#allocation17_spill] sm:$0xff] }
  0xc8   : > { %6485 = vset.pattern.permute.xlu1 %v13933_v62  ;;  %v7544_v4 = vpop.permute.xlu1 %680  ;;  %1594 = vmatpush.msra.mxu0 %v7483_v40  ;;  %6522 = vpow2.f32 %v1231_v61  ;;  %v930_v14 = vmul.f32 %v7131_v0, %v7538_v29  ;;  %v7564_v36 = vmul.f32 %v7104_v46, %v7501_v53  ;;  %v7569_v18 = vmul.f32 %v13955_v2, %v13951_v10 }
  0xc9   : > { %3145 = vperm.xlu1 %6485, %v13953_v24   ;;  %6406 = vmatpush.msra.mxu1 %v7483_v40  ;;  %6524 = vpow2.f32 %v1237_v7  ;;  %v743_v3 = vmul.f32 %v7104_v46, %v7544_v4  ;;  %v746_v60 = vmul.f32 %v7114_v52, %v7544_v4  ;;  %v6515_v1 = vpop.eup %6514  ;;  %v7573_v28 = vmul.f32 %v13956_v54, %v13951_v10 }
  0xca   : > { %6407 = vmatpush.msra.mxu2 %v7483_v40  ;;  %1789 = vmatpush.msra.mxu3 %v7499_v9  ;;  %6526 = vpow2.f32 %v1271_v27  ;;  %v6517_v61 = vpop.eup %6516  ;;  %v7580_v27 = vmul.f32 %v7114_v52, %v7501_v53  ;;  %vm1088_vm11 = vcmp.gt.f32.partialorder %v7458_v16, 0.0  ;;  %v1255_v24 = vmul.f32 1.442695, %v1147_v42 }
  0xcb   : > { %v807_v40 = vadd.f32 %v743_v3, %v7356_v45  ;;  %v810_v9 = vadd.f32 %v746_v60, %v7359_v22  ;;  %6486 = vset.pattern.permute.xlu2 %v13927_v51  ;;  %6528 = vpow2.f32 %v1251_v63  ;;  %v6519_v7 = vpop.eup %6518  ;;  %v7585_v25 = vadd.f32 %v7519_v35, %v838_v56 }
  0xcc   : > { %3247 = vperm.xlu2 %6486, %v13944_v20   ;;  %6530 = vpow2.f32 %v1277_v5  ;;  %v6521_v45 = vpop.eup %6520  ;;  %vm1063_vm12 = vcmp.gt.f32.partialorder %v7467_v32, 0.0  ;;  %vm1066_vm13 = vcmp.gt.f32.partialorder %v7469_v41, 0.0  ;;  %vm1089_vm14 = vcmp.gt.f32.partialorder %v7471_v48, 0.0 }
  0xcd   : > { %v7589_v51 = vadd.f32 %v927_v15, %v807_v40  ;;  %v7591_v22 = vadd.f32 %v930_v14, %v810_v9  ;;  %vm1071_vm15 = vcmp.gt.f32.partialorder %v7521_v34, 0.0  ;;  %v7597_v42 = vmul.f32 %v7104_v46, %v7552_v33 }
  0xce   : > { %v6523_v63 = vpop.eup %6522  ;;  %v7601_v35 = vmul.f32 %v7114_v52, %v7552_v33  ;;  %vm1091_vm0 = vcmp.gt.f32.partialorder %v7491_v50, 0.0  ;;  %v6034_v5 = vadd.f32 -1.0, %v6513_v44  ;;  %v6017_v3 = vadd.f32 -1.0, %v6517_v61 }
  0xcf   : > { %v6525_v15 = vpop.eup %6524  ;;  %v6025_v56 = vadd.f32 -1.0, %v6523_v63  ;;  %v6020_v60 = vadd.f32 -1.0, %v6519_v7  ;;  %v1119_v14 = vmin.f32 %v7589_v51, 0.0  ;;  %v1122_v30 = vmin.f32 %v7591_v22, 0.0 }
  0xd0   : > { %v6527_v40 = vpop.eup %6526  ;;  %v6028_v9 = vadd.f32 -1.0, %v6525_v15  ;;  %vm1081_vm1 = vcmp.gt.f32.partialorder %v7465_v6, 0.0  ;;  %6532 = vpow2.f32 %v1255_v24  ;;  %v1150_v46 = vmin.f32 %v7585_v25, 0.0 }
  0xd1   : > { %v6529_v52 = vpop.eup %6528  ;;  %3140 = vperm.xlu1 %6485, %v13957_v49   ;;  %v7609_v33 = vpop.permute.xlu1 %574  ;;  %v1391_v44 = vsel %vm1071_vm15, %v7521_v34, %v6025_v56  ;;  %vm1074_vm2 = vcmp.gt.f32.partialorder %v7523_v55, 0.0  ;;  %v1199_v61 = vmul.f32 1.442695, %v1119_v14  ;;  %v6042_v7 = vadd.f32 -1.0, %v6515_v1  ;;  %v13960_v14 = vld [vmem:[#allocation23_spill] sm:$0xff] }
  0xd2   : > { %v6531_v63 = vpop.eup %6530  ;;  %1595 = vmatpush.msra.mxu0 %v1391_v44  ;;  %6408 = vmatpush.msra.mxu1 %v1391_v44  ;;  %v1394_v24 = vsel %vm1074_vm2, %v7523_v55, %v6028_v9  ;;  %v1205_v15 = vmul.f32 1.442695, %v1122_v30  ;;  %v6043_v53 = vadd.f32 -1.0, %v6521_v45  ;;  %vm1094_vm3 = vcmp.gt.f32.partialorder %v7513_v19, 0.0  ;;  %v7620_v34 = vpop.permute.xlu2 %856  ;;  %v1444_v9 = vld [vmem:[%s13448_s4 + $0x28] sm:$0xff] }
  0xd3   : > { %6409 = vmatpush.msra.mxu2 %v1391_v44  ;;  %1790 = vmatpush.msra.mxu3 %v1394_v24  ;;  %v1383_v49 = vsel %vm1063_vm12, %v7467_v32, %v6017_v3  ;;  %13958 = vst [vmem:[#allocation38_spill] sm:$0xff] %v7620_v34  ;;  %6534 = vpow2.f32 %v1199_v61  ;;  %v6045_v56 = vadd.f32 -1.0, %v6527_v40  ;;  %v7625_v1 = vsel %vm1080_vm10, %v7413_v38, %v6034_v5  ;;  %v13959_v32 = vld [vmem:[#allocation22_spill] sm:$0xff] }
  0xd4   : > { %1596 = vmatpush.msra.mxu0 %v1383_v49  ;;  %6410 = vmatpush.msra.mxu1 %v1383_v49  ;;  %v1386_v30 = vsel %vm1066_vm13, %v7469_v41, %v6020_v60  ;;  %6536 = vpow2.f32 %v1205_v15  ;;  %vm1083_vm4 = vcmp.gt.f32.partialorder %v7506_v21, 0.0  ;;  %v1261_v55 = vmul.f32 1.442695, %v1150_v46  ;;  %v13961_v60 = vld [vmem:[#allocation5_spill] sm:$0xff] }
  0xd5   : > { %v760_v45 = vmul.f32 %v13959_v32, %v7349_v26  ;;  %6411 = vmatpush.msra.mxu2 %v1383_v49  ;;  %1791 = vmatpush.msra.mxu3 %v1386_v30  ;;  %v7636_v38 = vsel %vm1088_vm11, %v7458_v16, %v6042_v7  ;;  %v6048_v5 = vadd.f32 -1.0, %v6531_v63  ;;  %v6035_v3 = vadd.f32 -1.0, %v6529_v52  ;;  %v13962_v52 = vld [vmem:[#allocation24_spill] sm:$0xff] }
  0xd6   : > { %v761_v40 = vmul.f32 %v13960_v14, %v7349_v26  ;;  %v6533_v41 = vpop.eup %6532  ;;  %3243 = vperm.xlu2 %6486, %v13961_v60   ;;  %v911_v46 = vmul.f32 %v7122_v58, %v7620_v34  ;;  %v914_v44 = vmul.f32 %v7131_v0, %v7620_v34  ;;  %v7651_v16 = vsel %vm1089_vm14, %v7471_v48, %v6043_v53  ;;  %v13964_v60 = vld [vmem:[#allocation14_spill] sm:$0xff] }
  0xd7   : > { %v640_v61 = vadd.f32 %v13962_v52, %v7532_v39  ;;  %v615_v7 = vadd.f32 %v7609_v33, %v7370_v37  ;;  %v618_v63 = vadd.f32 %v7609_v33, %v7374_v57  ;;  %1482 = vperm.xlu0 %6489, %v1444_v9   ;;  %v7662_v24 = vsel %vm1091_vm0, %v7491_v50, %v6045_v56 }
  0xd8   : > { %v641_v15 = vadd.f32 %v13962_v52, %v7569_v18  ;;  %vm1055_vm5 = vcmp.gt.f32.partialorder %v7589_v51, 0.0  ;;  %vm1058_vm6 = vcmp.gt.f32.partialorder %v7591_v22, 0.0  ;;  %6538 = vpow2.f32 %v1261_v55 }
  0xd9   : > { %v824_v48 = vadd.f32 %v760_v45, %v640_v61  ;;  %v6535_v53 = vpop.eup %6534  ;;  %6487 = vset.pattern.permute.xlu1 %v13928_v47  ;;  %v7669_v37 = vpop.permute.xlu1 %569  ;;  %v7674_v57 = vsel %vm1094_vm3, %v7513_v19, %v6048_v5  ;;  %v7679_v50 = vsel %vm1081_vm1, %v7465_v6, %v6035_v3  ;;  %v6037_v39 = vadd.f32 -1.0, %v6533_v41  ;;  %v13963_v3 = vld [vmem:[#allocation21_spill] sm:$0xff] }
  0xda   : > { %v825_v18 = vadd.f32 %v761_v40, %v641_v15  ;;  %v6537_v49 = vpop.eup %6536  ;;  %3431 = vperm.xlu1 %6487, %v13944_v20   ;;  %v6009_v56 = vadd.f32 -1.0, %v6535_v53  ;;  %v607_v30 = vadd.f32 %v7669_v37, %v7394_v17  ;;  %v610_v55 = vadd.f32 %v7669_v37, %v7398_v11  ;;  %v6792_v15 = vld [vmem:[%s13445_s1] sm:$0xff] }
  0xdb   : > { %v643_v19 = vadd.f32 %v13962_v52, %v7573_v28  ;;  %v6012_v45 = vadd.f32 -1.0, %v6537_v49  ;;  %v799_v5 = vadd.f32 %v7564_v36, %v615_v7  ;;  %v802_v6 = vadd.f32 %v7580_v27, %v618_v63  ;;  %v13965_v7 = vld [vmem:[#allocation37_spill] sm:$0xff]  ;;  %v1447_v53 = vld [vmem:[%s13448_s4 + $0x40] sm:$0xff] }
  0xdc   : > { %v534_v40 = vmul.f32 %v13963_v3, %v13951_v10  ;;  %v1375_v20 = vsel %vm1055_vm5, %v7589_v51, %v6009_v56  ;;  %v791_v17 = vadd.f32 %v7597_v42, %v607_v30  ;;  %v794_v41 = vadd.f32 %v7601_v35, %v610_v55  ;;  %v13966_v55 = vld [vmem:[#allocation25_spill] sm:$0xff] }
  0xdd   : > { %v763_v11 = vmul.f32 %v13941_v43, %v7349_v26  ;;  %1597 = vmatpush.msra.mxu0 %v1375_v20  ;;  %6412 = vmatpush.msra.mxu1 %v1375_v20  ;;  %v1378_v36 = vsel %vm1058_vm6, %v7591_v22, %v6012_v45  ;;  %v7705_v28 = vsel %vm1083_vm4, %v7506_v21, %v6037_v39  ;;  %vm1086_vm7 = vcmp.gt.f32.partialorder %v7585_v25, 0.0 }
  0xde   : > { %v944_v27 = vmul.f32 %v7146_v31, %v7493_v12  ;;  %v6539_v51 = vpop.eup %6538  ;;  %6413 = vmatpush.msra.mxu2 %v1375_v20  ;;  %1792 = vmatpush.msra.mxu3 %v1378_v36  ;;  %v7710_v42 = vadd.f32 %v911_v46, %v791_v17  ;;  %v7712_v35 = vadd.f32 %v914_v44, %v794_v41  ;;  %v476_v9 = vperm.slane %v13964_v60, 4  ;;  %v1440_v44 = vld [vmem:[%s13448_s4 + $0x8] sm:$0xff] }
  0xdf   : > { %v766_v22 = vmul.f32 %v13950_v13, %v7349_v26  ;;  %6488 = vset.pattern.permute.xlu2 %v13928_v47  ;;  %v646_v61 = vadd.f32 %v13962_v52, %v534_v40  ;;  %v520_v63 = vmul.f32 %v13952_v59, %v13965_v7  ;;  %v521_v46 = vmul.f32 %v13955_v2, %v13965_v7 }
  0xe0   : > { %v7718_v21 = vadd.f32 %v944_v27, %v824_v48  ;;  %3427 = vperm.xlu2 %6488, %v6792_v15   ;;  %v1103_v47 = vmin.f32 %v7710_v42, 0.0  ;;  %v1106_v48 = vmin.f32 %v7712_v35, 0.0  ;;  %v827_v39 = vadd.f32 %v763_v11, %v643_v19  ;;  %1497 = vperm.xlu0 %6489, %v1447_v53  }
  0xe1   : > { %v523_v49 = vmul.f32 %v13956_v54, %v13965_v7  ;;  %v6040_v56 = vadd.f32 -1.0, %v6539_v51  ;;  %v945_v45 = vmul.f32 %v13966_v55, %v7493_v12  ;;  %v947_v40 = vmul.f32 %v13942_v8, %v7493_v12 }
  0xe2   : > { %v1136_v30 = vmin.f32 %v7718_v21, 0.0  ;;  %v7743_v20 = vpop.permute.xlu1 %860  ;;  %6490 = vset.pattern.permute.xlu1 %v13933_v62  ;;  %v1167_v17 = vmul.f32 1.442695, %v1103_v47  ;;  %v830_v41 = vadd.f32 %v766_v22, %v646_v61  ;;  %v950_v19 = vmul.f32 %v13945_v23, %v7493_v12 }
  0xe3   : > { %v7748_v11 = vperm.slane %v476_v9, 0  ;;  %1462 = vperm.xlu1 %6490, %v1440_v44   ;;  %v919_v36 = vmul.f32 %v7122_v58, %v7743_v20  ;;  %v922_v27 = vmul.f32 %v7131_v0, %v7743_v20  ;;  %v1173_v51 = vmul.f32 1.442695, %v1106_v48  ;;  %v13968_v0 = vld [vmem:[#allocation19_spill] sm:$0xff]  ;;  %v1441_v44 = vld [vmem:[%s13448_s4 + $0x10] sm:$0xff] }
  0xe4   : > { %v7754_v60 = vadd.f32 %v945_v45, %v825_v18  ;;  %v1233_v15 = vmul.f32 1.442695, %v1136_v30  ;;  %v7756_v53 = vadd.f32 %v947_v40, %v827_v39  ;;  %v7758_v47 = vadd.f32 %v950_v19, %v830_v41  ;;  %v1442_v40 = vld [vmem:[%s13448_s4 + $0x18] sm:$0xff] }
  0xe5   : > { %13967 = vst [vmem:[#allocation4_spill] sm:$0xff] %v7748_v11  ;;  %v526_v22 = vmul.f32 %v13963_v3, %v13965_v7  ;;  %v7762_v9 = vadd.f32 %v919_v36, %v799_v5  ;;  %v7764_v61 = vadd.f32 %v922_v27, %v802_v6  ;;  %v7769_v58 = vsel %vm1086_vm7, %v7585_v25, %v6040_v56  ;;  %v13970_v6 = vld [vmem:[#allocation33_spill] sm:$0xff]  ;;  %v13971_v56 = vld [vmem:[#allocation26_spill] sm:$0xff]  ;;  %v13972_v7 = vld [vmem:[#allocation35_spill] sm:$0xff] }
  0xe6   : > { %v7773_v18 = vmul.f32 %v7748_v11, %v13968_v0  ;;  %6540 = vpow2.f32 %v1167_v17  ;;  %v1137_v48 = vmin.f32 %v7754_v60, 0.0  ;;  %v1139_v5 = vmin.f32 %v7756_v53, 0.0 }
  0xe7   : > { %v512_v39 = vmul.f32 %v13952_v59, %v13970_v6  ;;  %v1111_v30 = vmin.f32 %v7762_v9, 0.0  ;;  %v1114_v25 = vmin.f32 %v7764_v61, 0.0  ;;  %6542 = vpow2.f32 %v1173_v51  ;;  %v13973_v51 = vld [vmem:[#allocation47_spill] sm:$0xff] }
  0xe8   : > { %13969 = vst [vmem:[#allocation27_spill] sm:$0xff] %v7773_v18  ;;  %v632_v45 = vadd.f32 %v13971_v56, %v520_v63  ;;  %6491 = vset.pattern.permute.xlu2 %v13933_v62  ;;  %6544 = vpow2.f32 %v1233_v15  ;;  %v1235_v17 = vmul.f32 1.442695, %v1137_v48  ;;  %v1239_v41 = vmul.f32 1.442695, %v1139_v5 }
  0xe9   : > { %v1142_v19 = vmin.f32 %v7758_v47, 0.0  ;;  %v1183_v36 = vmul.f32 1.442695, %v1111_v30  ;;  %v1189_v27 = vmul.f32 1.442695, %v1114_v25  ;;  %1467 = vperm.xlu2 %6491, %v1441_v44   ;;  %v752_v12 = vmul.f32 %v13959_v32, %v13972_v7 }
  0xea   : > { %v936_v63 = vmul.f32 %v7146_v31, %v13973_v51  ;;  %6546 = vpow2.f32 %v1235_v17  ;;  %v633_v52 = vadd.f32 %v13971_v56, %v521_v46  ;;  %v753_v62 = vmul.f32 %v13960_v14, %v13972_v7 }
  0xeb   : > { %v1245_v26 = vmul.f32 1.442695, %v1142_v19  ;;  %1472 = vperm.xlu1 %6490, %v1442_v40   ;;  %6548 = vpow2.f32 %v1183_v36  ;;  %v816_v15 = vadd.f32 %v752_v12, %v632_v45  ;;  %v937_v48 = vmul.f32 %v13966_v55, %v13973_v51  ;;  %v13974_v12 = vld [vmem:[#allocation36_spill] sm:$0xff] }
  0xec   : > { %v7801_v44 = vmul.f32 %v13955_v2, %v13970_v6  ;;  %v6541_v5 = vpop.eup %6540  ;;  %6550 = vpow2.f32 %v1189_v27  ;;  %vm1039_vm8 = vcmp.gt.f32.partialorder %v7710_v42, 0.0  ;;  %v817_v30 = vadd.f32 %v753_v62, %v633_v52 }
  0xed   : > { %v635_v46 = vadd.f32 %v13971_v56, %v523_v49  ;;  %v6543_v25 = vpop.eup %6542  ;;  %vm1042_vm9 = vcmp.gt.f32.partialorder %v7712_v35, 0.0  ;;  %6552 = vpow2.f32 %v1239_v41  ;;  %v7806_v40 = vadd.f32 %v936_v63, %v816_v15  ;;  %v1445_v63 = vld [vmem:[%s13448_s4 + $0x30] sm:$0xff] }
  0xee   : > { %v624_v45 = vadd.f32 %v13974_v12, %v512_v39  ;;  %v6545_v17 = vpop.eup %6544  ;;  %vm1047_vm10 = vcmp.gt.f32.partialorder %v7762_v9, 0.0  ;;  %vm1535_vm11 = vcmask 523264   ;;  %vm1072_vm12 = vcmp.gt.f32.partialorder %v7718_v21, 0.0 }
  0xef   : > { %vm1073_vm13 = vcmp.gt.f32.partialorder %v7754_v60, 0.0  ;;  %6554 = vpow2.f32 %v1245_v26  ;;  %v7812_v52 = vadd.f32 %v937_v48, %v817_v30  ;;  %v755_v49 = vmul.f32 %v13941_v43, %v13972_v7 }
  0xf0   : > { %vm1050_vm14 = vcmp.gt.f32.partialorder %v7764_v61, 0.0  ;;  %v5993_v41 = vadd.f32 -1.0, %v6541_v5  ;;  %v1128_v19 = vmin.f32 %v7806_v40, 0.0  ;;  %v939_v39 = vmul.f32 %v13942_v8, %v13973_v51  ;;  %v6547_v36 = vpop.eup %6546 }
  0xf1   : > { %v5996_v27 = vadd.f32 -1.0, %v6543_v25  ;;  %v1129_v26 = vmin.f32 %v7812_v52, 0.0  ;;  %v819_v62 = vadd.f32 %v755_v49, %v635_v46  ;;  %v638_v15 = vadd.f32 %v13971_v56, %v526_v22  ;;  %v6549_v48 = vpop.eup %6548 }
  0xf2   : > { %v6026_v30 = vadd.f32 -1.0, %v6545_v17  ;;  %vm1075_vm15 = vcmp.gt.f32.partialorder %v7756_v53, 0.0  ;;  %v1217_v5 = vmul.f32 1.442695, %v1128_v19  ;;  %v758_v10 = vmul.f32 %v13950_v13, %v13972_v7  ;;  %v6551_v11 = vpop.eup %6550 }
  0xf3   : > { %v942_v25 = vmul.f32 %v13945_v23, %v13973_v51  ;;  %v6001_v0 = vadd.f32 -1.0, %v6549_v48  ;;  %v1219_v18 = vmul.f32 1.442695, %v1129_v26  ;;  %v7830_v34 = vadd.f32 %v939_v39, %v819_v62  ;;  %v6553_v22 = vpop.eup %6552  ;;  %1487 = vperm.xlu1 %6490, %v1445_v63   ;;  %v7878_v62 = vld [vmem:[%s7066_s21 + $0x10] sm:$0x77] }
  0xf4   : > { %v744_v46 = vmul.f32 %v13959_v32, %v7544_v4  ;;  %v6004_v49 = vadd.f32 -1.0, %v6551_v11  ;;  %v6027_v17 = vadd.f32 -1.0, %v6547_v36  ;;  %6556 = vpow2.f32 %v1217_v5 }
  0xf5   : > { %v822_v19 = vadd.f32 %v758_v10, %v638_v15  ;;  %v6555_v56 = vpop.eup %6554  ;;  %v1367_v7 = vsel %vm1047_vm10, %v7762_v9, %v6001_v0  ;;  %v1359_v26 = vsel %vm1039_vm8, %v7710_v42, %v5993_v41  ;;  %vm1078_vm0 = vcmp.gt.f32.partialorder %v7758_v47, 0.0  ;;  %v7853_v42 = vld [vmem:[%s13447_s3] sm:$0xff]  ;;  %v1436_v0 = vld [vmem:[%s13447_s3 + $0x68] sm:$0xff] }
  0xf6   : > { %6558 = vpow2.f32 %v1219_v18  ;;  %1598 = vmatpush.msra.mxu0 %v1367_v7  ;;  %6414 = vmatpush.msra.mxu1 %v1367_v7  ;;  %v1370_v11 = vsel %vm1050_vm14, %v7764_v61, %v6004_v49  ;;  %v1362_v10 = vsel %vm1042_vm9, %v7712_v35, %v5996_v27  ;;  %v1131_v39 = vmin.f32 %v7830_v34, 0.0 }
  0xf7   : > { %v7848_v9 = vadd.f32 %v942_v25, %v822_v19  ;;  %6415 = vmatpush.msra.mxu2 %v1367_v7  ;;  %1793 = vmatpush.msra.mxu3 %v1370_v11  ;;  %v6029_v61 = vadd.f32 -1.0, %v6553_v22  ;;  %v6032_v18 = vadd.f32 -1.0, %v6555_v56  ;;  %v808_v41 = vadd.f32 %v744_v46, %v624_v45  ;;  %v13975_v25 = vld [vmem:[#allocation42_spill] sm:$0xff]  ;;  %v13976_v46 = vld [vmem:[#allocation43_spill] sm:$0xff] }
  0xf8   : > { %v928_v35 = vmul.f32 %v7146_v31, %v7538_v29  ;;  %1599 = vmatpush.msra.mxu0 %v1359_v26  ;;  %6416 = vmatpush.msra.mxu1 %v1359_v26  ;;  %v1392_v7 = vsel %vm1072_vm12, %v7718_v21, %v6026_v30  ;;  %v7866_v36 = vsel %vm1073_vm13, %v7754_v60, %v6027_v17  ;;  %v1223_v27 = vmul.f32 1.442695, %v1131_v39 }
  0xf9   : > { %v1134_v63 = vmin.f32 %v7848_v9, 0.0  ;;  %6417 = vmatpush.msra.mxu2 %v1359_v26  ;;  %1794 = vmatpush.msra.mxu3 %v1362_v10  ;;  %vm1064_vm1 = vcmp.gt.f32.partialorder %v7806_v40, 0.0  ;;  %vm1065_vm2 = vcmp.gt.f32.partialorder %v7812_v52, 0.0  ;;  %v625_v45 = vadd.f32 %v13974_v12, %v7801_v44  ;;  %v13977_v26 = vld [vmem:[#allocation44_spill] sm:$0xff]  ;;  %v13978_v10 = vld [vmem:[#allocation45_spill] sm:$0xff] }
  0xfa   : > { %v7871_v56 = vadd.f32 %v928_v35, %v808_v41  ;;  %v745_v21 = vmul.f32 %v13960_v14, %v7544_v4  ;;  %v708_v60 = vperm.slane %v7878_v62, 5  ;;  %v6557_v15 = vpop.eup %6556  ;;  %6057 = vmatmul.msk.f32.vlgmr.msra.gmra.mxu0 %vm1535_vm11, %v7853_v42  ;;  %6070 = vmatmul.msk.f32.vlgmr.msra.gmra.mxu1 %vm1535_vm11, %v1436_v0  ;;  %6560 = vpow2.f32 %v1223_v27 }
  0xfb   : > { %v1229_v48 = vmul.f32 1.442695, %v1134_v63  ;;  %v929_v30 = vmul.f32 %v13966_v55, %v7538_v29  ;;  %v515_v44 = vmul.f32 %v13956_v54, %v13970_v6  ;;  %1657 = vmatpush.msrb.mxu1 %v13975_v25  ;;  %1722 = vmatpush.msrb.mxu2 %v13976_v46  ;;  %v1395_v22 = vsel %vm1075_vm15, %v7756_v53, %v6029_v61 }
  0xfc   : > { %v6559_v5 = vpop.eup %6558  ;;  %v1398_v49 = vsel %vm1078_vm0, %v7758_v47, %v6032_v18  ;;  %vm1067_vm3 = vcmp.gt.f32.partialorder %v7830_v34, 0.0  ;;  %v1120_v17 = vmin.f32 %v7871_v56, 0.0  ;;  %v809_v19 = vadd.f32 %v745_v21, %v625_v45  ;;  %6105 = vmatmul.msk.f32.vlgmr.msra.gmra.mxu3 %vm1535_vm11, %v7853_v42  ;;  %1852 = vmatpush.msrb.mxu0 %v13977_v26 }
  0xfd   : > { %vm1070_vm4 = vcmp.gt.f32.partialorder %v7848_v9, 0.0  ;;  %6562 = vpow2.f32 %v1229_v48  ;;  %v627_v11 = vadd.f32 %v13974_v12, %v515_v44  ;;  %v747_v53 = vmul.f32 %v13941_v43, %v7544_v4  ;;  %2047 = vmatpush.msrb.mxu3 %v13978_v10  ;;  %1658 = vmatpush.msrb.mxu1 %v7636_v38  ;;  %v13979_v48 = vld [vmem:[#allocation39_spill] sm:$0xff]  ;;  %v13980_v44 = vld [vmem:[#allocation6_spill] sm:$0xff] }
  0xfe   : > { %v1201_v47 = vmul.f32 1.442695, %v1120_v17  ;;  %v7907_v39 = vadd.f32 %v929_v30, %v809_v19  ;;  %v931_v0 = vmul.f32 %v13942_v8, %v7538_v29  ;;  %v7911_v61 = vperm.slane %v708_v60, 1  ;;  %1723 = vmatpush.msrb.mxu2 %v7651_v16  ;;  %1853 = vmatpush.msrb.mxu0 %v7662_v24  ;;  %v1438_v24 = vld [vmem:[%s13447_s3 + $0x78] sm:$0xff] }
  0xff   : > { %v6018_v18 = vadd.f32 -1.0, %v6557_v15  ;;  %v6019_v41 = vadd.f32 -1.0, %v6559_v5  ;;  %v811_v35 = vadd.f32 %v747_v53, %v627_v11  ;;  %v518_v27 = vmul.f32 %v13963_v3, %v13970_v6  ;;  %2048 = vmatpush.msrb.mxu3 %v7674_v57  ;;  %1659 = vmatpush.msrb.mxu1 %v7625_v1 }
 0x100   : > { %vm1056_vm5 = vcmp.gt.f32.partialorder %v7871_v56, 0.0  ;;  %6564 = vpow2.f32 %v1201_v47  ;;  %v1121_v38 = vmin.f32 %v7907_v39, 0.0  ;;  %v750_v16 = vmul.f32 %v13950_v13, %v7544_v4  ;;  %v6561_v63 = vpop.eup %6560  ;;  %1724 = vmatpush.msrb.mxu2 %v7679_v50  ;;  %1854 = vmatpush.msrb.mxu0 %v7705_v28  ;;  %v1448_v50 = vld [vmem:[%s13448_s4 + $0x48] sm:$0xff] }
 0x101   : > { %v7928_v57 = vadd.f32 %v931_v0, %v811_v35  ;;  %v630_v1 = vadd.f32 %v13974_v12, %v518_v27  ;;  %v934_v45 = vmul.f32 %v13945_v23, %v7538_v29  ;;  %v892_v21 = vperm.slane %v7878_v62, 6  ;;  %2049 = vmatpush.msrb.mxu3 %v7769_v58  ;;  %1660 = vmatpush.msrb.mxu1 %v1392_v7  ;;  %v7941_v28 = vld [vmem:[%s13447_s3 + $0x8] sm:$0xff]  ;;  %v1437_v58 = vld [vmem:[%s13447_s3 + $0x70] sm:$0xff]  ;;  %v1450_v0 = vld [vmem:[%s13448_s4 + $0x58] sm:$0xff] }
 0x102   : > { %v6021_v60 = vadd.f32 -1.0, %v6561_v63  ;;  %v1203_v15 = vmul.f32 1.442695, %v1121_v38  ;;  %v504_v30 = vmul.f32 %v13952_v59, %v13979_v48  ;;  %v736_v62 = vmul.f32 %v13959_v32, %v13980_v44  ;;  %1725 = vmatpush.msrb.mxu2 %v7866_v36  ;;  %1855 = vmatpush.msrb.mxu0 %v1395_v22 }
 0x103   : > { %v6563_v5 = vpop.eup %6562  ;;  %v1384_v7 = vsel %vm1064_vm1, %v7806_v40, %v6018_v18  ;;  %v1385_v25 = vsel %vm1065_vm2, %v7812_v52, %v6019_v41  ;;  %v1123_v46 = vmin.f32 %v7928_v57, 0.0  ;;  %v814_v17 = vadd.f32 %v750_v16, %v630_v1  ;;  %2050 = vmatpush.msrb.mxu3 %v1398_v49  ;;  %6072 = vmatmul.msk.f32.vlgmr.msra.gmra.mxu2 %vm1535_vm11, %v1438_v24 }
 0x104   : > { %v6024_v36 = vadd.f32 -1.0, %v6563_v5  ;;  %vm1057_vm6 = vcmp.gt.f32.partialorder %v7907_v39, 0.0  ;;  %6566 = vpow2.f32 %v1203_v15  ;;  %v616_v22 = vadd.f32 %v7609_v33, %v504_v30  ;;  %1502 = vperm.xlu1 %6490, %v1448_v50   ;;  %6058 = vmatmul.msk.f32.gmra.mxu0 %vm1535_vm11, %v7941_v28 }
 0x105   : > { %v920_v19 = vmul.f32 %v7146_v31, %v7743_v20  ;;  %v1387_v40 = vsel %vm1067_vm3, %v7830_v34, %v6021_v60  ;;  %v1207_v52 = vmul.f32 1.442695, %v1123_v46  ;;  %v7968_v49 = vadd.f32 %v934_v45, %v814_v17  ;;  %6071 = vmatmul.msk.f32.gmra.mxu1 %vm1535_vm11, %v1437_v58  ;;  %1726 = vmatpush.msrb.mxu2 %v1385_v25  ;;  %v1443_v34 = vld [vmem:[%s13448_s4 + $0x20] sm:$0xff]  ;;  %v8003_v45 = vld [vmem:[%s7066_s21 + $0x18] sm:$0x77] }
 0x106   : > { %v505_v26 = vmul.f32 %v13955_v2, %v13979_v48  ;;  %v6565_v11 = vpop.eup %6564  ;;  %v1390_v53 = vsel %vm1070_vm4, %v7848_v9, %v6024_v36  ;;  %v800_v10 = vadd.f32 %v736_v62, %v616_v22  ;;  %v737_v47 = vmul.f32 %v13960_v14, %v13980_v44  ;;  %1661 = vmatpush.msrb.mxu1 %v1384_v7 }
 0x107   : > { %v7984_v18 = vperm.slane %v892_v21, 2  ;;  %6106 = vmatmul.msk.f32.gmra.mxu3 %vm1535_vm11, %v7941_v28  ;;  %v6010_v9 = vadd.f32 -1.0, %v6565_v11  ;;  %6568 = vpow2.f32 %v1207_v52  ;;  %v1126_v41 = vmin.f32 %v7968_v49, 0.0  ;;  %1856 = vmatpush.msrb.mxu0 %v1387_v40  ;;  %v13981_v40 = vld [vmem:[#allocation40_spill] sm:$0xff] }
 0x108   : > { %v921_v35 = vmul.f32 %v13966_v55, %v7743_v20  ;;  %2051 = vmatpush.msrb.mxu3 %v1390_v53  ;;  %vm1059_vm7 = vcmp.gt.f32.partialorder %v7928_v57, 0.0  ;;  %v7992_v27 = vadd.f32 %v920_v19, %v800_v10  ;;  %v617_v38 = vadd.f32 %v7609_v33, %v505_v26  ;;  %1477 = vperm.xlu2 %6491, %v1443_v34   ;;  %v13982_v53 = vld [vmem:[#allocation31_spill] sm:$0xff] }
 0x109   : > { %v507_v16 = vmul.f32 %v13956_v54, %v13979_v48  ;;  %v1376_v63 = vsel %vm1056_vm5, %v7871_v56, %v6010_v9  ;;  %v1213_v24 = vmul.f32 1.442695, %v1126_v41  ;;  %v739_v1 = vmul.f32 %v13941_v43, %v13980_v44  ;;  %1512 = vperm.xlu0 %6489, %v1450_v0   ;;  %v13983_v0 = vld [vmem:[#allocation38_spill] sm:$0xff] }
 0x10a   : > { %v477_v21 = vperm.slane %v8003_v45, 0  ;;  %v6567_v50 = vpop.eup %6566  ;;  %1662 = vmatpush.msrb.mxu1 %v1376_v63  ;;  %v1112_v60 = vmin.f32 %v7992_v27, 0.0  ;;  %v801_v15 = vadd.f32 %v737_v47, %v617_v38  ;;  %v923_v56 = vmul.f32 %v13942_v8, %v7743_v20 }
 0x10b   : > { %v619_v30 = vadd.f32 %v7609_v33, %v507_v16  ;;  %v6011_v62 = vadd.f32 -1.0, %v6567_v50  ;;  %6570 = vpow2.f32 %v1213_v24  ;;  %v510_v5 = vmul.f32 %v13963_v3, %v13979_v48 }
 0x10c   : > { %v742_v58 = vmul.f32 %v13950_v13, %v13980_v44  ;;  %vm1062_vm8 = vcmp.gt.f32.partialorder %v7968_v49, 0.0  ;;  %v1185_v7 = vmul.f32 1.442695, %v1112_v60  ;;  %v8015_v25 = vadd.f32 %v921_v35, %v801_v15 }
 0x10d   : > { %v803_v46 = vadd.f32 %v739_v1, %v619_v30  ;;  %v6569_v17 = vpop.eup %6568  ;;  %v1377_v36 = vsel %vm1057_vm6, %v7907_v39, %v6011_v62  ;;  %v622_v22 = vadd.f32 %v7609_v33, %v510_v5  ;;  %v926_v19 = vmul.f32 %v13945_v23, %v7743_v20 }
 0x10e   : > { %v496_v52 = vmul.f32 %v13952_v59, %v13981_v40  ;;  %1727 = vmatpush.msrb.mxu2 %v1377_v36  ;;  %v6013_v26 = vadd.f32 -1.0, %v6569_v17  ;;  %6572 = vpow2.f32 %v1185_v7  ;;  %v1113_v11 = vmin.f32 %v8015_v25, 0.0  ;;  %v8072_v17 = vld [vmem:[%s13447_s3 + $0x10] sm:$0xff] }
 0x10f   : > { %v728_v10 = vmul.f32 %v13959_v32, %v13982_v53  ;;  %v8028_v47 = vadd.f32 %v923_v56, %v803_v46  ;;  %v806_v34 = vadd.f32 %v742_v58, %v622_v22  ;;  %v912_v9 = vmul.f32 %v7146_v31, %v13983_v0  ;;  %6059 = vmatmul.msk.f32.gmra.mxu0 %vm1535_vm11, %v8072_v17 }
 0x110   : > { %v608_v39 = vadd.f32 %v7669_v37, %v496_v52  ;;  %v1379_v59 = vsel %vm1059_vm7, %v7928_v57, %v6013_v26  ;;  %v1187_v41 = vmul.f32 1.442695, %v1113_v11  ;;  %v497_v35 = vmul.f32 %v13955_v2, %v13981_v40  ;;  %6107 = vmatmul.msk.f32.gmra.mxu3 %vm1535_vm11, %v8072_v17 }
 0x111   : > { %v8038_v38 = vperm.slane %v477_v21, 0  ;;  %v6571_v16 = vpop.eup %6570  ;;  %1857 = vmatpush.msrb.mxu0 %v1379_v59  ;;  %v1115_v32 = vmin.f32 %v8028_v47, 0.0  ;;  %v8041_v63 = vadd.f32 %v926_v19, %v806_v34  ;;  %v729_v31 = vmul.f32 %v13960_v14, %v13982_v53  ;;  %v13985_v34 = vld [vmem:[#allocation13_spill] sm:$0xff] }
 0x112   : > { %v792_v24 = vadd.f32 %v728_v10, %v608_v39  ;;  %v6016_v1 = vadd.f32 -1.0, %v6571_v16  ;;  %6574 = vpow2.f32 %v1187_v41  ;;  %v609_v57 = vadd.f32 %v7669_v37, %v497_v35  ;;  %v13984_v10 = vld [vmem:[#allocation27_spill] sm:$0xff]  ;;  %v13986_v41 = vld [vmem:[#allocation18_spill] sm:$0xff] }
 0x113   : > { %v913_v50 = vmul.f32 %v13966_v55, %v13983_v0  ;;  %vm1048_vm9 = vcmp.gt.f32.partialorder %v7992_v27, 0.0  ;;  %v1191_v2 = vmul.f32 1.442695, %v1115_v32  ;;  %v1118_v21 = vmin.f32 %v8041_v63, 0.0 }
 0x114   : > { %v8050_v60 = vadd.f32 %v912_v9, %v792_v24  ;;  %v6573_v15 = vpop.eup %6572  ;;  %v1382_v30 = vsel %vm1062_vm8, %v7968_v49, %v6016_v1  ;;  %vm1049_vm10 = vcmp.gt.f32.partialorder %v8015_v25, 0.0  ;;  %v793_v14 = vadd.f32 %v729_v31, %v609_v57  ;;  %v13987_v24 = vld [vmem:[#allocation30_spill] sm:$0xff] }
 0x115   : > { %v499_v56 = vmul.f32 %v13956_v54, %v13981_v40  ;;  %2052 = vmatpush.msrb.mxu3 %v1382_v30  ;;  %v6002_v55 = vadd.f32 -1.0, %v6573_v15  ;;  %6576 = vpow2.f32 %v1191_v2  ;;  %v1197_v62 = vmul.f32 1.442695, %v1118_v21  ;;  %v1451_v54 = vld [vmem:[%s13448_s4 + $0x60] sm:$0xff] }
 0x116   : > { %v731_v5 = vmul.f32 %v13941_v43, %v13982_v53  ;;  %v1104_v58 = vmin.f32 %v8050_v60, 0.0  ;;  %v8061_v7 = vadd.f32 %v913_v50, %v793_v14  ;;  %v915_v49 = vmul.f32 %v13942_v8, %v13983_v0  ;;  %1517 = vperm.xlu1 %6490, %v1451_v54  }
 0x117   : > { %v611_v46 = vadd.f32 %v7669_v37, %v499_v56  ;;  %v1368_v43 = vsel %vm1048_vm9, %v7992_v27, %v6002_v55  ;;  %vm1051_vm12 = vcmp.gt.f32.partialorder %v8028_v47, 0.0  ;;  %6578 = vpow2.f32 %v1197_v62 }
 0x118   : > { %v502_v36 = vmul.f32 %v13963_v3, %v13981_v40  ;;  %v6575_v8 = vpop.eup %6574  ;;  %1663 = vmatpush.msrb.mxu1 %v1368_v43  ;;  %v1169_v22 = vmul.f32 1.442695, %v1104_v58  ;;  %v1105_v19 = vmin.f32 %v8061_v7, 0.0  ;;  %v734_v26 = vmul.f32 %v13950_v13, %v13982_v53  ;;  %v13989_v43 = vld [vmem:[#allocation28_spill] sm:$0xff] }
 0x119   : > { %v795_v52 = vadd.f32 %v731_v5, %v611_v46  ;;  %v6003_v27 = vadd.f32 -1.0, %v6575_v8  ;;  %v918_v3 = vmul.f32 %v13945_v23, %v13983_v0  ;;  %v668_v39 = vadd.f32 %v13985_v34, %v13984_v10  ;;  %v13988_v23 = vld [vmem:[#allocation19_spill] sm:$0xff] }
 0x11a   : > { %v614_v11 = vadd.f32 %v7669_v37, %v502_v36  ;;  %6580 = vpow2.f32 %v1169_v22  ;;  %v1171_v9 = vmul.f32 1.442695, %v1105_v19  ;;  %v788_v35 = vmul.f32 %v7911_v61, %v13986_v41  ;;  %v13990_v36 = vld [vmem:[#allocation4_spill] sm:$0xff] }
 0x11b   : > { %v8092_v59 = vadd.f32 %v915_v49, %v795_v52  ;;  %v6577_v13 = vpop.eup %6576  ;;  %v1369_v16 = vsel %vm1049_vm10, %v8015_v25, %v6003_v27  ;;  %v972_v31 = vmul.f32 %v7984_v18, %v13987_v24  ;;  %v557_v1 = vmul.f32 %v8038_v38, %v13988_v23  ;;  %v13991_v27 = vld [vmem:[#allocation10_spill] sm:$0xff] }
 0x11c   : > { %v798_v32 = vadd.f32 %v734_v26, %v614_v11  ;;  %1728 = vmatpush.msrb.mxu2 %v1369_v16  ;;  %v6005_v57 = vadd.f32 -1.0, %v6577_v13  ;;  %vm1054_vm13 = vcmp.gt.f32.partialorder %v8041_v63, 0.0  ;;  %6582 = vpow2.f32 %v1171_v9  ;;  %v13993_v16 = vld [vmem:[#allocation46_spill] sm:$0xff] }
 0x11d   : > { %v1107_v50 = vmin.f32 %v8092_v59, 0.0  ;;  %v6579_v2 = vpop.eup %6578  ;;  %vm1040_vm14 = vcmp.gt.f32.partialorder %v8050_v60, 0.0  ;;  %v852_v25 = vadd.f32 %v788_v35, %v668_v39  ;;  %v709_v15 = vperm.slane %v8003_v45, 1 }
 0x11e   : > { %v8106_v21 = vadd.f32 %v918_v3, %v798_v32  ;;  %v1371_v30 = vsel %vm1051_vm12, %v8028_v47, %v6005_v57  ;;  %v6008_v14 = vadd.f32 -1.0, %v6579_v2  ;;  %v893_v55 = vperm.slane %v8003_v45, 2  ;;  %v13992_v3 = vld [vmem:[#allocation12_spill] sm:$0xff]  ;;  %v13994_v2 = vld [vmem:[#allocation9_spill] sm:$0xff] }
 0x11f   : > { %v1175_v56 = vmul.f32 1.442695, %v1107_v50  ;;  %1858 = vmatpush.msrb.mxu0 %v1371_v30  ;;  %v8114_v5 = vadd.f32 %v972_v31, %v852_v25  ;;  %v669_v58 = vadd.f32 %v13985_v34, %v557_v1  ;;  %v8117_v46 = vperm.slane %v709_v15, 1  ;;  %v13995_v15 = vld [vmem:[#allocation15_spill] sm:$0xff] }
 0x120   : > { %v1110_v62 = vmin.f32 %v8106_v21, 0.0  ;;  %v6581_v49 = vpop.eup %6580  ;;  %v1374_v54 = vsel %vm1054_vm13, %v8041_v63, %v6008_v14  ;;  %v8122_v47 = vperm.slane %v893_v55, 2  ;;  %v548_v45 = vmul.f32 %v13990_v36, %v13989_v43  ;;  %v1453_v55 = vld [vmem:[%s13448_s4 + $0x70] sm:$0xff] }
 0x121   : > { %6584 = vpow2.f32 %v1175_v56  ;;  %2053 = vmatpush.msrb.mxu3 %v1374_v54  ;;  %v5994_v8 = vadd.f32 -1.0, %v6581_v49  ;;  %vm1041_vm15 = vcmp.gt.f32.partialorder %v8061_v7, 0.0  ;;  %v1164_v19 = vmin.f32 %v8114_v5, 0.0  ;;  %v1446_v56 = vld [vmem:[%s13448_s4 + $0x38] sm:$0xff]  ;;  %1527 = vperm.xlu0 %6489, %v1453_v55  }
 0x122   : > { %v1181_v22 = vmul.f32 1.442695, %v1110_v62  ;;  %v6583_v52 = vpop.eup %6582  ;;  %v789_v26 = vmul.f32 %v8117_v46, %v13986_v41  ;;  %v973_v63 = vmul.f32 %v8122_v47, %v13987_v24  ;;  %v660_v11 = vadd.f32 %v13991_v27, %v548_v45  ;;  %1492 = vperm.xlu2 %6491, %v1446_v56  }
 0x123   : > { %v780_v10 = vmul.f32 %v7911_v61, %v13992_v3  ;;  %v1360_v34 = vsel %vm1040_vm14, %v8050_v60, %v5994_v8  ;;  %v5995_v39 = vadd.f32 -1.0, %v6583_v52  ;;  %v1289_v9 = vmul.f32 1.442695, %v1164_v19  ;;  %v13997_v8 = vld [vmem:[#allocation34_spill] sm:$0xff] }
 0x124   : > { %6586 = vpow2.f32 %v1181_v22  ;;  %1664 = vmatpush.msrb.mxu1 %v1360_v34  ;;  %v853_v35 = vadd.f32 %v789_v26, %v669_v58  ;;  %v964_v41 = vmul.f32 %v7984_v18, %v13993_v16  ;;  %v549_v32 = vmul.f32 %v8038_v38, %v13989_v43  ;;  %v13996_v58 = vld [vmem:[#allocation32_spill] sm:$0xff] }
 0x125   : > { %v844_v13 = vadd.f32 %v780_v10, %v660_v11  ;;  %v1361_v24 = vsel %vm1041_vm15, %v8061_v7, %v5995_v39  ;;  %vm1043_vm0 = vcmp.gt.f32.partialorder %v8092_v59, 0.0  ;;  %6588 = vpow2.f32 %v1289_v9  ;;  %6073 = vmatmul.msk.f32.vlgmr.msrb.gmra.mxu1 %vm1535_vm11, %v7853_v42 }
 0x126   : > { %v781_v60 = vmul.f32 %v8117_v46, %v13992_v3  ;;  %1729 = vmatpush.msrb.mxu2 %v1361_v24  ;;  %v8150_v23 = vadd.f32 %v973_v63, %v853_v35  ;;  %v661_v57 = vadd.f32 %v13991_v27, %v549_v32  ;;  %v965_v7 = vmul.f32 %v8122_v47, %v13993_v16  ;;  %v1454_v16 = vld [vmem:[%s13448_s4 + $0x78] sm:$0xff] }
 0x127   : > { %v6585_v31 = vpop.eup %6584  ;;  %v8152_v1 = vadd.f32 %v964_v41, %v844_v13  ;;  %6089 = vmatmul.msk.f32.vlgmr.msrb.gmra.mxu2 %vm1535_vm11, %v7853_v42  ;;  %v540_v25 = vmul.f32 %v13990_v36, %v13994_v2  ;;  %v772_v30 = vmul.f32 %v7911_v61, %v13995_v15  ;;  %v541_v14 = vmul.f32 %v8038_v38, %v13994_v2  ;;  %v8198_v41 = vld [vmem:[%s13447_s3 + $0x18] sm:$0xff] }
 0x128   : > { %v5997_v50 = vadd.f32 -1.0, %v6585_v31  ;;  %vm1046_vm1 = vcmp.gt.f32.partialorder %v8106_v21, 0.0  ;;  %v1165_v42 = vmin.f32 %v8150_v23, 0.0  ;;  %v956_v49 = vmul.f32 %v7984_v18, %v13996_v58  ;;  %1532 = vperm.xlu1 %6490, %v1454_v16   ;;  %v13999_v31 = vld [vmem:[#allocation24_spill] sm:$0xff]  ;;  %6060 = vmatmul.msk.f32.gmra.mxu0 %vm1535_vm11, %v8198_v41 }
 0x129   : > { %v1156_v62 = vmin.f32 %v8152_v1, 0.0  ;;  %v845_v45 = vadd.f32 %v781_v60, %v661_v57  ;;  %v652_v22 = vadd.f32 %v13997_v8, %v540_v25  ;;  %v653_v19 = vadd.f32 %v13997_v8, %v541_v14  ;;  %6108 = vmatmul.msk.f32.gmra.mxu3 %vm1535_vm11, %v8198_v41  ;;  %v14002_v8 = vld [vmem:[#allocation37_spill] sm:$0xff] }
 0x12a   : > { %v6587_v54 = vpop.eup %6586  ;;  %v1363_v43 = vsel %vm1043_vm0, %v8092_v59, %v5997_v50  ;;  %v1291_v26 = vmul.f32 1.442695, %v1165_v42  ;;  %v773_v27 = vmul.f32 %v8117_v46, %v13995_v15  ;;  %v957_v34 = vmul.f32 %v8122_v47, %v13996_v58  ;;  %v13998_v59 = vld [vmem:[#allocation11_spill] sm:$0xff]  ;;  %v14001_v15 = vld [vmem:[#allocation29_spill] sm:$0xff] }
 0x12b   : > { %1859 = vmatpush.msrb.mxu0 %v1363_v43  ;;  %v6000_v52 = vadd.f32 -1.0, %v6587_v54  ;;  %v1273_v63 = vmul.f32 1.442695, %v1156_v62  ;;  %v6589_v11 = vpop.eup %6588  ;;  %v8183_v3 = vadd.f32 %v965_v7, %v845_v45  ;;  %v836_v10 = vadd.f32 %v772_v30, %v652_v22  ;;  %v14000_v7 = vld [vmem:[#allocation41_spill] sm:$0xff] }
 0x12c   : > { %v532_v39 = vmul.f32 %v13990_v36, %v13998_v59  ;;  %v6054_v35 = vadd.f32 -1.0, %v6589_v11  ;;  %6590 = vpow2.f32 %v1291_v26  ;;  %v837_v13 = vadd.f32 %v773_v27, %v653_v19  ;;  %v14003_v19 = vld [vmem:[#allocation35_spill] sm:$0xff]  ;;  %v8238_v26 = vpop.permute.xlu0 %3035 }
 0x12d   : > { %v1366_v9 = vsel %vm1046_vm1, %v8106_v21, %v6000_v52  ;;  %vm1100_vm2 = vcmp.gt.f32.partialorder %v8114_v5, 0.0  ;;  %6592 = vpow2.f32 %v1273_v63  ;;  %v1157_v32 = vmin.f32 %v8183_v3, 0.0  ;;  %6074 = vmatmul.msk.f32.gmra.mxu1 %vm1535_vm11, %v7941_v28  ;;  %v8240_v63 = vpop.permute.xlu1 %3030 }
 0x12e   : > { %2054 = vmatpush.msrb.mxu3 %v1366_v9  ;;  %v8202_v24 = vadd.f32 %v956_v49, %v836_v10  ;;  %v1420_v21 = vsel %vm1100_vm2, %v8114_v5, %v6054_v35  ;;  %v8205_v60 = vadd.f32 %v957_v34, %v837_v13  ;;  %v644_v57 = vadd.f32 %v13999_v31, %v532_v39  ;;  %v14004_v39 = vld [vmem:[#allocation26_spill] sm:$0xff] }
 0x12f   : > { %v764_v50 = vmul.f32 %v7911_v61, %v14000_v7  ;;  %1917 = vmatpush.msra.mxu1 %v1420_v21  ;;  %vm1101_vm3 = vcmp.gt.f32.partialorder %v8150_v23, 0.0  ;;  %v1275_v2 = vmul.f32 1.442695, %v1157_v32  ;;  %v948_v30 = vmul.f32 %v7984_v18, %v14001_v15  ;;  %6090 = vmatmul.msk.f32.gmra.mxu2 %vm1535_vm11, %v7941_v28 }
 0x130   : > { %v1148_v25 = vmin.f32 %v8202_v24, 0.0  ;;  %vm1092_vm4 = vcmp.gt.f32.partialorder %v8152_v1, 0.0  ;;  %v1149_v5 = vmin.f32 %v8205_v60, 0.0  ;;  %v533_v56 = vmul.f32 %v8038_v38, %v13998_v59 }
 0x131   : > { %v828_v14 = vadd.f32 %v764_v50, %v644_v57  ;;  %vm1093_vm5 = vcmp.gt.f32.partialorder %v8183_v3, 0.0  ;;  %6594 = vpow2.f32 %v1275_v2  ;;  %v765_v42 = vmul.f32 %v8117_v46, %v14000_v7 }
 0x132   : > { %v1257_v55 = vmul.f32 1.442695, %v1148_v25  ;;  %v6591_v62 = vpop.eup %6590  ;;  %v1259_v58 = vmul.f32 1.442695, %v1149_v5  ;;  %v645_v54 = vadd.f32 %v13999_v31, %v533_v56  ;;  %v949_v43 = vmul.f32 %v8122_v47, %v14001_v15 }
 0x133   : > { %v8229_v49 = vadd.f32 %v948_v30, %v828_v14  ;;  %v6593_v28 = vpop.eup %6592  ;;  %v6055_v45 = vadd.f32 -1.0, %v6591_v62  ;;  %v524_v22 = vmul.f32 %v13990_v36, %v14002_v8  ;;  %v756_v52 = vmul.f32 %v7911_v61, %v14003_v19 }
 0x134   : > { %6596 = vpow2.f32 %v1257_v55  ;;  %v6046_v27 = vadd.f32 -1.0, %v6593_v28  ;;  %v940_v10 = vmul.f32 %v7984_v18, %v13973_v51  ;;  %v829_v59 = vadd.f32 %v765_v42, %v645_v54 }
 0x135   : > { %6598 = vpow2.f32 %v1259_v58  ;;  %v1140_v11 = vmin.f32 %v8229_v49, 0.0  ;;  %v1421_v34 = vsel %vm1101_vm3, %v8150_v23, %v6055_v45  ;;  %v636_v9 = vadd.f32 %v14004_v39, %v524_v22  ;;  %6075 = vmatmul.msk.f32.gmra.mxu1 %vm1535_vm11, %v8072_v17 }
 0x136   : > { %v525_v35 = vmul.f32 %v8038_v38, %v14002_v8  ;;  %1982 = vmatpush.msra.mxu2 %v1421_v34  ;;  %v1412_v13 = vsel %vm1092_vm4, %v8152_v1, %v6046_v27  ;;  %vm1084_vm6 = vcmp.gt.f32.partialorder %v8202_v24, 0.0  ;;  %v757_v32 = vmul.f32 %v8117_v46, %v14003_v19  ;;  %v8297_v27 = vpop.permute.xlu0 %3170 }
 0x137   : > { %v1241_v16 = vmul.f32 1.442695, %v1140_v11  ;;  %v6595_v21 = vpop.eup %6594  ;;  %1918 = vmatpush.msra.mxu1 %v1412_v13  ;;  %v8257_v23 = vadd.f32 %v949_v43, %v829_v59  ;;  %v820_v31 = vadd.f32 %v756_v52, %v636_v9  ;;  %v516_v7 = vmul.f32 %v13990_v36, %v13970_v6  ;;  %6091 = vmatmul.msk.f32.gmra.mxu2 %vm1535_vm11, %v8072_v17  ;;  %v1449_v52 = vld [vmem:[%s13448_s4 + $0x50] sm:$0xff]  ;;  %v8304_v11 = vpop.permute.xlu1 %3271 }
 0x138   : > { %v637_v57 = vadd.f32 %v14004_v39, %v525_v35  ;;  %v6047_v50 = vadd.f32 -1.0, %v6595_v21  ;;  %v941_v1 = vmul.f32 %v8122_v47, %v13973_v51  ;;  %v748_v2 = vmul.f32 %v7911_v61, %v7544_v4  ;;  %v8275_v51 = vpop.permute.xlu2 %3175  ;;  %1507 = vperm.xlu2 %6491, %v1449_v52  }
 0x139   : > { %6600 = vpow2.f32 %v1241_v16  ;;  %v1141_v15 = vmin.f32 %v8257_v23, 0.0  ;;  %v8271_v30 = vadd.f32 %v940_v10, %v820_v31  ;;  %v932_v14 = vmul.f32 %v7984_v18, %v7538_v29 }
 0x13a   : > { %v6597_v25 = vpop.eup %6596  ;;  %v821_v5 = vadd.f32 %v757_v32, %v637_v57  ;;  %v1413_v55 = vsel %vm1093_vm5, %v8183_v3, %v6047_v50  ;;  %v628_v62 = vadd.f32 %v13974_v12, %v516_v7  ;;  %v517_v17 = vmul.f32 %v8038_v38, %v13970_v6 }
 0x13b   : > { %v6599_v56 = vpop.eup %6598  ;;  %v6038_v42 = vadd.f32 -1.0, %v6597_v25  ;;  %1983 = vmatpush.msra.mxu2 %v1413_v55  ;;  %vm1085_vm7 = vcmp.gt.f32.partialorder %v8205_v60, 0.0  ;;  %v1243_v54 = vmul.f32 1.442695, %v1141_v15  ;;  %v1132_v43 = vmin.f32 %v8271_v30, 0.0 }
 0x13c   : > { %v6039_v58 = vadd.f32 -1.0, %v6599_v56  ;;  %v8288_v45 = vadd.f32 %v941_v1, %v821_v5  ;;  %v812_v3 = vadd.f32 %v748_v2, %v628_v62  ;;  %v629_v8 = vadd.f32 %v13974_v12, %v517_v17  ;;  %v1452_v2 = vld [vmem:[%s13448_s4 + $0x68] sm:$0xff] }
 0x13d   : > { %v1404_v28 = vsel %vm1084_vm6, %v8202_v24, %v6038_v42  ;;  %6602 = vpow2.f32 %v1243_v54  ;;  %v1225_v6 = vmul.f32 1.442695, %v1132_v43  ;;  %v749_v19 = vmul.f32 %v8117_v46, %v7544_v4  ;;  %v8302_v24 = vld [vmem:[%s13447_s3 + $0x20] sm:$0xff]  ;;  %6076 = vmatmul.msk.f32.gmra.mxu1 %vm1535_vm11, %v8198_v41  ;;  %v8350_v5 = vld [vmem:[%s13447_s3 + $0x28] sm:$0xff] }
 0x13e   : > { %1919 = vmatpush.msra.mxu1 %v1404_v28  ;;  %v1405_v22 = vsel %vm1085_vm7, %v8205_v60, %v6039_v58  ;;  %v1133_v60 = vmin.f32 %v8288_v45, 0.0  ;;  %v8307_v10 = vadd.f32 %v932_v14, %v812_v3  ;;  %v933_v4 = vmul.f32 %v8122_v47, %v7538_v29  ;;  %6061 = vmatmul.msk.f32.gmra.mxu0 %vm1535_vm11, %v8302_v24  ;;  %v8358_v62 = vpop.permute.xlu0 %3020 }
 0x13f   : > { %v6601_v12 = vpop.eup %6600  ;;  %1984 = vmatpush.msra.mxu2 %v1405_v22  ;;  %6604 = vpow2.f32 %v1225_v6  ;;  %v813_v59 = vadd.f32 %v749_v19, %v629_v8  ;;  %v508_v39 = vmul.f32 %v13990_v36, %v13979_v48  ;;  %6109 = vmatmul.msk.f32.gmra.mxu3 %vm1535_vm11, %v8302_v24  ;;  %vm1076_vm8 = vcmp.gt.f32.partialorder %v8229_v49, 0.0  ;;  %v8370_v43 = vpop.permute.xlu1 %3267 }
 0x140   : > { %v6030_v34 = vadd.f32 -1.0, %v6601_v12  ;;  %v1227_v9 = vmul.f32 1.442695, %v1133_v60  ;;  %v1124_v35 = vmin.f32 %v8307_v10, 0.0  ;;  %v740_v29 = vmul.f32 %v7911_v61, %v13980_v44  ;;  %6092 = vmatmul.msk.f32.gmra.mxu2 %vm1535_vm11, %v8198_v41  ;;  %v8342_v25 = vpop.permute.xlu2 %3025  ;;  %1522 = vperm.xlu2 %6491, %v1452_v2   ;;  %v6185_v2 = vld [vmem:[%s7066_s21 + $0x20] sm:$0x77] }
 0x141   : > { %v8326_v16 = vadd.f32 %v933_v4, %v813_v59  ;;  %v620_v32 = vadd.f32 %v7609_v33, %v508_v39  ;;  %v924_v21 = vmul.f32 %v7984_v18, %v7743_v20  ;;  %v509_v57 = vmul.f32 %v8038_v38, %v13979_v48 }
 0x142   : > { %v1396_v13 = vsel %vm1076_vm8, %v8229_v49, %v6030_v34  ;;  %6606 = vpow2.f32 %v1227_v9  ;;  %v1209_v31 = vmul.f32 1.442695, %v1124_v35  ;;  %v741_v7 = vmul.f32 %v8117_v46, %v13980_v44 }
 0x143   : > { %1920 = vmatpush.msra.mxu1 %v1396_v13  ;;  %v6603_v50 = vpop.eup %6602  ;;  %vm1077_vm9 = vcmp.gt.f32.partialorder %v8257_v23, 0.0  ;;  %v1125_v41 = vmin.f32 %v8326_v16, 0.0  ;;  %v804_v49 = vadd.f32 %v740_v29, %v620_v32  ;;  %v925_v1 = vmul.f32 %v8122_v47, %v7743_v20 }
 0x144   : > { %v6031_v15 = vadd.f32 -1.0, %v6603_v50  ;;  %6608 = vpow2.f32 %v1209_v31  ;;  %v621_v48 = vadd.f32 %v7609_v33, %v509_v57  ;;  %v500_v44 = vmul.f32 %v13990_v36, %v13981_v40  ;;  %v8410_v31 = vld [vmem:[%s13447_s3 + $0x38] sm:$0xff] }
 0x145   : > { %v6605_v14 = vpop.eup %6604  ;;  %v1211_v20 = vmul.f32 1.442695, %v1125_v41  ;;  %v8352_v56 = vadd.f32 %v924_v21, %v804_v49  ;;  %v732_v55 = vmul.f32 %v7911_v61, %v13982_v53  ;;  %v916_v42 = vmul.f32 %v7984_v18, %v13983_v0  ;;  %6077 = vmatmul.msk.f32.gmra.mxu1 %vm1535_vm11, %v8302_v24 }
 0x146   : > { %v1397_v33 = vsel %vm1077_vm9, %v8257_v23, %v6031_v15  ;;  %v6022_v36 = vadd.f32 -1.0, %v6605_v14  ;;  %v805_v17 = vadd.f32 %v741_v7, %v621_v48  ;;  %v612_v58 = vadd.f32 %v7669_v37, %v500_v44  ;;  %6062 = vmatmul.msk.f32.gmra.mxu0 %vm1535_vm11, %v8350_v5  ;;  %v8391_v59 = vpop.permute.xlu0 %3010  ;;  %v6186_v15 = vld [vmem:[%s7066_s21 + $0x28] sm:$0x77] }
 0x147   : > { %1985 = vmatpush.msra.mxu2 %v1397_v33  ;;  %vm1068_vm10 = vcmp.gt.f32.partialorder %v8271_v30, 0.0  ;;  %6610 = vpow2.f32 %v1211_v20  ;;  %v1116_v61 = vmin.f32 %v8352_v56, 0.0  ;;  %v501_v18 = vmul.f32 %v8038_v38, %v13981_v40  ;;  %6110 = vmatmul.msk.f32.gmra.mxu3 %vm1535_vm11, %v8350_v5  ;;  %v8399_v13 = vpop.permute.xlu1 %3165 }
 0x148   : > { %v6607_v54 = vpop.eup %6606  ;;  %v1388_v23 = vsel %vm1068_vm10, %v8271_v30, %v6022_v36  ;;  %v989_v28 = vadd.f32 %v925_v1, %v805_v17  ;;  %v796_v3 = vadd.f32 %v732_v55, %v612_v58  ;;  %v733_v8 = vmul.f32 %v8117_v46, %v13982_v53  ;;  %6093 = vmatmul.msk.f32.gmra.mxu2 %vm1535_vm11, %v8302_v24  ;;  %v8393_v24 = vpop.permute.xlu2 %3455 }
 0x149   : > { %1921 = vmatpush.msra.mxu1 %v1388_v23  ;;  %v6023_v22 = vadd.f32 -1.0, %v6607_v54  ;;  %v1193_v6 = vmul.f32 1.442695, %v1116_v61  ;;  %v613_v40 = vadd.f32 %v7669_v37, %v501_v18  ;;  %v917_v38 = vmul.f32 %v8122_v47, %v13983_v0  ;;  %v1429_v47 = vld [vmem:[%s13447_s3 + $0x30] sm:$0xff]  ;;  %v8436_v23 = vld [vmem:[%s13447_s3 + $0x40] sm:$0xff] }
 0x14a   : > { %v6609_v30 = vpop.eup %6608  ;;  %vm1069_vm12 = vcmp.gt.f32.partialorder %v8288_v45, 0.0  ;;  %v1117_v19 = vmin.f32 %v989_v28, 0.0  ;;  %v980_v52 = vadd.f32 %v916_v42, %v796_v3  ;;  %vm1060_vm13 = vcmp.gt.f32.partialorder %v8307_v10, 0.0 }
 0x14b   : > { %v1389_v53 = vsel %vm1069_vm12, %v8288_v45, %v6023_v22  ;;  %v6014_v46 = vadd.f32 -1.0, %v6609_v30  ;;  %6612 = vpow2.f32 %v1193_v6  ;;  %v797_v12 = vadd.f32 %v733_v8, %v613_v40 }
 0x14c   : > { %1986 = vmatpush.msra.mxu2 %v1389_v53  ;;  %v1195_v37 = vmul.f32 1.442695, %v1117_v19  ;;  %v1108_v0 = vmin.f32 %v980_v52, 0.0  ;;  %vm1061_vm14 = vcmp.gt.f32.partialorder %v8326_v16, 0.0  ;;  %vm1052_vm15 = vcmp.gt.f32.partialorder %v8352_v56, 0.0 }
 0x14d   : > { %v6611_v60 = vpop.eup %6610  ;;  %v1380_v4 = vsel %vm1060_vm13, %v8307_v10, %v6014_v46  ;;  %v981_v34 = vadd.f32 %v917_v38, %v797_v12  ;;  %6078 = vmatmul.msk.f32.gmra.mxu1 %vm1535_vm11, %v8350_v5  ;;  %vm1053_vm0 = vcmp.gt.f32.partialorder %v989_v28, 0.0  ;;  %vm1044_vm1 = vcmp.gt.f32.partialorder %v980_v52, 0.0 }
 0x14e   : > { %1922 = vmatpush.msra.mxu1 %v1380_v4  ;;  %v6015_v45 = vadd.f32 -1.0, %v6611_v60  ;;  %6614 = vpow2.f32 %v1195_v37  ;;  %v1177_v39 = vmul.f32 1.442695, %v1108_v0  ;;  %6063 = vmatmul.msk.f32.gmra.mxu0 %vm1535_vm11, %v1429_v47  ;;  %v8412_v7 = vpop.permute.xlu0 %3150  ;;  %v3274_v14 = vperm.slane %v6185_v2, 1 }
 0x14f   : > { %v1109_v9 = vmin.f32 %v981_v34, 0.0  ;;  %6111 = vmatmul.msk.f32.gmra.mxu3 %vm1535_vm11, %v1429_v47  ;;  %14005 = vst [vmem:[#allocation16_spill] sm:$0xff] %v8412_v7  ;;  %vm1045_vm2 = vcmp.gt.f32.partialorder %v981_v34, 0.0  ;;  %v3458_v20 = vperm.slane %v6185_v2, 2  ;;  %v3043_v55 = vperm.slane %v6185_v2, 4  ;;  %v8430_v18 = vpop.permute.xlu1 %3015 }
 0x150   : > { %v1381_v35 = vsel %vm1061_vm14, %v8326_v16, %v6015_v45  ;;  %6616 = vpow2.f32 %v1177_v39  ;;  %6094 = vmatmul.msk.f32.gmra.mxu2 %vm1535_vm11, %v8350_v5  ;;  %v8416_v1 = vpop.permute.xlu2 %3263  ;;  %v3042_v5 = vperm.slane %v6185_v2, 0  ;;  %v3275_v42 = vperm.slane %v6185_v2, 5 }
 0x151   : > { %v6613_v10 = vpop.eup %6612  ;;  %1987 = vmatpush.msra.mxu2 %v1381_v35  ;;  %v1179_v29 = vmul.f32 1.442695, %v1109_v9  ;;  %v3459_v33 = vperm.slane %v6185_v2, 6  ;;  %v8426_v17 = vperm.slane %v3274_v14, 1  ;;  %v8428_v58 = vperm.slane %v3458_v20, 2 }
 0x152   : > { %v6006_v32 = vadd.f32 -1.0, %v6613_v10  ;;  %v8424_v36 = vperm.slane %v3042_v5, 0  ;;  %v3044_v61 = vperm.slane %v6186_v15, 0  ;;  %v8440_v3 = vperm.slane %v3275_v42, 1 }
 0x153   : > { %6618 = vpow2.f32 %v1179_v29  ;;  %v8442_v8 = vperm.slane %v3459_v33, 2  ;;  %v3354_v40 = vmul.f32 %v8426_v17, %v8304_v11  ;;  %v3538_v38 = vmul.f32 %v8428_v58, %v8393_v24 }
 0x154   : > { %v6615_v21 = vpop.eup %6614  ;;  %v1372_v16 = vsel %vm1052_vm15, %v8352_v56, %v6006_v32  ;;  %v3122_v6 = vmul.f32 %v8424_v36, %v8238_v26  ;;  %v8452_v30 = vperm.slane %v3044_v61, 0  ;;  %v3276_v46 = vperm.slane %v6186_v15, 1 }
 0x155   : > { %1923 = vmatpush.msra.mxu1 %v1372_v16  ;;  %v6007_v57 = vadd.f32 -1.0, %v6615_v21  ;;  %v3539_v53 = vmul.f32 %v8442_v8, %v8393_v24  ;;  %v3460_v0 = vperm.slane %v6186_v15, 2  ;;  %v3461_v45 = vperm.slane %v6186_v15, 6 }
 0x156   : > { %v6617_v50 = vpop.eup %6616  ;;  %6064 = vmatmul.msk.f32.gmra.mxu0 %vm1535_vm11, %v8410_v31  ;;  %6079 = vmatmul.msk.f32.gmra.mxu1 %vm1535_vm11, %v1429_v47  ;;  %v8444_v22 = vpop.permute.xlu0 %3000  ;;  %v3234_v12 = vadd.f32 %v8275_v51, %v3122_v6  ;;  %v3124_v37 = vmul.f32 %v8452_v30, %v8238_v26  ;;  %v8468_v4 = vperm.slane %v3276_v46, 1  ;;  %v3114_v2 = vmul.f32 %v8424_v36, %v8240_v63 }
 0x157   : > { %v1373_v41 = vsel %vm1053_vm0, %v989_v28, %v6007_v57  ;;  %v5998_v49 = vadd.f32 -1.0, %v6617_v50  ;;  %6112 = vmatmul.msk.f32.gmra.mxu3 %vm1535_vm11, %v8410_v31  ;;  %v8438_v28 = vperm.slane %v3043_v55, 0  ;;  %v8471_v35 = vperm.slane %v3460_v0, 2  ;;  %v8509_v55 = vpop.permute.xlu1 %3259 }
 0x158   : > { %1988 = vmatpush.msra.mxu2 %v1373_v41  ;;  %v3418_v39 = vadd.f32 %v3354_v40, %v3234_v12  ;;  %v3236_v9 = vadd.f32 %v8275_v51, %v3124_v37  ;;  %v8475_v29 = vpop.permute.xlu2 %3160  ;;  %v3356_v21 = vmul.f32 %v8468_v4, %v8304_v11  ;;  %v8483_v57 = vperm.slane %v3461_v45, 2 }
 0x159   : > { %v6619_v48 = vpop.eup %6618  ;;  %v1364_v44 = vsel %vm1044_vm1, %v980_v52, %v5998_v49  ;;  %6095 = vmatmul.msk.f32.gmra.mxu2 %vm1535_vm11, %v1429_v47  ;;  %v3123_v19 = vmul.f32 %v8438_v28, %v8238_v26  ;;  %v3355_v52 = vmul.f32 %v8440_v3, %v8304_v11  ;;  %v3045_v47 = vperm.slane %v6186_v15, 4  ;;  %14006 = vst [vmem:[#allocation7_spill] sm:$0xff] %v8475_v29 }
 0x15a   : > { %1924 = vmatpush.msra.mxu1 %v1364_v44  ;;  %v5999_v56 = vadd.f32 -1.0, %v6619_v48  ;;  %v8487_v50 = vadd.f32 %v3538_v38, %v3418_v39  ;;  %v3540_v41 = vmul.f32 %v8471_v35, %v8393_v24  ;;  %v3420_v44 = vadd.f32 %v3356_v21, %v3236_v9  ;;  %v8550_v21 = vld [vmem:[%s13447_s3 + $0x50] sm:$0xff] }
 0x15b   : > { %v3235_v60 = vadd.f32 %v8275_v51, %v3123_v19  ;;  %v8473_v10 = vperm.slane %v3045_v47, 0  ;;  %v3541_v20 = vmul.f32 %v8483_v57, %v8393_v24  ;;  %v3115_v19 = vmul.f32 %v8438_v28, %v8240_v63 }
 0x15c   : > { %v1365_v54 = vsel %vm1045_vm2, %v981_v34, %v5999_v56  ;;  %v3277_v34 = vperm.slane %v6186_v15, 5  ;;  %v8498_v15 = vld [vmem:[%s13447_s3 + $0x48] sm:$0xff]  ;;  %v3730_v5 = vmin.f32 %v8487_v50, 0.0  ;;  %v3226_v56 = vadd.f32 %v8297_v27, %v3114_v2 }
 0x15d   : > { %1989 = vmatpush.msra.mxu2 %v1365_v54  ;;  %v3419_v32 = vadd.f32 %v3355_v52, %v3235_v60  ;;  %v3125_v49 = vmul.f32 %v8473_v10, %v8238_v26  ;;  %v8514_v61 = vadd.f32 %v3540_v41, %v3420_v44  ;;  %v3346_v54 = vmul.f32 %v8426_v17, %v8370_v43 }
 0x15e   : > { %6065 = vmatmul.msk.f32.gmra.mxu0 %vm1535_vm11, %v8436_v23  ;;  %v8481_v16 = vperm.slane %v3277_v34, 1  ;;  %6080 = vmatmul.msk.f32.gmra.mxu1 %vm1535_vm11, %v8410_v31  ;;  %v8511_v42 = vpop.permute.xlu0 %3451  ;;  %v3850_v6 = vmul.f32 1.442695, %v3730_v5  ;;  %vm3666_vm3 = vcmp.gt.f32.partialorder %v8487_v50, 0.0  ;;  %v3227_v37 = vadd.f32 %v8297_v27, %v3115_v19 }
 0x15f   : > { %6113 = vmatmul.msk.f32.gmra.mxu3 %vm1535_vm11, %v8436_v23  ;;  %v8500_v48 = vadd.f32 %v3539_v53, %v3419_v32  ;;  %v3237_v14 = vadd.f32 %v8275_v51, %v3125_v49  ;;  %v3530_v38 = vmul.f32 %v8428_v58, %v8511_v42  ;;  %v3732_v53 = vmin.f32 %v8514_v61, 0.0 }
 0x160   : > { %v3410_v46 = vadd.f32 %v3346_v54, %v3226_v56  ;;  %6620 = vpow2.f32 %v3850_v6  ;;  %v3347_v0 = vmul.f32 %v8440_v3, %v8370_v43  ;;  %v3531_v34 = vmul.f32 %v8442_v8, %v8511_v42  ;;  %v8545_v32 = vpop.permute.xlu2 %3447 }
 0x161   : > { %6096 = vmatmul.msk.f32.gmra.mxu2 %vm1535_vm11, %v8410_v31  ;;  %v3357_v31 = vmul.f32 %v8481_v16, %v8304_v11  ;;  %v3731_v33 = vmin.f32 %v8500_v48, 0.0  ;;  %v3854_v47 = vmul.f32 1.442695, %v3732_v53  ;;  %vm3667_vm4 = vcmp.gt.f32.partialorder %v8500_v48, 0.0 }
 0x162   : > { %v8535_v60 = vadd.f32 %v3530_v38, %v3410_v46  ;;  %v3411_v39 = vadd.f32 %v3347_v0, %v3227_v37  ;;  %v3116_v9 = vmul.f32 %v8452_v30, %v8240_v63  ;;  %vm3668_vm5 = vcmp.gt.f32.partialorder %v8514_v61, 0.0  ;;  %v8571_v38 = vpop.permute.xlu1 %3155 }
 0x163   : > { %v3421_v40 = vadd.f32 %v3357_v31, %v3237_v14  ;;  %v3852_v52 = vmul.f32 1.442695, %v3731_v33  ;;  %v3348_v41 = vmul.f32 %v8468_v4, %v8370_v43  ;;  %v3532_v31 = vmul.f32 %v8471_v35, %v8511_v42 }
 0x164   : > { %v8556_v2 = vadd.f32 %v3531_v34, %v3411_v39  ;;  %v3228_v44 = vadd.f32 %v8297_v27, %v3116_v9  ;;  %v3117_v14 = vmul.f32 %v8473_v10, %v8240_v63  ;;  %v3533_v6 = vmul.f32 %v8483_v57, %v8511_v42 }
 0x165   : > { %v8528_v12 = vadd.f32 %v3541_v20, %v3421_v40  ;;  %6622 = vpow2.f32 %v3852_v52  ;;  %v3349_v20 = vmul.f32 %v8481_v16, %v8370_v43  ;;  %v3106_v53 = vmul.f32 %v8424_v36, %v8342_v25 }
 0x166   : > { %6066 = vmatmul.msk.f32.gmra.mxu0 %vm1535_vm11, %v8498_v15  ;;  %6081 = vmatmul.msk.f32.gmra.mxu1 %vm1535_vm11, %v8436_v23  ;;  %6624 = vpow2.f32 %v3854_v47  ;;  %v6621_v56 = vpop.eup %6620  ;;  %v3723_v33 = vmin.f32 %v8556_v2, 0.0  ;;  %v3412_v54 = vadd.f32 %v3348_v41, %v3228_v44  ;;  %v3229_v52 = vadd.f32 %v8297_v27, %v3117_v14 }
 0x167   : > { %6114 = vmatmul.msk.f32.gmra.mxu3 %vm1535_vm11, %v8498_v15  ;;  %v3733_v45 = vmin.f32 %v8528_v12, 0.0  ;;  %vm3669_vm6 = vcmp.gt.f32.partialorder %v8528_v12, 0.0  ;;  %v6245_v19 = vadd.f32 -1.0, %v6621_v56  ;;  %v3338_v47 = vmul.f32 %v8426_v17, %v8416_v1 }
 0x168   : > { %v3836_v37 = vmul.f32 1.442695, %v3723_v33  ;;  %v8578_v0 = vadd.f32 %v3532_v31, %v3412_v54  ;;  %vm3658_vm7 = vcmp.gt.f32.partialorder %v8535_v60, 0.0  ;;  %v3413_v39 = vadd.f32 %v3349_v20, %v3229_v52  ;;  %v8614_v54 = vpop.permute.xlu2 %3255 }
 0x169   : > { %6097 = vmatmul.msk.f32.gmra.mxu2 %vm1535_vm11, %v8436_v23  ;;  %v3722_v23 = vmin.f32 %v8535_v60, 0.0  ;;  %v3856_v49 = vmul.f32 1.442695, %v3733_v45  ;;  %v3986_v45 = vsel %vm3666_vm3, %v8487_v50, %v6245_v19  ;;  %v3218_v9 = vadd.f32 %v8399_v13, %v3106_v53  ;;  %v8599_v50 = vld [vmem:[%s13447_s3 + $0x58] sm:$0xff]  ;;  %14007 = vst [vmem:[#allocation17_spill] sm:$0xff] %v8614_v54 }
 0x16a   : > { %4162 = vmatpush.msra.mxu0 %v3986_v45  ;;  %v3724_v44 = vmin.f32 %v8578_v0, 0.0  ;;  %v8602_v31 = vadd.f32 %v3533_v6, %v3413_v39  ;;  %vm3659_vm8 = vcmp.gt.f32.partialorder %v8556_v2, 0.0  ;;  %v3339_v20 = vmul.f32 %v8440_v3, %v8416_v1 }
 0x16b   : > { %v3834_v5 = vmul.f32 1.442695, %v3722_v23  ;;  %6626 = vpow2.f32 %v3856_v49  ;;  %v6623_v40 = vpop.eup %6622  ;;  %v3522_v49 = vmul.f32 %v8428_v58, %v8545_v32  ;;  %v3108_v56 = vmul.f32 %v8452_v30, %v8342_v25 }
 0x16c   : > { %v6246_v46 = vadd.f32 -1.0, %v6623_v40  ;;  %v6625_v34 = vpop.eup %6624  ;;  %v3838_v40 = vmul.f32 1.442695, %v3724_v44  ;;  %v3725_v19 = vmin.f32 %v8602_v31, 0.0  ;;  %v3523_v52 = vmul.f32 %v8442_v8, %v8545_v32 }
 0x16d   : > { %6628 = vpow2.f32 %v3834_v5  ;;  %v6247_v41 = vadd.f32 -1.0, %v6625_v34  ;;  %v3107_v5 = vmul.f32 %v8438_v28, %v8342_v25  ;;  %v3340_v45 = vmul.f32 %v8468_v4, %v8416_v1 }
 0x16e   : > { %6067 = vmatmul.msk.f32.gmra.mxu0 %vm1535_vm11, %v8550_v21  ;;  %6082 = vmatmul.msk.f32.gmra.mxu1 %vm1535_vm11, %v8498_v15  ;;  %v3987_v23 = vsel %vm3667_vm4, %v8500_v48, %v6246_v46  ;;  %6630 = vpow2.f32 %v3836_v37  ;;  %v3220_v37 = vadd.f32 %v8399_v13, %v3108_v56  ;;  %v3840_v34 = vmul.f32 1.442695, %v3725_v19 }
 0x16f   : > { %6115 = vmatmul.msk.f32.gmra.mxu3 %vm1535_vm11, %v8550_v21  ;;  %4227 = vmatpush.msrb.mxu1 %v3987_v23  ;;  %v3988_v14 = vsel %vm3668_vm5, %v8514_v61, %v6247_v41  ;;  %v3219_v46 = vadd.f32 %v8399_v13, %v3107_v5  ;;  %6632 = vpow2.f32 %v3838_v40  ;;  %vm3660_vm9 = vcmp.gt.f32.partialorder %v8578_v0, 0.0 }
 0x170   : > { %4292 = vmatpush.msrb.mxu2 %v3988_v14  ;;  %6634 = vpow2.f32 %v3840_v34  ;;  %v3404_v44 = vadd.f32 %v3340_v45, %v3220_v37  ;;  %v3341_v14 = vmul.f32 %v8481_v16, %v8416_v1  ;;  %vm3661_vm10 = vcmp.gt.f32.partialorder %v8602_v31, 0.0 }
 0x171   : > { %6098 = vmatmul.msk.f32.gmra.mxu2 %vm1535_vm11, %v8498_v15  ;;  %v3402_v15 = vadd.f32 %v3338_v47, %v3218_v9  ;;  %v6627_v48 = vpop.eup %6626  ;;  %v3403_v41 = vadd.f32 %v3339_v20, %v3219_v46  ;;  %v3330_v46 = vmul.f32 %v8426_v17, %v8509_v55 }
 0x172   : > { %v6248_v6 = vadd.f32 -1.0, %v6627_v48 }
 0x173   : > { %v6629_v33 = vpop.eup %6628  ;;  %v8621_v53 = vadd.f32 %v3522_v49, %v3402_v15  ;;  %v8637_v49 = vpop.permute.xlu1 %3443  ;;  %v3524_v15 = vmul.f32 %v8471_v35, %v8545_v32  ;;  %v8643_v48 = vadd.f32 %v3523_v52, %v3403_v41 }
 0x174   : > { %v6237_v61 = vadd.f32 -1.0, %v6629_v33  ;;  %v3989_v47 = vsel %vm3669_vm6, %v8528_v12, %v6248_v6  ;;  %v6631_v39 = vpop.eup %6630  ;;  %v3098_v33 = vmul.f32 %v8424_v36, %v8358_v62  ;;  %v3514_v45 = vmul.f32 %v8428_v58, %v8637_v49 }
 0x175   : > { %4357 = vmatpush.msra.mxu3 %v3989_v47  ;;  %v3714_v23 = vmin.f32 %v8621_v53, 0.0  ;;  %v6238_v12 = vadd.f32 -1.0, %v6631_v39  ;;  %v8655_v56 = vadd.f32 %v3524_v15, %v3404_v44  ;;  %v3715_v6 = vmin.f32 %v8643_v48, 0.0  ;;  %v6633_v19 = vpop.eup %6632 }
 0x176   : > { %6068 = vmatmul.msk.f32.gmra.mxu0 %vm1535_vm11, %v8599_v50  ;;  %v3978_v9 = vsel %vm3658_vm7, %v8535_v60, %v6237_v61  ;;  %v3109_v60 = vmul.f32 %v8473_v10, %v8342_v25  ;;  %6083 = vmatmul.msk.f32.gmra.mxu1 %vm1535_vm11, %v8550_v21  ;;  %vm3650_vm12 = vcmp.gt.f32.partialorder %v8621_v53, 0.0  ;;  %v3210_v61 = vadd.f32 %v8475_v29, %v3098_v33  ;;  %v6635_v39 = vpop.eup %6634 }
 0x177   : > { %6116 = vmatmul.msk.f32.gmra.mxu3 %vm1535_vm11, %v8599_v50  ;;  %4163 = vmatpush.msra.mxu0 %v3978_v9  ;;  %v3818_v5 = vmul.f32 1.442695, %v3714_v23  ;;  %v3979_v20 = vsel %vm3659_vm8, %v8556_v2, %v6238_v12  ;;  %v8666_v2 = vld [vmem:[%s13447_s3 + $0x60] sm:$0xff]  ;;  %v3716_v52 = vmin.f32 %v8655_v56, 0.0  ;;  %v6239_v37 = vadd.f32 -1.0, %v6633_v19  ;;  %v8677_v9 = vpop.permute.xlu2 %3005 }
 0x178   : > { %4228 = vmatpush.msrb.mxu1 %v3979_v20  ;;  %v3221_v40 = vadd.f32 %v8399_v13, %v3109_v60  ;;  %v3820_v47 = vmul.f32 1.442695, %v3715_v6  ;;  %v3394_v41 = vadd.f32 %v3330_v46, %v3210_v61  ;;  %v3099_v12 = vmul.f32 %v8438_v28, %v8358_v62 }
 0x179   : > { %6099 = vmatmul.msk.f32.gmra.mxu2 %vm1535_vm11, %v8550_v21  ;;  %6636 = vpow2.f32 %v3818_v5  ;;  %v3525_v21 = vmul.f32 %v8483_v57, %v8545_v32  ;;  %v3822_v23 = vmul.f32 1.442695, %v3716_v52  ;;  %v3331_v44 = vmul.f32 %v8440_v3, %v8509_v55 }
 0x17a   : > { %v3405_v34 = vadd.f32 %v3341_v14, %v3221_v40  ;;  %v3980_v15 = vsel %vm3660_vm9, %v8578_v0, %v6239_v37  ;;  %v6240_v5 = vadd.f32 -1.0, %v6635_v39  ;;  %6638 = vpow2.f32 %v3820_v47 }
 0x17b   : > { %4293 = vmatpush.msrb.mxu2 %v3980_v15  ;;  %6640 = vpow2.f32 %v3822_v23  ;;  %v8690_v14 = vadd.f32 %v3514_v45, %v3394_v41  ;;  %v3211_v20 = vadd.f32 %v8475_v29, %v3099_v12  ;;  %v3515_v33 = vmul.f32 %v8442_v8, %v8637_v49  ;;  %v8706_v19 = vpop.permute.xlu1 %3251 }
 0x17c   : > { %v8688_v60 = vadd.f32 %v3525_v21, %v3405_v34  ;;  %v3981_v40 = vsel %vm3661_vm10, %v8602_v31, %v6240_v5  ;;  %vm3651_vm13 = vcmp.gt.f32.partialorder %v8643_v48, 0.0  ;;  %v3100_v21 = vmul.f32 %v8452_v30, %v8358_v62 }
 0x17d   : > { %4358 = vmatpush.msra.mxu3 %v3981_v40  ;;  %vm3652_vm14 = vcmp.gt.f32.partialorder %v8655_v56, 0.0  ;;  %v3706_v31 = vmin.f32 %v8690_v14, 0.0  ;;  %v3395_v61 = vadd.f32 %v3331_v44, %v3211_v20  ;;  %v3332_v47 = vmul.f32 %v8468_v4, %v8509_v55 }
 0x17e   : > { %6069 = vmatmul.msk.f32.gmra.mxu0 %vm1535_vm11, %v8666_v2  ;;  %v3717_v0 = vmin.f32 %v8688_v60, 0.0  ;;  %6084 = vmatmul.msk.f32.gmra.mxu1 %vm1535_vm11, %v8599_v50  ;;  %v3212_v37 = vadd.f32 %v8475_v29, %v3100_v21  ;;  %v3516_v34 = vmul.f32 %v8471_v35, %v8637_v49  ;;  %v3101_v23 = vmul.f32 %v8473_v10, %v8358_v62 }
 0x17f   : > { %6117 = vmatmul.msk.f32.gmra.mxu3 %vm1535_vm11, %v8666_v2  ;;  %v6637_v6 = vpop.eup %6636  ;;  %v3802_v45 = vmul.f32 1.442695, %v3706_v31  ;;  %v8718_v39 = vadd.f32 %v3515_v33, %v3395_v61  ;;  %vm3653_vm15 = vcmp.gt.f32.partialorder %v8688_v60, 0.0  ;;  %v3333_v44 = vmul.f32 %v8481_v16, %v8509_v55  ;;  %v8731_v33 = vld [vmem:[%s13447_s3 + $0x68] sm:$0xff]  ;;  %v8747_v31 = vpop.permute.xlu2 %3439 }
 0x180   : > { %v6229_v52 = vadd.f32 -1.0, %v6637_v6  ;;  %v3824_v46 = vmul.f32 1.442695, %v3717_v0  ;;  %v6639_v41 = vpop.eup %6638  ;;  %v3396_v12 = vadd.f32 %v3332_v47, %v3212_v37  ;;  %v3517_v20 = vmul.f32 %v8483_v57, %v8637_v49  ;;  %v8738_v6 = vld [vmem:[%s13447_s3] sm:$0xff]  ;;  %14008 = vst [vmem:[#allocation20_spill] sm:$0xff] %v8747_v31 }
 0x181   : > { %6100 = vmatmul.msk.f32.gmra.mxu2 %vm1535_vm11, %v8599_v50  ;;  %v6641_v15 = vpop.eup %6640  ;;  %v6230_v5 = vadd.f32 -1.0, %v6639_v41  ;;  %v3213_v21 = vadd.f32 %v8475_v29, %v3101_v23  ;;  %vm3642_vm0 = vcmp.gt.f32.partialorder %v8690_v14, 0.0  ;;  %v3322_v37 = vmul.f32 %v8426_v17, %v8614_v54 }
 0x182   : > { %v3970_v50 = vsel %vm3650_vm12, %v8621_v53, %v6229_v52  ;;  %6642 = vpow2.f32 %v3824_v46  ;;  %v3707_v53 = vmin.f32 %v8718_v39, 0.0  ;;  %v6231_v40 = vadd.f32 -1.0, %v6641_v15 }
 0x183   : > { %4164 = vmatpush.msra.mxu0 %v3970_v50  ;;  %6644 = vpow2.f32 %v3802_v45  ;;  %v8742_v0 = vadd.f32 %v3516_v34, %v3396_v12  ;;  %v3090_v52 = vmul.f32 %v8424_v36, %v8430_v18  ;;  %v3971_v61 = vsel %vm3651_vm13, %v8643_v48, %v6230_v5 }
 0x184   : > { %v3804_v46 = vmul.f32 1.442695, %v3707_v53  ;;  %4229 = vmatpush.msrb.mxu1 %v3971_v61  ;;  %v3972_v47 = vsel %vm3652_vm14, %v8655_v56, %v6231_v40  ;;  %v3397_v50 = vadd.f32 %v3333_v44, %v3213_v21  ;;  %v3506_v45 = vmul.f32 %v8428_v58, %v8747_v31  ;;  %v8776_v40 = vpop.permute.xlu1 %3145 }
 0x185   : > { %v3708_v34 = vmin.f32 %v8742_v0, 0.0  ;;  %4294 = vmatpush.msrb.mxu2 %v3972_v47  ;;  %v3202_v48 = vadd.f32 %v8571_v38, %v3090_v52  ;;  %v3091_v23 = vmul.f32 %v8438_v28, %v8430_v18  ;;  %v3323_v41 = vmul.f32 %v8440_v3, %v8614_v54 }
 0x186   : > { %6121 = vmatmul.msk.f32.vlgmr.msrb.gmra.mxu0 %vm1535_vm11, %v8738_v6  ;;  %6646 = vpow2.f32 %v3804_v46  ;;  %6085 = vmatmul.msk.f32.gmra.mxu1 %vm1535_vm11, %v8666_v2  ;;  %v8770_v44 = vadd.f32 %v3517_v20, %v3397_v50  ;;  %v3507_v15 = vmul.f32 %v8442_v8, %v8747_v31  ;;  %v3092_v5 = vmul.f32 %v8452_v30, %v8430_v18 }
 0x187   : > { %6118 = vmatmul.msk.f32.gmra.mxu3 %vm1535_vm11, %v8731_v33  ;;  %v3806_v12 = vmul.f32 1.442695, %v3708_v34  ;;  %v3386_v52 = vadd.f32 %v3322_v37, %v3202_v48  ;;  %v3203_v61 = vadd.f32 %v8571_v38, %v3091_v23  ;;  %v8791_v37 = vld [vmem:[%s13447_s3 + $0x70] sm:$0xff]  ;;  %vm3643_vm1 = vcmp.gt.f32.partialorder %v8718_v39, 0.0 }
 0x188   : > { %v6643_v56 = vpop.eup %6642  ;;  %v3709_v20 = vmin.f32 %v8770_v44, 0.0  ;;  %v3204_v29 = vadd.f32 %v8571_v38, %v3092_v5  ;;  %vm3644_vm2 = vcmp.gt.f32.partialorder %v8742_v0, 0.0  ;;  %vm3645_vm3 = vcmp.gt.f32.partialorder %v8770_v44, 0.0 }
 0x189   : > { %6101 = vmatmul.msk.f32.gmra.mxu2 %vm1535_vm11, %v8666_v2  ;;  %v6645_v53 = vpop.eup %6644  ;;  %v6232_v21 = vadd.f32 -1.0, %v6643_v56  ;;  %v3324_v2 = vmul.f32 %v8468_v4, %v8614_v54  ;;  %6648 = vpow2.f32 %v3806_v12  ;;  %v8785_v34 = vadd.f32 %v3506_v45, %v3386_v52 }
 0x18a   : > { %v6221_v46 = vadd.f32 -1.0, %v6645_v53  ;;  %v3387_v50 = vadd.f32 %v3323_v41, %v3203_v61  ;;  %v3808_v23 = vmul.f32 1.442695, %v3709_v20  ;;  %v3093_v45 = vmul.f32 %v8473_v10, %v8430_v18  ;;  %v8805_v41 = vld [vmem:[%s13447_s3 + $0x8] sm:$0xff] }
 0x18b   : > { %v3973_v47 = vsel %vm3653_vm15, %v8688_v60, %v6232_v21  ;;  %v3508_v60 = vmul.f32 %v8471_v35, %v8747_v31  ;;  %v3388_v5 = vadd.f32 %v3324_v2, %v3204_v29  ;;  %v3325_v52 = vmul.f32 %v8481_v16, %v8614_v54 }
 0x18c   : > { %4359 = vmatpush.msra.mxu3 %v3973_v47  ;;  %v3962_v48 = vsel %vm3642_vm0, %v8690_v14, %v6221_v46  ;;  %v6647_v56 = vpop.eup %6646  ;;  %v3698_v14 = vmin.f32 %v8785_v34, 0.0  ;;  %v8811_v12 = vadd.f32 %v3507_v15, %v3387_v50  ;;  %6650 = vpow2.f32 %v3808_v23 }
 0x18d   : > { %4165 = vmatpush.msra.mxu0 %v3962_v48  ;;  %v6222_v53 = vadd.f32 -1.0, %v6647_v56  ;;  %v3205_v21 = vadd.f32 %v8571_v38, %v3093_v45  ;;  %v8820_v20 = vadd.f32 %v3508_v60, %v3388_v5  ;;  %v3509_v47 = vmul.f32 %v8483_v57, %v8747_v31  ;;  %v8830_v60 = vpop.permute.xlu0 %3435 }
 0x18e   : > { %6122 = vmatmul.msk.f32.gmra.mxu0 %vm1535_vm11, %v8805_v41  ;;  %v3786_v61 = vmul.f32 1.442695, %v3698_v14  ;;  %v3699_v46 = vmin.f32 %v8811_v12, 0.0  ;;  %6086 = vmatmul.msk.f32.gmra.mxu1 %vm1535_vm11, %v8731_v33  ;;  %v3082_v50 = vmul.f32 %v8424_v36, %v8391_v59  ;;  %14009 = vst [vmem:[#allocation8_spill] sm:$0xff] %v8830_v60  ;;  %v3314_v56 = vmul.f32 %v8426_v17, %v8706_v19  ;;  %v8838_v14 = vpop.permute.xlu1 %3140 }
 0x18f   : > { %6119 = vmatmul.msk.f32.gmra.mxu3 %vm1535_vm11, %v8791_v37  ;;  %v6649_v29 = vpop.eup %6648  ;;  %v3963_v15 = vsel %vm3643_vm1, %v8718_v39, %v6222_v53  ;;  %v3389_v2 = vadd.f32 %v3325_v52, %v3205_v21  ;;  %v3498_v53 = vmul.f32 %v8428_v58, %v8830_v60  ;;  %v3083_v21 = vmul.f32 %v8438_v28, %v8391_v59  ;;  %v8850_v52 = vld [vmem:[%s13447_s3 + $0x78] sm:$0xff] }
 0x190   : > { %4230 = vmatpush.msrb.mxu1 %v3963_v15  ;;  %v6223_v48 = vadd.f32 -1.0, %v6649_v29  ;;  %6652 = vpow2.f32 %v3786_v61  ;;  %v3788_v23 = vmul.f32 1.442695, %v3699_v46  ;;  %v3194_v39 = vadd.f32 %v8412_v7, %v3082_v50  ;;  %v8859_v15 = vld [vmem:[%s13447_s3 + $0x10] sm:$0xff] }
 0x191   : > { %6102 = vmatmul.msk.f32.gmra.mxu2 %vm1535_vm11, %v8731_v33  ;;  %v3700_v33 = vmin.f32 %v8820_v20, 0.0  ;;  %v8833_v45 = vadd.f32 %v3509_v47, %v3389_v2  ;;  %vm3634_vm4 = vcmp.gt.f32.partialorder %v8785_v34, 0.0  ;;  %v8863_v2 = vpop.permute.xlu2 %3247  ;;  %v3195_v50 = vadd.f32 %v8412_v7, %v3083_v21 }
 0x192   : > { %v3964_v5 = vsel %vm3644_vm2, %v8742_v0, %v6223_v48  ;;  %6654 = vpow2.f32 %v3788_v23  ;;  %v6651_v61 = vpop.eup %6650  ;;  %v3378_v29 = vadd.f32 %v3314_v56, %v3194_v39  ;;  %v3315_v48 = vmul.f32 %v8440_v3, %v8706_v19 }
 0x193   : > { %4295 = vmatpush.msrb.mxu2 %v3964_v5  ;;  %v3790_v0 = vmul.f32 1.442695, %v3700_v33  ;;  %v3701_v46 = vmin.f32 %v8833_v45, 0.0  ;;  %v6224_v47 = vadd.f32 -1.0, %v6651_v61  ;;  %v3499_v23 = vmul.f32 %v8442_v8, %v8830_v60 }
 0x194   : > { %v8870_v39 = vadd.f32 %v3498_v53, %v3378_v29  ;;  %v3084_v56 = vmul.f32 %v8452_v30, %v8391_v59  ;;  %vm3635_vm5 = vcmp.gt.f32.partialorder %v8811_v12, 0.0  ;;  %v3379_v61 = vadd.f32 %v3315_v48, %v3195_v50 }
 0x195   : > { %6656 = vpow2.f32 %v3790_v0  ;;  %v3792_v33 = vmul.f32 1.442695, %v3701_v46  ;;  %v3965_v21 = vsel %vm3645_vm3, %v8770_v44, %v6224_v47  ;;  %v3316_v0 = vmul.f32 %v8468_v4, %v8706_v19 }
 0x196   : > { %6123 = vmatmul.msk.f32.gmra.mxu0 %vm1535_vm11, %v8859_v15  ;;  %v6653_v5 = vpop.eup %6652  ;;  %6087 = vmatmul.msk.f32.gmra.mxu1 %vm1535_vm11, %v8791_v37  ;;  %v3690_v46 = vmin.f32 %v8870_v39, 0.0  ;;  %v3500_v29 = vmul.f32 %v8471_v35, %v8830_v60  ;;  %v8887_v54 = vadd.f32 %v3499_v23, %v3379_v61  ;;  %v3196_v44 = vadd.f32 %v8412_v7, %v3084_v56 }
 0x197   : > { %6120 = vmatmul.msk.f32.gmra.mxu3 %vm1535_vm11, %v8850_v52  ;;  %v6213_v53 = vadd.f32 -1.0, %v6653_v5  ;;  %6658 = vpow2.f32 %v3792_v33  ;;  %v3085_v47 = vmul.f32 %v8473_v10, %v8391_v59  ;;  %v3317_v50 = vmul.f32 %v8481_v16, %v8706_v19 }
 0x198   : > { %4360 = vmatpush.msra.mxu3 %v3965_v21  ;;  %v6655_v31 = vpop.eup %6654  ;;  %vm3636_vm6 = vcmp.gt.f32.partialorder %v8820_v20, 0.0  ;;  %v3770_v33 = vmul.f32 1.442695, %v3690_v46  ;;  %v3691_v23 = vmin.f32 %v8887_v54, 0.0  ;;  %v3380_v5 = vadd.f32 %v3316_v0, %v3196_v44  ;;  %v8918_v46 = vpop.permute.xlu1 %3431 }
 0x199   : > { %6103 = vmatmul.msk.f32.gmra.mxu2 %vm1535_vm11, %v8791_v37  ;;  %v3954_v37 = vsel %vm3634_vm4, %v8785_v34, %v6213_v53  ;;  %v6214_v48 = vadd.f32 -1.0, %v6655_v31  ;;  %v3197_v56 = vadd.f32 %v8412_v7, %v3085_v47  ;;  %v3501_v21 = vmul.f32 %v8483_v57, %v8830_v60  ;;  %v8914_v53 = vld [vmem:[%s13447_s3 + $0x18] sm:$0xff] }
 0x19a   : > { %4166 = vmatpush.msra.mxu0 %v3954_v37  ;;  %6660 = vpow2.f32 %v3770_v33  ;;  %v3074_v34 = vmul.f32 %v8424_v36, %v8677_v9  ;;  %v3306_v0 = vmul.f32 %v8426_v17, %v8863_v2  ;;  %v8920_v47 = vadd.f32 %v3500_v29, %v3380_v5 }
 0x19b   : > { %v6657_v61 = vpop.eup %6656  ;;  %v3955_v31 = vsel %vm3635_vm5, %v8811_v12, %v6214_v48  ;;  %v3772_v12 = vmul.f32 1.442695, %v3691_v23  ;;  %v3381_v37 = vadd.f32 %v3317_v50, %v3197_v56  ;;  %vm3637_vm7 = vcmp.gt.f32.partialorder %v8833_v45, 0.0 }
 0x19c   : > { %4231 = vmatpush.msrb.mxu1 %v3955_v31  ;;  %v6215_v44 = vadd.f32 -1.0, %v6657_v61  ;;  %v3186_v33 = vadd.f32 %v8776_v40, %v3074_v34  ;;  %v3490_v60 = vmul.f32 %v8428_v58, %v8918_v46  ;;  %v3075_v7 = vmul.f32 %v8438_v28, %v8677_v9  ;;  %v8930_v31 = vpop.permute.xlu2 %3243 }
 0x19d   : > { %v6659_v48 = vpop.eup %6658  ;;  %6662 = vpow2.f32 %v3772_v12  ;;  %v3307_v23 = vmul.f32 %v8440_v3, %v8863_v2  ;;  %v3692_v5 = vmin.f32 %v8920_v47, 0.0  ;;  %v8940_v56 = vadd.f32 %v3501_v21, %v3381_v37 }
 0x19e   : > { %6124 = vmatmul.msk.f32.gmra.mxu0 %vm1535_vm11, %v8914_v53  ;;  %v3956_v29 = vsel %vm3636_vm6, %v8820_v20, %v6215_v44  ;;  %v6216_v50 = vadd.f32 -1.0, %v6659_v48  ;;  %6088 = vmatmul.msk.f32.gmra.mxu1 %vm1535_vm11, %v8850_v52  ;;  %v3370_v61 = vadd.f32 %v3306_v0, %v3186_v33  ;;  %v3187_v34 = vadd.f32 %v8776_v40, %v3075_v7 }
 0x19f   : > { %6169 = vmatmul.msk.f32.vlgmr.msrb.gmra.mxu3 %vm1535_vm11, %v8738_v6  ;;  %4296 = vmatpush.msrb.mxu2 %v3956_v29  ;;  %v3491_v44 = vmul.f32 %v8442_v8, %v8918_v46  ;;  %v3076_v12 = vmul.f32 %v8452_v30, %v8677_v9  ;;  %vm3626_vm8 = vcmp.gt.f32.partialorder %v8870_v39, 0.0  ;;  %v3774_v21 = vmul.f32 1.442695, %v3692_v5 }
 0x1a0   : > { %v3957_v20 = vsel %vm3637_vm7, %v8833_v45, %v6216_v50  ;;  %v6661_v48 = vpop.eup %6660  ;;  %v3693_v7 = vmin.f32 %v8940_v56, 0.0  ;;  %v8954_v0 = vadd.f32 %v3490_v60, %v3370_v61  ;;  %v3371_v45 = vadd.f32 %v3307_v23, %v3187_v34  ;;  %v8966_v60 = vld [vmem:[%s13447_s3 + $0x20] sm:$0xff] }
 0x1a1   : > { %6104 = vmatmul.msk.f32.gmra.mxu2 %vm1535_vm11, %v8850_v52  ;;  %v3308_v52 = vmul.f32 %v8468_v4, %v8863_v2  ;;  %4361 = vmatpush.msra.mxu3 %v3957_v20  ;;  %v6205_v37 = vadd.f32 -1.0, %v6661_v48  ;;  %v3188_v33 = vadd.f32 %v8776_v40, %v3076_v12  ;;  %v3492_v29 = vmul.f32 %v8471_v35, %v8918_v46 }
 0x1a2   : > { %vm3627_vm9 = vcmp.gt.f32.partialorder %v8887_v54, 0.0  ;;  %6664 = vpow2.f32 %v3774_v21  ;;  %v3776_v50 = vmul.f32 1.442695, %v3693_v7  ;;  %v3682_v5 = vmin.f32 %v8954_v0, 0.0 }
 0x1a3   : > { %v6663_v23 = vpop.eup %6662  ;;  %v3946_v61 = vsel %vm3626_vm8, %v8870_v39, %v6205_v37  ;;  %v8973_v34 = vadd.f32 %v3491_v44, %v3371_v45  ;;  %v3372_v20 = vadd.f32 %v3308_v52, %v3188_v33  ;;  %v3077_v12 = vmul.f32 %v8473_v10, %v8677_v9 }
 0x1a4   : > { %4167 = vmatpush.msra.mxu0 %v3946_v61  ;;  %v6206_v48 = vadd.f32 -1.0, %v6663_v23  ;;  %6666 = vpow2.f32 %v3776_v50  ;;  %v3754_v21 = vmul.f32 1.442695, %v3682_v5  ;;  %v3309_v7 = vmul.f32 %v8481_v16, %v8863_v2  ;;  %v8995_v50 = vpop.permute.xlu2 %3427 }
 0x1a5   : > { %vm3628_vm10 = vcmp.gt.f32.partialorder %v8920_v47, 0.0  ;;  %v3683_v39 = vmin.f32 %v8973_v34, 0.0  ;;  %v8983_v44 = vadd.f32 %v3492_v29, %v3372_v20  ;;  %v3189_v52 = vadd.f32 %v8776_v40, %v3077_v12 }
 0x1a6   : > { %6125 = vmatmul.msk.f32.gmra.mxu0 %vm1535_vm11, %v8966_v60  ;;  %6137 = vmatmul.msk.f32.vlgmr.msra.gmra.mxu1 %vm1535_vm11, %v8738_v6  ;;  %v3947_v37 = vsel %vm3627_vm9, %v8887_v54, %v6206_v48  ;;  %6668 = vpow2.f32 %v3754_v21  ;;  %v3493_v45 = vmul.f32 %v8483_v57, %v8918_v46  ;;  %v3066_v33 = vmul.f32 %v8424_v36, %v8444_v22 }
 0x1a7   : > { %6170 = vmatmul.msk.f32.gmra.mxu3 %vm1535_vm11, %v8805_v41  ;;  %4232 = vmatpush.msrb.mxu1 %v3947_v37  ;;  %vm3629_vm12 = vcmp.gt.f32.partialorder %v8940_v56, 0.0  ;;  %v3756_v29 = vmul.f32 1.442695, %v3683_v39  ;;  %v3684_v5 = vmin.f32 %v8983_v44, 0.0  ;;  %v3298_v54 = vmul.f32 %v8426_v17, %v8930_v31 }
 0x1a8   : > { %v6665_v23 = vpop.eup %6664  ;;  %v3178_v61 = vadd.f32 %v8838_v14, %v3066_v33  ;;  %v3482_v20 = vmul.f32 %v8428_v58, %v8995_v50  ;;  %v3067_v36 = vmul.f32 %v8438_v28, %v8444_v22  ;;  %v3299_v17 = vmul.f32 %v8440_v3, %v8930_v31  ;;  %v9018_v28 = vld [vmem:[%s13447_s3 + $0x28] sm:$0xff] }
 0x1a9   : > { %6153 = vmatmul.msk.f32.vlgmr.msra.gmra.mxu2 %vm1535_vm11, %v8738_v6  ;;  %v3373_v6 = vadd.f32 %v3309_v7, %v3189_v52  ;;  %v6207_v12 = vadd.f32 -1.0, %v6665_v23  ;;  %6670 = vpow2.f32 %v3756_v29  ;;  %v3758_v48 = vmul.f32 1.442695, %v3684_v5 }
 0x1aa   : > { %v6667_v7 = vpop.eup %6666  ;;  %v3362_v39 = vadd.f32 %v3298_v54, %v3178_v61  ;;  %v3179_v52 = vadd.f32 %v8838_v14, %v3067_v36  ;;  %v3483_v58 = vmul.f32 %v8442_v8, %v8995_v50  ;;  %vm3618_vm13 = vcmp.gt.f32.partialorder %v8954_v0, 0.0 }
 0x1ab   : > { %v9006_v21 = vadd.f32 %v3493_v45, %v3373_v6  ;;  %v3948_v37 = vsel %vm3628_vm10, %v8920_v47, %v6207_v12  ;;  %v6208_v45 = vadd.f32 -1.0, %v6667_v7  ;;  %6672 = vpow2.f32 %v3758_v48  ;;  %v9055_v48 = vld [vmem:[%s7066_s21 + $0x30] sm:$0x77] }
 0x1ac   : > { %v6669_v3 = vpop.eup %6668  ;;  %4297 = vmatpush.msrb.mxu2 %v3948_v37  ;;  %v9027_v33 = vadd.f32 %v3482_v20, %v3362_v39  ;;  %v3363_v29 = vadd.f32 %v3299_v17, %v3179_v52  ;;  %v3068_v5 = vmul.f32 %v8452_v30, %v8444_v22  ;;  %vm3619_vm14 = vcmp.gt.f32.partialorder %v8973_v34, 0.0 }
 0x1ad   : > { %v3685_v8 = vmin.f32 %v9006_v21, 0.0  ;;  %v3949_v6 = vsel %vm3629_vm12, %v8940_v56, %v6208_v45  ;;  %v6197_v47 = vadd.f32 -1.0, %v6669_v3  ;;  %v3300_v23 = vmul.f32 %v8468_v4, %v8930_v31  ;;  %v9071_v45 = vld [vmem:[%s13447_s3 + $0x30] sm:$0xff] }
 0x1ae   : > { %6126 = vmatmul.msk.f32.gmra.mxu0 %vm1535_vm11, %v9018_v28  ;;  %6138 = vmatmul.msk.f32.gmra.mxu1 %vm1535_vm11, %v8805_v41  ;;  %v3674_v30 = vmin.f32 %v9027_v33, 0.0  ;;  %v9042_v54 = vadd.f32 %v3483_v58, %v3363_v29  ;;  %v3484_v56 = vmul.f32 %v8471_v35, %v8995_v50  ;;  %v3180_v36 = vadd.f32 %v8838_v14, %v3068_v5 }
 0x1af   : > { %6171 = vmatmul.msk.f32.gmra.mxu3 %vm1535_vm11, %v8859_v15  ;;  %v3760_v61 = vmul.f32 1.442695, %v3685_v8  ;;  %v6671_v20 = vpop.eup %6670  ;;  %v3938_v4 = vsel %vm3618_vm13, %v8954_v0, %v6197_v47  ;;  %v3069_v12 = vmul.f32 %v8473_v10, %v8444_v22  ;;  %vm3620_vm15 = vcmp.gt.f32.partialorder %v8983_v44, 0.0 }
 0x1b0   : > { %4362 = vmatpush.msra.mxu3 %v3949_v6  ;;  %4168 = vmatpush.msra.mxu0 %v3938_v4  ;;  %v6198_v7 = vadd.f32 -1.0, %v6671_v20  ;;  %v3738_v35 = vmul.f32 1.442695, %v3674_v30  ;;  %v3675_v52 = vmin.f32 %v9042_v54, 0.0  ;;  %v3364_v0 = vadd.f32 %v3300_v23, %v3180_v36 }
 0x1b1   : > { %6154 = vmatmul.msk.f32.gmra.mxu2 %vm1535_vm11, %v8805_v41  ;;  %v3301_v41 = vmul.f32 %v8481_v16, %v8930_v31  ;;  %6674 = vpow2.f32 %v3760_v61  ;;  %v6673_v39 = vpop.eup %6672  ;;  %v3181_v17 = vadd.f32 %v8838_v14, %v3069_v12  ;;  %v3485_v10 = vmul.f32 %v8483_v57, %v8995_v50 }
 0x1b2   : > { %v3939_v16 = vsel %vm3619_vm14, %v8973_v34, %v6198_v7  ;;  %v6199_v58 = vadd.f32 -1.0, %v6673_v39  ;;  %6676 = vpow2.f32 %v3738_v35  ;;  %v3046_v37 = vperm.slane %v9055_v48, 0 }
 0x1b3   : > { %4233 = vmatpush.msrb.mxu1 %v3939_v16  ;;  %v3740_v57 = vmul.f32 1.442695, %v3675_v52  ;;  %v9075_v3 = vadd.f32 %v3484_v56, %v3364_v0  ;;  %v3365_v8 = vadd.f32 %v3301_v41, %v3181_v17  ;;  %v3278_v29 = vperm.slane %v9055_v48, 1 }
 0x1b4   : > { %v3940_v34 = vsel %vm3620_vm15, %v8983_v44, %v6199_v58  ;;  %vm3621_vm0 = vcmp.gt.f32.partialorder %v9006_v21, 0.0  ;;  %v9082_v5 = vperm.slane %v3046_v37, 0  ;;  %v3462_v6 = vperm.slane %v9055_v48, 2 }
 0x1b5   : > { %4298 = vmatpush.msrb.mxu2 %v3940_v34  ;;  %vm3610_vm1 = vcmp.gt.f32.partialorder %v9027_v33, 0.0  ;;  %6678 = vpow2.f32 %v3740_v57  ;;  %v3676_v47 = vmin.f32 %v9075_v3, 0.0  ;;  %v9087_v23 = vadd.f32 %v3485_v10, %v3365_v8 }
 0x1b6   : > { %6127 = vmatmul.msk.f32.gmra.mxu0 %vm1535_vm11, %v9071_v45  ;;  %6139 = vmatmul.msk.f32.gmra.mxu1 %vm1535_vm11, %v8859_v15  ;;  %v3126_v44 = vmul.f32 %v9082_v5, %v8238_v26  ;;  %v9093_v30 = vperm.slane %v3278_v29, 1  ;;  %v9095_v56 = vperm.slane %v3462_v6, 2  ;;  %v3118_v20 = vmul.f32 %v9082_v5, %v8240_v63  ;;  %v9129_v29 = vld [vmem:[%s13447_s3 + $0x38] sm:$0xff] }
 0x1b7   : > { %6172 = vmatmul.msk.f32.gmra.mxu3 %vm1535_vm11, %v8914_v53  ;;  %v6675_v61 = vpop.eup %6674  ;;  %vm3611_vm2 = vcmp.gt.f32.partialorder %v9042_v54, 0.0  ;;  %v3742_v36 = vmul.f32 1.442695, %v3676_v47  ;;  %v3677_v12 = vmin.f32 %v9087_v23, 0.0  ;;  %v3110_v37 = vmul.f32 %v9082_v5, %v8342_v25 }
 0x1b8   : > { %v6200_v4 = vadd.f32 -1.0, %v6675_v61  ;;  %v6677_v41 = vpop.eup %6676  ;;  %v3238_v7 = vadd.f32 %v8275_v51, %v3126_v44  ;;  %v3358_v35 = vmul.f32 %v9093_v30, %v8304_v11  ;;  %v3542_v39 = vmul.f32 %v9095_v56, %v8393_v24 }
 0x1b9   : > { %6155 = vmatmul.msk.f32.gmra.mxu2 %vm1535_vm11, %v8859_v15  ;;  %v3230_v52 = vadd.f32 %v8297_v27, %v3118_v20  ;;  %v6189_v0 = vadd.f32 -1.0, %v6677_v41  ;;  %6680 = vpow2.f32 %v3742_v36  ;;  %v3744_v17 = vmul.f32 1.442695, %v3677_v12 }
 0x1ba   : > { %v3941_v15 = vsel %vm3621_vm0, %v9006_v21, %v6200_v4  ;;  %v3422_v10 = vadd.f32 %v3358_v35, %v3238_v7  ;;  %v3350_v16 = vmul.f32 %v9093_v30, %v8370_v43  ;;  %v3534_v58 = vmul.f32 %v9095_v56, %v8511_v42 }
 0x1bb   : > { %4363 = vmatpush.msra.mxu3 %v3941_v15  ;;  %v6679_v57 = vpop.eup %6678  ;;  %v3930_v21 = vsel %vm3610_vm1, %v9027_v33, %v6189_v0  ;;  %vm3612_vm3 = vcmp.gt.f32.partialorder %v9075_v3, 0.0  ;;  %6682 = vpow2.f32 %v3744_v17  ;;  %v3342_v8 = vmul.f32 %v9093_v30, %v8416_v1  ;;  %v14011_v17 = vld [vmem:[#allocation17_spill] sm:$0xff] }
 0x1bc   : > { %4169 = vmatpush.msra.mxu0 %v3930_v21  ;;  %v6190_v34 = vadd.f32 -1.0, %v6679_v57  ;;  %v9133_v6 = vadd.f32 %v3542_v39, %v3422_v10  ;;  %v3414_v47 = vadd.f32 %v3350_v16, %v3230_v52  ;;  %v3222_v33 = vadd.f32 %v8399_v13, %v3110_v37  ;;  %v14010_v52 = vld [vmem:[#allocation7_spill] sm:$0xff] }
 0x1bd   : > { %v3526_v61 = vmul.f32 %v9095_v56, %v8545_v32  ;;  %v3102_v44 = vmul.f32 %v9082_v5, %v8358_v62  ;;  %v3334_v20 = vmul.f32 %v9093_v30, %v8509_v55  ;;  %v3094_v4 = vmul.f32 %v9082_v5, %v8430_v18 }
 0x1be   : > { %6128 = vmatmul.msk.f32.gmra.mxu0 %vm1535_vm11, %v9129_v29  ;;  %6140 = vmatmul.msk.f32.gmra.mxu1 %vm1535_vm11, %v8914_v53  ;;  %v3931_v36 = vsel %vm3611_vm2, %v9042_v54, %v6190_v34  ;;  %v3734_v12 = vmin.f32 %v9133_v6, 0.0  ;;  %v9150_v41 = vadd.f32 %v3534_v58, %v3414_v47  ;;  %v3518_v7 = vmul.f32 %v9095_v56, %v8637_v49  ;;  %v14012_v34 = vld [vmem:[#allocation20_spill] sm:$0xff] }
 0x1bf   : > { %6173 = vmatmul.msk.f32.gmra.mxu3 %vm1535_vm11, %v8966_v60  ;;  %v6681_v35 = vpop.eup %6680  ;;  %4234 = vmatpush.msrb.mxu1 %v3931_v36  ;;  %v3406_v39 = vadd.f32 %v3342_v8, %v3222_v33  ;;  %v3214_v15 = vadd.f32 %v14010_v52, %v3102_v44  ;;  %v3206_v0 = vadd.f32 %v8571_v38, %v3094_v4  ;;  %vm3613_vm4 = vcmp.gt.f32.partialorder %v9087_v23, 0.0  ;;  %v9179_v36 = vld [vmem:[%s13447_s3 + $0x40] sm:$0xff] }
 0x1c0   : > { %v3326_v54 = vmul.f32 %v9093_v30, %v14011_v17  ;;  %v6191_v10 = vadd.f32 -1.0, %v6681_v35  ;;  %v3858_v16 = vmul.f32 1.442695, %v3734_v12  ;;  %v3726_v58 = vmin.f32 %v9150_v41, 0.0 }
 0x1c1   : > { %6156 = vmatmul.msk.f32.gmra.mxu2 %vm1535_vm11, %v8914_v53  ;;  %v6683_v37 = vpop.eup %6682  ;;  %v9162_v57 = vadd.f32 %v3526_v61, %v3406_v39  ;;  %v3398_v53 = vadd.f32 %v3334_v20, %v3214_v15  ;;  %v3510_v8 = vmul.f32 %v9095_v56, %v14012_v34  ;;  %v3086_v12 = vmul.f32 %v9082_v5, %v8391_v59  ;;  %v14013_v15 = vld [vmem:[#allocation16_spill] sm:$0xff] }
 0x1c2   : > { %v3390_v21 = vadd.f32 %v3326_v54, %v3206_v0  ;;  %v3932_v47 = vsel %vm3612_vm3, %v9075_v3, %v6191_v10  ;;  %v6192_v33 = vadd.f32 -1.0, %v6683_v37  ;;  %6684 = vpow2.f32 %v3858_v16  ;;  %v14014_v54 = vld [vmem:[#allocation8_spill] sm:$0xff] }
 0x1c3   : > { %v3842_v44 = vmul.f32 1.442695, %v3726_v58  ;;  %4299 = vmatpush.msrb.mxu2 %v3932_v47  ;;  %v3718_v4 = vmin.f32 %v9162_v57, 0.0  ;;  %v9172_v61 = vadd.f32 %v3518_v7, %v3398_v53  ;;  %v3318_v7 = vmul.f32 %v9093_v30, %v8706_v19 }
 0x1c4   : > { %v9174_v20 = vadd.f32 %v3510_v8, %v3390_v21  ;;  %v3933_v3 = vsel %vm3613_vm4, %v9087_v23, %v6192_v33  ;;  %vm3670_vm5 = vcmp.gt.f32.partialorder %v9133_v6, 0.0  ;;  %vm3662_vm6 = vcmp.gt.f32.partialorder %v9150_v41, 0.0 }
 0x1c5   : > { %6686 = vpow2.f32 %v3842_v44  ;;  %4364 = vmatpush.msra.mxu3 %v3933_v3  ;;  %v3826_v35 = vmul.f32 1.442695, %v3718_v4  ;;  %v3710_v39 = vmin.f32 %v9172_v61, 0.0  ;;  %v3198_v0 = vadd.f32 %v14013_v15, %v3086_v12  ;;  %v9211_v4 = vld [vmem:[%s7066_s21 + $0x38] sm:$0x77] }
 0x1c6   : > { %6129 = vmatmul.msk.f32.gmra.mxu0 %vm1535_vm11, %v9179_v36  ;;  %6141 = vmatmul.msk.f32.gmra.mxu1 %vm1535_vm11, %v8966_v60  ;;  %v3702_v23 = vmin.f32 %v9174_v20, 0.0  ;;  %v3502_v10 = vmul.f32 %v9095_v56, %v14014_v54  ;;  %v3078_v16 = vmul.f32 %v9082_v5, %v8677_v9  ;;  %v3310_v37 = vmul.f32 %v9093_v30, %v8863_v2 }
 0x1c7   : > { %6174 = vmatmul.msk.f32.gmra.mxu3 %vm1535_vm11, %v9018_v28  ;;  %6688 = vpow2.f32 %v3826_v35  ;;  %v3810_v58 = vmul.f32 1.442695, %v3710_v39  ;;  %v3494_v53 = vmul.f32 %v9095_v56, %v8918_v46  ;;  %v3382_v47 = vadd.f32 %v3318_v7, %v3198_v0 }
 0x1c8   : > { %v6685_v21 = vpop.eup %6684  ;;  %v3794_v8 = vmul.f32 1.442695, %v3702_v23  ;;  %v3190_v33 = vadd.f32 %v8776_v40, %v3078_v16  ;;  %v3070_v44 = vmul.f32 %v9082_v5, %v8444_v22  ;;  %vm3654_vm7 = vcmp.gt.f32.partialorder %v9162_v57, 0.0  ;;  %v9230_v16 = vld [vmem:[%s13447_s3 + $0x48] sm:$0xff] }
 0x1c9   : > { %6157 = vmatmul.msk.f32.gmra.mxu2 %vm1535_vm11, %v8966_v60  ;;  %v6249_v3 = vadd.f32 -1.0, %v6685_v21  ;;  %6690 = vpow2.f32 %v3810_v58  ;;  %v3302_v60 = vmul.f32 %v9093_v30, %v8930_v31  ;;  %v9218_v7 = vadd.f32 %v3502_v10, %v3382_v47 }
 0x1ca   : > { %6692 = vpow2.f32 %v3794_v8  ;;  %v3374_v35 = vadd.f32 %v3310_v37, %v3190_v33  ;;  %v3182_v39 = vadd.f32 %v8838_v14, %v3070_v44  ;;  %v3486_v0 = vmul.f32 %v9095_v56, %v8995_v50 }
 0x1cb   : > { %v6687_v12 = vpop.eup %6686  ;;  %v3990_v5 = vsel %vm3670_vm5, %v9133_v6, %v6249_v3  ;;  %v3049_v30 = vperm.slane %v9211_v4, 4  ;;  %vm3646_vm8 = vcmp.gt.f32.partialorder %v9172_v61, 0.0  ;;  %v3694_v10 = vmin.f32 %v9218_v7, 0.0 }
 0x1cc   : > { %v6241_v23 = vadd.f32 -1.0, %v6687_v12  ;;  %4422 = vmatpush.msrb.mxu0 %v3990_v5  ;;  %v9236_v6 = vadd.f32 %v3494_v53, %v3374_v35  ;;  %v3366_v58 = vadd.f32 %v3302_v60, %v3182_v39  ;;  %v3281_v8 = vperm.slane %v9211_v4, 5 }
 0x1cd   : > { %v6689_v37 = vpop.eup %6688  ;;  %v9241_v21 = vperm.slane %v3049_v30, 0  ;;  %v3465_v47 = vperm.slane %v9211_v4, 6  ;;  %vm3638_vm9 = vcmp.gt.f32.partialorder %v9174_v20, 0.0  ;;  %v3778_v53 = vmul.f32 1.442695, %v3694_v10  ;;  %v9263_v10 = vpop.f32.mrf.mxu1 }
 0x1ce   : > { %6130 = vmatmul.msk.f32.gmra.mxu0 %vm1535_vm11, %v9230_v16  ;;  %v3982_v56 = vsel %vm3662_vm6, %v9150_v41, %v6241_v23  ;;  %6142 = vmatmul.msk.f32.gmra.mxu1 %vm1535_vm11, %v9018_v28  ;;  %v6233_v33 = vadd.f32 -1.0, %v6689_v37  ;;  %v3686_v44 = vmin.f32 %v9236_v6, 0.0  ;;  %v9251_v3 = vadd.f32 %v3486_v0, %v3366_v58  ;;  %14015 = vst [vmem:[#allocation22_spill] sm:$0xff] %v9263_v10 }
 0x1cf   : > { %6175 = vmatmul.msk.f32.gmra.mxu3 %vm1535_vm11, %v9071_v45  ;;  %4423 = vmatpush.msrb.mxu0 %v3982_v56  ;;  %v6691_v41 = vpop.eup %6690  ;;  %v3129_v60 = vmul.f32 %v9241_v21, %v8238_v26  ;;  %v9255_v12 = vperm.slane %v3281_v8, 1  ;;  %v9257_v35 = vperm.slane %v3465_v47, 2  ;;  %6694 = vpow2.f32 %v3778_v53 }
 0x1d0   : > { %v6693_v39 = vpop.eup %6692  ;;  %v3974_v5 = vsel %vm3654_vm7, %v9162_v57, %v6233_v33  ;;  %v6225_v23 = vadd.f32 -1.0, %v6691_v41  ;;  %v3762_v30 = vmul.f32 1.442695, %v3686_v44  ;;  %v3678_v0 = vmin.f32 %v9251_v3, 0.0  ;;  %v9288_v41 = vld [vmem:[%s13447_s3 + $0x50] sm:$0xff] }
 0x1d1   : > { %6158 = vmatmul.msk.f32.gmra.mxu2 %vm1535_vm11, %v9018_v28  ;;  %4424 = vmatpush.msrb.mxu0 %v3974_v5  ;;  %v6217_v28 = vadd.f32 -1.0, %v6693_v39  ;;  %v3241_v58 = vadd.f32 %v8275_v51, %v3129_v60  ;;  %v3361_v57 = vmul.f32 %v9255_v12, %v8304_v11  ;;  %v3545_v56 = vmul.f32 %v9257_v35, %v8393_v24 }
 0x1d2   : > { %v3966_v37 = vsel %vm3646_vm8, %v9172_v61, %v6225_v23  ;;  %6696 = vpow2.f32 %v3762_v30  ;;  %v3746_v47 = vmul.f32 1.442695, %v3678_v0  ;;  %v3121_v33 = vmul.f32 %v9241_v21, %v8240_v63  ;;  %v9301_v30 = vpop.f32.mrf.mxu3 }
 0x1d3   : > { %4425 = vmatpush.msrb.mxu0 %v3966_v37  ;;  %v3958_v8 = vsel %vm3638_vm9, %v9174_v20, %v6217_v28  ;;  %v3353_v53 = vmul.f32 %v9255_v12, %v8370_v43  ;;  %vm3630_vm10 = vcmp.gt.f32.partialorder %v9218_v7, 0.0  ;;  %v3425_v61 = vadd.f32 %v3361_v57, %v3241_v58  ;;  %14016 = vst [vmem:[#allocation23_spill] sm:$0xff] %v9301_v30  ;;  %v9311_v57 = vpop.f32.mrf.mxu0 }
 0x1d4   : > { %v3113_v44 = vmul.f32 %v9241_v21, %v8342_v25  ;;  %6698 = vpow2.f32 %v3746_v47  ;;  %v3233_v20 = vadd.f32 %v8297_v27, %v3121_v33  ;;  %v3537_v60 = vmul.f32 %v9257_v35, %v8511_v42  ;;  %14017 = vst [vmem:[#allocation5_spill] sm:$0xff] %v9311_v57 }
 0x1d5   : > { %4426 = vmatpush.msrb.mxu0 %v3958_v8  ;;  %v3345_v39 = vmul.f32 %v9255_v12, %v8416_v1  ;;  %v6695_v5 = vpop.eup %6694  ;;  %v9299_v23 = vadd.f32 %v3545_v56, %v3425_v61  ;;  %v3529_v0 = vmul.f32 %v9257_v35, %v8545_v32  ;;  %v3105_v58 = vmul.f32 %v9241_v21, %v8358_v62 }
 0x1d6   : > { %6131 = vmatmul.msk.f32.gmra.mxu0 %vm1535_vm11, %v9288_v41  ;;  %6143 = vmatmul.msk.f32.gmra.mxu1 %vm1535_vm11, %v9071_v45  ;;  %v3225_v28 = vadd.f32 %v8399_v13, %v3113_v44  ;;  %v6209_v37 = vadd.f32 -1.0, %v6695_v5  ;;  %vm3622_vm12 = vcmp.gt.f32.partialorder %v9236_v6, 0.0  ;;  %v3417_v56 = vadd.f32 %v3353_v53, %v3233_v20 }
 0x1d7   : > { %6176 = vmatmul.msk.f32.gmra.mxu3 %vm1535_vm11, %v9129_v29  ;;  %v3337_v8 = vmul.f32 %v9255_v12, %v8509_v55  ;;  %v3737_v33 = vmin.f32 %v9299_v23, 0.0  ;;  %v3217_v44 = vadd.f32 %v14010_v52, %v3105_v58  ;;  %v3521_v10 = vmul.f32 %v9257_v35, %v8637_v49 }
 0x1d8   : > { %v6697_v47 = vpop.eup %6696  ;;  %v3409_v61 = vadd.f32 %v3345_v39, %v3225_v28  ;;  %v9322_v30 = vadd.f32 %v3537_v60, %v3417_v56  ;;  %v3097_v53 = vmul.f32 %v9241_v21, %v8430_v18  ;;  %v3329_v58 = vmul.f32 %v9255_v12, %v14011_v17 }
 0x1d9   : > { %6159 = vmatmul.msk.f32.gmra.mxu2 %vm1535_vm11, %v9071_v45  ;;  %v3950_v45 = vsel %vm3630_vm10, %v9218_v7, %v6209_v37  ;;  %v6201_v5 = vadd.f32 -1.0, %v6697_v47  ;;  %v3864_v20 = vmul.f32 1.442695, %v3737_v33  ;;  %v3401_v28 = vadd.f32 %v3337_v8, %v3217_v44  ;;  %v9337_v37 = vpop.f32.mrf.mxu1  ;;  %v9345_v44 = vpop.f32.mrf.mxu2 }
 0x1da   : > { %4427 = vmatpush.msrb.mxu0 %v3950_v45  ;;  %v9328_v39 = vadd.f32 %v3529_v0, %v3409_v61  ;;  %v6699_v57 = vpop.eup %6698  ;;  %vm3614_vm13 = vcmp.gt.f32.partialorder %v9251_v3, 0.0  ;;  %v3729_v60 = vmin.f32 %v9322_v30, 0.0  ;;  %14018 = vst [vmem:[#allocation21_spill] sm:$0xff] %v9337_v37  ;;  %v3209_v56 = vadd.f32 %v8571_v38, %v3097_v53  ;;  %v9350_v45 = vld [vmem:[%s13447_s3 + $0x58] sm:$0xff] }
 0x1db   : > { %v3942_v7 = vsel %vm3622_vm12, %v9236_v6, %v6201_v5  ;;  %v6193_v0 = vadd.f32 -1.0, %v6699_v57  ;;  %6700 = vpow2.f32 %v3864_v20  ;;  %v9341_v33 = vadd.f32 %v3521_v10, %v3401_v28  ;;  %14019 = vst [vmem:[#allocation14_spill] sm:$0xff] %v9345_v44 }
 0x1dc   : > { %4428 = vmatpush.msrb.mxu0 %v3942_v7  ;;  %v3721_v8 = vmin.f32 %v9328_v39, 0.0  ;;  %v3848_v47 = vmul.f32 1.442695, %v3729_v60  ;;  %v3393_v61 = vadd.f32 %v3329_v58, %v3209_v56  ;;  %v3513_v6 = vmul.f32 %v9257_v35, %v14012_v34  ;;  %v9371_v7 = vpop.f32.mrf.mxu3  ;;  %v9373_v60 = vpop.f32.mrf.mxu0 }
 0x1dd   : > { %v3934_v10 = vsel %vm3614_vm13, %v9251_v3, %v6193_v0  ;;  %v3089_v5 = vmul.f32 %v9241_v21, %v8391_v59  ;;  %v3713_v53 = vmin.f32 %v9341_v33, 0.0  ;;  %v3321_v58 = vmul.f32 %v9255_v12, %v8706_v19  ;;  %14020 = vst [vmem:[#allocation25_spill] sm:$0xff] %v9371_v7 }
 0x1de   : > { %6132 = vmatmul.msk.f32.gmra.mxu0 %vm1535_vm11, %v9350_v45  ;;  %6144 = vmatmul.msk.f32.gmra.mxu1 %vm1535_vm11, %v9129_v29  ;;  %v3832_v57 = vmul.f32 1.442695, %v3721_v8  ;;  %6702 = vpow2.f32 %v3848_v47  ;;  %v9364_v20 = vadd.f32 %v3513_v6, %v3393_v61  ;;  %v3505_v3 = vmul.f32 %v9257_v35, %v14014_v54  ;;  %14021 = vst [vmem:[#allocation33_spill] sm:$0xff] %v9373_v60 }
 0x1df   : > { %6177 = vmatmul.msk.f32.gmra.mxu3 %vm1535_vm11, %v9179_v36  ;;  %4429 = vmatpush.msrb.mxu0 %v3934_v10  ;;  %v3201_v28 = vadd.f32 %v14013_v15, %v3089_v5  ;;  %vm3673_vm14 = vcmp.gt.f32.partialorder %v9299_v23, 0.0  ;;  %v3081_v47 = vmul.f32 %v9241_v21, %v8677_v9  ;;  %v3313_v61 = vmul.f32 %v9255_v12, %v8863_v2 }
 0x1e0   : > { %6704 = vpow2.f32 %v3832_v57  ;;  %v3705_v56 = vmin.f32 %v9364_v20, 0.0  ;;  %vm3665_vm15 = vcmp.gt.f32.partialorder %v9322_v30, 0.0  ;;  %vm3657_vm0 = vcmp.gt.f32.partialorder %v9328_v39, 0.0 }
 0x1e1   : > { %6160 = vmatmul.msk.f32.gmra.mxu2 %vm1535_vm11, %v9129_v29  ;;  %v3816_v29 = vmul.f32 1.442695, %v3713_v53  ;;  %v6701_v0 = vpop.eup %6700  ;;  %v3385_v8 = vadd.f32 %v3321_v58, %v3201_v28  ;;  %v3193_v5 = vadd.f32 %v8776_v40, %v3081_v47  ;;  %v3497_v53 = vmul.f32 %v9257_v35, %v8918_v46  ;;  %v9412_v37 = vpop.f32.mrf.mxu2 }
 0x1e2   : > { %v6252_v6 = vadd.f32 -1.0, %v6701_v0  ;;  %v3800_v10 = vmul.f32 1.442695, %v3705_v56  ;;  %v3073_v28 = vmul.f32 %v9241_v21, %v8444_v22  ;;  %v9393_v0 = vpop.f32.mrf.mxu1  ;;  %vm3649_vm1 = vcmp.gt.f32.partialorder %v9341_v33, 0.0 }
 0x1e3   : > { %6706 = vpow2.f32 %v3816_v29  ;;  %v9384_v57 = vadd.f32 %v3505_v3, %v3385_v8  ;;  %v3305_v3 = vmul.f32 %v9255_v12, %v8930_v31  ;;  %v9400_v29 = vld [vmem:[%s13447_s3 + $0x60] sm:$0xff]  ;;  %v3377_v8 = vadd.f32 %v3313_v61, %v3193_v5 }
 0x1e4   : > { %v6703_v58 = vpop.eup %6702  ;;  %v3993_v44 = vsel %vm3673_vm14, %v9299_v23, %v6252_v6  ;;  %6708 = vpow2.f32 %v3800_v10  ;;  %v3185_v47 = vadd.f32 %v8838_v14, %v3073_v28  ;;  %v3489_v6 = vmul.f32 %v9257_v35, %v8995_v50 }
 0x1e5   : > { %4617 = vmatpush.msrb.mxu3 %v3993_v44  ;;  %v6244_v23 = vadd.f32 -1.0, %v6703_v58  ;;  %v3697_v56 = vmin.f32 %v9384_v57, 0.0  ;;  %v3048_v10 = vperm.slane %v9211_v4, 0  ;;  %v9419_v7 = vadd.f32 %v3497_v53, %v3377_v8  ;;  %v9430_v53 = vpop.f32.mrf.mxu3 }
 0x1e6   : > { %6133 = vmatmul.msk.f32.gmra.mxu0 %vm1535_vm11, %v9400_v29  ;;  %6145 = vmatmul.msk.f32.gmra.mxu1 %vm1535_vm11, %v9179_v36  ;;  %v6705_v21 = vpop.eup %6704  ;;  %v3280_v61 = vperm.slane %v9211_v4, 1  ;;  %v3369_v28 = vadd.f32 %v3305_v3, %v3185_v47  ;;  %vm3641_vm2 = vcmp.gt.f32.partialorder %v9364_v20, 0.0  ;;  %14022 = vst [vmem:[#allocation47_spill] sm:$0xff] %v9430_v53  ;;  %vm3633_vm3 = vcmp.gt.f32.partialorder %v9384_v57, 0.0 }
 0x1e7   : > { %6178 = vmatmul.msk.f32.gmra.mxu3 %vm1535_vm11, %v9230_v16  ;;  %v6236_v12 = vadd.f32 -1.0, %v6705_v21  ;;  %v3985_v44 = vsel %vm3665_vm15, %v9322_v30, %v6244_v23  ;;  %v3784_v58 = vmul.f32 1.442695, %v3697_v56  ;;  %v9425_v21 = vperm.slane %v3048_v10, 0  ;;  %v9434_v56 = vpop.f32.mrf.mxu0 }
 0x1e8   : > { %4618 = vmatpush.msrb.mxu3 %v3985_v44  ;;  %v3689_v30 = vmin.f32 %v9419_v7, 0.0  ;;  %v9440_v3 = vperm.slane %v3280_v61, 1  ;;  %v3047_v44 = vperm.slane %v9055_v48, 4  ;;  %v9455_v61 = vld [vmem:[%s13447_s3 + $0x68] sm:$0xff]  ;;  %vm3625_vm4 = vcmp.gt.f32.partialorder %v9419_v7, 0.0 }
 0x1e9   : > { %6161 = vmatmul.msk.f32.gmra.mxu2 %vm1535_vm11, %v9179_v36  ;;  %v6707_v5 = vpop.eup %6706  ;;  %v3977_v35 = vsel %vm3657_vm0, %v9328_v39, %v6236_v12  ;;  %v3464_v36 = vperm.slane %v9211_v4, 2  ;;  %6710 = vpow2.f32 %v3784_v58  ;;  %v9436_v39 = vadd.f32 %v3489_v6, %v3369_v28 }
 0x1ea   : > { %v6228_v60 = vadd.f32 -1.0, %v6707_v5  ;;  %v6709_v23 = vpop.eup %6708  ;;  %4619 = vmatpush.msrb.mxu3 %v3977_v35  ;;  %v3128_v4 = vmul.f32 %v9425_v21, %v8238_v26  ;;  %v3768_v10 = vmul.f32 1.442695, %v3689_v30  ;;  %v3360_v5 = vmul.f32 %v9440_v3, %v8304_v11 }
 0x1eb   : > { %v9442_v8 = vperm.slane %v3464_v36, 2  ;;  %v6220_v47 = vadd.f32 -1.0, %v6709_v23  ;;  %v3681_v58 = vmin.f32 %v9436_v39, 0.0  ;;  %v9464_v35 = vperm.slane %v3047_v44, 0 }
 0x1ec   : > { %v3969_v12 = vsel %vm3649_vm1, %v9341_v33, %v6228_v60  ;;  %v3240_v6 = vadd.f32 %v8275_v51, %v3128_v4  ;;  %6712 = vpow2.f32 %v3768_v10  ;;  %v3279_v30 = vperm.slane %v9055_v48, 5 }
 0x1ed   : > { %4620 = vmatpush.msrb.mxu3 %v3969_v12  ;;  %v3961_v33 = vsel %vm3641_vm2, %v9364_v20, %v6220_v47  ;;  %v3544_v60 = vmul.f32 %v9442_v8, %v8393_v24  ;;  %v3752_v28 = vmul.f32 1.442695, %v3681_v58  ;;  %v3463_v23 = vperm.slane %v9055_v48, 6 }
 0x1ee   : > { %6134 = vmatmul.msk.f32.gmra.mxu0 %vm1535_vm11, %v9455_v61  ;;  %v3424_v36 = vadd.f32 %v3360_v5, %v3240_v6  ;;  %v3127_v12 = vmul.f32 %v9464_v35, %v8238_v26  ;;  %v3120_v20 = vmul.f32 %v9425_v21, %v8240_v63  ;;  %v3352_v47 = vmul.f32 %v9440_v3, %v8370_v43  ;;  %v9479_v6 = vpop.f32.mrf.mxu1 }
 0x1ef   : > { %6179 = vmatmul.msk.f32.gmra.mxu3 %vm1535_vm11, %v9288_v41  ;;  %v6711_v4 = vpop.eup %6710  ;;  %6714 = vpow2.f32 %v3752_v28  ;;  %v9477_v58 = vperm.slane %v3279_v30, 1  ;;  %6146 = vmatmul.msk.f32.gmra.mxu1 %vm1535_vm11, %v9230_v16  ;;  %v9484_v26 = vperm.slane %v3463_v23, 2  ;;  %vm3617_vm5 = vcmp.gt.f32.partialorder %v9436_v39, 0.0 }
 0x1f0   : > { %4621 = vmatpush.msrb.mxu3 %v3961_v33  ;;  %v6212_v10 = vadd.f32 -1.0, %v6711_v4  ;;  %v9475_v44 = vadd.f32 %v3544_v60, %v3424_v36  ;;  %v3239_v48 = vadd.f32 %v8275_v51, %v3127_v12  ;;  %v3232_v5 = vadd.f32 %v8297_v27, %v3120_v20 }
 0x1f1   : > { %v3536_v33 = vmul.f32 %v9442_v8, %v8511_v42  ;;  %v3359_v36 = vmul.f32 %v9477_v58, %v8304_v11  ;;  %v3543_v51 = vmul.f32 %v9484_v26, %v8393_v24  ;;  %v3119_v4 = vmul.f32 %v9464_v35, %v8240_v63  ;;  %v9505_v11 = vld [vmem:[%s13447_s3 + $0x70] sm:$0xff] }
 0x1f2   : > { %v3953_v28 = vsel %vm3633_vm3, %v9384_v57, %v6212_v10  ;;  %v3736_v60 = vmin.f32 %v9475_v44, 0.0  ;;  %v6713_v30 = vpop.eup %6712  ;;  %v3416_v23 = vadd.f32 %v3352_v47, %v3232_v5  ;;  %v3351_v57 = vmul.f32 %v9477_v58, %v8370_v43  ;;  %v9500_v10 = vpop.f32.mrf.mxu0 }
 0x1f3   : > { %4622 = vmatpush.msrb.mxu3 %v3953_v28  ;;  %v6204_v12 = vadd.f32 -1.0, %v6713_v30  ;;  %v3423_v53 = vadd.f32 %v3359_v36, %v3239_v48  ;;  %v3231_v63 = vadd.f32 %v8297_v27, %v3119_v4  ;;  %v3535_v47 = vmul.f32 %v9484_v26, %v8511_v42 }
 0x1f4   : > { %v3862_v20 = vmul.f32 1.442695, %v3736_v60  ;;  %v9510_v24 = vadd.f32 %v3536_v33, %v3416_v23  ;;  %v3112_v28 = vmul.f32 %v9425_v21, %v8342_v25  ;;  %v3344_v30 = vmul.f32 %v9440_v3, %v8416_v1 }
 0x1f5   : > { %v6715_v43 = vpop.eup %6714  ;;  %v3945_v48 = vsel %vm3625_vm4, %v9419_v7, %v6204_v12  ;;  %v9518_v5 = vadd.f32 %v3543_v51, %v3423_v53  ;;  %v3415_v36 = vadd.f32 %v3351_v57, %v3231_v63  ;;  %v3528_v23 = vmul.f32 %v9442_v8, %v8545_v32 }
 0x1f6   : > { %6135 = vmatmul.msk.f32.gmra.mxu0 %vm1535_vm11, %v9505_v11  ;;  %6716 = vpow2.f32 %v3862_v20  ;;  %4623 = vmatpush.msrb.mxu3 %v3945_v48  ;;  %v6196_v60 = vadd.f32 -1.0, %v6715_v43  ;;  %v3728_v33 = vmin.f32 %v9510_v24, 0.0  ;;  %v3224_v42 = vadd.f32 %v8399_v13, %v3112_v28 }
 0x1f7   : > { %v3735_v27 = vmin.f32 %v9518_v5, 0.0  ;;  %v9530_v51 = vadd.f32 %v3535_v47, %v3415_v36  ;;  %v3111_v20 = vmul.f32 %v9464_v35, %v8342_v25  ;;  %v3343_v57 = vmul.f32 %v9477_v58, %v8416_v1 }
 0x1f8   : > { %v3937_v7 = vsel %vm3617_vm5, %v9436_v39, %v6196_v60  ;;  %v3846_v53 = vmul.f32 1.442695, %v3728_v33  ;;  %v3408_v12 = vadd.f32 %v3344_v30, %v3224_v42  ;;  %vm3672_vm6 = vcmp.gt.f32.partialorder %v9475_v44, 0.0 }
 0x1f9   : > { %4624 = vmatpush.msrb.mxu3 %v3937_v7  ;;  %v3860_v4 = vmul.f32 1.442695, %v3735_v27  ;;  %v3727_v39 = vmin.f32 %v9530_v51, 0.0  ;;  %v3223_v43 = vadd.f32 %v8399_v13, %v3111_v20  ;;  %v3527_v48 = vmul.f32 %v9484_v26, %v8545_v32  ;;  %v9554_v32 = vpop.f32.mrf.mxu2  ;;  %6162 = vmatmul.msk.f32.gmra.mxu2 %vm1535_vm11, %v9230_v16 }
 0x1fa   : > { %6718 = vpow2.f32 %v3846_v53  ;;  %v9540_v47 = vadd.f32 %v3528_v23, %v3408_v12  ;;  %v3104_v25 = vmul.f32 %v9425_v21, %v8358_v62  ;;  %vm3664_vm7 = vcmp.gt.f32.partialorder %v9510_v24, 0.0 }
 0x1fb   : > { %6720 = vpow2.f32 %v3860_v4  ;;  %v3844_v60 = vmul.f32 1.442695, %v3727_v39  ;;  %v3407_v33 = vadd.f32 %v3343_v57, %v3223_v43  ;;  %v3336_v36 = vmul.f32 %v9440_v3, %v8509_v55 }
 0x1fc   : > { %v6717_v63 = vpop.eup %6716  ;;  %v3720_v1 = vmin.f32 %v9540_v47, 0.0  ;;  %vm3671_vm8 = vcmp.gt.f32.partialorder %v9518_v5, 0.0  ;;  %v3216_v13 = vadd.f32 %v14010_v52, %v3104_v25  ;;  %v3520_v7 = vmul.f32 %v9442_v8, %v8637_v49 }
 0x1fd   : > { %v6251_v28 = vadd.f32 -1.0, %v6717_v63  ;;  %6722 = vpow2.f32 %v3844_v60  ;;  %v9558_v30 = vadd.f32 %v3527_v48, %v3407_v33  ;;  %vm3663_vm9 = vcmp.gt.f32.partialorder %v9530_v51, 0.0 }
 0x1fe   : > { %v3830_v42 = vmul.f32 1.442695, %v3720_v1  ;;  %v3400_v23 = vadd.f32 %v3336_v36, %v3216_v13  ;;  %v3335_v4 = vmul.f32 %v9477_v58, %v8509_v55  ;;  %v3096_v16 = vmul.f32 %v9425_v21, %v8430_v18 }
 0x1ff   : > { %v3992_v27 = vsel %vm3672_vm6, %v9475_v44, %v6251_v28  ;;  %v3103_v44 = vmul.f32 %v9464_v35, %v8358_v62  ;;  %v3719_v57 = vmin.f32 %v9558_v30, 0.0  ;;  %v3519_v39 = vmul.f32 %v9484_v26, %v8637_v49  ;;  %v9576_v28 = vpop.f32.mrf.mxu3  ;;  %6180 = vmatmul.msk.f32.gmra.mxu3 %vm1535_vm11, %v9350_v45 }
 0x200   : > { %4552 = vmatpush.msra.mxu2 %v3992_v27  ;;  %v6719_v53 = vpop.eup %6718  ;;  %6724 = vpow2.f32 %v3830_v42  ;;  %v9572_v62 = vadd.f32 %v3520_v7, %v3400_v23  ;;  %v3208_v48 = vadd.f32 %v8571_v38, %v3096_v16  ;;  %v3328_v49 = vmul.f32 %v9440_v3, %v14011_v17 }
 0x201   : > { %v6721_v12 = vpop.eup %6720  ;;  %v6243_v20 = vadd.f32 -1.0, %v6719_v53  ;;  %v3215_v43 = vadd.f32 %v14010_v52, %v3103_v44  ;;  %v3828_v60 = vmul.f32 1.442695, %v3719_v57  ;;  %v3512_v25 = vmul.f32 %v9442_v8, %v14012_v34 }
 0x202   : > { %v6250_v63 = vadd.f32 -1.0, %v6721_v12  ;;  %vm3656_vm10 = vcmp.gt.f32.partialorder %v9540_v47, 0.0  ;;  %v3712_v33 = vmin.f32 %v9572_v62, 0.0  ;;  %v3392_v27 = vadd.f32 %v3328_v49, %v3208_v48 }
 0x203   : > { %v3984_v55 = vsel %vm3664_vm7, %v9510_v24, %v6243_v20  ;;  %v6723_v1 = vpop.eup %6722  ;;  %v3399_v36 = vadd.f32 %v3335_v4, %v3215_v43  ;;  %6726 = vpow2.f32 %v3828_v60  ;;  %v3095_v13 = vmul.f32 %v9464_v35, %v8430_v18 }
 0x204   : > { %v3991_v52 = vsel %vm3671_vm8, %v9518_v5, %v6250_v63  ;;  %4553 = vmatpush.msra.mxu2 %v3984_v55  ;;  %v6242_v24 = vadd.f32 -1.0, %v6723_v1  ;;  %v3814_v42 = vmul.f32 1.442695, %v3712_v33  ;;  %v3327_v44 = vmul.f32 %v9477_v58, %v14011_v17 }
 0x205   : > { %4487 = vmatpush.msra.mxu1 %v3991_v52  ;;  %v9594_v7 = vadd.f32 %v3519_v39, %v3399_v36  ;;  %v3511_v5 = vmul.f32 %v9484_v26, %v14012_v34  ;;  %v9603_v4 = vadd.f32 %v3512_v25, %v3392_v27  ;;  %v3207_v16 = vadd.f32 %v8571_v38, %v3095_v13  ;;  %v9611_v39 = vpop.f32.mrf.mxu0  ;;  %v9618_v38 = vld [vmem:[%s13447_s3 + $0x78] sm:$0xff] }
 0x206   : > { %v6725_v53 = vpop.eup %6724  ;;  %v3983_v23 = vsel %vm3663_vm9, %v9530_v51, %v6242_v24  ;;  %v3088_v18 = vmul.f32 %v9425_v21, %v8391_v59  ;;  %6728 = vpow2.f32 %v3814_v42  ;;  %v9613_v51 = vpop.f32.mrf.mxu1  ;;  %6136 = vmatmul.msk.f32.gmra.mxu0 %vm1535_vm11, %v9618_v38  ;;  %6147 = vmatmul.msk.f32.gmra.mxu1 %vm1535_vm11, %v9288_v41  ;;  %v3320_v48 = vmul.f32 %v9440_v3, %v8706_v19 }
 0x207   : > { %4488 = vmatpush.msra.mxu1 %v3983_v23  ;;  %v6235_v12 = vadd.f32 -1.0, %v6725_v53  ;;  %v3711_v17 = vmin.f32 %v9594_v7, 0.0  ;;  %v3704_v20 = vmin.f32 %v9603_v4, 0.0  ;;  %v3391_v34 = vadd.f32 %v3327_v44, %v3207_v16 }
 0x208   : > { %v3200_v57 = vadd.f32 %v14013_v15, %v3088_v18  ;;  %v3504_v55 = vmul.f32 %v9442_v8, %v14014_v54  ;;  %vm3655_vm12 = vcmp.gt.f32.partialorder %v9558_v30, 0.0  ;;  %v3087_v1 = vmul.f32 %v9464_v35, %v8391_v59  ;;  %v9653_v18 = vpop.f32.mrf.mxu3  ;;  %6181 = vmatmul.msk.f32.gmra.mxu3 %vm1535_vm11, %v9400_v29 }
 0x209   : > { %v3976_v63 = vsel %vm3656_vm10, %v9540_v47, %v6235_v12  ;;  %v3812_v43 = vmul.f32 1.442695, %v3711_v17  ;;  %v6727_v60 = vpop.eup %6726  ;;  %v3798_v49 = vmul.f32 1.442695, %v3704_v20  ;;  %v9632_v25 = vadd.f32 %v3511_v5, %v3391_v34 }
 0x20a   : > { %4554 = vmatpush.msra.mxu2 %v3976_v63  ;;  %v6234_v52 = vadd.f32 -1.0, %v6727_v60  ;;  %v3384_v47 = vadd.f32 %v3320_v48, %v3200_v57  ;;  %v3319_v33 = vmul.f32 %v9477_v58, %v8706_v19  ;;  %vm3648_vm13 = vcmp.gt.f32.partialorder %v9572_v62, 0.0 }
 0x20b   : > { %6730 = vpow2.f32 %v3812_v43  ;;  %v3703_v36 = vmin.f32 %v9632_v25, 0.0  ;;  %v3199_v42 = vadd.f32 %v14013_v15, %v3087_v1  ;;  %v3503_v59 = vmul.f32 %v9484_v26, %v14014_v54  ;;  %v4025_v15 = vld [vmem:[%s13448_s4 + $0x78] sm:$0xff] }
 0x20c   : > { %6732 = vpow2.f32 %v3798_v49  ;;  %v6729_v24 = vpop.eup %6728  ;;  %v3975_v27 = vsel %vm3655_vm12, %v9558_v30, %v6234_v52  ;;  %v9641_v13 = vadd.f32 %v3504_v55, %v3384_v47  ;;  %v3080_v19 = vmul.f32 %v9425_v21, %v8677_v9  ;;  %v9651_v30 = vpop.f32.mrf.mxu2  ;;  %6163 = vmatmul.msk.f32.gmra.mxu2 %vm1535_vm11, %v9288_v41  ;;  %4103 = vperm.xlu1 %6490, %v4025_v15   ;;  %v4023_v52 = vld [vmem:[%s13448_s4 + $0x68] sm:$0xff] }
 0x20d   : > { %4489 = vmatpush.msra.mxu1 %v3975_v27  ;;  %v6227_v44 = vadd.f32 -1.0, %v6729_v24  ;;  %v3796_v5 = vmul.f32 1.442695, %v3703_v36  ;;  %v3383_v23 = vadd.f32 %v3319_v33, %v3199_v42  ;;  %v3312_v16 = vmul.f32 %v9440_v3, %v8863_v2  ;;  %v9668_v20 = vpop.f32.mrf.mxu0  ;;  %4093 = vperm.xlu0 %6489, %v4023_v52  }
 0x20e   : > { %v3696_v53 = vmin.f32 %v9641_v13, 0.0  ;;  %v3192_v12 = vadd.f32 %v8776_v40, %v3080_v19  ;;  %v3496_v17 = vmul.f32 %v9442_v8, %v8918_v46  ;;  %v9670_v34 = vpop.f32.mrf.mxu1  ;;  %6148 = vmatmul.msk.f32.gmra.mxu1 %vm1535_vm11, %v9350_v45  ;;  %vm3647_vm14 = vcmp.gt.f32.partialorder %v9594_v7, 0.0 }
 0x20f   : > { %v3968_v54 = vsel %vm3648_vm13, %v9572_v62, %v6227_v44  ;;  %6734 = vpow2.f32 %v3796_v5  ;;  %v9675_v62 = vadd.f32 %v3503_v59, %v3383_v23  ;;  %v3079_v63 = vmul.f32 %v9464_v35, %v8677_v9 }
 0x210   : > { %4555 = vmatpush.msra.mxu2 %v3968_v54  ;;  %v3782_v57 = vmul.f32 1.442695, %v3696_v53  ;;  %vm3640_vm15 = vcmp.gt.f32.partialorder %v9603_v4, 0.0  ;;  %v3376_v55 = vadd.f32 %v3312_v16, %v3192_v12  ;;  %v3311_v60 = vmul.f32 %v9477_v58, %v8863_v2 }
 0x211   : > { %v6731_v41 = vpop.eup %6730  ;;  %v3695_v1 = vmin.f32 %v9675_v62, 0.0  ;;  %v3191_v9 = vadd.f32 %v8776_v40, %v3079_v63  ;;  %v3495_v36 = vmul.f32 %v9484_v26, %v8918_v46  ;;  %v3072_v27 = vmul.f32 %v9425_v21, %v8444_v22  ;;  %v4021_v63 = vld [vmem:[%s13448_s4 + $0x58] sm:$0xff] }
 0x212   : > { %v6733_v43 = vpop.eup %6732  ;;  %v6226_v48 = vadd.f32 -1.0, %v6731_v41  ;;  %6736 = vpow2.f32 %v3782_v57  ;;  %v9687_v33 = vadd.f32 %v3496_v17, %v3376_v55  ;;  %v3304_v42 = vmul.f32 %v9440_v3, %v8930_v31  ;;  %v9707_v3 = vpop.f32.mrf.mxu3  ;;  %6182 = vmatmul.msk.f32.gmra.mxu3 %vm1535_vm11, %v9455_v61 }
 0x213   : > { %v6219_v49 = vadd.f32 -1.0, %v6733_v43  ;;  %v3780_v24 = vmul.f32 1.442695, %v3695_v1  ;;  %vm3639_vm0 = vcmp.gt.f32.partialorder %v9632_v25, 0.0  ;;  %v3375_v46 = vadd.f32 %v3311_v60, %v3191_v9 }
 0x214   : > { %v3967_v47 = vsel %vm3647_vm14, %v9594_v7, %v6226_v48  ;;  %v4022_v7 = vld [vmem:[%s13448_s4 + $0x60] sm:$0xff]  ;;  %v3688_v40 = vmin.f32 %v9687_v33, 0.0  ;;  %v3488_v21 = vmul.f32 %v9442_v8, %v8995_v50  ;;  %v9705_v5 = vpop.f32.mrf.mxu2  ;;  %6164 = vmatmul.msk.f32.gmra.mxu2 %vm1535_vm11, %v9350_v45  ;;  %v3071_v23 = vmul.f32 %v9464_v35, %v8444_v22 }
 0x215   : > { %4490 = vmatpush.msra.mxu1 %v3967_v47  ;;  %v3960_v2 = vsel %vm3640_vm15, %v9603_v4, %v6219_v49  ;;  %v6735_v59 = vpop.eup %6734  ;;  %6738 = vpow2.f32 %v3780_v24  ;;  %v3184_v4 = vadd.f32 %v8838_v14, %v3072_v27  ;;  %v9713_v53 = vadd.f32 %v3495_v36, %v3375_v46  ;;  %v9717_v16 = vpop.f32.mrf.mxu0  ;;  %4088 = vperm.xlu1 %6490, %v4022_v7   ;;  %v4018_v27 = vld [vmem:[%s13448_s4 + $0x40] sm:$0xff] }
 0x216   : > { %4556 = vmatpush.msra.mxu2 %v3960_v2  ;;  %v6218_v44 = vadd.f32 -1.0, %v6735_v59  ;;  %v3766_v19 = vmul.f32 1.442695, %v3688_v40  ;;  %v9719_v15 = vpop.f32.mrf.mxu1  ;;  %6149 = vmatmul.msk.f32.gmra.mxu1 %vm1535_vm11, %v9400_v29  ;;  %vm3632_vm1 = vcmp.gt.f32.partialorder %v9641_v13, 0.0  ;;  %v3303_v12 = vmul.f32 %v9477_v58, %v8930_v31 }
 0x217   : > { %v3368_v54 = vadd.f32 %v3304_v42, %v3184_v4  ;;  %v3687_v35 = vmin.f32 %v9713_v53, 0.0  ;;  %v3183_v41 = vadd.f32 %v8838_v14, %v3071_v23  ;;  %v3487_v57 = vmul.f32 %v9484_v26, %v8995_v50  ;;  %4083 = vperm.xlu0 %6489, %v4021_v63   ;;  %v4019_v50 = vld [vmem:[%s13448_s4 + $0x48] sm:$0xff]  ;;  %v4010_v63 = vld [vmem:[%s13448_s4] sm:$0xff] }
 0x218   : > { %v6737_v8 = vpop.eup %6736  ;;  %v3959_v45 = vsel %vm3639_vm0, %v9632_v25, %v6218_v44  ;;  %6740 = vpow2.f32 %v3766_v19  ;;  %v4024_v25 = vld [vmem:[%s13448_s4 + $0x70] sm:$0xff]  ;;  %vm3631_vm2 = vcmp.gt.f32.partialorder %v9675_v62, 0.0  ;;  %vm3624_vm3 = vcmp.gt.f32.partialorder %v9687_v33, 0.0 }
 0x219   : > { %4491 = vmatpush.msra.mxu1 %v3959_v45  ;;  %v6211_v22 = vadd.f32 -1.0, %v6737_v8  ;;  %v3552_v17 = vadd.f32 %v3488_v21, %v3368_v54  ;;  %v3764_v58 = vmul.f32 1.442695, %v3687_v35  ;;  %4098 = vperm.xlu2 %6491, %v4024_v25   ;;  %v3367_v48 = vadd.f32 %v3303_v12, %v3183_v41  ;;  %v4015_v8 = vld [vmem:[%s13448_s4 + $0x28] sm:$0xff]  ;;  %v4013_v54 = vld [vmem:[%s13448_s4 + $0x18] sm:$0xff]  ;;  %v4012_v25 = vld [vmem:[%s13448_s4 + $0x10] sm:$0xff] }
 0x21a   : > { %vm3623_vm4 = vcmp.gt.f32.partialorder %v9713_v53, 0.0  ;;  %vm13893_vm7 = vcmask 7168  }
 0x21b   : > { %v3952_v31 = vsel %vm3632_vm1, %v9641_v13, %v6211_v22  ;;  %v6739_v43 = vpop.eup %6738  ;;  %v3680_v14 = vmin.f32 %v3552_v17, 0.0  ;;  %6742 = vpow2.f32 %v3764_v58  ;;  %v3551_v60 = vadd.f32 %v3487_v57, %v3367_v48  ;;  %v9746_v13 = vpop.f32.mrf.mxu3  ;;  %6183 = vmatmul.msk.f32.gmra.mxu3 %vm1535_vm11, %v9505_v11  ;;  %v4014_v57 = vld [vmem:[%s13448_s4 + $0x20] sm:$0xff]  ;;  %v4011_v48 = vld [vmem:[%s13448_s4 + $0x8] sm:$0xff] }
 0x21c   : > { %4557 = vmatpush.msra.mxu2 %v3952_v31  ;;  %v6210_v26 = vadd.f32 -1.0, %v6739_v43  ;;  %v9744_v49 = vpop.f32.mrf.mxu2  ;;  %vm3616_vm5 = vcmp.gt.f32.partialorder %v3552_v17, 0.0 }
 0x21d   : > { %v3750_v55 = vmul.f32 1.442695, %v3680_v14  ;;  %6165 = vmatmul.msk.f32.gmra.mxu2 %vm1535_vm11, %v9400_v29  ;;  %v9754_v47 = vpop.f32.mrf.mxu0  ;;  %4073 = vperm.xlu1 %6490, %v4019_v50   ;;  %v3679_v2 = vmin.f32 %v3551_v60, 0.0  ;;  %vm3615_vm6 = vcmp.gt.f32.partialorder %v3551_v60, 0.0  ;;  %v9843_v50 = vld [vmem:[%s13447_s3 + $0x8] sm:$0xff] }
 0x21e   : > { %v6741_v1 = vpop.eup %6740  ;;  %v3951_v52 = vsel %vm3631_vm2, %v9675_v62, %v6210_v26  ;;  %v9756_v9 = vpop.f32.mrf.mxu1  ;;  %6150 = vmatmul.msk.f32.gmra.mxu1 %vm1535_vm11, %v9455_v61  ;;  %v4020_v62 = vld [vmem:[%s13448_s4 + $0x50] sm:$0xff] }
 0x21f   : > { %4492 = vmatpush.msra.mxu1 %v3951_v52  ;;  %v6203_v36 = vadd.f32 -1.0, %v6741_v1  ;;  %6744 = vpow2.f32 %v3750_v55  ;;  %v3748_v24 = vmul.f32 1.442695, %v3679_v2  ;;  %4068 = vperm.xlu0 %6489, %v4018_v27   ;;  %v9864_v1 = vld [vmem:[%s13447_s3 + $0x10] sm:$0xff] }
 0x221   : > { %v3944_v29 = vsel %vm3624_vm3, %v9687_v33, %v6203_v36  ;;  %v6743_v42 = vpop.eup %6742  ;;  %4078 = vperm.xlu2 %6491, %v4020_v62   ;;  %6746 = vpow2.f32 %v3748_v24  ;;  %v4016_v33 = vld [vmem:[%s13448_s4 + $0x30] sm:$0xff]  ;;  %v9885_v24 = vld [vmem:[%s13447_s3 + $0x18] sm:$0xff] }
 0x222   : > { %4558 = vmatpush.msra.mxu2 %v3944_v29  ;;  %v6202_v7 = vadd.f32 -1.0, %v6743_v42  ;;  %14027 = vst [vmem:[#allocation45_spill] sm:$0xff] %v9885_v24 }
 0x223   : > { %v9774_v44 = vpop.f32.mrf.mxu3  ;;  %6184 = vmatmul.msk.f32.gmra.mxu3 %vm1535_vm11, %v9618_v38 }
 0x224   : > { %v3943_v40 = vsel %vm3623_vm4, %v9713_v53, %v6202_v7  ;;  %v9772_v46 = vpop.f32.mrf.mxu2 }
 0x225   : > { %v6745_v59 = vpop.eup %6744  ;;  %6166 = vmatmul.msk.f32.gmra.mxu2 %vm1535_vm11, %v9455_v61  ;;  %4493 = vmatpush.msra.mxu1 %v3943_v40  ;;  %v9780_v21 = vpop.f32.mrf.mxu0  ;;  %v4017_v61 = vld [vmem:[%s13448_s4 + $0x38] sm:$0xff] }
 0x226   : > { %v6195_v4 = vadd.f32 -1.0, %v6745_v59  ;;  %v9782_v19 = vpop.f32.mrf.mxu1  ;;  %4058 = vperm.xlu1 %6490, %v4016_v33   ;;  %6151 = vmatmul.msk.f32.gmra.mxu1 %vm1535_vm11, %v9505_v11  ;;  %v9904_v33 = vld [vmem:[%s13447_s3 + $0x20] sm:$0xff] }
 0x227   : > { %v6747_v53 = vpop.eup %6746  ;;  %4053 = vperm.xlu0 %6489, %v4015_v8   ;;  %14030 = vst [vmem:[#allocation40_spill] sm:$0xff] %v9904_v33 }
 0x228   : > { %v3936_v23 = vsel %vm3616_vm5, %v3552_v17, %v6195_v4  ;;  %v6194_v45 = vadd.f32 -1.0, %v6747_v53  ;;  %v9925_v53 = vld [vmem:[%s13447_s3 + $0x28] sm:$0xff] }
 0x229   : > { %4559 = vmatpush.msra.mxu2 %v3936_v23  ;;  %4063 = vperm.xlu2 %6491, %v4017_v61   ;;  %14034 = vst [vmem:[#allocation13_spill] sm:$0xff] %v9925_v53 }
 0x22a   : > { %v3935_v12 = vsel %vm3615_vm6, %v3551_v60, %v6194_v45 }
 0x22b   : > { %4494 = vmatpush.msra.mxu1 %v3935_v12  ;;  %v9797_v35 = vpop.f32.mrf.mxu3  ;;  %v9946_v12 = vld [vmem:[%s13447_s3 + $0x30] sm:$0xff] }
 0x22c   : > { %v9795_v22 = vpop.f32.mrf.mxu2  ;;  %14038 = vst [vmem:[#allocation28_spill] sm:$0xff] %v9946_v12 }
 0x22d   : > { %6167 = vmatmul.msk.f32.gmra.mxu2 %vm1535_vm11, %v9505_v11  ;;  %v9801_v17 = vpop.f32.mrf.mxu0  ;;  %v9816_v11 = vld [vmem:[%s13447_s3] sm:$0xff] }
 0x22e   : > { %v9803_v41 = vpop.f32.mrf.mxu1  ;;  %4043 = vperm.xlu1 %6490, %v4013_v54   ;;  %6152 = vmatmul.msk.f32.gmra.mxu1 %vm1535_vm11, %v9618_v38 }
 0x22f   : > { %4038 = vperm.xlu0 %6489, %v4012_v25   ;;  %6253 = vmatmul.msk.f32.vlgmr.msra.gmra.mxu0 %vm1535_vm11, %v9816_v11 }
 0x230   : > { %6301 = vmatmul.msk.f32.vlgmr.msra.gmra.mxu3 %vm1535_vm11, %v9816_v11 }
 0x231   : > { %4048 = vperm.xlu2 %6491, %v4014_v57  }
 0x233   : > { %v9827_v58 = vpop.f32.mrf.mxu3 }
 0x234   : > { %v9825_v31 = vpop.f32.mrf.mxu2 }
 0x235   : > { %6168 = vmatmul.msk.f32.gmra.mxu2 %vm1535_vm11, %v9618_v38  ;;  %v9831_v43 = vpop.f32.mrf.mxu0 }
 0x236   : > { %v9833_v14 = vpop.f32.mrf.mxu1  ;;  %4028 = vperm.xlu1 %6490, %v4010_v63   ;;  %6269 = vmatmul.msk.f32.vlgmr.msrb.gmra.mxu1 %vm1535_vm11, %v9816_v11 }
 0x237   : > { %6254 = vmatmul.msk.f32.gmra.mxu0 %vm1535_vm11, %v9843_v50 }
 0x238   : > { %6302 = vmatmul.msk.f32.gmra.mxu3 %vm1535_vm11, %v9843_v50 }
 0x239   : > { %4033 = vperm.xlu2 %6491, %v4011_v48  }
 0x23b   : > { %v9851_v26 = vpop.f32.mrf.mxu3 }
 0x23c   : > { %v9849_v38 = vpop.f32.mrf.mxu2  ;;  %14023 = vst [vmem:[#allocation36_spill] sm:$0xff] %v9851_v26 }
 0x23d   : > { %6285 = vmatmul.msk.f32.vlgmr.msrb.gmra.mxu2 %vm1535_vm11, %v9816_v11  ;;  %v9855_v55 = vpop.f32.mrf.mxu0 }
 0x23e   : > { %14024 = vst [vmem:[#allocation42_spill] sm:$0xff] %v9855_v55  ;;  %v9857_v60 = vpop.f32.mrf.mxu1  ;;  %6270 = vmatmul.msk.f32.gmra.mxu1 %vm1535_vm11, %v9843_v50 }
 0x23f   : > { %6255 = vmatmul.msk.f32.gmra.mxu0 %vm1535_vm11, %v9864_v1 }
 0x240   : > { %6303 = vmatmul.msk.f32.gmra.mxu3 %vm1535_vm11, %v9864_v1 }
 0x243   : > { %v9872_v36 = vpop.f32.mrf.mxu3 }
 0x244   : > { %v9870_v52 = vpop.f32.mrf.mxu2  ;;  %14025 = vst [vmem:[#allocation43_spill] sm:$0xff] %v9872_v36  ;;  %v14050_v36 = vld [vmem:[#allocation23_spill] sm:$0xff] }
 0x245   : > { %6286 = vmatmul.msk.f32.gmra.mxu2 %vm1535_vm11, %v9843_v50  ;;  %v9876_v2 = vpop.f32.mrf.mxu0 }
 0x246   : > { %14026 = vst [vmem:[#allocation44_spill] sm:$0xff] %v9876_v2  ;;  %v9878_v29 = vpop.f32.mrf.mxu1  ;;  %6271 = vmatmul.msk.f32.gmra.mxu1 %vm1535_vm11, %v9864_v1 }
 0x247   : > { %6256 = vmatmul.msk.f32.gmra.mxu0 %vm1535_vm11, %v9885_v24 }
 0x248   : > { %6304 = vmatmul.msk.f32.gmra.mxu3 %vm1535_vm11, %v9885_v24 }
 0x24b   : > { %v9893_v27 = vpop.f32.mrf.mxu3 }
 0x24c   : > { %v9891_v62 = vpop.f32.mrf.mxu2  ;;  %14028 = vst [vmem:[#allocation39_spill] sm:$0xff] %v9893_v27 }
 0x24d   : > { %6287 = vmatmul.msk.f32.gmra.mxu2 %vm1535_vm11, %v9864_v1  ;;  %v1861_v7 = vpop.f32.mrf.mxu0 }
 0x24e   : > { %v9897_v42 = vpop.f32.mrf.mxu1  ;;  %6272 = vmatmul.msk.f32.gmra.mxu1 %vm1535_vm11, %v9885_v24 }
 0x24f   : > { %14029 = vst [vmem:[#allocation6_spill] sm:$0xff] %v9897_v42  ;;  %6257 = vmatmul.msk.f32.gmra.mxu0 %vm1535_vm11, %v9904_v33 }
 0x250   : > { %6305 = vmatmul.msk.f32.gmra.mxu3 %vm1535_vm11, %v9904_v33 }
 0x253   : > { %v9912_v40 = vpop.f32.mrf.mxu3 }
 0x254   : > { %v9910_v59 = vpop.f32.mrf.mxu2  ;;  %14032 = vst [vmem:[#allocation38_spill] sm:$0xff] %v9912_v40  ;;  %v1458_v40 = vpop.permute.xlu0 %1457 }
 0x255   : > { %14031 = vst [vmem:[#allocation31_spill] sm:$0xff] %v9910_v59  ;;  %6288 = vmatmul.msk.f32.gmra.mxu2 %vm1535_vm11, %v9885_v24  ;;  %v9918_v23 = vpop.f32.mrf.mxu0  ;;  %v10019_v26 = vadd.f32 %v1861_v7, %v1458_v40  ;;  %v10038_v7 = vpop.permute.xlu2 %1467 }
 0x256   : > { %v9916_v4 = vpop.f32.mrf.mxu1  ;;  %6273 = vmatmul.msk.f32.gmra.mxu1 %vm1535_vm11, %v9904_v33 }
 0x257   : > { %14033 = vst [vmem:[#allocation27_spill] sm:$0xff] %v9916_v4  ;;  %6258 = vmatmul.msk.f32.gmra.mxu0 %vm1535_vm11, %v9925_v53  ;;  %v10008_v4 = vadd.f32 %v14050_v36, %v1458_v40  ;;  %v10026_v36 = vld [vmem:[%s13447_s3 + $0x48] sm:$0xff] }
 0x258   : > { %6306 = vmatmul.msk.f32.gmra.mxu3 %vm1535_vm11, %v9925_v53  ;;  %14055 = vst [vmem:[#allocation35_spill] sm:$0xff] %v10019_v26 }
 0x259   : > { %14051 = vst [vmem:[#allocation41_spill] sm:$0xff] %v10008_v4 }
 0x25b   : > { %v9933_v8 = vpop.f32.mrf.mxu3 }
 0x25c   : > { %v9931_v61 = vpop.f32.mrf.mxu2  ;;  %14036 = vst [vmem:[#allocation30_spill] sm:$0xff] %v9933_v8  ;;  %v9967_v8 = vld [vmem:[%s13447_s3 + $0x38] sm:$0xff] }
 0x25d   : > { %14035 = vst [vmem:[#allocation18_spill] sm:$0xff] %v9931_v61  ;;  %6289 = vmatmul.msk.f32.gmra.mxu2 %vm1535_vm11, %v9904_v33  ;;  %v9939_v54 = vpop.f32.mrf.mxu0 }
 0x25e   : > { %v9937_v45 = vpop.f32.mrf.mxu1  ;;  %6274 = vmatmul.msk.f32.gmra.mxu1 %vm1535_vm11, %v9925_v53  ;;  %14042 = vst [vmem:[#allocation46_spill] sm:$0xff] %v9967_v8 }
 0x25f   : > { %14037 = vst [vmem:[#allocation19_spill] sm:$0xff] %v9937_v45  ;;  %6259 = vmatmul.msk.f32.gmra.mxu0 %vm1535_vm11, %v9946_v12  ;;  %v9981_v45 = vadd.f32 %v9393_v0, %v1458_v40  ;;  %v1463_v0 = vpop.permute.xlu1 %1462 }
 0x260   : > { %6307 = vmatmul.msk.f32.gmra.mxu3 %vm1535_vm11, %v9946_v12  ;;  %v10015_v2 = vadd.f32 %v9479_v6, %v1463_v0  ;;  %v10065_v55 = vadd.f32 %v9918_v23, %v1463_v0 }
 0x261   : > { %14046 = vst [vmem:[#allocation32_spill] sm:$0xff] %v9981_v45 }
 0x262   : > { %14054 = vst [vmem:[#allocation37_spill] sm:$0xff] %v10015_v2 }
 0x263   : > { %v9954_v25 = vpop.f32.mrf.mxu3  ;;  %14061 = vst [vmem:[#allocation16_spill] sm:$0xff] %v10065_v55 }
 0x264   : > { %v9952_v57 = vpop.f32.mrf.mxu2  ;;  %14040 = vst [vmem:[#allocation10_spill] sm:$0xff] %v9954_v25 }
 0x265   : > { %14039 = vst [vmem:[#allocation4_spill] sm:$0xff] %v9952_v57  ;;  %6290 = vmatmul.msk.f32.gmra.mxu2 %vm1535_vm11, %v9925_v53  ;;  %v9960_v48 = vpop.f32.mrf.mxu0  ;;  %v14044_v53 = vld [vmem:[#allocation5_spill] sm:$0xff] }
 0x266   : > { %v9958_v63 = vpop.f32.mrf.mxu1  ;;  %6275 = vmatmul.msk.f32.gmra.mxu1 %vm1535_vm11, %v9946_v12  ;;  %v9978_v57 = vadd.f32 %v14044_v53, %v1458_v40  ;;  %v9997_v53 = vadd.f32 %v9412_v37, %v1458_v40 }
 0x267   : > { %14041 = vst [vmem:[#allocation12_spill] sm:$0xff] %v9958_v63  ;;  %6260 = vmatmul.msk.f32.gmra.mxu0 %vm1535_vm11, %v9967_v8 }
 0x268   : > { %6308 = vmatmul.msk.f32.gmra.mxu3 %vm1535_vm11, %v9967_v8  ;;  %14045 = vst [vmem:[#allocation15_spill] sm:$0xff] %v9978_v57 }
 0x269   : > { %14048 = vst [vmem:[#allocation11_spill] sm:$0xff] %v9997_v53 }
 0x26b   : > { %v2056_v63 = vpop.f32.mrf.mxu3 }
 0x26c   : > { %v9973_v25 = vpop.f32.mrf.mxu2 }
 0x26d   : > { %14043 = vst [vmem:[#allocation9_spill] sm:$0xff] %v9973_v25  ;;  %6291 = vmatmul.msk.f32.gmra.mxu2 %vm1535_vm11, %v9946_v12  ;;  %v9985_v33 = vpop.f32.mrf.mxu0  ;;  %v9992_v25 = vld [vmem:[%s13447_s3 + $0x40] sm:$0xff]  ;;  %v2104_v12 = vmax.f32 %v9978_v57, %v9981_v45  ;;  %v14052_v45 = vld [vmem:[#allocation33_spill] sm:$0xff] }
 0x26e   : > { %v9983_v27 = vpop.f32.mrf.mxu1  ;;  %6276 = vmatmul.msk.f32.gmra.mxu1 %vm1535_vm11, %v9967_v8  ;;  %v10011_v57 = vadd.f32 %v14052_v45, %v1463_v0 }
 0x26f   : > { %14047 = vst [vmem:[#allocation34_spill] sm:$0xff] %v9983_v27  ;;  %6261 = vmatmul.msk.f32.gmra.mxu0 %vm1535_vm11, %v9992_v25  ;;  %v2105_v37 = vmax.f32 %v2104_v12, %v9997_v53  ;;  %v10031_v12 = vadd.f32 %v9554_v32, %v1463_v0  ;;  %v10048_v32 = vadd.f32 %v9434_v56, %v10038_v7 }
 0x270   : > { %6309 = vmatmul.msk.f32.gmra.mxu3 %vm1535_vm11, %v9992_v25  ;;  %14053 = vst [vmem:[#allocation29_spill] sm:$0xff] %v10011_v57  ;;  %v2113_v45 = vmax.f32 %v10011_v57, %v10015_v2  ;;  %v10057_v57 = vadd.f32 %v2056_v63, %v1458_v40  ;;  %v10074_v63 = vadd.f32 %v9651_v30, %v10038_v7  ;;  %v14063_v30 = vld [vmem:[#allocation47_spill] sm:$0xff] }
 0x271   : > { %14056 = vst [vmem:[#allocation26_spill] sm:$0xff] %v10031_v12  ;;  %v2106_v6 = vmax.f32 %v2105_v37, %v10008_v4 }
 0x272   : > { %14059 = vst [vmem:[#allocation17_spill] sm:$0xff] %v10048_v32 }
 0x273   : > { %v2059_v61 = vpop.f32.mrf.mxu3  ;;  %14062 = vst [vmem:[#allocation8_spill] sm:$0xff] %v10074_v63 }
 0x274   : > { %v10003_v27 = vpop.f32.mrf.mxu2 }
 0x275   : > { %14049 = vst [vmem:[#allocation24_spill] sm:$0xff] %v10003_v27  ;;  %6292 = vmatmul.msk.f32.gmra.mxu2 %vm1535_vm11, %v9967_v8  ;;  %v10017_v24 = vpop.f32.mrf.mxu0  ;;  %v2107_v8 = vmax.f32 %v2106_v6, %v10019_v26  ;;  %v14057_v27 = vld [vmem:[#allocation25_spill] sm:$0xff]  ;;  %v2114_v6 = vmax.f32 %v2113_v45, %v10031_v12 }
 0x276   : > { %v1926_v59 = vpop.f32.mrf.mxu1  ;;  %6277 = vmatmul.msk.f32.gmra.mxu1 %vm1535_vm11, %v9992_v25  ;;  %v10044_v42 = vadd.f32 %v14057_v27, %v1463_v0 }
 0x277   : > { %v10034_v53 = vadd.f32 %v1926_v59, %v1458_v40  ;;  %6262 = vmatmul.msk.f32.gmra.mxu0 %vm1535_vm11, %v10026_v36  ;;  %v10052_v59 = vadd.f32 %v9613_v51, %v10038_v7 }
 0x278   : > { %6310 = vmatmul.msk.f32.gmra.mxu3 %vm1535_vm11, %v10026_v36  ;;  %14058 = vst [vmem:[#allocation7_spill] sm:$0xff] %v10044_v42  ;;  %v2115_v23 = vmax.f32 %v2114_v6, %v10044_v42 }
 0x279   : > { %14060 = vst [vmem:[#allocation20_spill] sm:$0xff] %v10052_v59  ;;  %v2108_v27 = vmax.f32 %v2107_v8, %v10034_v53  ;;  %v2122_v45 = vmax.f32 %v10048_v32, %v10052_v59  ;;  %v10094_v32 = vadd.f32 %v14063_v30, %v10038_v7 }
 0x27a   : > { %v2116_v59 = vmax.f32 %v2115_v23, %v10065_v55 }
 0x27b   : > { %v2062_v2 = vpop.f32.mrf.mxu3  ;;  %14064 = vst [vmem:[#allocation5_spill] sm:$0xff] %v10094_v32 }
 0x27c   : > { %v1991_v37 = vpop.f32.mrf.mxu2 }
 0x27d   : > { %6293 = vmatmul.msk.f32.gmra.mxu2 %vm1535_vm11, %v9992_v25  ;;  %v10060_v26 = vadd.f32 %v1991_v37, %v1458_v40  ;;  %v10062_v4 = vpop.f32.mrf.mxu0  ;;  %v10079_v40 = vld [vmem:[%s13447_s3 + $0x50] sm:$0xff] }
 0x27e   : > { %v1929_v56 = vpop.f32.mrf.mxu1  ;;  %6278 = vmatmul.msk.f32.gmra.mxu1 %vm1535_vm11, %v10026_v36 }
 0x27f   : > { %v2109_v51 = vmax.f32 %v2108_v27, %v10060_v26  ;;  %v10082_v8 = vadd.f32 %v1929_v56, %v1463_v0  ;;  %6263 = vmatmul.msk.f32.gmra.mxu0 %vm1535_vm11, %v10079_v40  ;;  %v10087_v27 = vpop.permute.xlu1 %1472  ;;  %v2123_v56 = vmax.f32 %v2122_v45, %v10074_v63  ;;  %v10116_v45 = vadd.f32 %v9939_v54, %v10038_v7 }
 0x280   : > { %6311 = vmatmul.msk.f32.gmra.mxu3 %vm1535_vm11, %v10079_v40  ;;  %v10098_v6 = vadd.f32 %v9500_v10, %v10087_v27  ;;  %v10105_v23 = vadd.f32 %v9670_v34, %v10087_v27  ;;  %v10123_v34 = vadd.f32 %v9705_v5, %v10087_v27  ;;  %v10139_v5 = vpop.permute.xlu2 %1477 }
 0x281   : > { %v2110_v37 = vmax.f32 %v2109_v51, %v10057_v57  ;;  %v2117_v30 = vmax.f32 %v2116_v59, %v10082_v8  ;;  %14068 = vst [vmem:[#allocation47_spill] sm:$0xff] %v10116_v45  ;;  %v2124_v54 = vmax.f32 %v2123_v56, %v10094_v32  ;;  %v10150_v56 = vadd.f32 %v9611_v39, %v10139_v5 }
 0x282   : > { %14065 = vst [vmem:[#allocation23_spill] sm:$0xff] %v10098_v6 }
 0x283   : > { %2111 = vmax.xlane.f32.xlu2 %v2110_v37  ;;  %v2065_v42 = vpop.f32.mrf.mxu3  ;;  %14066 = vst [vmem:[#allocation33_spill] sm:$0xff] %v10105_v23  ;;  %v10107_v37 = vadd.f32 %v2059_v61, %v1463_v0  ;;  %v10128_v61 = vld [vmem:[%s13447_s3 + $0x58] sm:$0xff] }
 0x284   : > { %v1994_v51 = vpop.f32.mrf.mxu2  ;;  %14070 = vst [vmem:[#allocation49_spill] sm:$0xff] %v10150_v56 }
 0x285   : > { %6294 = vmatmul.msk.f32.gmra.mxu2 %vm1535_vm11, %v10026_v36  ;;  %14067 = vst [vmem:[#allocation25_spill] sm:$0xff] %v10107_v37  ;;  %v10110_v55 = vadd.f32 %v1994_v51, %v1463_v0  ;;  %v10112_v12 = vpop.f32.mrf.mxu0  ;;  %v2131_v0 = vmax.f32 %v10098_v6, %v10105_v23  ;;  %v10146_v23 = vadd.f32 %v9576_v28, %v10087_v27 }
 0x286   : > { %v1932_v10 = vpop.f32.mrf.mxu1  ;;  %6279 = vmatmul.msk.f32.gmra.mxu1 %vm1535_vm11, %v10079_v40 }
 0x287   : > { %v2118_v63 = vmax.f32 %v2117_v30, %v10110_v55  ;;  %v10134_v59 = vadd.f32 %v1932_v10, %v10038_v7  ;;  %6264 = vmatmul.msk.f32.gmra.mxu0 %vm1535_vm11, %v10128_v61  ;;  %v2125_v30 = vmax.f32 %v2124_v54, %v10116_v45  ;;  %14069 = vst [vmem:[#allocation48_spill] sm:$0xff] %v10146_v23 }
 0x288   : > { %6312 = vmatmul.msk.f32.gmra.mxu3 %vm1535_vm11, %v10128_v61  ;;  %v2132_v54 = vmax.f32 %v2131_v0, %v10123_v34 }
 0x289   : > { %v2119_v51 = vmax.f32 %v2118_v63, %v10107_v37  ;;  %v10154_v63 = vadd.f32 %v9719_v15, %v10139_v5  ;;  %v2126_v28 = vmax.f32 %v2125_v30, %v10134_v59  ;;  %v10170_v15 = vadd.f32 %v9960_v48, %v10087_v27 }
 0x28a   : > { %v2133_v48 = vmax.f32 %v2132_v54, %v10146_v23 }
 0x28b   : > { %2120 = vmax.xlane.f32.xlu0 %v2119_v51  ;;  %14071 = vst [vmem:[#allocation50_spill] sm:$0xff] %v10154_v63  ;;  %v2068_v6 = vpop.f32.mrf.mxu3  ;;  %v10160_v51 = vadd.f32 %v2062_v2, %v10038_v7  ;;  %v10177_v2 = vadd.f32 %v9744_v49, %v10139_v5  ;;  %v2140_v0 = vmax.f32 %v10150_v56, %v10154_v63  ;;  %v10193_v49 = vpop.permute.xlu0 %1482 }
 0x28c   : > { %v1997_v10 = vpop.f32.mrf.mxu2  ;;  %14073 = vst [vmem:[#allocation52_spill] sm:$0xff] %v10170_v15  ;;  %v10200_v63 = vadd.f32 %v9653_v18, %v10139_v5 }
 0x28d   : > { %6295 = vmatmul.msk.f32.gmra.mxu2 %vm1535_vm11, %v10079_v40  ;;  %14072 = vst [vmem:[#allocation51_spill] sm:$0xff] %v10160_v51  ;;  %v10164_v45 = vadd.f32 %v1997_v10, %v10038_v7  ;;  %v10166_v39 = vpop.f32.mrf.mxu0  ;;  %v10182_v7 = vld [vmem:[%s13447_s3 + $0x60] sm:$0xff] }
 0x28e   : > { %v1935_v32 = vpop.f32.mrf.mxu1  ;;  %6280 = vmatmul.msk.f32.gmra.mxu1 %vm1535_vm11, %v10128_v61  ;;  %14074 = vst [vmem:[#allocation53_spill] sm:$0xff] %v10177_v2 }
 0x28f   : > { %v2127_v37 = vmax.f32 %v2126_v28, %v10164_v45  ;;  %v10188_v30 = vadd.f32 %v1935_v32, %v10087_v27  ;;  %6265 = vmatmul.msk.f32.gmra.mxu0 %vm1535_vm11, %v10182_v7  ;;  %v2134_v28 = vmax.f32 %v2133_v48, %v10170_v15  ;;  %14075 = vst [vmem:[#allocation54_spill] sm:$0xff] %v10200_v63 }
 0x290   : > { %6313 = vmatmul.msk.f32.gmra.mxu3 %vm1535_vm11, %v10182_v7  ;;  %v10204_v32 = vadd.f32 %v9668_v20, %v10193_v49  ;;  %v2141_v48 = vmax.f32 %v2140_v0, %v10177_v2  ;;  %v10238_v0 = vadd.f32 %v9772_v46, %v10193_v49  ;;  %v10254_v46 = vadd.f32 %v9707_v3, %v10193_v49 }
 0x291   : > { %v2128_v10 = vmax.f32 %v2127_v37, %v10160_v51  ;;  %v10208_v37 = vadd.f32 %v9756_v9, %v10193_v49  ;;  %v2135_v18 = vmax.f32 %v2134_v28, %v10188_v30  ;;  %v10224_v9 = vadd.f32 %v9985_v33, %v10139_v5 }
 0x292   : > { %14076 = vst [vmem:[#allocation55_spill] sm:$0xff] %v10204_v32  ;;  %v2142_v33 = vmax.f32 %v2141_v48, %v10200_v63 }
 0x293   : > { %2129 = vmax.xlane.f32.xlu1 %v2128_v10  ;;  %14077 = vst [vmem:[#allocation56_spill] sm:$0xff] %v10208_v37  ;;  %v2071_v56 = vpop.f32.mrf.mxu3  ;;  %v10214_v10 = vadd.f32 %v2065_v42, %v10087_v27  ;;  %v2149_v42 = vmax.f32 %v10204_v32, %v10208_v37 }
 0x294   : > { %v2000_v54 = vpop.f32.mrf.mxu2  ;;  %14078 = vst [vmem:[#allocation57_spill] sm:$0xff] %v10224_v9  ;;  %v2143_v37 = vmax.f32 %v2142_v33, %v10224_v9 }
 0x295   : > { %6296 = vmatmul.msk.f32.gmra.mxu2 %vm1535_vm11, %v10128_v61  ;;  %v10218_v15 = vadd.f32 %v2000_v54, %v10087_v27  ;;  %v10220_v20 = vpop.f32.mrf.mxu0  ;;  %v10234_v27 = vld [vmem:[%s13447_s3 + $0x68] sm:$0xff]  ;;  %14079 = vst [vmem:[#allocation58_spill] sm:$0xff] %v10254_v46  ;;  %v2150_v33 = vmax.f32 %v2149_v42, %v10238_v0 }
 0x296   : > { %v1938_v23 = vpop.f32.mrf.mxu1  ;;  %6281 = vmatmul.msk.f32.gmra.mxu1 %vm1535_vm11, %v10182_v7 }
 0x297   : > { %v2136_v51 = vmax.f32 %v2135_v18, %v10218_v15  ;;  %v10242_v28 = vadd.f32 %v1938_v23, %v10139_v5  ;;  %6266 = vmatmul.msk.f32.gmra.mxu0 %vm1535_vm11, %v10234_v27  ;;  %v10247_v18 = vpop.permute.xlu1 %1487 }
 0x298   : > { %6314 = vmatmul.msk.f32.gmra.mxu3 %vm1535_vm11, %v10234_v27  ;;  %v10258_v23 = vadd.f32 %v9717_v16, %v10247_v18 }
 0x299   : > { %v2137_v54 = vmax.f32 %v2136_v51, %v10214_v10  ;;  %v10262_v51 = vadd.f32 %v9782_v19, %v10247_v18  ;;  %v2144_v3 = vmax.f32 %v2143_v37, %v10242_v28  ;;  %v10278_v19 = vadd.f32 %v10017_v24, %v10193_v49 }
 0x29a   : > { %14080 = vst [vmem:[#allocation59_spill] sm:$0xff] %v10258_v23  ;;  %v10292_v37 = vadd.f32 %v9795_v22, %v10247_v18  ;;  %v2151_v24 = vmax.f32 %v2150_v33, %v10254_v46  ;;  %v10308_v22 = vadd.f32 %v9746_v13, %v10247_v18 }
 0x29b   : > { %2138 = vmax.xlane.f32.xlu2 %v2137_v54  ;;  %14081 = vst [vmem:[#allocation60_spill] sm:$0xff] %v10262_v51  ;;  %v2074_v32 = vpop.f32.mrf.mxu3  ;;  %v10268_v54 = vadd.f32 %v2068_v6, %v10139_v5  ;;  %v2158_v6 = vmax.f32 %v10258_v23, %v10262_v51 }
 0x29c   : > { %v2003_v48 = vpop.f32.mrf.mxu2  ;;  %14083 = vst [vmem:[#allocation62_spill] sm:$0xff] %v10278_v19  ;;  %v2152_v51 = vmax.f32 %v2151_v24, %v10278_v19 }
 0x29d   : > { %6297 = vmatmul.msk.f32.gmra.mxu2 %vm1535_vm11, %v10182_v7  ;;  %14082 = vst [vmem:[#allocation61_spill] sm:$0xff] %v10268_v54  ;;  %v10272_v9 = vadd.f32 %v2003_v48, %v10139_v5  ;;  %v10274_v16 = vpop.f32.mrf.mxu0  ;;  %v10288_v5 = vld [vmem:[%s13447_s3 + $0x70] sm:$0xff]  ;;  %v2159_v24 = vmax.f32 %v2158_v6, %v10292_v37 }
 0x29e   : > { %v1941_v63 = vpop.f32.mrf.mxu1  ;;  %6282 = vmatmul.msk.f32.gmra.mxu1 %vm1535_vm11, %v10234_v27  ;;  %14084 = vst [vmem:[#allocation63_spill] sm:$0xff] %v10292_v37 }
 0x29f   : > { %v2145_v2 = vmax.f32 %v2144_v3, %v10272_v9  ;;  %v10296_v42 = vadd.f32 %v1941_v63, %v10193_v49  ;;  %6267 = vmatmul.msk.f32.gmra.mxu0 %vm1535_vm11, %v10288_v5  ;;  %v10301_v3 = vpop.permute.xlu2 %1492  ;;  %14085 = vst [vmem:[#allocation64_spill] sm:$0xff] %v10308_v22 }
 0x2a0   : > { %6315 = vmatmul.msk.f32.gmra.mxu3 %vm1535_vm11, %v10288_v5  ;;  %v10312_v63 = vadd.f32 %v9754_v47, %v10301_v3 }
 0x2a1   : > { %v2146_v48 = vmax.f32 %v2145_v2, %v10268_v54  ;;  %v10316_v2 = vadd.f32 %v9803_v41, %v10301_v3  ;;  %v2153_v13 = vmax.f32 %v2152_v51, %v10296_v42  ;;  %v10332_v41 = vadd.f32 %v10062_v4, %v10247_v18 }
 0x2a2   : > { %14086 = vst [vmem:[#allocation65_spill] sm:$0xff] %v10312_v63  ;;  %v10346_v51 = vadd.f32 %v9825_v31, %v10301_v3  ;;  %v2160_v4 = vmax.f32 %v2159_v24, %v10308_v22  ;;  %v10364_v31 = vadd.f32 %v9774_v44, %v10301_v3 }
 0x2a3   : > { %2147 = vmax.xlane.f32.xlu2 %v2146_v48  ;;  %14087 = vst [vmem:[#allocation66_spill] sm:$0xff] %v10316_v2  ;;  %v2077_v23 = vpop.f32.mrf.mxu3  ;;  %v10322_v48 = vadd.f32 %v2071_v56, %v10193_v49  ;;  %v2167_v56 = vmax.f32 %v10312_v63, %v10316_v2  ;;  %v10357_v2 = vpop.permute.xlu1 %1502 }
 0x2a4   : > { %v2006_v33 = vpop.f32.mrf.mxu2  ;;  %14089 = vst [vmem:[#allocation68_spill] sm:$0xff] %v10332_v41  ;;  %v2161_v63 = vmax.f32 %v2160_v4, %v10332_v41 }
 0x2a5   : > { %6298 = vmatmul.msk.f32.gmra.mxu2 %vm1535_vm11, %v10234_v27  ;;  %14088 = vst [vmem:[#allocation67_spill] sm:$0xff] %v10322_v48  ;;  %v10326_v19 = vadd.f32 %v2006_v33, %v10193_v49  ;;  %v10328_v47 = vpop.f32.mrf.mxu0  ;;  %v10342_v49 = vld [vmem:[%s13447_s3 + $0x78] sm:$0xff]  ;;  %v2168_v4 = vmax.f32 %v2167_v56, %v10346_v51 }
 0x2a6   : > { %v1944_v46 = vpop.f32.mrf.mxu1  ;;  %6283 = vmatmul.msk.f32.gmra.mxu1 %vm1535_vm11, %v10288_v5  ;;  %14090 = vst [vmem:[#allocation69_spill] sm:$0xff] %v10346_v51 }
 0x2a7   : > { %v2154_v54 = vmax.f32 %v2153_v13, %v10326_v19  ;;  %v10350_v6 = vadd.f32 %v1944_v46, %v10247_v18  ;;  %6268 = vmatmul.msk.f32.gmra.mxu0 %vm1535_vm11, %v10342_v49  ;;  %v10355_v13 = vpop.permute.xlu0 %1497  ;;  %14091 = vst [vmem:[#allocation70_spill] sm:$0xff] %v10364_v31  ;;  %v10395_v56 = vpop.permute.xlu2 %1507 }
 0x2a8   : > { %6316 = vmatmul.msk.f32.gmra.mxu3 %vm1535_vm11, %v10342_v49  ;;  %v10368_v46 = vadd.f32 %v9780_v21, %v10355_v13 }
 0x2a9   : > { %v2155_v33 = vmax.f32 %v2154_v54, %v10322_v48  ;;  %v10372_v54 = vadd.f32 %v9833_v14, %v10355_v13  ;;  %v2162_v44 = vmax.f32 %v2161_v63, %v10350_v6  ;;  %v10388_v14 = vadd.f32 %v10112_v12, %v10301_v3 }
 0x2aa   : > { %14092 = vst [vmem:[#allocation71_spill] sm:$0xff] %v10368_v46  ;;  %v2169_v63 = vmax.f32 %v2168_v4, %v10364_v31  ;;  %v10417_v4 = vadd.f32 %v9801_v17, %v10357_v2  ;;  %v10439_v31 = vadd.f32 %v10166_v39, %v10355_v13 }
 0x2ab   : > { %2156 = vmax.xlane.f32.xlu0 %v2155_v33  ;;  %14093 = vst [vmem:[#allocation72_spill] sm:$0xff] %v10372_v54  ;;  %v2080_v22 = vpop.f32.mrf.mxu3  ;;  %v10378_v33 = vadd.f32 %v2074_v32, %v10247_v18  ;;  %v2176_v32 = vmax.f32 %v10368_v46, %v10372_v54 }
 0x2ac   : > { %v2009_v24 = vpop.f32.mrf.mxu2  ;;  %14094 = vst [vmem:[#allocation73_spill] sm:$0xff] %v10388_v14 }
 0x2ad   : > { %6299 = vmatmul.msk.f32.gmra.mxu2 %vm1535_vm11, %v10288_v5  ;;  %v10382_v41 = vadd.f32 %v2009_v24, %v10247_v18  ;;  %v10384_v21 = vpop.f32.mrf.mxu0  ;;  %v10399_v18 = vadd.f32 %v9849_v38, %v10355_v13  ;;  %v10413_v38 = vadd.f32 %v9797_v35, %v10355_v13  ;;  %14096 = vst [vmem:[#allocation75_spill] sm:$0xff] %v10417_v4 }
 0x2ae   : > { %v1947_v37 = vpop.f32.mrf.mxu1  ;;  %6284 = vmatmul.msk.f32.gmra.mxu1 %vm1535_vm11, %v10342_v49  ;;  %14099 = vst [vmem:[#allocation78_spill] sm:$0xff] %v10439_v31 }
 0x2af   : > { %v2163_v48 = vmax.f32 %v2162_v44, %v10382_v41  ;;  %v10403_v24 = vadd.f32 %v1947_v37, %v10301_v3  ;;  %6317 = vmatmul.msk.f32.vlgmr.msrb.gmra.mxu0 %vm1535_vm11, %v9816_v11  ;;  %v2170_v44 = vmax.f32 %v2169_v63, %v10388_v14  ;;  %14095 = vst [vmem:[#allocation74_spill] sm:$0xff] %v10413_v38 }
 0x2b0   : > { %6365 = vmatmul.msk.f32.vlgmr.msrb.gmra.mxu3 %vm1535_vm11, %v9816_v11  ;;  %v10421_v37 = vadd.f32 %v9857_v60, %v10357_v2  ;;  %v2177_v63 = vmax.f32 %v2176_v32, %v10399_v18  ;;  %v10435_v60 = vpop.permute.xlu1 %1517  ;;  %v10446_v32 = vpop.permute.xlu0 %1512 }
 0x2b1   : > { %v2164_v12 = vmax.f32 %v2163_v48, %v10378_v33  ;;  %v2171_v35 = vmax.f32 %v2170_v44, %v10403_v24 }
 0x2b2   : > { %14097 = vst [vmem:[#allocation76_spill] sm:$0xff] %v10421_v37  ;;  %v2178_v44 = vmax.f32 %v2177_v63, %v10413_v38 }
 0x2b3   : > { %2165 = vmax.xlane.f32.xlu1 %v2164_v12  ;;  %v2083_v54 = vpop.f32.mrf.mxu3  ;;  %v10427_v12 = vadd.f32 %v2077_v23, %v10301_v3  ;;  %v2185_v23 = vmax.f32 %v10417_v4, %v10421_v37 }
 0x2b4   : > { %v2012_v48 = vpop.f32.mrf.mxu2  ;;  %v2179_v37 = vmax.f32 %v2178_v44, %v10439_v31 }
 0x2b5   : > { %6300 = vmatmul.msk.f32.gmra.mxu2 %vm1535_vm11, %v10342_v49  ;;  %14098 = vst [vmem:[#allocation77_spill] sm:$0xff] %v10427_v12  ;;  %v10431_v46 = vadd.f32 %v2012_v48, %v10301_v3  ;;  %v10433_v17 = vpop.f32.mrf.mxu0  ;;  %v10450_v3 = vadd.f32 %v9870_v52, %v10357_v2  ;;  %v10466_v52 = vadd.f32 %v9827_v58, %v10357_v2 }
 0x2b6   : > { %v1950_v14 = vpop.f32.mrf.mxu1  ;;  %6333 = vmatmul.msk.f32.vlgmr.msra.gmra.mxu1 %vm1535_vm11, %v9816_v11 }
 0x2b7   : > { %v2172_v51 = vmax.f32 %v2171_v35, %v10431_v46  ;;  %14100 = vst [vmem:[#allocation79_spill] sm:$0xff] %v10450_v3  ;;  %v10454_v48 = vadd.f32 %v1950_v14, %v10355_v13  ;;  %6318 = vmatmul.msk.f32.gmra.mxu0 %vm1535_vm11, %v9843_v50  ;;  %v10459_v35 = vpop.permute.xlu2 %1522  ;;  %v10470_v14 = vadd.f32 %v9831_v43, %v10395_v56 }
 0x2b8   : > { %6366 = vmatmul.msk.f32.gmra.mxu3 %vm1535_vm11, %v9843_v50  ;;  %14101 = vst [vmem:[#allocation80_spill] sm:$0xff] %v10466_v52  ;;  %v2186_v44 = vmax.f32 %v2185_v23, %v10450_v3 }
 0x2b9   : > { %v2173_v39 = vmax.f32 %v2172_v51, %v10427_v12  ;;  %14102 = vst [vmem:[#allocation81_spill] sm:$0xff] %v10470_v14  ;;  %v10474_v51 = vadd.f32 %v9878_v29, %v10395_v56  ;;  %v2180_v58 = vmax.f32 %v2179_v37, %v10454_v48  ;;  %v10490_v29 = vadd.f32 %v10220_v20, %v10357_v2 }
 0x2ba   : > { %v2187_v37 = vmax.f32 %v2186_v44, %v10466_v52 }
 0x2bb   : > { %2174 = vmax.xlane.f32.xlu2 %v2173_v39  ;;  %14103 = vst [vmem:[#allocation82_spill] sm:$0xff] %v10474_v51  ;;  %v2086_v4 = vpop.f32.mrf.mxu3  ;;  %v10480_v39 = vadd.f32 %v2080_v22, %v10355_v13  ;;  %v10497_v22 = vpop.permute.xlu1 %1532 }
 0x2bc   : > { %v2015_v63 = vpop.f32.mrf.mxu2  ;;  %14105 = vst [vmem:[#allocation84_spill] sm:$0xff] %v10490_v29 }
 0x2bd   : > { %6349 = vmatmul.msk.f32.vlgmr.msra.gmra.mxu2 %vm1535_vm11, %v9816_v11  ;;  %14104 = vst [vmem:[#allocation83_spill] sm:$0xff] %v10480_v39  ;;  %v10484_v31 = vadd.f32 %v2015_v63, %v10355_v13  ;;  %v10486_v43 = vpop.f32.mrf.mxu0  ;;  %v2194_v11 = vmax.f32 %v10470_v14, %v10474_v51  ;;  %v10501_v13 = vadd.f32 %v9891_v62, %v10395_v56  ;;  %v10510_v63 = vpop.permute.xlu0 %1527  ;;  %v14109_v62 = vld [vmem:[#allocation42_spill] sm:$0xff] }
 0x2be   : > { %v1953_v38 = vpop.f32.mrf.mxu1  ;;  %6334 = vmatmul.msk.f32.gmra.mxu1 %vm1535_vm11, %v9843_v50  ;;  %v10519_v44 = vadd.f32 %v14109_v62, %v10446_v32 }
 0x2bf   : > { %v2181_v12 = vmax.f32 %v2180_v58, %v10484_v31  ;;  %14106 = vst [vmem:[#allocation85_spill] sm:$0xff] %v10501_v13  ;;  %v10505_v23 = vadd.f32 %v1953_v38, %v10357_v2  ;;  %6319 = vmatmul.msk.f32.gmra.mxu0 %vm1535_vm11, %v9864_v1  ;;  %v2188_v58 = vmax.f32 %v2187_v37, %v10490_v29  ;;  %v10513_v51 = vpop.permute.xlu2 %4098  ;;  %v14111_v38 = vld [vmem:[#allocation6_spill] sm:$0xff]  ;;  %v14113_v37 = vld [vmem:[#allocation36_spill] sm:$0xff] }
 0x2c0   : > { %14108 = vst [vmem:[#allocation87_spill] sm:$0xff] %v10513_v51  ;;  %6367 = vmatmul.msk.f32.gmra.mxu3 %vm1535_vm11, %v9864_v1  ;;  %v10529_v51 = vadd.f32 %v14113_v37, %v10395_v56 }
 0x2c1   : > { %14107 = vst [vmem:[#allocation86_spill] sm:$0xff] %v10505_v23  ;;  %v2182_v20 = vmax.f32 %v2181_v12, %v10480_v39  ;;  %v10523_v12 = vadd.f32 %v14111_v38, %v10446_v32  ;;  %v2189_v29 = vmax.f32 %v2188_v58, %v10505_v23  ;;  %v10540_v39 = vadd.f32 %v10274_v16, %v10395_v56 }
 0x2c2   : > { %14110 = vst [vmem:[#allocation42_spill] sm:$0xff] %v10519_v44 }
 0x2c3   : > { %2183 = vmax.xlane.f32.xlu0 %v2182_v20  ;;  %14112 = vst [vmem:[#allocation6_spill] sm:$0xff] %v10523_v12  ;;  %v2089_v52 = vpop.f32.mrf.mxu3  ;;  %v2195_v20 = vmax.f32 %v2194_v11, %v10501_v13  ;;  %v2203_v11 = vmax.f32 %v10519_v44, %v10523_v12  ;;  %v10554_v13 = vpop.permute.xlu1 %4103 }
 0x2c4   : > { %v2018_v14 = vpop.f32.mrf.mxu2  ;;  %14114 = vst [vmem:[#allocation36_spill] sm:$0xff] %v10529_v51 }
 0x2c5   : > { %6350 = vmatmul.msk.f32.gmra.mxu2 %vm1535_vm11, %v9843_v50  ;;  %v10534_v62 = vadd.f32 %v2018_v14, %v10357_v2  ;;  %v10536_v3 = vpop.f32.mrf.mxu0  ;;  %14116 = vst [vmem:[#allocation89_spill] sm:$0xff] %v10540_v39  ;;  %v10543_v50 = vadd.f32 %v2083_v54, %v10357_v2  ;;  %v14118_v14 = vld [vmem:[#allocation31_spill] sm:$0xff]  ;;  %v2196_v16 = vmax.f32 %v2195_v20, %v10529_v51  ;;  %v14122_v54 = vld [vmem:[#allocation45_spill] sm:$0xff] }
 0x2c6   : > { %v1956_v38 = vpop.f32.mrf.mxu1  ;;  %6335 = vmatmul.msk.f32.gmra.mxu1 %vm1535_vm11, %v9864_v1  ;;  %v10552_v58 = vadd.f32 %v14118_v14, %v10446_v32  ;;  %14120 = vst [vmem:[#allocation91_spill] sm:$0xff] %v10554_v13  ;;  %v14124_v14 = vld [vmem:[#allocation44_spill] sm:$0xff]  ;;  %v14126_v20 = vld [vmem:[#allocation27_spill] sm:$0xff] }
 0x2c7   : > { %14115 = vst [vmem:[#allocation88_spill] sm:$0xff] %v10534_v62  ;;  %v2190_v37 = vmax.f32 %v2189_v29, %v10534_v62  ;;  %v10558_v23 = vadd.f32 %v1956_v38, %v10395_v56  ;;  %6320 = vmatmul.msk.f32.gmra.mxu0 %vm1535_vm11, %v14122_v54  ;;  %v2197_v29 = vmax.f32 %v2196_v16, %v10540_v39  ;;  %v10564_v62 = vpop.permute.xlu0 %4093  ;;  %v14128_v16 = vld [vmem:[#allocation43_spill] sm:$0xff] }
 0x2c8   : > { %14117 = vst [vmem:[#allocation90_spill] sm:$0xff] %v10543_v50  ;;  %6368 = vmatmul.msk.f32.gmra.mxu3 %vm1535_vm11, %v14122_v54  ;;  %v10570_v12 = vadd.f32 %v14124_v14, %v10435_v60  ;;  %v10574_v38 = vadd.f32 %v14126_v20, %v10435_v60  ;;  %v10580_v39 = vadd.f32 %v14128_v16, %v10446_v32  ;;  %v10589_v20 = vpop.permute.xlu2 %4078 }
 0x2c9   : > { %14119 = vst [vmem:[#allocation31_spill] sm:$0xff] %v10552_v58  ;;  %v2191_v2 = vmax.f32 %v2190_v37, %v10543_v50  ;;  %v2198_v51 = vmax.f32 %v2197_v29, %v10558_v23  ;;  %v10593_v50 = vadd.f32 %v10328_v47, %v10446_v32  ;;  %v14134_v29 = vld [vmem:[#allocation18_spill] sm:$0xff] }
 0x2ca   : > { %14121 = vst [vmem:[#allocation92_spill] sm:$0xff] %v10558_v23 }
 0x2cb   : > { %14123 = vst [vmem:[#allocation45_spill] sm:$0xff] %v10564_v62  ;;  %2192 = vmax.xlane.f32.xlu1 %v2191_v2  ;;  %v2092_v44 = vpop.f32.mrf.mxu3  ;;  %v2204_v2 = vmax.f32 %v2203_v11, %v10552_v58  ;;  %v2212_v11 = vmax.f32 %v10570_v12, %v10574_v38 }
 0x2cc   : > { %14125 = vst [vmem:[#allocation44_spill] sm:$0xff] %v10570_v12  ;;  %v2021_v37 = vpop.f32.mrf.mxu2 }
 0x2cd   : > { %14127 = vst [vmem:[#allocation27_spill] sm:$0xff] %v10574_v38  ;;  %6351 = vmatmul.msk.f32.gmra.mxu2 %vm1535_vm11, %v9864_v1  ;;  %v10585_v14 = vadd.f32 %v2021_v37, %v10395_v56  ;;  %v10587_v62 = vpop.f32.mrf.mxu0  ;;  %v10596_v1 = vadd.f32 %v2086_v4, %v10395_v56  ;;  %v10605_v37 = vadd.f32 %v14134_v29, %v10435_v60  ;;  %v14137_v4 = vld [vmem:[#allocation40_spill] sm:$0xff] }
 0x2ce   : > { %14129 = vst [vmem:[#allocation43_spill] sm:$0xff] %v10580_v39  ;;  %v1959_v13 = vpop.f32.mrf.mxu1  ;;  %6336 = vmatmul.msk.f32.gmra.mxu1 %vm1535_vm11, %v14122_v54 }
 0x2cf   : > { %14130 = vst [vmem:[#allocation93_spill] sm:$0xff] %v10585_v14  ;;  %v2199_v16 = vmax.f32 %v2198_v51, %v10585_v14  ;;  %v10609_v47 = vadd.f32 %v1959_v13, %v10446_v32  ;;  %6321 = vmatmul.msk.f32.gmra.mxu0 %vm1535_vm11, %v14137_v4  ;;  %v10614_v51 = vpop.permute.xlu1 %4088  ;;  %v14139_v13 = vld [vmem:[#allocation39_spill] sm:$0xff]  ;;  %v10638_v58 = vpop.permute.xlu0 %4083 }
 0x2d0   : > { %14131 = vst [vmem:[#allocation94_spill] sm:$0xff] %v10587_v62  ;;  %v2205_v62 = vmax.f32 %v2204_v2, %v10580_v39  ;;  %6369 = vmatmul.msk.f32.gmra.mxu3 %vm1535_vm11, %v14137_v4  ;;  %v10625_v2 = vadd.f32 %v14139_v13, %v10435_v60 }
 0x2d1   : > { %14132 = vst [vmem:[#allocation95_spill] sm:$0xff] %v10593_v50  ;;  %v2200_v56 = vmax.f32 %v2199_v16, %v10596_v1  ;;  %v2213_v16 = vmax.f32 %v2212_v11, %v10605_v37  ;;  %v10645_v11 = vadd.f32 %v2089_v52, %v10446_v32 }
 0x2d2   : > { %14133 = vst [vmem:[#allocation96_spill] sm:$0xff] %v10596_v1  ;;  %v2206_v14 = vmax.f32 %v2205_v62, %v10593_v50  ;;  %v14142_v1 = vld [vmem:[#allocation19_spill] sm:$0xff] }
 0x2d3   : > { %14135 = vst [vmem:[#allocation18_spill] sm:$0xff] %v10605_v37  ;;  %2201 = vmax.xlane.f32.xlu2 %v2200_v56  ;;  %v10619_v38 = vpop.f32.mrf.mxu3  ;;  %v10636_v39 = vadd.f32 %v14142_v1, %v10459_v35  ;;  %v14149_v1 = vld [vmem:[#allocation4_spill] sm:$0xff] }
 0x2d4   : > { %14136 = vst [vmem:[#allocation97_spill] sm:$0xff] %v10609_v47  ;;  %v2024_v29 = vpop.f32.mrf.mxu2  ;;  %v2207_v12 = vmax.f32 %v2206_v14, %v10609_v47  ;;  %v10656_v37 = vadd.f32 %v14149_v1, %v10459_v35  ;;  %v10658_v47 = vpop.permute.xlu2 %4063 }
 0x2d5   : > { %14138 = vst [vmem:[#allocation40_spill] sm:$0xff] %v10614_v51  ;;  %6352 = vmatmul.msk.f32.gmra.mxu2 %vm1535_vm11, %v14122_v54  ;;  %v10630_v62 = vadd.f32 %v2024_v29, %v10446_v32  ;;  %v10632_v50 = vpop.f32.mrf.mxu0  ;;  %v10642_v54 = vadd.f32 %v10384_v21, %v10435_v60  ;;  %v14147_v29 = vld [vmem:[#allocation22_spill] sm:$0xff]  ;;  %v2214_v21 = vmax.f32 %v2213_v16, %v10625_v2 }
 0x2d6   : > { %14140 = vst [vmem:[#allocation39_spill] sm:$0xff] %v10625_v2  ;;  %v1962_v56 = vpop.f32.mrf.mxu1  ;;  %6337 = vmatmul.msk.f32.gmra.mxu1 %vm1535_vm11, %v14137_v4  ;;  %v10652_v13 = vadd.f32 %v14147_v29, %v10459_v35  ;;  %v14154_v16 = vld [vmem:[#allocation38_spill] sm:$0xff] }
 0x2d7   : > { %14141 = vst [vmem:[#allocation98_spill] sm:$0xff] %v10630_v62  ;;  %v2208_v14 = vmax.f32 %v2207_v12, %v10630_v62  ;;  %v10662_v32 = vadd.f32 %v1962_v56, %v10435_v60  ;;  %v14153_v12 = vld [vmem:[#allocation13_spill] sm:$0xff]  ;;  %v2215_v62 = vmax.f32 %v2214_v21, %v10642_v54  ;;  %v10678_v56 = vadd.f32 %v14154_v16, %v10459_v35 }
 0x2d8   : > { %14143 = vst [vmem:[#allocation19_spill] sm:$0xff] %v10636_v39  ;;  %6322 = vmatmul.msk.f32.gmra.mxu0 %vm1535_vm11, %v14153_v12  ;;  %v2221_v29 = vmax.f32 %v10652_v13, %v10636_v39  ;;  %6370 = vmatmul.msk.f32.gmra.mxu3 %vm1535_vm11, %v14153_v12 }
 0x2d9   : > { %14144 = vst [vmem:[#allocation99_spill] sm:$0xff] %v10638_v58  ;;  %v2209_v52 = vmax.f32 %v2208_v14, %v10645_v11  ;;  %v2216_v39 = vmax.f32 %v2215_v62, %v10662_v32 }
 0x2da   : > { %14145 = vst [vmem:[#allocation100_spill] sm:$0xff] %v10642_v54  ;;  %v2222_v14 = vmax.f32 %v2221_v29, %v10656_v37  ;;  %v10698_v29 = vadd.f32 %v2092_v44, %v10435_v60  ;;  %v14168_v44 = vld [vmem:[#allocation28_spill] sm:$0xff] }
 0x2db   : > { %14146 = vst [vmem:[#allocation101_spill] sm:$0xff] %v10645_v11  ;;  %2210 = vmax.xlane.f32.xlu0 %v2209_v52  ;;  %v10672_v23 = vpop.f32.mrf.mxu3  ;;  %v10691_v11 = vpop.permute.xlu1 %4073 }
 0x2dc   : > { %14148 = vst [vmem:[#allocation22_spill] sm:$0xff] %v10652_v13  ;;  %v2027_v1 = vpop.f32.mrf.mxu2  ;;  %v14157_v13 = vld [vmem:[#allocation12_spill] sm:$0xff] }
 0x2dd   : > { %14150 = vst [vmem:[#allocation4_spill] sm:$0xff] %v10656_v37  ;;  %6353 = vmatmul.msk.f32.gmra.mxu2 %vm1535_vm11, %v14137_v4  ;;  %v10683_v21 = vadd.f32 %v2027_v1, %v10435_v60  ;;  %v10685_v54 = vpop.f32.mrf.mxu0  ;;  %v10689_v2 = vadd.f32 %v14157_v13, %v10510_v63  ;;  %v10695_v4 = vadd.f32 %v10433_v17, %v10459_v35  ;;  %v14162_v1 = vld [vmem:[#allocation21_spill] sm:$0xff] }
 0x2de   : > { %14151 = vst [vmem:[#allocation102_spill] sm:$0xff] %v10658_v47  ;;  %v1965_v52 = vpop.f32.mrf.mxu1  ;;  %6338 = vmatmul.msk.f32.gmra.mxu1 %vm1535_vm11, %v14153_v12  ;;  %v10705_v16 = vadd.f32 %v14162_v1, %v10510_v63  ;;  %v14164_v13 = vld [vmem:[#allocation9_spill] sm:$0xff]  ;;  %v2223_v17 = vmax.f32 %v2222_v14, %v10678_v56 }
 0x2df   : > { %14152 = vst [vmem:[#allocation103_spill] sm:$0xff] %v10662_v32  ;;  %v2217_v62 = vmax.f32 %v2216_v39, %v10683_v21  ;;  %v10709_v37 = vadd.f32 %v14164_v13, %v10510_v63  ;;  %v10711_v32 = vpop.permute.xlu0 %4068  ;;  %v10715_v60 = vadd.f32 %v1965_v52, %v10459_v35  ;;  %v14169_v52 = vld [vmem:[#allocation30_spill] sm:$0xff] }
 0x2e0   : > { %14155 = vst [vmem:[#allocation13_spill] sm:$0xff] %v10678_v56  ;;  %6323 = vmatmul.msk.f32.gmra.mxu0 %vm1535_vm11, %v14168_v44  ;;  %v2230_v1 = vmax.f32 %v10705_v16, %v10689_v2  ;;  %v2224_v13 = vmax.f32 %v2223_v17, %v10695_v4  ;;  %6371 = vmatmul.msk.f32.gmra.mxu3 %vm1535_vm11, %v14168_v44 }
 0x2e1   : > { %14156 = vst [vmem:[#allocation38_spill] sm:$0xff] %v10683_v21  ;;  %v2218_v39 = vmax.f32 %v2217_v62, %v10698_v29  ;;  %v10722_v21 = vpop.permute.xlu2 %4048  ;;  %v10731_v62 = vadd.f32 %v14169_v52, %v10510_v63  ;;  %v10750_v52 = vadd.f32 %v10619_v38, %v10459_v35 }
 0x2e2   : > { %14158 = vst [vmem:[#allocation12_spill] sm:$0xff] %v10689_v2  ;;  %v2225_v2 = vmax.f32 %v2224_v13, %v10715_v60  ;;  %v14176_v13 = vld [vmem:[#allocation14_spill] sm:$0xff] }
 0x2e3   : > { %14159 = vst [vmem:[#allocation104_spill] sm:$0xff] %v10691_v11  ;;  %2219 = vmax.xlane.f32.xlu1 %v2218_v39  ;;  %v2101_v56 = vpop.f32.mrf.mxu3  ;;  %v14207_v11 = vld [vmem:[#allocation35_spill] sm:$0xff] }
 0x2e4   : > { %14160 = vst [vmem:[#allocation105_spill] sm:$0xff] %v10695_v4  ;;  %v2030_v14 = vpop.f32.mrf.mxu2  ;;  %v14172_v4 = vld [vmem:[#allocation34_spill] sm:$0xff] }
 0x2e5   : > { %14161 = vst [vmem:[#allocation106_spill] sm:$0xff] %v10698_v29  ;;  %6354 = vmatmul.msk.f32.gmra.mxu2 %vm1535_vm11, %v14153_v12  ;;  %v2231_v29 = vmax.f32 %v2230_v1, %v10709_v37  ;;  %v10738_v39 = vpop.f32.mrf.mxu0  ;;  %v10742_v51 = vadd.f32 %v14172_v4, %v10497_v22  ;;  %v10746_v12 = vadd.f32 %v10486_v43, %v10510_v63  ;;  %v14178_v4 = vld [vmem:[#allocation24_spill] sm:$0xff] }
 0x2e6   : > { %14163 = vst [vmem:[#allocation21_spill] sm:$0xff] %v10705_v16  ;;  %v10736_v16 = vadd.f32 %v2030_v14, %v10459_v35  ;;  %v1968_v17 = vpop.f32.mrf.mxu1  ;;  %6339 = vmatmul.msk.f32.gmra.mxu1 %vm1535_vm11, %v14168_v44  ;;  %v10757_v14 = vadd.f32 %v14176_v13, %v10497_v22 }
 0x2e7   : > { %14165 = vst [vmem:[#allocation9_spill] sm:$0xff] %v10709_v37  ;;  %v10761_v37 = vadd.f32 %v14178_v4, %v10497_v22  ;;  %v2232_v43 = vmax.f32 %v2231_v29, %v10731_v62  ;;  %v10767_v35 = vadd.f32 %v1968_v17, %v10510_v63  ;;  %v14184_v17 = vld [vmem:[#allocation10_spill] sm:$0xff] }
 0x2e8   : > { %14166 = vst [vmem:[#allocation107_spill] sm:$0xff] %v10711_v32  ;;  %v2226_v1 = vmax.f32 %v2225_v2, %v10736_v16  ;;  %v14182_v2 = vld [vmem:[#allocation46_spill] sm:$0xff]  ;;  %v2239_v13 = vmax.f32 %v10757_v14, %v10742_v51 }
 0x2e9   : > { %14167 = vst [vmem:[#allocation108_spill] sm:$0xff] %v10715_v60  ;;  %v10763_v60 = vpop.permute.xlu1 %4058  ;;  %6324 = vmatmul.msk.f32.gmra.mxu0 %vm1535_vm11, %v14182_v2  ;;  %v2233_v4 = vmax.f32 %v2232_v43, %v10746_v12  ;;  %6372 = vmatmul.msk.f32.gmra.mxu3 %vm1535_vm11, %v14182_v2 }
 0x2ea   : > { %14170 = vst [vmem:[#allocation28_spill] sm:$0xff] %v10731_v62  ;;  %v2227_v38 = vmax.f32 %v2226_v1, %v10750_v52  ;;  %v10785_v1 = vadd.f32 %v14184_v17, %v10497_v22  ;;  %v10802_v17 = vadd.f32 %v10672_v23, %v10510_v63 }
 0x2eb   : > { %14171 = vst [vmem:[#allocation30_spill] sm:$0xff] %v10736_v16  ;;  %v10774_v16 = vpop.permute.xlu0 %4053  ;;  %v10779_v62 = vpop.f32.mrf.mxu3 }
 0x2ec   : > { %14173 = vst [vmem:[#allocation34_spill] sm:$0xff] %v10742_v51  ;;  %2228 = vmax.xlane.f32.xlu2 %v2227_v38  ;;  %v2033_v29 = vpop.f32.mrf.mxu2  ;;  %v2240_v51 = vmax.f32 %v2239_v13, %v10761_v37 }
 0x2ed   : > { %14174 = vst [vmem:[#allocation109_spill] sm:$0xff] %v10746_v12  ;;  %6355 = vmatmul.msk.f32.gmra.mxu2 %vm1535_vm11, %v14168_v44  ;;  %v10790_v43 = vadd.f32 %v2033_v29, %v10510_v63  ;;  %v10792_v12 = vpop.f32.mrf.mxu0  ;;  %v10798_v44 = vadd.f32 %v10536_v3, %v10497_v22 }
 0x2ee   : > { %14175 = vst [vmem:[#allocation110_spill] sm:$0xff] %v10750_v52  ;;  %v1971_v38 = vpop.f32.mrf.mxu1  ;;  %v10794_v52 = vpop.permute.xlu2 %4033  ;;  %6340 = vmatmul.msk.f32.gmra.mxu1 %vm1535_vm11, %v14182_v2 }
 0x2ef   : > { %14177 = vst [vmem:[#allocation14_spill] sm:$0xff] %v10757_v14  ;;  %v2234_v14 = vmax.f32 %v2233_v4, %v10767_v35  ;;  %v2241_v4 = vmax.f32 %v2240_v51, %v10785_v1  ;;  %v10809_v29 = vadd.f32 %v1971_v38, %v10497_v22 }
 0x2f0   : > { %14179 = vst [vmem:[#allocation24_spill] sm:$0xff] %v10761_v37 }
 0x2f1   : > { %14180 = vst [vmem:[#allocation111_spill] sm:$0xff] %v10763_v60  ;;  %v2235_v13 = vmax.f32 %v2234_v14, %v10790_v43  ;;  %6325 = vmatmul.msk.f32.gmra.mxu0 %vm1535_vm11, %v9992_v25  ;;  %v10816_v3 = vpop.permute.xlu1 %4043  ;;  %v2242_v23 = vmax.f32 %v2241_v4, %v10798_v44  ;;  %6373 = vmatmul.msk.f32.gmra.mxu3 %vm1535_vm11, %v9992_v25 }
 0x2f2   : > { %14181 = vst [vmem:[#allocation112_spill] sm:$0xff] %v10767_v35 }
 0x2f3   : > { %14183 = vst [vmem:[#allocation46_spill] sm:$0xff] %v10779_v62  ;;  %v406_v62 = vlaneseq  ;;  %v2236_v35 = vmax.f32 %v2235_v13, %v10802_v17  ;;  %v10821_v51 = vpop.f32.mrf.mxu3 }
 0x2f4   : > { %14185 = vst [vmem:[#allocation10_spill] sm:$0xff] %v10785_v1  ;;  %v2036_v63 = vpop.f32.mrf.mxu2 }
 0x2f5   : > { %14186 = vst [vmem:[#allocation113_spill] sm:$0xff] %v10790_v43  ;;  %v10812_v37 = vand.u32 127, %v406_v62  ;;  %2237 = vmax.xlane.f32.xlu0 %v2236_v35  ;;  %6356 = vmatmul.msk.f32.gmra.mxu2 %vm1535_vm11, %v14182_v2  ;;  %v2243_v62 = vmax.f32 %v2242_v23, %v10809_v29  ;;  %v10827_v14 = vadd.f32 %v2036_v63, %v10497_v22  ;;  %v10829_v38 = vpop.f32.mrf.mxu0  ;;  %v10833_v35 = vpop.permute.xlu0 %4038  ;;  %v14197_v23 = vld [vmem:[#allocation15_spill] sm:$0xff]  ;;  %v14198_v63 = vld [vmem:[#allocation32_spill] sm:$0xff] }
 0x2f6   : > { %14187 = vst [vmem:[#allocation114_spill] sm:$0xff] %v10798_v44  ;;  %v10831_v13 = vpop.f32.mrf.mxu1  ;;  %v10835_v4 = vpop.xlane.xlu2 %2111  ;;  %v10841_v44 = vadd.f32 %v2101_v56, %v10497_v22  ;;  %6341 = vmatmul.msk.f32.gmra.mxu1 %vm1535_vm11, %v9992_v25  ;;  %v14200_v56 = vld [vmem:[#allocation11_spill] sm:$0xff] }
 0x2f7   : > { %14188 = vst [vmem:[#allocation115_spill] sm:$0xff] %v10802_v17  ;;  %v10838_v17 = vadd.s32 128, %v10812_v37  ;;  %v2244_v2 = vmax.f32 %v2243_v62, %v10827_v14  ;;  %vm2248_vm8 = vcmp.eq.f32.partialorder %v14197_v23, %v10835_v4  ;;  %vm2249_vm9 = vcmp.eq.f32.partialorder %v14198_v63, %v10835_v4  ;;  %v14202_v63 = vld [vmem:[#allocation41_spill] sm:$0xff] }
 0x2f8   : > { %14189 = vst [vmem:[#allocation116_spill] sm:$0xff] %v10809_v29  ;;  %v10851_v29 = vadd.s32 256, %v10812_v37  ;;  %vm2250_vm10 = vcmp.eq.f32.partialorder %v14200_v56, %v10835_v4  ;;  %v2376_v43 = vsel %vm2248_vm8, %v10812_v37, 1024  ;;  %v10860_v62 = vadd.s32 384, %v10812_v37 }
 0x2f9   : > { %14190 = vst [vmem:[#allocation117_spill] sm:$0xff] %v10812_v37  ;;  %v2245_v22 = vmax.f32 %v2244_v2, %v10841_v44  ;;  %v2377_v23 = vsel %vm2249_vm9, %v10838_v17, 1024  ;;  %6326 = vmatmul.msk.f32.gmra.mxu0 %vm1535_vm11, %v10026_v36  ;;  %vm2251_vm12 = vcmp.eq.f32.partialorder %v14202_v63, %v10835_v4  ;;  %6374 = vmatmul.msk.f32.gmra.mxu3 %vm1535_vm11, %v10026_v36  ;;  %v10890_v32 = vadd.s32 640, %v10812_v37 }
 0x2fa   : > { %14191 = vst [vmem:[#allocation118_spill] sm:$0xff] %v10816_v3  ;;  %vm2504_vm13 = vcmp.lt.s32.totalorder %v2376_v43, %v2377_v23  ;;  %vm2252_vm14 = vcmp.eq.f32.partialorder %v14207_v11, %v10835_v4  ;;  %vm2253_vm0 = vcmp.eq.f32.partialorder %v10034_v53, %v10835_v4  ;;  %v14210_v11 = vld [vmem:[#allocation29_spill] sm:$0xff]  ;;  %vm2254_vm4 = vcmp.eq.f32.partialorder %v10060_v26, %v10835_v4 }
 0x2fb   : > { %14192 = vst [vmem:[#allocation119_spill] sm:$0xff] %v10827_v14  ;;  %2246 = vmax.xlane.f32.xlu1 %v2245_v22  ;;  %v10871_v56 = vpop.f32.mrf.mxu3  ;;  %v2378_v14 = vsel %vm2250_vm10, %v10851_v29, 1024  ;;  %v2505_v1 = vsel %vm2504_vm13, %v2376_v43, %v2377_v23  ;;  %v14211_v23 = vld [vmem:[#allocation37_spill] sm:$0xff]  ;;  %v2381_v53 = vsel %vm2253_vm0, %v10890_v32, 1024  ;;  %vm2255_vm6 = vcmp.eq.f32.partialorder %v10057_v57, %v10835_v4 }
 0x2fc   : > { %14193 = vst [vmem:[#allocation120_spill] sm:$0xff] %v10829_v38  ;;  %v10869_v2 = vpop.f32.mrf.mxu2  ;;  %vm2506_vm15 = vcmp.lt.s32.totalorder %v2505_v1, %v2378_v14  ;;  %v14229_v38 = vld [vmem:[#allocation33_spill] sm:$0xff] }
 0x2fd   : > { %14194 = vst [vmem:[#allocation121_spill] sm:$0xff] %v10831_v13  ;;  %6357 = vmatmul.msk.f32.gmra.mxu2 %vm1535_vm11, %v9992_v25  ;;  %v10879_v22 = vpop.f32.mrf.mxu0  ;;  %v2379_v25 = vsel %vm2251_vm12, %v10860_v62, 1024  ;;  %v2507_v43 = vsel %vm2506_vm15, %v2505_v1, %v2378_v14  ;;  %v10911_v1 = vadd.s32 896, %v10812_v37 }
 0x2fe   : > { %14195 = vst [vmem:[#allocation122_spill] sm:$0xff] %v10838_v17  ;;  %v10881_v13 = vpop.f32.mrf.mxu1  ;;  %v10887_v58 = vpop.xlane.xlu0 %2120  ;;  %vm2508_vm1 = vcmp.lt.s32.totalorder %v2507_v43, %v2379_v25  ;;  %6342 = vmatmul.msk.f32.gmra.mxu1 %vm1535_vm11, %v10026_v36 }
 0x2ff   : > { %14196 = vst [vmem:[#allocation123_spill] sm:$0xff] %v10841_v44  ;;  %v10874_v44 = vadd.s32 512, %v10812_v37  ;;  %vm2256_vm2 = vcmp.eq.f32.partialorder %v14210_v11, %v10887_v58  ;;  %vm2257_vm3 = vcmp.eq.f32.partialorder %v14211_v23, %v10887_v58  ;;  %v2509_v47 = vsel %vm2508_vm1, %v2507_v43, %v2379_v25  ;;  %v14214_v25 = vld [vmem:[#allocation26_spill] sm:$0xff] }
 0x300   : > { %2953 = vst.msk [vmem:[#allocation2] sm:$0xff] %vm13893_vm7, %v10835_v4  ;;  %v2384_v11 = vsel %vm2256_vm2, %v10812_v37, 1024  ;;  %v2385_v23 = vsel %vm2257_vm3, %v10838_v17, 1024  ;;  %vm2258_vm9 = vcmp.eq.f32.partialorder %v14214_v25, %v10887_v58  ;;  %v14217_v4 = vld [vmem:[#allocation7_spill] sm:$0xff]  ;;  %v2383_v60 = vsel %vm2255_vm6, %v10911_v1, 1024 }
 0x301   : > { %14199 = vst [vmem:[#allocation15_spill] sm:$0xff] %v10851_v29  ;;  %v2380_v63 = vsel %vm2252_vm14, %v10874_v44, 1024  ;;  %6327 = vmatmul.msk.f32.gmra.mxu0 %vm1535_vm11, %v10079_v40  ;;  %6375 = vmatmul.msk.f32.gmra.mxu3 %vm1535_vm11, %v10079_v40  ;;  %vm2259_vm12 = vcmp.eq.f32.partialorder %v14217_v4, %v10887_v58  ;;  %vm2532_vm13 = vcmp.lt.s32.totalorder %v2384_v11, %v2385_v23 }
 0x302   : > { %14201 = vst [vmem:[#allocation32_spill] sm:$0xff] %v10860_v62  ;;  %vm2510_vm5 = vcmp.lt.s32.totalorder %v2509_v47, %v2380_v63  ;;  %v2387_v4 = vsel %vm2259_vm12, %v10860_v62, 1024  ;;  %vm2261_vm1 = vcmp.eq.f32.partialorder %v10082_v8, %v10887_v58 }
 0x303   : > { %14203 = vst [vmem:[#allocation11_spill] sm:$0xff] %v10869_v2  ;;  %v10885_v2 = vpop.permute.xlu1 %4028  ;;  %v2511_v14 = vsel %vm2510_vm5, %v2509_v47, %v2380_v63  ;;  %v10928_v47 = vpop.f32.mrf.mxu3  ;;  %vm2262_vm5 = vcmp.eq.f32.partialorder %v10110_v55, %v10887_v58 }
 0x304   : > { %14204 = vst [vmem:[#allocation41_spill] sm:$0xff] %v10871_v56  ;;  %vm2512_vm8 = vcmp.lt.s32.totalorder %v2511_v14, %v2381_v53  ;;  %v10926_v26 = vpop.f32.mrf.mxu2  ;;  %v2386_v56 = vsel %vm2258_vm9, %v10851_v29, 1024 }
 0x305   : > { %14205 = vst [vmem:[#allocation124_spill] sm:$0xff] %v10874_v44  ;;  %v2513_v63 = vsel %vm2512_vm8, %v2511_v14, %v2381_v53  ;;  %6358 = vmatmul.msk.f32.gmra.mxu2 %vm1535_vm11, %v10026_v36  ;;  %v2533_v53 = vsel %vm2532_vm13, %v2384_v11, %v2385_v23  ;;  %v14218_v36 = vld [vmem:[#allocation16_spill] sm:$0xff] }
 0x306   : > { %14206 = vst [vmem:[#allocation125_spill] sm:$0xff] %v10879_v22  ;;  %v10933_v22 = vpop.f32.mrf.mxu0  ;;  %v10935_v57 = vpop.f32.mrf.mxu1  ;;  %vm2260_vm15 = vcmp.eq.f32.partialorder %v14218_v36, %v10887_v58  ;;  %vm2534_vm0 = vcmp.lt.s32.totalorder %v2533_v53, %v2386_v56  ;;  %6343 = vmatmul.msk.f32.gmra.mxu1 %vm1535_vm11, %v10079_v40 }
 0x307   : > { %14208 = vst [vmem:[#allocation35_spill] sm:$0xff] %v10885_v2  ;;  %v10905_v2 = vadd.s32 768, %v10812_v37  ;;  %v2388_v11 = vsel %vm2260_vm15, %v10874_v44, 1024 }
 0x308   : > { %14209 = vst [vmem:[#allocation126_spill] sm:$0xff] %v10890_v32 }
 0x309   : > { %2954 = vst.msk [vmem:[#allocation2 + $0x8] sm:$0xff] %vm13893_vm7, %v10887_v58  ;;  %v2382_v43 = vsel %vm2254_vm4, %v10905_v2, 1024  ;;  %6328 = vmatmul.msk.f32.gmra.mxu0 %vm1535_vm11, %v10128_v61  ;;  %6376 = vmatmul.msk.f32.gmra.mxu3 %vm1535_vm11, %v10128_v61 }
 0x30a   : > { %14212 = vst [vmem:[#allocation29_spill] sm:$0xff] %v10905_v2  ;;  %vm2514_vm10 = vcmp.lt.s32.totalorder %v2513_v63, %v2382_v43 }
 0x30b   : > { %14213 = vst [vmem:[#allocation37_spill] sm:$0xff] %v10911_v1  ;;  %v10939_v25 = vpop.xlane.xlu1 %2129 }
 0x30c   : > { %14215 = vst [vmem:[#allocation26_spill] sm:$0xff] %v10928_v47  ;;  %v2515_v47 = vsel %vm2514_vm10, %v2513_v63, %v2382_v43  ;;  %v14219_v63 = vld [vmem:[#allocation17_spill] sm:$0xff]  ;;  %v10968_v8 = vpop.f32.mrf.mxu2 }
 0x30d   : > { %14216 = vst [vmem:[#allocation127_spill] sm:$0xff] %v10933_v22  ;;  %vm2516_vm14 = vcmp.lt.s32.totalorder %v2515_v47, %v2383_v60  ;;  %v2535_v22 = vsel %vm2534_vm0, %v2533_v53, %v2386_v56  ;;  %vm2264_vm3 = vcmp.eq.f32.partialorder %v14219_v63, %v10939_v25  ;;  %6359 = vmatmul.msk.f32.gmra.mxu2 %vm1535_vm11, %v10079_v40  ;;  %v14226_v63 = vld [vmem:[#allocation5_spill] sm:$0xff] }
 0x30e   : > { %2955 = vst.msk [vmem:[#allocation2 + $0x10] sm:$0xff] %vm13893_vm7, %v10939_v25  ;;  %v10947_v14 = vsel %vm2516_vm14, %v2515_v47, %v2383_v60  ;;  %vm2536_vm2 = vcmp.lt.s32.totalorder %v2535_v22, %v2387_v4  ;;  %v14220_v60 = vld [vmem:[#allocation20_spill] sm:$0xff]  ;;  %v2389_v47 = vsel %vm2261_vm1, %v10890_v32, 1024  ;;  %v10976_v36 = vpop.f32.mrf.mxu0  ;;  %vm2267_vm13 = vcmp.eq.f32.partialorder %v14226_v63, %v10939_v25  ;;  %v14228_v63 = vld [vmem:[#allocation23_spill] sm:$0xff] }
 0x30f   : > { %v2519_v43 = vshra.s32 %v10947_v14, 16  ;;  %v2537_v23 = vsel %vm2536_vm2, %v2535_v22, %v2387_v4  ;;  %vm2265_vm4 = vcmp.eq.f32.partialorder %v14220_v60, %v10939_v25  ;;  %v10970_v22 = vpop.f32.mrf.mxu3  ;;  %14222 = vst [vmem:[#allocation16_spill] sm:$0xff] %v10976_v36  ;;  %v10978_v4 = vpop.f32.mrf.mxu1  ;;  %6344 = vmatmul.msk.f32.gmra.mxu1 %vm1535_vm11, %v10128_v61 }
 0x310   : > { %vm2538_vm6 = vcmp.lt.s32.totalorder %v2537_v23, %v2388_v11  ;;  %14221 = vst [vmem:[#allocation7_spill] sm:$0xff] %v10970_v22  ;;  %v2392_v22 = vsel %vm2264_vm3, %v10812_v37, 1024  ;;  %v2393_v40 = vsel %vm2265_vm4, %v10838_v17, 1024  ;;  %vm2269_vm4 = vcmp.eq.f32.partialorder %v10134_v59, %v10939_v25 }
 0x311   : > { %v10962_v56 = vcvt.s32.f32 %v2519_v43  ;;  %v2539_v53 = vsel %vm2538_vm6, %v2537_v23, %v2388_v11  ;;  %14223 = vst [vmem:[#allocation17_spill] sm:$0xff] %v10978_v4  ;;  %v14224_v43 = vld [vmem:[#allocation25_spill] sm:$0xff]  ;;  %v10990_v11 = vpop.xlane.xlu2 %2138  ;;  %v2390_v23 = vsel %vm2262_vm5, %v10905_v2, 1024  ;;  %vm2560_vm14 = vcmp.lt.s32.totalorder %v2392_v22, %v2393_v40  ;;  %6329 = vmatmul.msk.f32.gmra.mxu0 %vm1535_vm11, %v10182_v7  ;;  %6377 = vmatmul.msk.f32.gmra.mxu3 %vm1535_vm11, %v10182_v7 }
 0x312   : > { %vm2263_vm8 = vcmp.eq.f32.partialorder %v14224_v43, %v10887_v58  ;;  %vm2540_vm9 = vcmp.lt.s32.totalorder %v2539_v53, %v2389_v47  ;;  %v14225_v43 = vld [vmem:[#allocation8_spill] sm:$0xff]  ;;  %2956 = vst.msk [vmem:[#allocation2 + $0x18] sm:$0xff] %vm13893_vm7, %v10990_v11  ;;  %v2561_v58 = vsel %vm2560_vm14, %v2392_v22, %v2393_v40  ;;  %vm2272_vm2 = vcmp.eq.f32.partialorder %v14228_v63, %v10990_v11 }
 0x313   : > { %2522 = vmin.xlane.f32.xlu2 %v10962_v56  ;;  %v2541_v36 = vsel %vm2540_vm9, %v2539_v53, %v2389_v47  ;;  %vm2266_vm10 = vcmp.eq.f32.partialorder %v14225_v43, %v10939_v25  ;;  %v2391_v60 = vsel %vm2263_vm8, %v10911_v1, 1024  ;;  %v14227_v53 = vld [vmem:[#allocation47_spill] sm:$0xff]  ;;  %v2395_v43 = vsel %vm2267_vm13, %v10860_v62, 1024 }
 0x314   : > { %vm2542_vm12 = vcmp.lt.s32.totalorder %v2541_v36, %v2390_v23  ;;  %v2394_v55 = vsel %vm2266_vm10, %v10851_v29, 1024  ;;  %vm2268_vm0 = vcmp.eq.f32.partialorder %v14227_v53, %v10939_v25  ;;  %vm2273_vm3 = vcmp.eq.f32.partialorder %v14229_v38, %v10990_v11  ;;  %v11020_v22 = vpop.f32.mrf.mxu2 }
 0x315   : > { %v2543_v4 = vsel %vm2542_vm12, %v2541_v36, %v2390_v23  ;;  %vm2562_vm1 = vcmp.lt.s32.totalorder %v2561_v58, %v2394_v55  ;;  %14230 = vst [vmem:[#allocation20_spill] sm:$0xff] %v11020_v22  ;;  %6360 = vmatmul.msk.f32.gmra.mxu2 %vm1535_vm11, %v10128_v61  ;;  %vm2270_vm6 = vcmp.eq.f32.partialorder %v10164_v45, %v10939_v25  ;;  %v2400_v61 = vsel %vm2272_vm2, %v10812_v37, 1024  ;;  %v14233_v45 = vld [vmem:[#allocation51_spill] sm:$0xff] }
 0x316   : > { %vm2544_vm15 = vcmp.lt.s32.totalorder %v2543_v4, %v2391_v60  ;;  %v2563_v23 = vsel %vm2562_vm1, %v2561_v58, %v2394_v55  ;;  %v2396_v58 = vsel %vm2268_vm0, %v10874_v44, 1024  ;;  %v2401_v59 = vsel %vm2273_vm3, %v10838_v17, 1024 }
 0x317   : > { %v11006_v47 = vsel %vm2544_vm15, %v2543_v4, %v2391_v60  ;;  %v11022_v4 = vpop.f32.mrf.mxu3  ;;  %vm2564_vm5 = vcmp.lt.s32.totalorder %v2563_v23, %v2395_v43  ;;  %v11030_v60 = vpop.f32.mrf.mxu0  ;;  %v2397_v53 = vsel %vm2269_vm4, %v10890_v32, 1024  ;;  %vm2274_vm9 = vcmp.eq.f32.partialorder %v10123_v34, %v10990_v11 }
 0x318   : > { %v2547_v36 = vshra.s32 %v11006_v47, 16  ;;  %14231 = vst [vmem:[#allocation25_spill] sm:$0xff] %v11022_v4  ;;  %v11032_v55 = vpop.f32.mrf.mxu1  ;;  %v2565_v22 = vsel %vm2564_vm5, %v2563_v23, %v2395_v43  ;;  %vm2271_vm10 = vcmp.eq.f32.partialorder %v14233_v45, %v10939_v25  ;;  %6345 = vmatmul.msk.f32.gmra.mxu1 %vm1535_vm11, %v10182_v7  ;;  %v2398_v38 = vsel %vm2270_vm6, %v10905_v2, 1024  ;;  %v14234_v23 = vld [vmem:[#allocation48_spill] sm:$0xff] }
 0x319   : > { %14232 = vst [vmem:[#allocation8_spill] sm:$0xff] %v11030_v60  ;;  %v11038_v4 = vpop.xlane.xlu2 %2147  ;;  %vm2566_vm8 = vcmp.lt.s32.totalorder %v2565_v22, %v2396_v58  ;;  %vm2275_vm13 = vcmp.eq.f32.partialorder %v14234_v23, %v10990_v11  ;;  %vm2588_vm14 = vcmp.lt.s32.totalorder %v2400_v61, %v2401_v59  ;;  %v2402_v63 = vsel %vm2274_vm9, %v10851_v29, 1024  ;;  %6330 = vmatmul.msk.f32.gmra.mxu0 %vm1535_vm11, %v10234_v27  ;;  %v14238_v23 = vld [vmem:[#allocation49_spill] sm:$0xff] }
 0x31a   : > { %v11028_v40 = vcvt.s32.f32 %v2547_v36  ;;  %2957 = vst.msk [vmem:[#allocation2 + $0x20] sm:$0xff] %vm13893_vm7, %v11038_v4  ;;  %v2567_v43 = vsel %vm2566_vm8, %v2565_v22, %v2396_v58  ;;  %v2589_v22 = vsel %vm2588_vm14, %v2400_v61, %v2401_v59  ;;  %v2399_v34 = vsel %vm2271_vm10, %v10911_v1, 1024  ;;  %v14235_v58 = vld [vmem:[#allocation52_spill] sm:$0xff]  ;;  %6378 = vmatmul.msk.f32.gmra.mxu3 %vm1535_vm11, %v10234_v27 }
 0x31b   : > { %vm2568_vm12 = vcmp.lt.s32.totalorder %v2567_v43, %v2397_v53  ;;  %vm2276_vm0 = vcmp.eq.f32.partialorder %v14235_v58, %v10990_v11  ;;  %vm2590_vm1 = vcmp.lt.s32.totalorder %v2589_v22, %v2402_v63  ;;  %vm2277_vm3 = vcmp.eq.f32.partialorder %v10188_v30, %v10990_v11 }
 0x31c   : > { %2550 = vmin.xlane.f32.xlu1 %v11028_v40  ;;  %v2569_v36 = vsel %vm2568_vm12, %v2567_v43, %v2397_v53  ;;  %v11071_v53 = vpop.f32.mrf.mxu2  ;;  %v2403_v61 = vsel %vm2275_vm13, %v10860_v62, 1024  ;;  %v2591_v59 = vsel %vm2590_vm1, %v2589_v22, %v2402_v63  ;;  %vm2280_vm5 = vcmp.eq.f32.partialorder %v14238_v23, %v11038_v4 }
 0x31d   : > { %vm2570_vm15 = vcmp.lt.s32.totalorder %v2569_v36, %v2398_v38  ;;  %14236 = vst [vmem:[#allocation5_spill] sm:$0xff] %v11071_v53  ;;  %6361 = vmatmul.msk.f32.gmra.mxu2 %vm1535_vm11, %v10182_v7  ;;  %vm2592_vm4 = vcmp.lt.s32.totalorder %v2591_v59, %v2403_v61  ;;  %v2404_v7 = vsel %vm2276_vm0, %v10874_v44, 1024  ;;  %vm2278_vm8 = vcmp.eq.f32.partialorder %v10218_v15, %v10990_v11  ;;  %v14240_v15 = vld [vmem:[#allocation53_spill] sm:$0xff] }
 0x31e   : > { %v2571_v25 = vsel %vm2570_vm15, %v2569_v36, %v2398_v38  ;;  %v11091_v53 = vpop.xlane.xlu0 %2156  ;;  %v2593_v63 = vsel %vm2592_vm4, %v2591_v59, %v2403_v61  ;;  %v2405_v22 = vsel %vm2277_vm3, %v10890_v32, 1024  ;;  %vm2279_vm10 = vcmp.eq.f32.partialorder %v10214_v10, %v10990_v11  ;;  %v14241_v61 = vld [vmem:[#allocation54_spill] sm:$0xff] }
 0x31f   : > { %vm2572_vm2 = vcmp.lt.s32.totalorder %v2571_v25, %v2399_v34  ;;  %v11073_v43 = vpop.f32.mrf.mxu3  ;;  %v11082_v38 = vpop.f32.mrf.mxu0  ;;  %2958 = vst.msk [vmem:[#allocation2 + $0x28] sm:$0xff] %vm13893_vm7, %v11091_v53  ;;  %vm2594_vm9 = vcmp.lt.s32.totalorder %v2593_v63, %v2404_v7  ;;  %vm2282_vm13 = vcmp.eq.f32.partialorder %v14240_v15, %v11038_v4  ;;  %v2406_v30 = vsel %vm2278_vm8, %v10905_v2, 1024  ;;  %v14244_v15 = vld [vmem:[#allocation57_spill] sm:$0xff] }
 0x320   : > { %14237 = vst [vmem:[#allocation47_spill] sm:$0xff] %v11073_v43  ;;  %v11080_v45 = vsel %vm2572_vm2, %v2571_v25, %v2399_v34  ;;  %v11084_v36 = vpop.f32.mrf.mxu1  ;;  %v14239_v43 = vld [vmem:[#allocation50_spill] sm:$0xff]  ;;  %v2595_v25 = vsel %vm2594_vm9, %v2593_v63, %v2404_v7  ;;  %6346 = vmatmul.msk.f32.gmra.mxu1 %vm1535_vm11, %v10234_v27  ;;  %vm2283_vm15 = vcmp.eq.f32.partialorder %v14241_v61, %v11038_v4  ;;  %v2407_v10 = vsel %vm2279_vm10, %v10911_v1, 1024 }
 0x321   : > { %vm2281_vm6 = vcmp.eq.f32.partialorder %v14239_v43, %v11038_v4  ;;  %v2575_v60 = vshra.s32 %v11080_v45, 16  ;;  %v2408_v43 = vsel %vm2280_vm5, %v10812_v37, 1024  ;;  %vm2596_vm12 = vcmp.lt.s32.totalorder %v2595_v25, %v2405_v22  ;;  %6331 = vmatmul.msk.f32.gmra.mxu0 %vm1535_vm11, %v10288_v5 }
 0x322   : > { %v2409_v58 = vsel %vm2281_vm6, %v10838_v17, 1024  ;;  %6379 = vmatmul.msk.f32.gmra.mxu3 %vm1535_vm11, %v10288_v5  ;;  %v2410_v7 = vsel %vm2282_vm13, %v10851_v29, 1024  ;;  %vm2284_vm2 = vcmp.eq.f32.partialorder %v14244_v15, %v11038_v4  ;;  %vm2285_vm5 = vcmp.eq.f32.partialorder %v10242_v28, %v11038_v4 }
 0x323   : > { %v11105_v34 = vcvt.s32.f32 %v2575_v60  ;;  %v2597_v60 = vsel %vm2596_vm12, %v2595_v25, %v2405_v22  ;;  %vm2616_vm0 = vcmp.lt.s32.totalorder %v2408_v43, %v2409_v58  ;;  %vm2286_vm9 = vcmp.eq.f32.partialorder %v10272_v9, %v11038_v4 }
 0x324   : > { %vm2598_vm14 = vcmp.lt.s32.totalorder %v2597_v60, %v2406_v30  ;;  %v11124_v59 = vpop.f32.mrf.mxu2  ;;  %v2617_v63 = vsel %vm2616_vm0, %v2408_v43, %v2409_v58  ;;  %v2411_v43 = vsel %vm2283_vm15, %v10860_v62, 1024  ;;  %v2413_v28 = vsel %vm2285_vm5, %v10890_v32, 1024 }
 0x325   : > { %2578 = vmin.xlane.f32.xlu0 %v11105_v34  ;;  %v2599_v11 = vsel %vm2598_vm14, %v2597_v60, %v2406_v30  ;;  %14242 = vst [vmem:[#allocation23_spill] sm:$0xff] %v11124_v59  ;;  %6362 = vmatmul.msk.f32.gmra.mxu2 %vm1535_vm11, %v10234_v27  ;;  %vm2618_vm3 = vcmp.lt.s32.totalorder %v2617_v63, %v2410_v7  ;;  %v14245_v27 = vld [vmem:[#allocation55_spill] sm:$0xff]  ;;  %v2414_v9 = vsel %vm2286_vm9, %v10905_v2, 1024 }
 0x326   : > { %vm2600_vm1 = vcmp.lt.s32.totalorder %v2599_v11, %v2407_v10  ;;  %v11139_v60 = vpop.xlane.xlu1 %2165  ;;  %v2619_v58 = vsel %vm2618_vm3, %v2617_v63, %v2410_v7  ;;  %vm2288_vm4 = vcmp.eq.f32.partialorder %v14245_v27, %v11091_v53  ;;  %vm2290_vm12 = vcmp.eq.f32.partialorder %v10238_v0, %v11091_v53 }
 0x327   : > { %v11126_v23 = vpop.f32.mrf.mxu3  ;;  %v11131_v22 = vpop.f32.mrf.mxu0  ;;  %v11137_v30 = vsel %vm2600_vm1, %v2599_v11, %v2407_v10  ;;  %2959 = vst.msk [vmem:[#allocation2 + $0x30] sm:$0xff] %vm13893_vm7, %v11139_v60  ;;  %vm2620_vm6 = vcmp.lt.s32.totalorder %v2619_v58, %v2411_v43  ;;  %v14246_v10 = vld [vmem:[#allocation56_spill] sm:$0xff]  ;;  %v2412_v11 = vsel %vm2284_vm2, %v10874_v44, 1024  ;;  %v2416_v63 = vsel %vm2288_vm4, %v10812_v37, 1024 }
 0x328   : > { %14243 = vst [vmem:[#allocation33_spill] sm:$0xff] %v11126_v23  ;;  %v11133_v25 = vpop.f32.mrf.mxu1  ;;  %v2603_v23 = vshra.s32 %v11137_v30, 16  ;;  %vm2289_vm8 = vcmp.eq.f32.partialorder %v14246_v10, %v11091_v53  ;;  %v2621_v61 = vsel %vm2620_vm6, %v2619_v58, %v2411_v43  ;;  %6347 = vmatmul.msk.f32.gmra.mxu1 %vm1535_vm11, %v10288_v5  ;;  %v14247_v5 = vld [vmem:[#allocation61_spill] sm:$0xff]  ;;  %v14250_v10 = vld [vmem:[#allocation58_spill] sm:$0xff]  ;;  %vm2293_vm5 = vcmp.eq.f32.partialorder %v10296_v42, %v11091_v53 }
 0x329   : > { %vm2622_vm10 = vcmp.lt.s32.totalorder %v2621_v61, %v2412_v11  ;;  %v2417_v27 = vsel %vm2289_vm8, %v10838_v17, 1024  ;;  %6332 = vmatmul.msk.f32.gmra.mxu0 %vm1535_vm11, %v10342_v49  ;;  %vm2287_vm13 = vcmp.eq.f32.partialorder %v14247_v5, %v11038_v4  ;;  %vm2291_vm15 = vcmp.eq.f32.partialorder %v14250_v10, %v11091_v53 }
 0x32a   : > { %v11157_v7 = vcvt.s32.f32 %v2603_v23  ;;  %v2623_v15 = vsel %vm2622_vm10, %v2621_v61, %v2412_v11  ;;  %6380 = vmatmul.msk.f32.gmra.mxu3 %vm1535_vm11, %v10342_v49  ;;  %vm2644_vm0 = vcmp.lt.s32.totalorder %v2416_v63, %v2417_v27  ;;  %v6814_v11 = vld [vmem:[%s13447_s3 + $0x70] sm:$0xff]  ;;  %v2419_v0 = vsel %vm2291_vm15, %v10860_v62, 1024 }
 0x32b   : > { %vm2624_vm14 = vcmp.lt.s32.totalorder %v2623_v15, %v2413_v28  ;;  %vm2294_vm10 = vcmp.eq.f32.partialorder %v10326_v19, %v11091_v53 }
 0x32c   : > { %2606 = vmin.xlane.f32.xlu2 %v11157_v7  ;;  %v2625_v23 = vsel %vm2624_vm14, %v2623_v15, %v2413_v28  ;;  %v11174_v43 = vpop.f32.mrf.mxu2  ;;  %v14253_v28 = vld [vmem:[#allocation62_spill] sm:$0xff]  ;;  %v2418_v15 = vsel %vm2290_vm12, %v10851_v29, 1024  ;;  %v2422_v19 = vsel %vm2294_vm10, %v10905_v2, 1024  ;;  %vm2302_vm10 = vcmp.eq.f32.partialorder %v10382_v41, %v11139_v60  ;;  %v14268_v41 = vld [vmem:[#allocation69_spill] sm:$0xff] }
 0x32d   : > { %14248 = vst [vmem:[#allocation51_spill] sm:$0xff] %v11174_v43  ;;  %6363 = vmatmul.msk.f32.gmra.mxu2 %vm1535_vm11, %v6814_v11  ;;  %vm2626_vm1 = vcmp.lt.s32.totalorder %v2625_v23, %v2414_v9  ;;  %vm2292_vm2 = vcmp.eq.f32.partialorder %v14253_v28, %v11091_v53  ;;  %v2415_v43 = vsel %vm2287_vm13, %v10911_v1, 1024 }
 0x32e   : > { %v2627_v11 = vsel %vm2626_vm1, %v2625_v23, %v2414_v9  ;;  %v11198_v59 = vpop.xlane.xlu2 %2174  ;;  %v2420_v4 = vsel %vm2292_vm2, %v10874_v44, 1024  ;;  %v14254_v23 = vld [vmem:[#allocation59_spill] sm:$0xff] }
 0x32f   : > { %v11176_v58 = vpop.f32.mrf.mxu3  ;;  %v11184_v61 = vpop.f32.mrf.mxu0  ;;  %vm2628_vm4 = vcmp.lt.s32.totalorder %v2627_v11, %v2415_v43  ;;  %2960 = vst.msk [vmem:[#allocation2 + $0x38] sm:$0xff] %vm13893_vm7, %v11198_v59  ;;  %vm2296_vm8 = vcmp.eq.f32.partialorder %v14254_v23, %v11139_v60 }
 0x330   : > { %14249 = vst [vmem:[#allocation48_spill] sm:$0xff] %v11176_v58  ;;  %v11186_v49 = vpop.f32.mrf.mxu1  ;;  %v2645_v58 = vsel %vm2644_vm0, %v2416_v63, %v2417_v27  ;;  %v11206_v63 = vsel %vm2628_vm4, %v2627_v11, %v2415_v43  ;;  %v6815_v27 = vld [vmem:[%s13447_s3 + $0x78] sm:$0xff]  ;;  %v14255_v43 = vld [vmem:[#allocation60_spill] sm:$0xff] }
 0x331   : > { %14251 = vst [vmem:[#allocation52_spill] sm:$0xff] %v11184_v61  ;;  %vm2646_vm3 = vcmp.lt.s32.totalorder %v2645_v58, %v2418_v15  ;;  %6348 = vmatmul.msk.f32.gmra.mxu1 %vm1535_vm11, %v6815_v27  ;;  %v2631_v5 = vshra.s32 %v11206_v63, 16  ;;  %vm2297_vm9 = vcmp.eq.f32.partialorder %v14255_v43, %v11139_v60  ;;  %v14271_v61 = vld [vmem:[#allocation73_spill] sm:$0xff] }
 0x332   : > { %14252 = vst [vmem:[#allocation49_spill] sm:$0xff] %v11186_v49  ;;  %v2647_v28 = vsel %vm2646_vm3, %v2645_v58, %v2418_v15  ;;  %v2421_v58 = vsel %vm2293_vm5, %v10890_v32, 1024  ;;  %v14256_v15 = vld [vmem:[#allocation67_spill] sm:$0xff]  ;;  %v2425_v23 = vsel %vm2297_vm9, %v10838_v17, 1024  ;;  %vm2301_vm5 = vcmp.eq.f32.partialorder %v10350_v6, %v11139_v60 }
 0x333   : > { %vm2648_vm6 = vcmp.lt.s32.totalorder %v2647_v28, %v2419_v0  ;;  %v11222_v42 = vcvt.s32.f32 %v2631_v5  ;;  %vm2295_vm13 = vcmp.eq.f32.partialorder %v14256_v15, %v11091_v53  ;;  %v14260_v53 = vld [vmem:[#allocation63_spill] sm:$0xff] }
 0x334   : > { %v2649_v9 = vsel %vm2648_vm6, %v2647_v28, %v2419_v0  ;;  %v11227_v11 = vpop.f32.mrf.mxu2  ;;  %v2424_v28 = vsel %vm2296_vm8, %v10812_v37, 1024  ;;  %vm2298_vm15 = vcmp.eq.f32.partialorder %v14260_v53, %v11139_v60  ;;  %v2423_v43 = vsel %vm2295_vm13, %v10911_v1, 1024  ;;  %v14273_v49 = vld [vmem:[#allocation71_spill] sm:$0xff] }
 0x335   : > { %vm2650_vm12 = vcmp.lt.s32.totalorder %v2649_v9, %v2420_v4  ;;  %14257 = vst [vmem:[#allocation50_spill] sm:$0xff] %v11227_v11  ;;  %6364 = vmatmul.msk.f32.gmra.mxu2 %vm1535_vm11, %v6815_v27  ;;  %2634 = vmin.xlane.f32.xlu1 %v11222_v42  ;;  %vm2672_vm1 = vcmp.lt.s32.totalorder %v2424_v28, %v2425_v23 }
 0x336   : > { %v2651_v10 = vsel %vm2650_vm12, %v2649_v9, %v2420_v4  ;;  %v11240_v9 = vpop.xlane.xlu0 %2183  ;;  %vm2303_vm13 = vcmp.eq.f32.partialorder %v10378_v33, %v11139_v60 }
 0x337   : > { %vm2652_vm14 = vcmp.lt.s32.totalorder %v2651_v10, %v2421_v58  ;;  %v11229_v0 = vpop.f32.mrf.mxu3  ;;  %2961 = vst.msk [vmem:[#allocation2 + $0x40] sm:$0xff] %vm13893_vm7, %v11240_v9  ;;  %v11245_v27 = vpop.f32.mrf.mxu0 }
 0x338   : > { %14258 = vst [vmem:[#allocation53_spill] sm:$0xff] %v11229_v0  ;;  %v2653_v5 = vsel %vm2652_vm14, %v2651_v10, %v2421_v58  ;;  %v11236_v4 = vpop.f32.mrf.mxu1  ;;  %v14262_v0 = vld [vmem:[#allocation64_spill] sm:$0xff]  ;;  %v2426_v58 = vsel %vm2298_vm15, %v10851_v29, 1024  ;;  %v2673_v10 = vsel %vm2672_vm1, %v2424_v28, %v2425_v23  ;;  %v14265_v28 = vld [vmem:[#allocation66_spill] sm:$0xff]  ;;  %vm2306_vm15 = vcmp.eq.f32.partialorder %v14268_v41, %v11198_v59 }
 0x339   : > { %14259 = vst [vmem:[#allocation54_spill] sm:$0xff] %v11236_v4  ;;  %vm2654_vm0 = vcmp.lt.s32.totalorder %v2653_v5, %v2422_v19  ;;  %vm2299_vm11 = vcmp.eq.f32.partialorder %v14262_v0, %v11139_v60  ;;  %v14263_v4 = vld [vmem:[#allocation68_spill] sm:$0xff]  ;;  %vm2674_vm4 = vcmp.lt.s32.totalorder %v2673_v10, %v2426_v58  ;;  %v14264_v0 = vld [vmem:[#allocation65_spill] sm:$0xff]  ;;  %vm2305_vm9 = vcmp.eq.f32.partialorder %v14265_v28, %v11198_v59 }
 0x33a   : > { %v2655_v15 = vsel %vm2654_vm0, %v2653_v5, %v2422_v19  ;;  %14261 = vst [vmem:[#allocation57_spill] sm:$0xff] %v11245_v27  ;;  %vm2300_vm3 = vcmp.eq.f32.partialorder %v14263_v4, %v11139_v60  ;;  %v2427_v5 = vsel %vm2299_vm11, %v10860_v62, 1024  ;;  %v2675_v11 = vsel %vm2674_vm4, %v2673_v10, %v2426_v58 }
 0x33b   : > { %vm2656_vm2 = vcmp.lt.s32.totalorder %v2655_v15, %v2423_v43  ;;  %vm2676_vm6 = vcmp.lt.s32.totalorder %v2675_v11, %v2427_v5  ;;  %vm2304_vm8 = vcmp.eq.f32.partialorder %v14264_v0, %v11198_v59  ;;  %v2428_v4 = vsel %vm2300_vm3, %v10874_v44, 1024 }
 0x33c   : > { %v11250_v53 = vsel %vm2656_vm2, %v2655_v15, %v2423_v43  ;;  %v2677_v43 = vsel %vm2676_vm6, %v2675_v11, %v2427_v5  ;;  %v11265_v15 = vpop.f32.mrf.mxu2  ;;  %v2429_v58 = vsel %vm2301_vm5, %v10890_v32, 1024  ;;  %v2432_v0 = vsel %vm2304_vm8, %v10812_v37, 1024 }
 0x33d   : > { %v2659_v19 = vshra.s32 %v11250_v53, 16  ;;  %14266 = vst [vmem:[#allocation55_spill] sm:$0xff] %v11265_v15  ;;  %vm2678_vm12 = vcmp.lt.s32.totalorder %v2677_v43, %v2428_v4  ;;  %v2433_v11 = vsel %vm2305_vm9, %v10838_v17, 1024  ;;  %v2430_v5 = vsel %vm2302_vm10, %v10905_v2, 1024 }
 0x33e   : > { %v2679_v10 = vsel %vm2678_vm12, %v2677_v43, %v2428_v4  ;;  %v14269_v4 = vld [vmem:[#allocation70_spill] sm:$0xff]  ;;  %vm2700_vm1 = vcmp.lt.s32.totalorder %v2432_v0, %v2433_v11  ;;  %v2434_v60 = vsel %vm2306_vm15, %v10851_v29, 1024  ;;  %vm2308_vm3 = vcmp.eq.f32.partialorder %v14271_v61, %v11198_v59 }
 0x33f   : > { %v11262_v23 = vcvt.s32.f32 %v2659_v19  ;;  %v11267_v27 = vpop.f32.mrf.mxu3  ;;  %v11275_v19 = vpop.xlane.xlu1 %2192  ;;  %vm2680_vm14 = vcmp.lt.s32.totalorder %v2679_v10, %v2429_v58  ;;  %vm2307_vm0 = vcmp.eq.f32.partialorder %v14269_v4, %v11198_v59  ;;  %v2701_v15 = vsel %vm2700_vm1, %v2432_v0, %v2433_v11 }
 0x340   : > { %v11271_v6 = vpop.f32.mrf.mxu1  ;;  %2962 = vst.msk [vmem:[#allocation2 + $0x48] sm:$0xff] %vm13893_vm7, %v11275_v19  ;;  %v2681_v28 = vsel %vm2680_vm14, %v2679_v10, %v2429_v58  ;;  %v11288_v43 = vpop.f32.mrf.mxu0  ;;  %v2435_v41 = vsel %vm2307_vm0, %v10860_v62, 1024  ;;  %vm2702_vm4 = vcmp.lt.s32.totalorder %v2701_v15, %v2434_v60  ;;  %vm2312_vm5 = vcmp.eq.f32.partialorder %v14273_v49, %v11240_v9 }
 0x341   : > { %14267 = vst [vmem:[#allocation56_spill] sm:$0xff] %v11271_v6  ;;  %2662 = vmin.xlane.f32.xlu0 %v11262_v23  ;;  %vm2682_vm11 = vcmp.lt.s32.totalorder %v2681_v28, %v2430_v5  ;;  %v2431_v6 = vsel %vm2303_vm13, %v10911_v1, 1024  ;;  %v2703_v10 = vsel %vm2702_vm4, %v2701_v15, %v2434_v60  ;;  %vm2309_vm8 = vcmp.eq.f32.partialorder %v10403_v24, %v11198_v59 }
 0x342   : > { %14270 = vst [vmem:[#allocation61_spill] sm:$0xff] %v11288_v43  ;;  %v2683_v33 = vsel %vm2682_vm11, %v2681_v28, %v2430_v5  ;;  %v14274_v5 = vld [vmem:[#allocation72_spill] sm:$0xff]  ;;  %vm2704_vm9 = vcmp.lt.s32.totalorder %v2703_v10, %v2435_v41  ;;  %vm2310_vm10 = vcmp.eq.f32.partialorder %v10431_v46, %v11198_v59  ;;  %v2436_v15 = vsel %vm2308_vm3, %v10874_v44, 1024  ;;  %v14276_v46 = vld [vmem:[#allocation77_spill] sm:$0xff] }
 0x343   : > { %vm2684_vm2 = vcmp.lt.s32.totalorder %v2683_v33, %v2431_v6  ;;  %vm2313_vm6 = vcmp.eq.f32.partialorder %v14274_v5, %v11240_v9  ;;  %v2440_v28 = vsel %vm2312_vm5, %v10812_v37, 1024  ;;  %vm2314_vm13 = vcmp.eq.f32.partialorder %v10399_v18, %v11240_v9  ;;  %v14277_v5 = vld [vmem:[#allocation74_spill] sm:$0xff] }
 0x344   : > { %v11295_v58 = vsel %vm2684_vm2, %v2683_v33, %v2431_v6  ;;  %v11297_v4 = vpop.f32.mrf.mxu2  ;;  %v2705_v6 = vsel %vm2704_vm9, %v2703_v10, %v2435_v41  ;;  %v2441_v24 = vsel %vm2313_vm6, %v10838_v17, 1024  ;;  %v2437_v33 = vsel %vm2309_vm8, %v10890_v32, 1024 }
 0x345   : > { %14272 = vst [vmem:[#allocation58_spill] sm:$0xff] %v11297_v4  ;;  %v2687_v0 = vshra.s32 %v11295_v58, 16  ;;  %vm2706_vm12 = vcmp.lt.s32.totalorder %v2705_v6, %v2436_v15  ;;  %vm2311_vm14 = vcmp.eq.f32.partialorder %v14276_v46, %v11198_v59  ;;  %v2438_v41 = vsel %vm2310_vm10, %v10905_v2, 1024 }
 0x346   : > { %v11313_v11 = vpop.xlane.xlu2 %2201  ;;  %v2707_v60 = vsel %vm2706_vm12, %v2705_v6, %v2436_v15  ;;  %vm2315_vm0 = vcmp.eq.f32.partialorder %v14277_v5, %v11240_v9  ;;  %vm2728_vm11 = vcmp.lt.s32.totalorder %v2440_v28, %v2441_v24  ;;  %v14279_v15 = vld [vmem:[#allocation78_spill] sm:$0xff]  ;;  %v2442_v18 = vsel %vm2314_vm13, %v10851_v29, 1024 }
 0x347   : > { %v11299_v43 = vpop.f32.mrf.mxu3  ;;  %14275 = vst [vmem:[#allocation62_spill] sm:$0xff] %v11313_v11  ;;  %v11315_v49 = vcvt.s32.f32 %v2687_v0  ;;  %vm2708_vm15 = vcmp.lt.s32.totalorder %v2707_v60, %v2437_v33  ;;  %vm2316_vm2 = vcmp.eq.f32.partialorder %v14279_v15, %v11240_v9  ;;  %v2729_v6 = vsel %vm2728_vm11, %v2440_v28, %v2441_v24  ;;  %v14282_v15 = vld [vmem:[#allocation75_spill] sm:$0xff] }
 0x348   : > { %v11308_v61 = vpop.f32.mrf.mxu1  ;;  %2963 = vst.msk [vmem:[#allocation2 + $0x50] sm:$0xff] %vm13893_vm7, %v11313_v11  ;;  %v2709_v10 = vsel %vm2708_vm15, %v2707_v60, %v2437_v33  ;;  %v11330_v0 = vpop.f32.mrf.mxu0  ;;  %v2439_v4 = vsel %vm2311_vm14, %v10911_v1, 1024  ;;  %vm2730_vm3 = vcmp.lt.s32.totalorder %v2729_v6, %v2442_v18  ;;  %v2443_v60 = vsel %vm2315_vm0, %v10860_v62, 1024 }
 0x349   : > { %2690 = vmin.xlane.f32.xlu2 %v11315_v49  ;;  %vm2710_vm1 = vcmp.lt.s32.totalorder %v2709_v10, %v2438_v41  ;;  %14278 = vst [vmem:[#allocation59_spill] sm:$0xff] %v11330_v0  ;;  %v2731_v5 = vsel %vm2730_vm3, %v2729_v6, %v2442_v18  ;;  %vm2317_vm5 = vcmp.eq.f32.partialorder %v10454_v48, %v11240_v9  ;;  %v2444_v28 = vsel %vm2316_vm2, %v10874_v44, 1024  ;;  %v14284_v18 = vld [vmem:[#allocation83_spill] sm:$0xff] }
 0x34a   : > { %v2711_v59 = vsel %vm2710_vm1, %v2709_v10, %v2438_v41  ;;  %vm2732_vm6 = vcmp.lt.s32.totalorder %v2731_v5, %v2443_v60  ;;  %vm2320_vm8 = vcmp.eq.f32.partialorder %v14282_v15, %v11275_v19  ;;  %vm2318_vm10 = vcmp.eq.f32.partialorder %v10484_v31, %v11240_v9 }
 0x34b   : > { %vm2712_vm4 = vcmp.lt.s32.totalorder %v2711_v59, %v2439_v4  ;;  %v2733_v10 = vsel %vm2732_vm6, %v2731_v5, %v2443_v60  ;;  %vm2319_vm13 = vcmp.eq.f32.partialorder %v14284_v18, %v11240_v9  ;;  %v2445_v6 = vsel %vm2317_vm5, %v10890_v32, 1024  ;;  %v14285_v60 = vld [vmem:[#allocation79_spill] sm:$0xff] }
 0x34c   : > { %v11336_v46 = vpop.f32.mrf.mxu2  ;;  %v11343_v0 = vsel %vm2712_vm4, %v2711_v59, %v2439_v4  ;;  %v14283_v4 = vld [vmem:[#allocation76_spill] sm:$0xff]  ;;  %vm2734_vm12 = vcmp.lt.s32.totalorder %v2733_v10, %v2444_v28  ;;  %vm2322_vm15 = vcmp.eq.f32.partialorder %v14285_v60, %v11275_v19  ;;  %v2448_v5 = vsel %vm2320_vm8, %v10812_v37, 1024 }
 0x34d   : > { %v2715_v41 = vshra.s32 %v11343_v0, 16  ;;  %vm2321_vm9 = vcmp.eq.f32.partialorder %v14283_v4, %v11275_v19  ;;  %v2735_v59 = vsel %vm2734_vm12, %v2733_v10, %v2444_v28  ;;  %v2446_v31 = vsel %vm2318_vm10, %v10905_v2, 1024  ;;  %v14286_v4 = vld [vmem:[#allocation80_spill] sm:$0xff] }
 0x34e   : > { %v11348_v24 = vpop.xlane.xlu0 %2210  ;;  %vm2736_vm14 = vcmp.lt.s32.totalorder %v2735_v59, %v2445_v6  ;;  %v2449_v15 = vsel %vm2321_vm9, %v10838_v17, 1024  ;;  %vm2323_vm11 = vcmp.eq.f32.partialorder %v14286_v4, %v11275_v19  ;;  %v2447_v10 = vsel %vm2319_vm13, %v10911_v1, 1024 }
 0x34f   : > { %v11338_v33 = vpop.f32.mrf.mxu3  ;;  %14281 = vst [vmem:[#allocation67_spill] sm:$0xff] %v11348_v24  ;;  %v11359_v48 = vcvt.s32.f32 %v2715_v41  ;;  %v2737_v41 = vsel %vm2736_vm14, %v2735_v59, %v2445_v6  ;;  %vm2756_vm1 = vcmp.lt.s32.totalorder %v2448_v5, %v2449_v15  ;;  %v14289_v6 = vld [vmem:[#allocation84_spill] sm:$0xff] }
 0x350   : > { %14280 = vst [vmem:[#allocation60_spill] sm:$0xff] %v11338_v33  ;;  %v11341_v11 = vpop.f32.mrf.mxu1  ;;  %vm2738_vm0 = vcmp.lt.s32.totalorder %v2737_v41, %v2446_v31  ;;  %v11377_v60 = vpop.f32.mrf.mxu0  ;;  %v2757_v17 = vsel %vm2756_vm1, %v2448_v5, %v2449_v15  ;;  %vm2324_vm3 = vcmp.eq.f32.partialorder %v14289_v6, %v11275_v19  ;;  %v14291_v5 = vld [vmem:[#allocation86_spill] sm:$0xff] }
 0x351   : > { %2964 = vst.msk [vmem:[#allocation2 + $0x58] sm:$0xff] %vm13893_vm7, %v11348_v24  ;;  %2718 = vmin.xlane.f32.xlu1 %v11359_v48  ;;  %v2739_v18 = vsel %vm2738_vm0, %v2737_v41, %v2446_v31  ;;  %v2450_v24 = vsel %vm2322_vm15, %v10851_v29, 1024  ;;  %vm2325_vm5 = vcmp.eq.f32.partialorder %v14291_v5, %v11275_v19  ;;  %v2452_v15 = vsel %vm2324_vm3, %v10874_v44, 1024 }
 0x352   : > { %14288 = vst [vmem:[#allocation64_spill] sm:$0xff] %v11377_v60  ;;  %vm2740_vm2 = vcmp.lt.s32.totalorder %v2739_v18, %v2447_v10  ;;  %vm2758_vm4 = vcmp.lt.s32.totalorder %v2757_v17, %v2450_v24 }
 0x353   : > { %v11386_v4 = vsel %vm2740_vm2, %v2739_v18, %v2447_v10  ;;  %v2759_v33 = vsel %vm2758_vm4, %v2757_v17, %v2450_v24  ;;  %v14292_v10 = vld [vmem:[#allocation88_spill] sm:$0xff]  ;;  %v2453_v17 = vsel %vm2325_vm5, %v10890_v32, 1024  ;;  %v14293_v18 = vld [vmem:[#allocation90_spill] sm:$0xff] }
 0x354   : > { %v11372_v9 = vpop.f32.mrf.mxu2  ;;  %v2743_v31 = vshra.s32 %v11386_v4, 16  ;;  %vm2326_vm8 = vcmp.eq.f32.partialorder %v14292_v10, %v11275_v19  ;;  %vm2327_vm10 = vcmp.eq.f32.partialorder %v14293_v18, %v11275_v19 }
 0x356   : > { %v11384_v59 = vpop.xlane.xlu1 %2219  ;;  %v11395_v6 = vcvt.s32.f32 %v2743_v31 }
 0x357   : > { %v11374_v28 = vpop.f32.mrf.mxu3  ;;  %14290 = vst [vmem:[#allocation68_spill] sm:$0xff] %v11384_v59 }
 0x358   : > { %14287 = vst [vmem:[#allocation63_spill] sm:$0xff] %v11374_v28  ;;  %v11380_v37 = vpop.f32.mrf.mxu1  ;;  %v2451_v28 = vsel %vm2323_vm11, %v10860_v62, 1024  ;;  %2746 = vmin.xlane.f32.xlu0 %v11395_v6  ;;  %v11413_v60 = vpop.f32.mrf.mxu0 }
 0x359   : > { %2965 = vst.msk [vmem:[#allocation2 + $0x60] sm:$0xff] %vm13893_vm7, %v11384_v59  ;;  %vm2760_vm6 = vcmp.lt.s32.totalorder %v2759_v33, %v2451_v28 }
 0x35a   : > { %v2761_v41 = vsel %vm2760_vm6, %v2759_v33, %v2451_v28  ;;  %v2454_v33 = vsel %vm2326_vm8, %v10905_v2, 1024 }
 0x35b   : > { %vm2762_vm9 = vcmp.lt.s32.totalorder %v2761_v41, %v2452_v15 }
 0x35c   : > { %v2763_v24 = vsel %vm2762_vm9, %v2761_v41, %v2452_v15  ;;  %v11403_v5 = vpop.f32.mrf.mxu2  ;;  %v2455_v15 = vsel %vm2327_vm10, %v10911_v1, 1024 }
 0x35d   : > { %vm2764_vm12 = vcmp.lt.s32.totalorder %v2763_v24, %v2453_v17 }
 0x35e   : > { %v2765_v28 = vsel %vm2764_vm12, %v2763_v24, %v2453_v17 }
 0x35f   : > { %v11405_v59 = vpop.f32.mrf.mxu3  ;;  %vm2766_vm13 = vcmp.lt.s32.totalorder %v2765_v28, %v2454_v33  ;;  %v11410_v10 = vpop.xlane.xlu2 %2228 }
 0x360   : > { %14294 = vst [vmem:[#allocation65_spill] sm:$0xff] %v11405_v59  ;;  %v11408_v31 = vpop.f32.mrf.mxu1  ;;  %v2767_v41 = vsel %vm2766_vm13, %v2765_v28, %v2454_v33  ;;  %v11433_v28 = vpop.f32.mrf.mxu0 }
 0x361   : > { %14295 = vst [vmem:[#allocation66_spill] sm:$0xff] %v11410_v10  ;;  %vm2768_vm14 = vcmp.lt.s32.totalorder %v2767_v41, %v2455_v15 }
 0x362   : > { %2966 = vst.msk [vmem:[#allocation2 + $0x68] sm:$0xff] %vm13893_vm7, %v11410_v10  ;;  %v11417_v19 = vsel %vm2768_vm14, %v2767_v41, %v2455_v15 }
 0x363   : > { %v2771_v18 = vshra.s32 %v11417_v19, 16  ;;  %14298 = vst [vmem:[#allocation73_spill] sm:$0xff] %v11433_v28 }
 0x364   : > { %v11422_v17 = vpop.f32.mrf.mxu2 }
 0x365   : > { %v11420_v2 = vcvt.s32.f32 %v2771_v18 }
 0x367   : > { %v11424_v24 = vpop.f32.mrf.mxu3  ;;  %2774 = vmin.xlane.f32.xlu2 %v11420_v2 }
 0x368   : > { %14296 = vst [vmem:[#allocation69_spill] sm:$0xff] %v11424_v24  ;;  %v11426_v32 = vpop.f32.mrf.mxu1  ;;  %v11429_v33 = vpop.xlane.xlu0 %2237 }
 0x369   : > { %14297 = vst [vmem:[#allocation70_spill] sm:$0xff] %v11429_v33  ;;  %v11445_v1 = vpop.f32.mrf.mxu0 }
 0x36a   : > { %2967 = vst.msk [vmem:[#allocation2 + $0x70] sm:$0xff] %vm13893_vm7, %v11429_v33 }
 0x36b   : > { %14302 = vst [vmem:[#allocation74_spill] sm:$0xff] %v11445_v1 }
 0x36c   : > { %v11435_v15 = vpop.f32.mrf.mxu2 }
 0x36e   : > { %v11441_v10 = vpop.xlane.xlu1 %2246 }
 0x36f   : > { %v11437_v41 = vpop.f32.mrf.mxu3  ;;  %14301 = vst [vmem:[#allocation77_spill] sm:$0xff] %v11441_v10 }
 0x370   : > { %14299 = vst [vmem:[#allocation71_spill] sm:$0xff] %v11437_v41  ;;  %v11439_v18 = vpop.f32.mrf.mxu1  ;;  %v2518_v41 = vand.u32 65535, %v10947_v14  ;;  %v2546_v14 = vand.u32 65535, %v11006_v47  ;;  %v2574_v47 = vand.u32 65535, %v11080_v45 }
 0x371   : > { %14300 = vst [vmem:[#allocation72_spill] sm:$0xff] %v11439_v18  ;;  %v11458_v29 = vpop.f32.mrf.mxu0 }
 0x372   : > { %2968 = vst.msk [vmem:[#allocation2 + $0x78] sm:$0xff] %vm13893_vm7, %v11441_v10  ;;  %v2520_v10 = vcvt.s32.f32 %v2518_v41 }
 0x374   : > { %v11447_v44 = vpop.f32.mrf.mxu2 }
 0x375   : > { %14303 = vst [vmem:[#allocation78_spill] sm:$0xff] %v11447_v44 }
 0x377   : > { %v11449_v62 = vpop.f32.mrf.mxu3 }
 0x378   : > { %14304 = vst [vmem:[#allocation75_spill] sm:$0xff] %v11449_v62  ;;  %v11451_v33 = vpop.f32.mrf.mxu1 }
 0x379   : > { %14305 = vst [vmem:[#allocation76_spill] sm:$0xff] %v11451_v33 }
 0x37c   : > { %v11453_v24 = vpop.f32.mrf.mxu2 }
 0x37d   : > { %14306 = vst [vmem:[#allocation83_spill] sm:$0xff] %v11453_v24 }
 0x37f   : > { %v11455_v28 = vpop.f32.mrf.mxu3 }
 0x380   : > { %14307 = vst [vmem:[#allocation79_spill] sm:$0xff] %v11455_v28  ;;  %v11460_v18 = vpop.f32.mrf.mxu1  ;;  %v11473_v28 = vpop.f32.mrf.mxu0 }
 0x381   : > { %14308 = vst [vmem:[#allocation80_spill] sm:$0xff] %v11460_v18  ;;  %v2548_v18 = vcvt.s32.f32 %v2546_v14 }
 0x384   : > { %v11466_v62 = vpop.f32.mrf.mxu2 }
 0x385   : > { %14310 = vst [vmem:[#allocation86_spill] sm:$0xff] %v11466_v62 }
 0x386   : > { %v11462_v59 = vpop.xlane.xlu2 %2522 }
 0x387   : > { %14309 = vst [vmem:[#allocation84_spill] sm:$0xff] %v11462_v59  ;;  %vm2524_vm15 = vcmp.eq.f32.partialorder %v10962_v56, %v11462_v59  ;;  %v11468_v33 = vpop.f32.mrf.mxu3  ;;  %v2576_v59 = vcvt.s32.f32 %v2574_v47 }
 0x388   : > { %v2525_v1 = vsel %vm2524_vm15, %v2520_v10, inf  ;;  %14311 = vst [vmem:[#allocation88_spill] sm:$0xff] %v11468_v33  ;;  %v11470_v24 = vpop.f32.mrf.mxu1  ;;  %v11485_v33 = vpop.f32.mrf.mxu0 }
 0x389   : > { %2526 = vmin.xlane.f32.xlu0 %v2525_v1  ;;  %14312 = vst [vmem:[#allocation90_spill] sm:$0xff] %v11470_v24 }
 0x38a   : > { %14317 = vst [vmem:[#allocation132_spill] sm:$0xff] %v11485_v33 }
 0x38c   : > { %v11479_v56 = vpop.f32.mrf.mxu2 }
 0x38d   : > { %14314 = vst [vmem:[#allocation129_spill] sm:$0xff] %v11479_v56 }
 0x38f   : > { %v11475_v44 = vpop.xlane.xlu1 %2550  ;;  %v11481_v1 = vpop.f32.mrf.mxu3 }
 0x390   : > { %14313 = vst [vmem:[#allocation128_spill] sm:$0xff] %v11475_v44  ;;  %vm2552_vm0 = vcmp.eq.f32.partialorder %v11028_v40, %v11475_v44  ;;  %v11483_v10 = vpop.f32.mrf.mxu1 }
 0x391   : > { %v2553_v41 = vsel %vm2552_vm0, %v2548_v18, inf  ;;  %14315 = vst [vmem:[#allocation130_spill] sm:$0xff] %v11481_v1  ;;  %v14361_v1 = vld [vmem:[#allocation102_spill] sm:$0xff] }
 0x392   : > { %2554 = vmin.xlane.f32.xlu2 %v2553_v41  ;;  %14316 = vst [vmem:[#allocation131_spill] sm:$0xff] %v11483_v10  ;;  %v2602_v41 = vand.u32 65535, %v11137_v30  ;;  %v11499_v10 = vpop.f32.mrf.mxu0 }
 0x394   : > { %v11488_v24 = vpop.f32.mrf.mxu2 }
 0x395   : > { %14318 = vst [vmem:[#allocation133_spill] sm:$0xff] %v11488_v24 }
 0x397   : > { %v11490_v62 = vpop.f32.mrf.mxu3 }
 0x398   : > { %14319 = vst [vmem:[#allocation134_spill] sm:$0xff] %v11490_v62  ;;  %v11492_v14 = vpop.xlane.xlu0 %2578  ;;  %v11496_v40 = vpop.f32.mrf.mxu1  ;;  %v2604_v62 = vcvt.s32.f32 %v2602_v41 }
 0x399   : > { %14320 = vst [vmem:[#allocation135_spill] sm:$0xff] %v11492_v14  ;;  %vm2580_vm11 = vcmp.eq.f32.partialorder %v11105_v34, %v11492_v14 }
 0x39a   : > { %14321 = vst [vmem:[#allocation136_spill] sm:$0xff] %v11496_v40  ;;  %v2581_v18 = vsel %vm2580_vm11, %v2576_v59, inf  ;;  %v2630_v59 = vand.u32 65535, %v11206_v63 }
 0x39b   : > { %2582 = vmin.xlane.f32.xlu1 %v2581_v18  ;;  %v11516_v18 = vpop.f32.mrf.mxu0 }
 0x39c   : > { %v11501_v56 = vpop.f32.mrf.mxu2  ;;  %14328 = vst [vmem:[#allocation143_spill] sm:$0xff] %v11516_v18  ;;  %v2632_v41 = vcvt.s32.f32 %v2630_v59 }
 0x39d   : > { %14322 = vst [vmem:[#allocation137_spill] sm:$0xff] %v11501_v56  ;;  %v14367_v56 = vld [vmem:[#allocation16_spill] sm:$0xff] }
 0x39f   : > { %v11503_v45 = vpop.f32.mrf.mxu3  ;;  %v11505_v24 = vpop.xlane.xlu2 %2606 }
 0x3a0   : > { %14323 = vst [vmem:[#allocation138_spill] sm:$0xff] %v11503_v45  ;;  %v11507_v33 = vpop.f32.mrf.mxu1  ;;  %vm2608_vm1 = vcmp.eq.f32.partialorder %v11157_v7, %v11505_v24  ;;  %v2658_v7 = vand.u32 65535, %v11250_v53  ;;  %v2686_v53 = vand.u32 65535, %v11295_v58  ;;  %v11558_v58 = vadd.f32 %v10632_v50, %v10794_v52 }
 0x3a1   : > { %14324 = vst [vmem:[#allocation139_spill] sm:$0xff] %v11505_v24  ;;  %v2609_v34 = vsel %vm2608_vm1, %v2604_v62, inf  ;;  %v11578_v50 = vadd.f32 %v10926_v26, %v10794_v52 }
 0x3a2   : > { %14325 = vst [vmem:[#allocation140_spill] sm:$0xff] %v11507_v33  ;;  %2610 = vmin.xlane.f32.xlu0 %v2609_v34 }
 0x3a3   : > { %v11531_v24 = vpop.f32.mrf.mxu0  ;;  %14341 = vst [vmem:[#allocation156_spill] sm:$0xff] %v11558_v58 }
 0x3a4   : > { %v11512_v47 = vpop.f32.mrf.mxu2  ;;  %14333 = vst [vmem:[#allocation148_spill] sm:$0xff] %v11531_v24 }
 0x3a5   : > { %14326 = vst [vmem:[#allocation141_spill] sm:$0xff] %v11512_v47 }
 0x3a6   : > { %14346 = vst [vmem:[#allocation161_spill] sm:$0xff] %v11578_v50 }
 0x3a7   : > { %v11514_v30 = vpop.f32.mrf.mxu3 }
 0x3a8   : > { %14327 = vst [vmem:[#allocation142_spill] sm:$0xff] %v11514_v30  ;;  %v11518_v14 = vpop.f32.mrf.mxu1  ;;  %v11520_v45 = vpop.xlane.xlu1 %2634 }
 0x3a9   : > { %14329 = vst [vmem:[#allocation144_spill] sm:$0xff] %v11518_v14  ;;  %vm2636_vm2 = vcmp.eq.f32.partialorder %v11222_v42, %v11520_v45  ;;  %v2660_v14 = vcvt.s32.f32 %v2658_v7  ;;  %v11554_v7 = vadd.f32 %v10881_v13, %v10794_v52  ;;  %v11574_v13 = vadd.f32 %v10792_v12, %v10722_v21 }
 0x3aa   : > { %14330 = vst [vmem:[#allocation145_spill] sm:$0xff] %v11520_v45  ;;  %v2637_v44 = vsel %vm2636_vm2, %v2632_v41, inf }
 0x3ab   : > { %2638 = vmin.xlane.f32.xlu2 %v2637_v44  ;;  %v4461_v45 = vpop.f32.mrf.mxu0  ;;  %14340 = vst [vmem:[#allocation155_spill] sm:$0xff] %v11554_v7 }
 0x3ac   : > { %v11524_v62 = vpop.f32.mrf.mxu2  ;;  %14345 = vst [vmem:[#allocation160_spill] sm:$0xff] %v11574_v13 }
 0x3ad   : > { %14331 = vst [vmem:[#allocation146_spill] sm:$0xff] %v11524_v62 }
 0x3af   : > { %v11527_v63 = vpop.f32.mrf.mxu3 }
 0x3b0   : > { %14332 = vst [vmem:[#allocation147_spill] sm:$0xff] %v11527_v63  ;;  %v11529_v34 = vpop.f32.mrf.mxu1  ;;  %v2688_v63 = vcvt.s32.f32 %v2686_v53  ;;  %v11566_v53 = vadd.f32 %v10685_v54, %v10833_v35  ;;  %v11586_v54 = vadd.f32 %v10968_v8, %v10833_v35  ;;  %v4683_v8 = vmax.f32 %v11558_v58, %v11554_v7 }
 0x3b2   : > { %14343 = vst [vmem:[#allocation158_spill] sm:$0xff] %v11566_v53 }
 0x3b3   : > { %14348 = vst [vmem:[#allocation163_spill] sm:$0xff] %v11586_v54  ;;  %v4464_v7 = vpop.f32.mrf.mxu0 }
 0x3b4   : > { %v11533_v47 = vpop.xlane.xlu0 %2662  ;;  %v11537_v42 = vpop.f32.mrf.mxu2 }
 0x3b5   : > { %14334 = vst [vmem:[#allocation149_spill] sm:$0xff] %v11533_v47  ;;  %vm2664_vm3 = vcmp.eq.f32.partialorder %v11262_v23, %v11533_v47  ;;  %v14353_v47 = vld [vmem:[#allocation17_spill] sm:$0xff] }
 0x3b6   : > { %v2665_v59 = vsel %vm2664_vm3, %v2660_v14, inf }
 0x3b7   : > { %2666 = vmin.xlane.f32.xlu1 %v2665_v59  ;;  %v11542_v41 = vpop.f32.mrf.mxu3  ;;  %v11562_v59 = vadd.f32 %v10935_v57, %v10833_v35  ;;  %v11582_v57 = vadd.f32 %v10821_v51, %v10794_v52 }
 0x3b8   : > { %v11539_v44 = vpop.f32.mrf.mxu1  ;;  %14336 = vst [vmem:[#allocation151_spill] sm:$0xff] %v11542_v41  ;;  %v11607_v41 = vadd.f32 %v14353_v47, %v10816_v3  ;;  %v11626_v47 = vmax.f32 %v4683_v8, %v11578_v50 }
 0x3b9   : > { %14335 = vst [vmem:[#allocation150_spill] sm:$0xff] %v11539_v44  ;;  %v4692_v24 = vmax.f32 %v11566_v53, %v11562_v59 }
 0x3ba   : > { %14342 = vst [vmem:[#allocation157_spill] sm:$0xff] %v11562_v59  ;;  %v14364_v59 = vld [vmem:[#allocation7_spill] sm:$0xff] }
 0x3bb   : > { %14347 = vst [vmem:[#allocation162_spill] sm:$0xff] %v11582_v57  ;;  %v11634_v53 = vadd.f32 %v14364_v59, %v10722_v21 }
 0x3bc   : > { %v11544_v62 = vpop.xlane.xlu2 %2690  ;;  %v11546_v33 = vpop.f32.mrf.mxu2 }
 0x3bd   : > { %14337 = vst [vmem:[#allocation152_spill] sm:$0xff] %v11544_v62  ;;  %vm2692_vm4 = vcmp.eq.f32.partialorder %v11315_v49, %v11544_v62  ;;  %v11570_v49 = vadd.f32 %v10738_v39, %v10816_v3  ;;  %v11590_v39 = vadd.f32 %v11308_v61, %v10589_v20  ;;  %v14352_v62 = vld [vmem:[#allocation41_spill] sm:$0xff]  ;;  %v14355_v61 = vld [vmem:[#allocation111_spill] sm:$0xff] }
 0x3be   : > { %14338 = vst [vmem:[#allocation153_spill] sm:$0xff] %v11546_v33  ;;  %v2693_v23 = vsel %vm2692_vm4, %v2688_v63, inf  ;;  %v2714_v63 = vand.u32 65535, %v11343_v0  ;;  %v11601_v51 = vadd.f32 %v14352_v62, %v10833_v35  ;;  %v11621_v62 = vadd.f32 %v11336_v46, %v10589_v20 }
 0x3bf   : > { %2694 = vmin.xlane.f32.xlu0 %v2693_v23  ;;  %14344 = vst [vmem:[#allocation159_spill] sm:$0xff] %v11570_v49  ;;  %v11593_v12 = vpop.f32.mrf.mxu3  ;;  %v14350_v23 = vld [vmem:[#allocation120_spill] sm:$0xff]  ;;  %v11641_v46 = vmax.f32 %v4692_v24, %v11586_v54  ;;  %v4701_v59 = vmax.f32 %v11570_v49, %v11607_v41  ;;  %v14373_v24 = vld [vmem:[#allocation99_spill] sm:$0xff] }
 0x3c0   : > { %v11550_v14 = vpop.f32.mrf.mxu1  ;;  %14349 = vst [vmem:[#allocation164_spill] sm:$0xff] %v11590_v39  ;;  %v11597_v26 = vadd.f32 %v14350_v23, %v10774_v16  ;;  %v11617_v23 = vadd.f32 %v11082_v38, %v10589_v20  ;;  %v14366_v38 = vld [vmem:[#allocation107_spill] sm:$0xff]  ;;  %v2716_v50 = vcvt.s32.f32 %v2714_v63  ;;  %v11659_v54 = vadd.f32 %v11341_v11, %v14373_v24 }
 0x3c1   : > { %14339 = vst [vmem:[#allocation154_spill] sm:$0xff] %v11550_v14  ;;  %v14356_v14 = vld [vmem:[#allocation125_spill] sm:$0xff]  ;;  %v11638_v44 = vadd.f32 %v14367_v56, %v14366_v38  ;;  %v14371_v56 = vld [vmem:[#allocation20_spill] sm:$0xff]  ;;  %v11669_v63 = vadd.f32 %v11084_v36, %v10774_v16  ;;  %v11678_v11 = vadd.f32 %v11131_v22, %v14373_v24  ;;  %v11696_v22 = vadd.f32 %v11267_v27, %v10589_v20 }
 0x3c2   : > { %14351 = vst [vmem:[#allocation120_spill] sm:$0xff] %v11597_v26  ;;  %v11611_v0 = vadd.f32 %v14356_v14, %v14355_v61  ;;  %v14362_v14 = vld [vmem:[#allocation127_spill] sm:$0xff]  ;;  %v4764_v8 = vmax.f32 %v11617_v23, %v11590_v39  ;;  %v11655_v40 = vadd.f32 %v14371_v56, %v10816_v3  ;;  %v14378_v56 = vld [vmem:[#allocation25_spill] sm:$0xff]  ;;  %v14382_v36 = vld [vmem:[#allocation104_spill] sm:$0xff] }
 0x3c3   : > { %14354 = vst [vmem:[#allocation41_spill] sm:$0xff] %v11607_v41  ;;  %v11630_v33 = vadd.f32 %v14362_v14, %v14361_v1  ;;  %v4719_v27 = vmax.f32 %v11597_v26, %v11669_v63 }
 0x3c4   : > { %14357 = vst [vmem:[#allocation17_spill] sm:$0xff] %v11611_v0  ;;  %v11623_v58 = vpop.f32.mrf.mxu2  ;;  %v11649_v14 = vpop.xlane.xlu1 %2718  ;;  %v4765_v41 = vmax.f32 %v4764_v8, %v11621_v62  ;;  %v14383_v8 = vld [vmem:[#allocation8_spill] sm:$0xff] }
 0x3c5   : > { %14358 = vst [vmem:[#allocation125_spill] sm:$0xff] %v11617_v23  ;;  %vm2720_vm5 = vcmp.eq.f32.partialorder %v11359_v48, %v11649_v14  ;;  %v11674_v23 = vadd.f32 %v14378_v56, %v10774_v16  ;;  %v11682_v48 = vadd.f32 %v11133_v25, %v14355_v61  ;;  %v11702_v25 = vmax.f32 %v4701_v59, %v11655_v40 }
 0x3c6   : > { %14359 = vst [vmem:[#allocation165_spill] sm:$0xff] %v11621_v62  ;;  %v2721_v49 = vsel %vm2720_vm5, %v2716_v50, inf  ;;  %v11690_v50 = vadd.f32 %v14383_v8, %v14382_v36  ;;  %v11699_v62 = vadd.f32 %v4461_v45, %v10589_v20  ;;  %v4773_v8 = vmax.f32 %v11678_v11, %v11659_v54 }
 0x3c7   : > { %14360 = vst [vmem:[#allocation166_spill] sm:$0xff] %v11623_v58  ;;  %v11645_v58 = vadd.f32 %v11032_v55, %v10722_v21  ;;  %v14375_v55 = vld [vmem:[#allocation5_spill] sm:$0xff]  ;;  %2722 = vmin.xlane.f32.xlu2 %v2721_v49  ;;  %v4766_v45 = vmax.f32 %v4765_v41, %v11696_v22  ;;  %v14395_v41 = vld [vmem:[#allocation51_spill] sm:$0xff] }
 0x3c8   : > { %14363 = vst [vmem:[#allocation102_spill] sm:$0xff] %v11630_v33  ;;  %v4526_v30 = vpop.f32.mrf.mxu1  ;;  %v11665_v39 = vadd.f32 %v14375_v55, %v10722_v21  ;;  %v11686_v55 = vadd.f32 %v11372_v9, %v14373_v24  ;;  %v14388_v9 = vld [vmem:[#allocation47_spill] sm:$0xff] }
 0x3c9   : > { %14365 = vst [vmem:[#allocation127_spill] sm:$0xff] %v11634_v53  ;;  %v4710_v56 = vmax.f32 %v11574_v13, %v11645_v58  ;;  %v11706_v49 = vadd.f32 %v14388_v9, %v14355_v61  ;;  %v4659_v13 = vpop.f32.mrf.mxu3  ;;  %v11718_v59 = vadd.f32 %v4526_v30, %v10589_v20  ;;  %v14391_v9 = vld [vmem:[#allocation23_spill] sm:$0xff]  ;;  %v14397_v30 = vld [vmem:[#allocation49_spill] sm:$0xff] }
 0x3ca   : > { %14368 = vst [vmem:[#allocation7_spill] sm:$0xff] %v11638_v44 }
 0x3cb   : > { %14369 = vst [vmem:[#allocation107_spill] sm:$0xff] %v11645_v58  ;;  %v11712_v58 = vmax.f32 %v4710_v56, %v11665_v39  ;;  %v4728_v56 = vmax.f32 %v11611_v0, %v11682_v48 }
 0x3cc   : > { %14370 = vst [vmem:[#allocation16_spill] sm:$0xff] %v11649_v14  ;;  %v2742_v14 = vand.u32 65535, %v11386_v4 }
 0x3cd   : > { %14372 = vst [vmem:[#allocation20_spill] sm:$0xff] %v11655_v40  ;;  %v4591_v40 = vpop.f32.mrf.mxu2 }
 0x3ce   : > { %14374 = vst [vmem:[#allocation99_spill] sm:$0xff] %v11659_v54  ;;  %v14393_v54 = vld [vmem:[#allocation33_spill] sm:$0xff]  ;;  %v11741_v26 = vadd.f32 %v4591_v40, %v10589_v20  ;;  %v2744_v0 = vcvt.s32.f32 %v2742_v14  ;;  %v14406_v40 = vld [vmem:[#allocation50_spill] sm:$0xff] }
 0x3cf   : > { %14376 = vst [vmem:[#allocation5_spill] sm:$0xff] %v11665_v39  ;;  %v11726_v4 = vadd.f32 %v14393_v54, %v14361_v1  ;;  %v4774_v39 = vmax.f32 %v4773_v8, %v11686_v55  ;;  %v14401_v8 = vld [vmem:[#allocation40_spill] sm:$0xff]  ;;  %v11762_v3 = vadd.f32 %v14406_v40, %v14361_v1 }
 0x3d0   : > { %14377 = vst [vmem:[#allocation167_spill] sm:$0xff] %v11669_v63  ;;  %v4467_v63 = vpop.f32.mrf.mxu0  ;;  %v4529_v54 = vpop.f32.mrf.mxu1  ;;  %v14410_v40 = vld [vmem:[#allocation48_spill] sm:$0xff] }
 0x3d1   : > { %14379 = vst [vmem:[#allocation25_spill] sm:$0xff] %v11678_v11  ;;  %v11733_v11 = vadd.f32 %v14395_v41, %v14355_v61  ;;  %v11752_v41 = vadd.f32 %v4464_v7, %v14373_v24  ;;  %v11773_v61 = vadd.f32 %v4529_v54, %v14373_v24  ;;  %v11780_v18 = vadd.f32 %v14410_v40, %v14366_v38 }
 0x3d2   : > { %14380 = vst [vmem:[#allocation168_spill] sm:$0xff] %v11682_v48  ;;  %v11745_v48 = vadd.f32 %v11299_v43, %v14373_v24  ;;  %v11769_v43 = vadd.f32 %v11403_v5, %v14401_v8 }
 0x3d3   : > { %14381 = vst [vmem:[#allocation169_spill] sm:$0xff] %v11686_v55  ;;  %v11749_v55 = vadd.f32 %v11380_v37, %v14401_v8 }
 0x3d4   : > { %14384 = vst [vmem:[#allocation104_spill] sm:$0xff] %v11690_v50  ;;  %v4775_v7 = vmax.f32 %v4774_v39, %v11745_v48  ;;  %v14411_v39 = vld [vmem:[#allocation53_spill] sm:$0xff] }
 0x3d5   : > { %14385 = vst [vmem:[#allocation8_spill] sm:$0xff] %v11696_v22  ;;  %v11737_v22 = vadd.f32 %v14397_v30, %v14361_v1  ;;  %v11754_v30 = vpop.xlane.xlu0 %2746 }
 0x3d6   : > { %14386 = vst [vmem:[#allocation170_spill] sm:$0xff] %v11699_v62  ;;  %vm2748_vm6 = vcmp.eq.f32.partialorder %v11395_v6, %v11754_v30  ;;  %v4776_v54 = vmax.f32 %v4775_v7, %v11752_v41  ;;  %v2770_v7 = vand.u32 65535, %v11417_v19  ;;  %v11828_v19 = vadd.f32 %v4467_v63, %v14401_v8 }
 0x3d7   : > { %14387 = vst [vmem:[#allocation171_spill] sm:$0xff] %v11702_v25  ;;  %v11722_v25 = vadd.f32 %v14391_v9, %v10774_v16  ;;  %v4767_v9 = vmax.f32 %v4766_v45, %v11699_v62  ;;  %v14404_v45 = vld [vmem:[#allocation52_spill] sm:$0xff]  ;;  %v2749_v14 = vsel %vm2748_vm6, %v2744_v0, inf  ;;  %v4737_v6 = vmax.f32 %v11630_v33, %v11737_v22  ;;  %v4594_v33 = vpop.f32.mrf.mxu2 }
 0x3d8   : > { %14389 = vst [vmem:[#allocation47_spill] sm:$0xff] %v11706_v49  ;;  %v11758_v62 = vadd.f32 %v14404_v45, %v14401_v8  ;;  %2750 = vmin.xlane.f32.xlu1 %v2749_v14  ;;  %v11790_v0 = vadd.f32 %v14411_v39, %v14382_v36  ;;  %v11808_v39 = vadd.f32 %v11593_v12, %v10589_v20  ;;  %v4662_v20 = vpop.f32.mrf.mxu3 }
 0x3d9   : > { %14390 = vst [vmem:[#allocation172_spill] sm:$0xff] %v11718_v59  ;;  %v4768_v37 = vmax.f32 %v4767_v9, %v11718_v59  ;;  %v11776_v45 = vmax.f32 %v4719_v27, %v11722_v25  ;;  %v11786_v9 = vmax.f32 %v4728_v56, %v11733_v11  ;;  %v11796_v40 = vmax.f32 %v4737_v6, %v11762_v3 }
 0x3da   : > { %14392 = vst [vmem:[#allocation23_spill] sm:$0xff] %v11722_v25  ;;  %v4782_v27 = vmax.f32 %v11758_v62, %v11749_v55  ;;  %v4777_v6 = vmax.f32 %v4776_v54, %v11773_v61 }
 0x3db   : > { %14394 = vst [vmem:[#allocation33_spill] sm:$0xff] %v11726_v4  ;;  %v4769_v5 = vmax.f32 %v4768_v37, %v11741_v26  ;;  %v14415_v37 = vld [vmem:[#allocation54_spill] sm:$0xff] }
 0x3dc   : > { %14396 = vst [vmem:[#allocation51_spill] sm:$0xff] %v11733_v11  ;;  %v11804_v56 = vadd.f32 %v14415_v37, %v14366_v38  ;;  %v14428_v11 = vld [vmem:[#allocation56_spill] sm:$0xff] }
 0x3dd   : > { %14398 = vst [vmem:[#allocation49_spill] sm:$0xff] %v11737_v22  ;;  %v14414_v22 = vld [vmem:[#allocation57_spill] sm:$0xff]  ;;  %v4770_v12 = vmax.f32 %v4769_v5, %v11808_v39  ;;  %v14427_v5 = vld [vmem:[#allocation55_spill] sm:$0xff] }
 0x3de   : > { %14399 = vst [vmem:[#allocation173_spill] sm:$0xff] %v11741_v26  ;;  %v14432_v26 = vld [vmem:[#allocation58_spill] sm:$0xff] }
 0x3df   : > { %14400 = vst [vmem:[#allocation174_spill] sm:$0xff] %v11745_v48  ;;  %v14413_v48 = vld [vmem:[#allocation45_spill] sm:$0xff]  ;;  %v11859_v59 = vadd.f32 %v14432_v26, %v14382_v36 }
 0x3e0   : > { %14402 = vst [vmem:[#allocation40_spill] sm:$0xff] %v11749_v55  ;;  %v11800_v14 = vadd.f32 %v14414_v22, %v14413_v48  ;;  %v4783_v55 = vmax.f32 %v4782_v27, %v11769_v43  ;;  %v14419_v22 = vld [vmem:[#allocation60_spill] sm:$0xff]  ;;  %v11822_v37 = vadd.f32 %v11408_v31, %v14413_v48  ;;  %v14422_v27 = vld [vmem:[#allocation62_spill] sm:$0xff]  ;;  %v4746_v31 = vmax.f32 %v11638_v44, %v11804_v56  ;;  %v14440_v44 = vld [vmem:[#allocation59_spill] sm:$0xff] }
 0x3e1   : > { %14403 = vst [vmem:[#allocation175_spill] sm:$0xff] %v11752_v41  ;;  %v4532_v41 = vpop.f32.mrf.mxu1  ;;  %4771 = vmax.xlane.f32.xlu1 %v4770_v12  ;;  %v14439_v12 = vld [vmem:[#allocation91_spill] sm:$0xff] }
 0x3e2   : > { %14405 = vst [vmem:[#allocation52_spill] sm:$0xff] %v11758_v62  ;;  %v11814_v62 = vadd.f32 %v4594_v33, %v14373_v24  ;;  %v11831_v33 = vadd.f32 %v4659_v13, %v14373_v24  ;;  %v11848_v13 = vadd.f32 %v11422_v17, %v14413_v48  ;;  %v4470_v24 = vpop.f32.mrf.mxu0  ;;  %v14434_v17 = vld [vmem:[#allocation117_spill] sm:$0xff]  ;;  %v11882_v25 = vadd.f32 %v14440_v44, %v14439_v12  ;;  %v14444_v44 = vld [vmem:[#allocation63_spill] sm:$0xff] }
 0x3e3   : > { %14407 = vst [vmem:[#allocation50_spill] sm:$0xff] %v11762_v3  ;;  %v11818_v3 = vadd.f32 %v14419_v22, %v14401_v8  ;;  %v14426_v22 = vld [vmem:[#allocation82_spill] sm:$0xff] }
 0x3e4   : > { %14408 = vst [vmem:[#allocation176_spill] sm:$0xff] %v11769_v43  ;;  %v14423_v43 = vld [vmem:[#allocation81_spill] sm:$0xff]  ;;  %v4778_v54 = vmax.f32 %v4777_v6, %v11814_v62  ;;  %vm2329_vm9 = vcmp.eq.f32.partialorder %v14426_v22, %v14422_v27  ;;  %v11851_v6 = vpop.xlane.xlu2 %2774  ;;  %v2772_v22 = vcvt.s32.f32 %v2770_v7 }
 0x3e5   : > { %14409 = vst [vmem:[#allocation177_spill] sm:$0xff] %v11773_v61  ;;  %vm2328_vm8 = vcmp.eq.f32.partialorder %v14423_v43, %v14422_v27  ;;  %v11840_v61 = vadd.f32 %v14427_v5, %v14366_v38  ;;  %v4784_v63 = vmax.f32 %v4783_v55, %v11818_v3  ;;  %vm2776_vm10 = vcmp.eq.f32.partialorder %v11420_v2, %v11851_v6  ;;  %v14435_v55 = vld [vmem:[#allocation122_spill] sm:$0xff] }
 0x3e6   : > { %14412 = vst [vmem:[#allocation48_spill] sm:$0xff] %v11790_v0  ;;  %v4779_v5 = vmax.f32 %v4778_v54, %v11831_v33  ;;  %v2457_v7 = vsel %vm2329_vm9, %v14435_v55, 1024  ;;  %v4791_v54 = vmax.f32 %v11800_v14, %v11822_v37 }
 0x3e7   : > { %14416 = vst [vmem:[#allocation53_spill] sm:$0xff] %v11804_v56  ;;  %v4785_v26 = vmax.f32 %v4784_v63, %v11828_v19  ;;  %v11876_v2 = vmax.f32 %v4746_v31, %v11840_v61 }
 0x3e8   : > { %14417 = vst [vmem:[#allocation45_spill] sm:$0xff] %v11808_v39  ;;  %v11844_v39 = vadd.f32 %v14428_v11, %v14382_v36  ;;  %v2456_v11 = vsel %vm2328_vm8, %v14434_v17, 1024  ;;  %4780 = vmax.xlane.f32.xlu2 %v4779_v5  ;;  %v4792_v63 = vmax.f32 %v4791_v54, %v11848_v13 }
 0x3e9   : > { %14418 = vst [vmem:[#allocation57_spill] sm:$0xff] %v11814_v62  ;;  %v11854_v62 = vadd.f32 %v4532_v41, %v14401_v8  ;;  %v14437_v41 = vld [vmem:[#allocation61_spill] sm:$0xff]  ;;  %vm2784_vm12 = vcmp.lt.s32.totalorder %v2456_v11, %v2457_v7  ;;  %v4535_v54 = vpop.f32.mrf.mxu1 }
 0x3ea   : > { %14420 = vst [vmem:[#allocation54_spill] sm:$0xff] %v11818_v3  ;;  %v14436_v3 = vld [vmem:[#allocation87_spill] sm:$0xff]  ;;  %v4755_v43 = vmax.f32 %v11690_v50, %v11844_v39 }
 0x3eb   : > { %14421 = vst [vmem:[#allocation60_spill] sm:$0xff] %v11822_v37  ;;  %v11870_v56 = vadd.f32 %v14437_v41, %v14436_v3  ;;  %v11886_v41 = vadd.f32 %v11413_v60, %v10794_v52  ;;  %v4597_v37 = vpop.f32.mrf.mxu2  ;;  %v4685_v60 = vmax.f32 %v11626_v47, %v11582_v57  ;;  %v14454_v47 = vld [vmem:[#allocation72_spill] sm:$0xff] }
 0x3ec   : > { %14424 = vst [vmem:[#allocation62_spill] sm:$0xff] %v11828_v19  ;;  %v11891_v31 = vadd.f32 %v4597_v37, %v14401_v8  ;;  %v11894_v5 = vmax.f32 %v4755_v43, %v11859_v59  ;;  %v11898_v19 = vadd.f32 %v14444_v44, %v14413_v48  ;;  %v11910_v37 = vadd.f32 %v4662_v20, %v14401_v8 }
 0x3ed   : > { %14425 = vst [vmem:[#allocation81_spill] sm:$0xff] %v11831_v33  ;;  %v2777_v33 = vsel %vm2776_vm10, %v2772_v22, inf  ;;  %v4786_v22 = vmax.f32 %v4785_v26, %v11854_v62  ;;  %v11907_v26 = vadd.f32 %v4470_v24, %v14413_v48  ;;  %v11916_v44 = vmax.f32 %v4685_v60, %v11886_v41  ;;  %v14452_v60 = vld [vmem:[#allocation65_spill] sm:$0xff] }
 0x3ee   : > { %14429 = vst [vmem:[#allocation82_spill] sm:$0xff] %v11844_v39  ;;  %2778 = vmin.xlane.f32.xlu0 %v2777_v33  ;;  %v11904_v33 = vadd.f32 %v11426_v32, %v14436_v3  ;;  %v4712_v32 = vmax.f32 %v11712_v58, %v11634_v53  ;;  %v2785_v24 = vsel %vm2784_vm12, %v2456_v11, %v2457_v7  ;;  %v14456_v7 = vld [vmem:[#allocation15_spill] sm:$0xff]  ;;  %v14463_v39 = vld [vmem:[#allocation36_spill] sm:$0xff] }
 0x3ef   : > { %14430 = vst [vmem:[#allocation55_spill] sm:$0xff] %v11848_v13  ;;  %v4787_v43 = vmax.f32 %v4786_v22, %v11891_v31  ;;  %v11924_v8 = vadd.f32 %v11435_v15, %v14436_v3  ;;  %v4793_v20 = vmax.f32 %v4792_v63, %v11898_v19  ;;  %v11928_v22 = vadd.f32 %v4535_v54, %v14413_v48  ;;  %v4473_v15 = vpop.f32.mrf.mxu0  ;;  %v14457_v63 = vld [vmem:[#allocation73_spill] sm:$0xff] }
 0x3f0   : > { %14431 = vst [vmem:[#allocation56_spill] sm:$0xff] %v11854_v62  ;;  %v14449_v62 = vld [vmem:[#allocation85_spill] sm:$0xff]  ;;  %v11937_v58 = vadd.f32 %v14454_v47, %v14439_v12  ;;  %v11944_v54 = vadd.f32 %v14457_v63, %v10833_v35  ;;  %v11955_v11 = vadd.f32 %v11458_v29, %v10722_v21  ;;  %v11961_v63 = vadd.f32 %v11499_v10, %v14361_v1 }
 0x3f1   : > { %14433 = vst [vmem:[#allocation58_spill] sm:$0xff] %v11859_v59  ;;  %vm2330_vm13 = vcmp.eq.f32.partialorder %v14449_v62, %v14422_v27  ;;  %v4665_v59 = vpop.f32.mrf.mxu3  ;;  %v4788_v62 = vmax.f32 %v4787_v43, %v11910_v37  ;;  %v4800_v43 = vmax.f32 %v11870_v56, %v11904_v33  ;;  %vm2331_vm15 = vcmp.eq.f32.partialorder %v14463_v39, %v14422_v27 }
 0x3f2   : > { %14438 = vst [vmem:[#allocation117_spill] sm:$0xff] %v11870_v56  ;;  %v2458_v53 = vsel %vm2330_vm13, %v14456_v7, 1024  ;;  %v4809_v29 = vmax.f32 %v11882_v25, %v11937_v58  ;;  %v4739_v10 = vmax.f32 %v11796_v40, %v11726_v4  ;;  %v11986_v39 = vadd.f32 %v4665_v59, %v14413_v48  ;;  %v14469_v40 = vld [vmem:[#allocation89_spill] sm:$0xff] }
 0x3f3   : > { %14441 = vst [vmem:[#allocation122_spill] sm:$0xff] %v11882_v25  ;;  %vm2786_vm14 = vcmp.lt.s32.totalorder %v2785_v24, %v2458_v53  ;;  %vm2332_vm0 = vcmp.eq.f32.partialorder %v14469_v40, %v14422_v27 }
 0x3f4   : > { %14442 = vst [vmem:[#allocation87_spill] sm:$0xff] %v11886_v41  ;;  %v14464_v41 = vld [vmem:[#allocation78_spill] sm:$0xff]  ;;  %v4740_v25 = vmax.f32 %v4739_v10, %v11961_v63  ;;  %v4748_v10 = vmax.f32 %v11876_v2, %v11780_v18 }
 0x3f5   : > { %14443 = vst [vmem:[#allocation61_spill] sm:$0xff] %v11891_v31  ;;  %v11933_v31 = vadd.f32 %v14452_v60, %v14436_v3  ;;  %v4794_v60 = vmax.f32 %v4793_v20, %v11907_v26  ;;  %v4801_v20 = vmax.f32 %v4800_v43, %v11924_v8  ;;  %v11974_v50 = vadd.f32 %v14464_v41, %v14439_v12 }
 0x3f6   : > { %14445 = vst [vmem:[#allocation91_spill] sm:$0xff] %v11898_v19  ;;  %4789 = vmax.xlane.f32.xlu0 %v4788_v62  ;;  %v4538_v62 = vpop.f32.mrf.mxu1  ;;  %v2787_v43 = vsel %vm2786_vm14, %v2785_v24, %v2458_v53  ;;  %v4713_v41 = vmax.f32 %v4712_v32, %v11955_v11  ;;  %v14470_v53 = vld [vmem:[#allocation32_spill] sm:$0xff]  ;;  %v12006_v32 = vadd.f32 %v11473_v28, %v10774_v16  ;;  %v14477_v28 = vld [vmem:[#allocation143_spill] sm:$0xff] }
 0x3f7   : > { %14446 = vst [vmem:[#allocation59_spill] sm:$0xff] %v11904_v33  ;;  %v4600_v33 = vpop.f32.mrf.mxu2  ;;  %v4795_v56 = vmax.f32 %v4794_v60, %v11928_v22  ;;  %v11980_v60 = vadd.f32 %v11529_v34, %v14361_v1  ;;  %v2459_v24 = vsel %vm2331_vm15, %v14470_v53, 1024  ;;  %v11996_v34 = vadd.f32 %v11537_v42, %v14361_v1  ;;  %v4476_v2 = vpop.f32.mrf.mxu0 }
 0x3f8   : > { %14447 = vst [vmem:[#allocation63_spill] sm:$0xff] %v11907_v26  ;;  %vm2788_vm11 = vcmp.lt.s32.totalorder %v2787_v43, %v2459_v24  ;;  %v12019_v4 = vadd.f32 %v14477_v28, %v14366_v38  ;;  %v14481_v28 = vld [vmem:[#allocation136_spill] sm:$0xff] }
 0x3f9   : > { %14448 = vst [vmem:[#allocation178_spill] sm:$0xff] %v11910_v37  ;;  %v14458_v37 = vld [vmem:[#allocation69_spill] sm:$0xff]  ;;  %v4741_v42 = vmax.f32 %v4740_v25, %v11980_v60  ;;  %v14479_v25 = vld [vmem:[#allocation124_spill] sm:$0xff] }
 0x3fa   : > { %14450 = vst [vmem:[#allocation85_spill] sm:$0xff] %v11924_v8  ;;  %v11951_v47 = vadd.f32 %v14458_v37, %v14439_v12  ;;  %v11966_v37 = vadd.f32 %v4600_v33, %v14413_v48  ;;  %v11983_v33 = vadd.f32 %v4473_v15, %v14436_v3  ;;  %v4802_v15 = vmax.f32 %v4801_v20, %v11933_v31 }
 0x3fb   : > { %14451 = vst [vmem:[#allocation179_spill] sm:$0xff] %v11928_v22  ;;  %v12000_v48 = vadd.f32 %v4538_v62, %v14436_v3  ;;  %v14473_v62 = vld [vmem:[#allocation67_spill] sm:$0xff] }
 0x3fc   : > { %14453 = vst [vmem:[#allocation65_spill] sm:$0xff] %v11933_v31  ;;  %v4803_v20 = vmax.f32 %v4802_v15, %v11983_v33  ;;  %v14474_v31 = vld [vmem:[#allocation42_spill] sm:$0xff]  ;;  %v2460_v15 = vsel %vm2332_vm0, %v14479_v25, 1024 }
 0x3fd   : > { %14455 = vst [vmem:[#allocation72_spill] sm:$0xff] %v11937_v58  ;;  %v4796_v58 = vmax.f32 %v4795_v56, %v11966_v37  ;;  %v4810_v56 = vmax.f32 %v4809_v29, %v11974_v50  ;;  %vm2336_vm1 = vcmp.eq.f32.partialorder %v14474_v31, %v14473_v62  ;;  %v14476_v29 = vld [vmem:[#allocation84_spill] sm:$0xff]  ;;  %v4742_v31 = vmax.f32 %v4741_v42, %v11996_v34  ;;  %v14485_v42 = vld [vmem:[#allocation150_spill] sm:$0xff] }
 0x3fe   : > { %14459 = vst [vmem:[#allocation15_spill] sm:$0xff] %v11951_v47  ;;  %v2464_v40 = vsel %vm2336_vm1, %v14434_v17, 1024 }
 0x3ff   : > { %14460 = vst [vmem:[#allocation73_spill] sm:$0xff] %v11955_v11  ;;  %v4797_v59 = vmax.f32 %v4796_v58, %v11986_v39  ;;  %v14475_v58 = vld [vmem:[#allocation6_spill] sm:$0xff]  ;;  %v4603_v8 = vpop.f32.mrf.mxu2  ;;  %v14478_v11 = vld [vmem:[#allocation92_spill] sm:$0xff] }
 0x400   : > { %14461 = vst [vmem:[#allocation69_spill] sm:$0xff] %v11961_v63  ;;  %v4668_v63 = vpop.f32.mrf.mxu3  ;;  %vm2337_vm2 = vcmp.eq.f32.partialorder %v14475_v58, %v14473_v62  ;;  %vm2333_vm3 = vcmp.eq.f32.partialorder %v14478_v11, %v14422_v27  ;;  %v12030_v58 = vadd.f32 %v4603_v8, %v14436_v3  ;;  %v12047_v8 = vadd.f32 %v4476_v2, %v14439_v12 }
 0x401   : > { %14462 = vst [vmem:[#allocation180_spill] sm:$0xff] %v11966_v37  ;;  %4798 = vmax.xlane.f32.xlu1 %v4797_v59  ;;  %v4804_v59 = vmax.f32 %v4803_v20, %v12000_v48  ;;  %v2465_v37 = vsel %vm2337_vm2, %v14435_v55, 1024  ;;  %v12044_v20 = vadd.f32 %v14485_v42, %v14366_v38  ;;  %v14491_v42 = vld [vmem:[#allocation153_spill] sm:$0xff] }
 0x402   : > { %14465 = vst [vmem:[#allocation36_spill] sm:$0xff] %v11974_v50  ;;  %v2529_v50 = vcvt.f32.s32 %v14476_v29  ;;  %v2789_v29 = vsel %vm2788_vm11, %v2787_v43, %v2459_v24  ;;  %v12050_v43 = vadd.f32 %v4668_v63, %v14436_v3  ;;  %vm2812_vm5 = vcmp.lt.s32.totalorder %v2464_v40, %v2465_v37 }
 0x403   : > { %14466 = vst [vmem:[#allocation78_spill] sm:$0xff] %v11980_v60  ;;  %v12034_v60 = vadd.f32 %v14481_v28, %v10722_v21  ;;  %v4805_v24 = vmax.f32 %v4804_v59, %v12030_v58  ;;  %vm2790_vm4 = vcmp.lt.s32.totalorder %v2789_v29, %v2460_v15 }
 0x404   : > { %14467 = vst [vmem:[#allocation181_spill] sm:$0xff] %v11983_v33  ;;  %v14483_v33 = vld [vmem:[#allocation142_spill] sm:$0xff] }
 0x405   : > { %14468 = vst [vmem:[#allocation182_spill] sm:$0xff] %v11986_v39  ;;  %v12038_v57 = vadd.f32 %v14483_v33, %v14361_v1  ;;  %v4541_v39 = vpop.f32.mrf.mxu1  ;;  %v4749_v1 = vmax.f32 %v4748_v10, %v12019_v4  ;;  %v14489_v33 = vld [vmem:[#allocation137_spill] sm:$0xff]  ;;  %v4806_v63 = vmax.f32 %v4805_v24, %v12050_v43  ;;  %v14494_v10 = vmax.f32 %v11776_v45, %v11674_v23  ;;  %v14497_v24 = vld [vmem:[#allocation126_spill] sm:$0xff] }
 0x406   : > { %14471 = vst [vmem:[#allocation89_spill] sm:$0xff] %v11996_v34  ;;  %v12056_v28 = vadd.f32 %v14489_v33, %v10722_v21  ;;  %v4811_v34 = vmax.f32 %v4810_v56, %v11951_v47  ;;  %v12064_v2 = vadd.f32 %v4541_v39, %v14439_v12  ;;  %v14495_v33 = vld [vmem:[#allocation80_spill] sm:$0xff]  ;;  %v4714_v39 = vmax.f32 %v4713_v41, %v12034_v60 }
 0x407   : > { %14472 = vst [vmem:[#allocation32_spill] sm:$0xff] %v12000_v48  ;;  %v12061_v48 = vadd.f32 %v14491_v42, %v14366_v38  ;;  %v4743_v3 = vmax.f32 %v4742_v31, %v12038_v57  ;;  %v4722_v59 = vmax.f32 %v14494_v10, %v12006_v32  ;;  %v12074_v56 = vadd.f32 %v14495_v33, %v10794_v52  ;;  %v14498_v33 = vld [vmem:[#allocation86_spill] sm:$0xff] }
 0x408   : > { %14480 = vst [vmem:[#allocation67_spill] sm:$0xff] %v12030_v58  ;;  %v4757_v42 = vmax.f32 %v11894_v5, %v11790_v0  ;;  %v4750_v58 = vmax.f32 %v4749_v1, %v12044_v20  ;;  %v4812_v31 = vmax.f32 %v4811_v34, %v12047_v8  ;;  %4807 = vmax.xlane.f32.xlu2 %v4806_v63  ;;  %v2461_v45 = vsel %vm2333_vm3, %v14497_v24, 1024  ;;  %v4671_v5 = vpop.f32.mrf.mxu3  ;;  %v14500_v1 = vld [vmem:[#allocation31_spill] sm:$0xff] }
 0x409   : > { %14482 = vst [vmem:[#allocation42_spill] sm:$0xff] %v12034_v60  ;;  %4744 = vmax.xlane.f32.xlu1 %v4743_v3  ;;  %v2530_v10 = vshll.u32 %v2529_v50, 16  ;;  %v2791_v41 = vsel %vm2790_vm4, %v2789_v29, %v2460_v15  ;;  %vm2338_vm6 = vcmp.eq.f32.partialorder %v14500_v1, %v14473_v62  ;;  %v4715_v34 = vmax.f32 %v4714_v39, %v12056_v28  ;;  %v14502_v50 = vld [vmem:[#allocation130_spill] sm:$0xff]  ;;  %v14506_v15 = vld [vmem:[#allocation140_spill] sm:$0xff]  ;;  %v2527_v39 = vpop.xlane.xlu0 %2526 }
 0x40a   : > { %14484 = vst [vmem:[#allocation6_spill] sm:$0xff] %v12038_v57  ;;  %v4606_v57 = vpop.f32.mrf.mxu2  ;;  %v4751_v3 = vmax.f32 %v4750_v58, %v12061_v48  ;;  %v4813_v63 = vmax.f32 %v4812_v31, %v12064_v2  ;;  %v12108_v29 = vadd.f32 %v14506_v15, %v10774_v16  ;;  %v2813_v58 = vsel %vm2812_vm5, %v2464_v40, %v2465_v37  ;;  %v14507_v31 = vld [vmem:[#allocation147_spill] sm:$0xff]  ;;  %v14511_v15 = vld [vmem:[#allocation154_spill] sm:$0xff] }
 0x40b   : > { %14486 = vst [vmem:[#allocation84_spill] sm:$0xff] %v12044_v20  ;;  %v12096_v11 = vadd.f32 %v4606_v57, %v14439_v12  ;;  %v12116_v57 = vadd.f32 %v4671_v5, %v14439_v12  ;;  %v12125_v60 = vadd.f32 %v14511_v15, %v14382_v36  ;;  %vm2792_vm8 = vcmp.lt.s32.totalorder %v2791_v41, %v2461_v45 }
 0x40c   : > { %14487 = vst [vmem:[#allocation143_spill] sm:$0xff] %v12047_v8  ;;  %v14504_v8 = vld [vmem:[#allocation148_spill] sm:$0xff]  ;;  %v4723_v1 = vmax.f32 %v4722_v59, %v12108_v29 }
 0x40d   : > { %14488 = vst [vmem:[#allocation92_spill] sm:$0xff] %v12050_v43  ;;  %v12087_v43 = vadd.f32 %v14498_v33, %v10794_v52  ;;  %v12100_v33 = vadd.f32 %v14502_v50, %v10722_v21  ;;  %v12104_v47 = vadd.f32 %v14504_v8, %v14382_v36  ;;  %v4814_v21 = vmax.f32 %v4813_v63, %v12096_v11  ;;  %v14510_v8 = vld [vmem:[#allocation141_spill] sm:$0xff] }
 0x40e   : > { %14490 = vst [vmem:[#allocation124_spill] sm:$0xff] %v12056_v28  ;;  %v2528_v50 = vcvt.f32.s32 %v2527_v39  ;;  %v12121_v28 = vadd.f32 %v14510_v8, %v10774_v16  ;;  %v14513_v63 = vmax.f32 %v11641_v46, %v11601_v51  ;;  %v14514_v8 = vld [vmem:[#allocation166_spill] sm:$0xff]  ;;  %v14517_v46 = vld [vmem:[#allocation128_spill] sm:$0xff] }
 0x40f   : > { %14492 = vst [vmem:[#allocation136_spill] sm:$0xff] %v12061_v48  ;;  %v4716_v12 = vmax.f32 %v4715_v34, %v12100_v33  ;;  %v4815_v5 = vmax.f32 %v4814_v21, %v12116_v57  ;;  %v12141_v15 = vadd.f32 %v14514_v8, %v14382_v36  ;;  %v14516_v34 = vld [vmem:[#allocation93_spill] sm:$0xff]  ;;  %v2793_v21 = vsel %vm2792_vm8, %v2791_v41, %v2461_v45  ;;  %v14522_v8 = vld [vmem:[#allocation132_spill] sm:$0xff] }
 0x410   : > { %14493 = vst [vmem:[#allocation142_spill] sm:$0xff] %v12064_v2  ;;  %v12113_v2 = vadd.f32 %v14507_v31, %v14366_v38  ;;  %v2466_v38 = vsel %vm2338_vm6, %v14456_v7, 1024  ;;  %v2531_v37 = vadd.s32 %v2530_v10, %v2528_v50  ;;  %v4695_v39 = vmax.f32 %v14513_v63, %v11944_v54  ;;  %v14518_v50 = vld [vmem:[#allocation43_spill] sm:$0xff]  ;;  %v14524_v45 = vld [vmem:[#allocation96_spill] sm:$0xff]  ;;  %v14525_v41 = vld [vmem:[#allocation29_spill] sm:$0xff] }
 0x411   : > { %14496 = vst [vmem:[#allocation150_spill] sm:$0xff] %v12074_v56  ;;  %v4758_v31 = vmax.f32 %v4757_v42, %v12104_v47  ;;  %vm2814_vm9 = vcmp.lt.s32.totalorder %v2813_v58, %v2466_v38  ;;  %v4687_v10 = vmax.f32 %v11916_v44, %v12074_v56  ;;  %4717 = vmax.xlane.f32.xlu1 %v4716_v12  ;;  %v14519_v44 = vld [vmem:[#allocation75_spill] sm:$0xff] }
 0x412   : > { %14499 = vst [vmem:[#allocation137_spill] sm:$0xff] %v12087_v43  ;;  %v4752_v40 = vmax.f32 %v4751_v3, %v12113_v2  ;;  %vm2334_vm10 = vcmp.eq.f32.partialorder %v14516_v34, %v14422_v27  ;;  %v2557_v3 = vcvt.f32.s32 %v14517_v46  ;;  %4816 = vmax.xlane.f32.xlu0 %v4815_v5  ;;  %vm2339_vm12 = vcmp.eq.f32.partialorder %v14518_v50, %v14473_v62  ;;  %v14521_v63 = vld [vmem:[#allocation111_spill] sm:$0xff]  ;;  %v14526_v46 = vld [vmem:[#allocation90_spill] sm:$0xff] }
 0x413   : > { %14501 = vst [vmem:[#allocation153_spill] sm:$0xff] %v12096_v11  ;;  %v4759_v42 = vmax.f32 %v4758_v31, %v12125_v60  ;;  %v12156_v59 = vadd.f32 %v14519_v44, %v10794_v52  ;;  %v4724_v12 = vmax.f32 %v4723_v1, %v12121_v28  ;;  %v12162_v34 = vadd.f32 %v14522_v8, %v14521_v63  ;;  %v14529_v1 = vld [vmem:[#allocation144_spill] sm:$0xff]  ;;  %v14531_v44 = vld [vmem:[#allocation151_spill] sm:$0xff] }
 0x414   : > { %14503 = vst [vmem:[#allocation80_spill] sm:$0xff] %v12100_v33  ;;  %4753 = vmax.xlane.f32.xlu2 %v4752_v40  ;;  %v2815_v40 = vsel %vm2814_vm9, %v2813_v58, %v2466_v38  ;;  %vm2335_vm13 = vcmp.eq.f32.partialorder %v14524_v45, %v14422_v27  ;;  %v2462_v31 = vsel %vm2334_vm10, %v14525_v41, 1024  ;;  %v12170_v52 = vadd.f32 %v14526_v46, %v10833_v35  ;;  %v14533_v46 = vld [vmem:[#allocation129_spill] sm:$0xff]  ;;  %v14556_v27 = vld [vmem:[#allocation138_spill] sm:$0xff] }
 0x415   : > { %14505 = vst [vmem:[#allocation126_spill] sm:$0xff] %v12104_v47  ;;  %v4760_v5 = vmax.f32 %v4759_v42, %v12141_v15  ;;  %vm2794_vm14 = vcmp.lt.s32.totalorder %v2793_v21, %v2462_v31  ;;  %v2467_v58 = vsel %vm2339_vm12, %v14470_v53, 1024  ;;  %v2558_v38 = vshll.u32 %v2557_v3, 16  ;;  %v14539_v47 = vld [vmem:[#allocation94_spill] sm:$0xff] }
 0x416   : > { %14508 = vst [vmem:[#allocation86_spill] sm:$0xff] %v12113_v2  ;;  %v12179_v42 = vadd.f32 %v14529_v1, %v14521_v63  ;;  %v12183_v8 = vadd.f32 %v14531_v44, %v14382_v36  ;;  %vm2816_vm15 = vcmp.lt.s32.totalorder %v2815_v40, %v2467_v58  ;;  %v12187_v11 = vadd.f32 %v14533_v46, %v10833_v35 }
 0x417   : > { %14509 = vst [vmem:[#allocation31_spill] sm:$0xff] %v12116_v57  ;;  %v2555_v57 = vpop.xlane.xlu2 %2554  ;;  %v14534_v3 = vmax.f32 %v11786_v9, %v11706_v49  ;;  %v12246_v45 = vadd.f32 %v14556_v27, %v14521_v63  ;;  %v2583_v27 = vpop.xlane.xlu1 %2582  ;;  %vm13892_vm9 = vcmask 15368   ;;  %v14599_v49 = vld [vmem:[#allocation38_spill] sm:$0xff] }
 0x418   : > { %14512 = vst [vmem:[#allocation130_spill] sm:$0xff] %v12125_v60  ;;  %v4761_v44 = vmax.f32 %v4760_v5, %v12183_v8  ;;  %v14537_v60 = vld [vmem:[#allocation95_spill] sm:$0xff]  ;;  %v14541_v5 = vld [vmem:[#allocation121_spill] sm:$0xff] }
 0x419   : > { %14515 = vst [vmem:[#allocation148_spill] sm:$0xff] %v12141_v15  ;;  %v4731_v1 = vmax.f32 %v14534_v3, %v12162_v34  ;;  %v14535_v15 = vld [vmem:[#allocation146_spill] sm:$0xff]  ;;  %vm2340_vm0 = vcmp.eq.f32.partialorder %v14537_v60, %v14473_v62 }
 0x41a   : > { %2969 = vst.msk [vmem:[#allocation3] sm:$0xff] %vm13893_vm7, %v2531_v37  ;;  %v4688_v37 = vmax.f32 %v4687_v10, %v12087_v43  ;;  %v14527_v10 = vld [vmem:[#allocation134_spill] sm:$0xff]  ;;  %v12197_v36 = vadd.f32 %v14535_v15, %v14521_v63  ;;  %4762 = vmax.xlane.f32.xlu0 %v4761_v44  ;;  %v2795_v15 = vsel %vm2794_vm14, %v2793_v21, %v2462_v31  ;;  %v14548_v31 = vld [vmem:[#allocation37_spill] sm:$0xff]  ;;  %v14552_v44 = vld [vmem:[#allocation79_spill] sm:$0xff] }
 0x41b   : > { %14520 = vst [vmem:[#allocation140_spill] sm:$0xff] %v12156_v59  ;;  %v12174_v50 = vadd.f32 %v14527_v10, %v10774_v16  ;;  %v2556_v16 = vcvt.f32.s32 %v2555_v57  ;;  %v4696_v57 = vmax.f32 %v4695_v39, %v12170_v52  ;;  %v4732_v9 = vmax.f32 %v4731_v1, %v12179_v42  ;;  %v14543_v60 = vld [vmem:[#allocation118_spill] sm:$0xff] }
 0x41c   : > { %14523 = vst [vmem:[#allocation147_spill] sm:$0xff] %v12162_v34  ;;  %v4689_v10 = vmax.f32 %v4688_v37, %v12156_v59  ;;  %v2817_v37 = vsel %vm2816_vm15, %v2815_v40, %v2467_v58  ;;  %v14546_v40 = vld [vmem:[#allocation74_spill] sm:$0xff] }
 0x41d   : > { %14528 = vst [vmem:[#allocation141_spill] sm:$0xff] %v12174_v50  ;;  %v4725_v33 = vmax.f32 %v4724_v12, %v12174_v50  ;;  %v2559_v46 = vadd.s32 %v2558_v38, %v2556_v16  ;;  %v14538_v12 = vld [vmem:[#allocation35_spill] sm:$0xff]  ;;  %v12222_v58 = vadd.f32 %v14546_v40, %v14543_v60  ;;  %v4733_v21 = vmax.f32 %v4732_v9, %v12197_v36 }
 0x41e   : > { %14530 = vst [vmem:[#allocation154_spill] sm:$0xff] %v12179_v42  ;;  %4690 = vmax.xlane.f32.xlu1 %v4689_v10  ;;  %v12205_v0 = vadd.f32 %v14539_v47, %v14538_v12  ;;  %v12211_v3 = vadd.f32 %v14541_v5, %v14538_v12  ;;  %v2468_v47 = vsel %vm2340_vm0, %v14479_v25, 1024  ;;  %v2463_v38 = vsel %vm2335_vm13, %v14548_v31, 1024  ;;  %v14551_v10 = vld [vmem:[#allocation171_spill] sm:$0xff] }
 0x41f   : > { %14532 = vst [vmem:[#allocation166_spill] sm:$0xff] %v12183_v8  ;;  %4726 = vmax.xlane.f32.xlu2 %v4725_v33  ;;  %v14544_v8 = vld [vmem:[#allocation26_spill] sm:$0xff]  ;;  %v4697_v33 = vmax.f32 %v4696_v57, %v12187_v11  ;;  %vm2818_vm11 = vcmp.lt.s32.totalorder %v2817_v37, %v2468_v47  ;;  %v12237_v57 = vadd.f32 %v14552_v44, %v10833_v35  ;;  %v14554_v5 = vld [vmem:[#allocation131_spill] sm:$0xff] }
 0x420   : > { %14536 = vst [vmem:[#allocation93_spill] sm:$0xff] %v12197_v36  ;;  %v12215_v39 = vadd.f32 %v14544_v8, %v14543_v60  ;;  %v14549_v8 = vld [vmem:[#allocation11_spill] sm:$0xff]  ;;  %vm2796_vm1 = vcmp.lt.s32.totalorder %v2795_v15, %v2463_v38  ;;  %v12242_v40 = vadd.f32 %v14554_v5, %v14543_v60  ;;  %v2819_v44 = vsel %vm2818_vm11, %v2817_v37, %v2468_v47  ;;  %v14561_v47 = vld [vmem:[#allocation46_spill] sm:$0xff] }
 0x421   : > { %14540 = vst [vmem:[#allocation128_spill] sm:$0xff] %v12205_v0  ;;  %v12231_v16 = vadd.f32 %v14549_v8, %v14538_v12  ;;  %v14558_v8 = vld [vmem:[#allocation97_spill] sm:$0xff]  ;;  %v4698_v35 = vmax.f32 %v4697_v33, %v12237_v57  ;;  %v4734_v5 = vmax.f32 %v4733_v21, %v12246_v45  ;;  %v12259_v56 = vsel %vm2796_vm1, %v2795_v15, %v2463_v38  ;;  %v14563_v15 = vld [vmem:[#allocation64_spill] sm:$0xff] }
 0x422   : > { %14542 = vst [vmem:[#allocation43_spill] sm:$0xff] %v12211_v3  ;;  %v4703_v1 = vmax.f32 %v14551_v10, %v12215_v39  ;;  %vm2341_vm2 = vcmp.eq.f32.partialorder %v14558_v8, %v14473_v62  ;;  %v4674_v10 = vmax.f32 %v12205_v0, %v12211_v3  ;;  %v2584_v37 = vcvt.f32.s32 %v2583_v27 }
 0x423   : > { %14545 = vst [vmem:[#allocation75_spill] sm:$0xff] %v12215_v39  ;;  %v2469_v8 = vsel %vm2341_vm2, %v14497_v24, 1024  ;;  %4735 = vmax.xlane.f32.xlu0 %v4734_v5  ;;  %v2799_v21 = vshra.s32 %v12259_v56, 16  ;;  %v12271_v38 = vadd.f32 %v14563_v15, %v14538_v12  ;;  %v14566_v5 = vld [vmem:[#allocation76_spill] sm:$0xff]  ;;  %v14570_v15 = vld [vmem:[#allocation139_spill] sm:$0xff] }
 0x424   : > { %2970 = vst.msk [vmem:[#allocation3 + $0x8] sm:$0xff] %vm13893_vm7, %v2559_v46  ;;  %v14553_v46 = vld [vmem:[#allocation135_spill] sm:$0xff]  ;;  %v4704_v59 = vmax.f32 %v4703_v1, %v12222_v58  ;;  %v4675_v63 = vmax.f32 %v4674_v10, %v12231_v16  ;;  %vm2820_vm3 = vcmp.lt.s32.totalorder %v2819_v44, %v2469_v8  ;;  %v12266_v1 = vadd.f32 %v14561_v47, %v14538_v12  ;;  %v14568_v47 = vld [vmem:[#allocation88_spill] sm:$0xff] }
 0x425   : > { %14547 = vst [vmem:[#allocation111_spill] sm:$0xff] %v12222_v58  ;;  %v2585_v9 = vcvt.f32.s32 %v14553_v46  ;;  %v14559_v46 = vld [vmem:[#allocation133_spill] sm:$0xff]  ;;  %v12279_v27 = vadd.f32 %v14566_v5, %v14538_v12  ;;  %v2613_v42 = vcvt.f32.s32 %v14570_v15 }
 0x426   : > { %14550 = vst [vmem:[#allocation132_spill] sm:$0xff] %v12231_v16  ;;  %v12256_v43 = vadd.f32 %v14559_v46, %v14543_v60  ;;  %v4705_v33 = vmax.f32 %v4704_v59, %v12242_v40  ;;  %v2821_v59 = vsel %vm2820_vm3, %v2819_v44, %v2469_v8  ;;  %v4676_v46 = vmax.f32 %v4675_v63, %v12266_v1  ;;  %v14571_v63 = vld [vmem:[#allocation83_spill] sm:$0xff] }
 0x427   : > { %14555 = vst [vmem:[#allocation96_spill] sm:$0xff] %v12242_v40  ;;  %4699 = vmax.xlane.f32.xlu2 %v4698_v35  ;;  %v2586_v36 = vshll.u32 %v2585_v9, 16  ;;  %v14565_v9 = vld [vmem:[#allocation98_spill] sm:$0xff]  ;;  %v12293_v8 = vadd.f32 %v14571_v63, %v14538_v12 }
 0x428   : > { %14557 = vst [vmem:[#allocation29_spill] sm:$0xff] %v12246_v45  ;;  %v4706_v10 = vmax.f32 %v4705_v33, %v12256_v43  ;;  %vm2342_vm4 = vcmp.eq.f32.partialorder %v14565_v9, %v14473_v62  ;;  %v12283_v45 = vadd.f32 %v14568_v47, %v14543_v60  ;;  %v12287_v33 = vcvt.s32.f32 %v2799_v21  ;;  %v14573_v21 = vld [vmem:[#allocation101_spill] sm:$0xff] }
 0x429   : > { %14560 = vst [vmem:[#allocation90_spill] sm:$0xff] %v12256_v43  ;;  %v2587_v35 = vadd.s32 %v2586_v36, %v2584_v37  ;;  %v2470_v36 = vsel %vm2342_vm4, %v14525_v41, 1024  ;;  %v4677_v44 = vmax.f32 %v4676_v46, %v12271_v38  ;;  %vm2343_vm6 = vcmp.eq.f32.partialorder %v14573_v21, %v14473_v62 }
 0x42a   : > { %14562 = vst [vmem:[#allocation134_spill] sm:$0xff] %v12266_v1  ;;  %v4707_v37 = vmax.f32 %v4706_v10, %v12283_v45  ;;  %vm2822_vm5 = vcmp.lt.s32.totalorder %v2821_v59, %v2470_v36  ;;  %v2614_v9 = vshll.u32 %v2613_v42, 16  ;;  %v2471_v63 = vsel %vm2343_vm6, %v14548_v31, 1024  ;;  %v14574_v10 = vld [vmem:[#allocation71_spill] sm:$0xff]  ;;  %v2639_v42 = vpop.xlane.xlu2 %2638 }
 0x42b   : > { %14564 = vst [vmem:[#allocation144_spill] sm:$0xff] %v12271_v38  ;;  %v4678_v60 = vmax.f32 %v4677_v44, %v12279_v27  ;;  %v2823_v47 = vsel %vm2822_vm5, %v2821_v59, %v2470_v36  ;;  %v14600_v38 = vld [vmem:[#allocation13_spill] sm:$0xff] }
 0x42c   : > { %14567 = vst [vmem:[#allocation151_spill] sm:$0xff] %v12279_v27  ;;  %4708 = vmax.xlane.f32.xlu0 %v4707_v37  ;;  %vm2824_vm8 = vcmp.lt.s32.totalorder %v2823_v47, %v2471_v63  ;;  %v14576_v37 = vld [vmem:[#allocation145_spill] sm:$0xff] }
 0x42d   : > { %14569 = vst [vmem:[#allocation129_spill] sm:$0xff] %v12283_v45  ;;  %v4679_v46 = vmax.f32 %v4678_v60, %v12293_v8  ;;  %v12304_v45 = vadd.f32 %v14574_v10, %v14538_v12  ;;  %v2641_v43 = vcvt.f32.s32 %v14576_v37  ;;  %v12309_v62 = vsel %vm2824_vm8, %v2823_v47, %v2471_v63  ;;  %v14577_v12 = vld [vmem:[#allocation149_spill] sm:$0xff]  ;;  %v14578_v63 = vld [vmem:[#allocation152_spill] sm:$0xff] }
 0x42e   : > { %2971 = vst.msk [vmem:[#allocation3 + $0x10] sm:$0xff] %vm13893_vm7, %v2587_v35  ;;  %v2611_v35 = vpop.xlane.xlu0 %2610  ;;  %v2827_v59 = vshra.s32 %v12309_v62, 16  ;;  %v2640_v60 = vcvt.f32.s32 %v2639_v42  ;;  %v2697_v10 = vcvt.f32.s32 %v14578_v63  ;;  %v2781_v63 = vcvt.f32.s32 %v11851_v6  ;;  %v14582_v6 = vld [vmem:[#allocation68_spill] sm:$0xff] }
 0x42f   : > { %14572 = vst [vmem:[#allocation146_spill] sm:$0xff] %v12293_v8  ;;  %2802 = vmin.xlane.f32.xlu2 %v12287_v33  ;;  %v2612_v5 = vcvt.f32.s32 %v2611_v35  ;;  %v4680_v44 = vmax.f32 %v4679_v46, %v12304_v45  ;;  %v2642_v36 = vshll.u32 %v2641_v43, 16 }
 0x430   : > { %14575 = vst [vmem:[#allocation95_spill] sm:$0xff] %v12304_v45  ;;  %v12312_v21 = vcvt.s32.f32 %v2827_v59  ;;  %v2698_v43 = vshll.u32 %v2697_v10, 16  ;;  %v14579_v59 = vld [vmem:[#allocation16_spill] sm:$0xff] }
 0x431   : > { %v2615_v15 = vadd.s32 %v2614_v9, %v2612_v5  ;;  %v2643_v35 = vadd.s32 %v2642_v36, %v2640_v60  ;;  %v2669_v9 = vcvt.f32.s32 %v14577_v12  ;;  %v2667_v5 = vpop.xlane.xlu1 %2666  ;;  %v2725_v36 = vcvt.f32.s32 %v14579_v59  ;;  %v14583_v59 = vld [vmem:[#allocation44_spill] sm:$0xff] }
 0x432   : > { %vm2344_vm10 = vcmp.eq.f32.partialorder %v14583_v59, %v14582_v6  ;;  %v14591_v59 = vld [vmem:[#allocation19_spill] sm:$0xff] }
 0x433   : > { %2972 = vst.msk [vmem:[#allocation3 + $0x18] sm:$0xff] %vm13893_vm7, %v2615_v15  ;;  %v2670_v46 = vshll.u32 %v2669_v9, 16  ;;  %v2668_v15 = vcvt.f32.s32 %v2667_v5  ;;  %v2753_v9 = vcvt.f32.s32 %v11754_v30  ;;  %v2782_v30 = vshll.u32 %v2781_v63, 16  ;;  %v14588_v63 = vld [vmem:[#allocation39_spill] sm:$0xff] }
 0x434   : > { %4681 = vmax.xlane.f32.xlu0 %v4680_v44  ;;  %2973 = vst.msk [vmem:[#allocation3 + $0x20] sm:$0xff] %vm13893_vm7, %v2643_v35  ;;  %v2726_v35 = vshll.u32 %v2725_v36, 16  ;;  %v14584_v36 = vld [vmem:[#allocation27_spill] sm:$0xff]  ;;  %vm2347_vm0 = vcmp.eq.f32.partialorder %v14588_v63, %v14582_v6 }
 0x435   : > { %v2671_v47 = vadd.s32 %v2670_v46, %v2668_v15  ;;  %v2754_v46 = vshll.u32 %v2753_v9, 16  ;;  %vm2345_vm12 = vcmp.eq.f32.partialorder %v14584_v36, %v14582_v6  ;;  %v14585_v9 = vld [vmem:[#allocation18_spill] sm:$0xff]  ;;  %v14592_v36 = vld [vmem:[#allocation100_spill] sm:$0xff] }
 0x436   : > { %v2695_v44 = vpop.xlane.xlu0 %2694  ;;  %vm2346_vm14 = vcmp.eq.f32.partialorder %v14585_v9, %v14582_v6  ;;  %vm2348_vm3 = vcmp.eq.f32.partialorder %v14592_v36, %v14582_v6  ;;  %v14595_v36 = vld [vmem:[#allocation103_spill] sm:$0xff] }
 0x437   : > { %2974 = vst.msk [vmem:[#allocation3 + $0x28] sm:$0xff] %vm13893_vm7, %v2671_v47  ;;  %v2696_v37 = vcvt.f32.s32 %v2695_v44  ;;  %vm2349_vm6 = vcmp.eq.f32.partialorder %v14595_v36, %v14582_v6 }
 0x438   : > { %v2477_v8 = vsel %vm2349_vm6, %v14497_v24, 1024 }
 0x439   : > { %v2699_v42 = vadd.s32 %v2698_v43, %v2696_v37 }
 0x43a   : > { %v2723_v60 = vpop.xlane.xlu2 %2722 }
 0x43b   : > { %2975 = vst.msk [vmem:[#allocation3 + $0x30] sm:$0xff] %vm13893_vm7, %v2699_v42  ;;  %v2724_v12 = vcvt.f32.s32 %v2723_v60  ;;  %v2472_v60 = vsel %vm2344_vm10, %v14434_v17, 1024 }
 0x43c   : > { %2830 = vmin.xlane.f32.xlu0 %v12312_v21 }
 0x43d   : > { %v2727_v45 = vadd.s32 %v2726_v35, %v2724_v12  ;;  %v2473_v35 = vsel %vm2345_vm12, %v14435_v55, 1024 }
 0x43e   : > { %vm2840_vm13 = vcmp.lt.s32.totalorder %v2472_v60, %v2473_v35 }
 0x43f   : > { %2976 = vst.msk [vmem:[#allocation3 + $0x38] sm:$0xff] %vm13893_vm7, %v2727_v45 }
 0x44b   : > { %v2751_v5 = vpop.xlane.xlu1 %2750 }
 0x44c   : > { %v2752_v15 = vcvt.f32.s32 %v2751_v5  ;;  %v2841_v5 = vsel %vm2840_vm13, %v2472_v60, %v2473_v35  ;;  %vm2350_vm13 = vcmp.eq.f32.partialorder %v14599_v49, %v14582_v6 }
 0x44d   : > { %v2478_v16 = vsel %vm2350_vm13, %v14525_v41, 1024 }
 0x44e   : > { %v2755_v47 = vadd.s32 %v2754_v46, %v2752_v15  ;;  %v2474_v46 = vsel %vm2346_vm14, %v14456_v7, 1024 }
 0x44f   : > { %vm2842_vm15 = vcmp.lt.s32.totalorder %v2841_v5, %v2474_v46 }
 0x450   : > { %2977 = vst.msk [vmem:[#allocation3 + $0x40] sm:$0xff] %vm13893_vm7, %v2755_v47 }
 0x454   : > { %v12325_v10 = vpop.xlane.xlu1 %4771 }
 0x455   : > { %5533 = vst.msk [vmem:[#allocation2 + $0x50] sm:$0xff] %vm13892_vm9, %v12325_v10 }
 0x45b   : > { %v12329_v44 = vpop.xlane.xlu2 %4780 }
 0x45c   : > { %14580 = vst [vmem:[#allocation35_spill] sm:$0xff] %v12329_v44 }
 0x45d   : > { %5534 = vst.msk [vmem:[#allocation2 + $0x58] sm:$0xff] %vm13892_vm9, %v12329_v44 }
 0x461   : > { %v2779_v43 = vpop.xlane.xlu0 %2778 }
 0x462   : > { %v2780_v45 = vcvt.f32.s32 %v2779_v43  ;;  %v2843_v43 = vsel %vm2842_vm15, %v2841_v5, %v2474_v46 }
 0x464   : > { %v2783_v37 = vadd.s32 %v2782_v30, %v2780_v45  ;;  %v2475_v30 = vsel %vm2347_vm0, %v14470_v53, 1024  ;;  %v14589_v45 = vld [vmem:[#allocation66_spill] sm:$0xff] }
 0x465   : > { %vm2844_vm11 = vcmp.lt.s32.totalorder %v2843_v43, %v2475_v30  ;;  %vm2353_vm2 = vcmp.eq.f32.partialorder %v14591_v59, %v14589_v45  ;;  %v2476_v59 = vsel %vm2348_vm3, %v14479_v25, 1024  ;;  %vm2355_vm14 = vcmp.eq.f32.partialorder %v14600_v38, %v14589_v45  ;;  %v14601_v38 = vld [vmem:[#allocation106_spill] sm:$0xff] }
 0x466   : > { %2978 = vst.msk [vmem:[#allocation3 + $0x48] sm:$0xff] %vm13893_vm7, %v2783_v37  ;;  %v14590_v37 = vld [vmem:[#allocation22_spill] sm:$0xff]  ;;  %v2845_v60 = vsel %vm2844_vm11, %v2843_v43, %v2475_v30  ;;  %v2481_v9 = vsel %vm2353_vm2, %v14435_v55, 1024  ;;  %v2483_v0 = vsel %vm2355_vm14, %v14470_v53, 1024  ;;  %vm2351_vm0 = vcmp.eq.f32.partialorder %v14601_v38, %v14582_v6 }
 0x467   : > { %vm2352_vm1 = vcmp.eq.f32.partialorder %v14590_v37, %v14589_v45  ;;  %vm2846_vm4 = vcmp.lt.s32.totalorder %v2845_v60, %v2476_v59 }
 0x468   : > { %v2480_v35 = vsel %vm2352_vm1, %v14434_v17, 1024 }
 0x469   : > { %v12334_v42 = vpop.xlane.xlu0 %4789  ;;  %vm2868_vm5 = vcmp.lt.s32.totalorder %v2480_v35, %v2481_v9 }
 0x46a   : > { %14581 = vst [vmem:[#allocation94_spill] sm:$0xff] %v12334_v42  ;;  %v2869_v44 = vsel %vm2868_vm5, %v2480_v35, %v2481_v9  ;;  %v12410_v9 = vld [vmem:[#allocation2 + $0x50] sm:$0xff] }
 0x46b   : > { %5535 = vst.msk [vmem:[#allocation2 + $0x60] sm:$0xff] %vm13892_vm9, %v12334_v42  ;;  %v14596_v42 = vld [vmem:[#allocation4_spill] sm:$0xff] }
 0x46c   : > { %vm2354_vm8 = vcmp.eq.f32.partialorder %v14596_v42, %v14589_v45 }
 0x46d   : > { %v2482_v40 = vsel %vm2354_vm8, %v14456_v7, 1024 }
 0x46e   : > { %vm2870_vm12 = vcmp.lt.s32.totalorder %v2869_v44, %v2482_v40 }
 0x474   : > { %v12344_v12 = vpop.xlane.xlu1 %4798 }
 0x475   : > { %5536 = vst.msk [vmem:[#allocation2 + $0x68] sm:$0xff] %vm13892_vm9, %v12344_v12 }
 0x47b   : > { %v12353_v47 = vpop.xlane.xlu2 %4807 }
 0x47c   : > { %v12351_v15 = vpop.xlane.xlu1 %4744  ;;  %14587 = vst [vmem:[#allocation118_spill] sm:$0xff] %v12353_v47  ;;  %v12383_v43 = vld [vmem:[#allocation2 + $0x68] sm:$0xff] }
 0x47d   : > { %14586 = vst [vmem:[#allocation121_spill] sm:$0xff] %v12351_v15 }
 0x47e   : > { %5530 = vst.msk [vmem:[#allocation2 + $0x38] sm:$0xff] %vm13892_vm9, %v12351_v15  ;;  %v12393_v15 = vld [vmem:[#allocation2 + $0x60] sm:$0xff] }
 0x47f   : > { %5537 = vst.msk [vmem:[#allocation2 + $0x70] sm:$0xff] %vm13892_vm9, %v12353_v47  ;;  %v5600_v47 = vmin.f32 %v12383_v43, 0.0  ;;  %v5599_v58 = vmin.f32 %v12393_v15, 0.0  ;;  %vm5583_vm14 = vcmp.gt.f32.partialorder %v12393_v15, 0.0 }
 0x481   : > { %v5629_v35 = vmul.f32 1.442695, %v5600_v47  ;;  %v2871_v47 = vsel %vm2870_vm12, %v2869_v44, %v2482_v40  ;;  %v5627_v1 = vmul.f32 1.442695, %v5599_v58  ;;  %vm5584_vm12 = vcmp.gt.f32.partialorder %v12383_v43, 0.0 }
 0x482   : > { %vm2872_vm11 = vcmp.lt.s32.totalorder %v2871_v47, %v2483_v0 }
 0x483   : > { %v2873_v22 = vsel %vm2872_vm11, %v2871_v47, %v2483_v0 }
 0x484   : > { %v12370_v5 = vpop.xlane.xlu1 %4717 }
 0x485   : > { %14593 = vst [vmem:[#allocation26_spill] sm:$0xff] %v12370_v5  ;;  %v12376_v63 = vpop.xlane.xlu0 %4816  ;;  %v12430_v40 = vld [vmem:[#allocation2 + $0x38] sm:$0xff] }
 0x486   : > { %5527 = vst.msk [vmem:[#allocation2 + $0x20] sm:$0xff] %vm13892_vm9, %v12370_v5  ;;  %v12378_v37 = vld [vmem:[#allocation2 + $0x70] sm:$0xff]  ;;  %v12395_v5 = vld [vmem:[#allocation2 + $0x58] sm:$0xff] }
 0x487   : > { %v12372_v46 = vpop.xlane.xlu2 %4753  ;;  %14594 = vst [vmem:[#allocation74_spill] sm:$0xff] %v12376_v63  ;;  %v5601_v30 = vmin.f32 %v12378_v37, 0.0  ;;  %vm5585_vm8 = vcmp.gt.f32.partialorder %v12378_v37, 0.0 }
 0x488   : > { %5538 = vst.msk [vmem:[#allocation2 + $0x78] sm:$0xff] %vm13892_vm9, %v12376_v63  ;;  %v2847_v63 = vsel %vm2846_vm4, %v2845_v60, %v2476_v59 }
 0x489   : > { %5531 = vst.msk [vmem:[#allocation2 + $0x40] sm:$0xff] %vm13892_vm9, %v12372_v46  ;;  %v5631_v36 = vmul.f32 1.442695, %v5601_v30  ;;  %vm2848_vm10 = vcmp.lt.s32.totalorder %v2847_v63, %v2477_v8  ;;  %v5598_v30 = vmin.f32 %v12395_v5, 0.0 }
 0x48b   : > { %6748 = vpow2.f32 %v5631_v36  ;;  %v5625_v49 = vmul.f32 1.442695, %v5598_v30 }
 0x48c   : > { %6750 = vpow2.f32 %v5629_v35 }
 0x48d   : > { %v12406_v42 = vpop.xlane.xlu0 %4762  ;;  %v12461_v50 = vld [vmem:[#allocation2 + $0x20] sm:$0xff] }
 0x48e   : > { %14598 = vst [vmem:[#allocation11_spill] sm:$0xff] %v12406_v42 }
 0x48f   : > { %v12408_v60 = vld [vmem:[#allocation2 + $0x78] sm:$0xff]  ;;  %5532 = vst.msk [vmem:[#allocation2 + $0x48] sm:$0xff] %vm13892_vm9, %v12406_v42  ;;  %v5597_v42 = vmin.f32 %v12410_v9, 0.0 }
 0x490   : > { %v5602_v59 = vmin.f32 %v12408_v60, 0.0  ;;  %v12424_v3 = vld [vmem:[#allocation2 + $0x40] sm:$0xff]  ;;  %vm5586_vm5 = vcmp.gt.f32.partialorder %v12408_v60, 0.0 }
 0x491   : > { %v12399_v34 = vpop.xlane.xlu1 %4690  ;;  %v5623_v44 = vmul.f32 1.442695, %v5597_v42  ;;  %v5594_v42 = vmin.f32 %v12430_v40, 0.0 }
 0x492   : > { %14597 = vst [vmem:[#allocation37_spill] sm:$0xff] %v12399_v34  ;;  %v12401_v27 = vpop.xlane.xlu2 %4726  ;;  %v5633_v39 = vmul.f32 1.442695, %v5602_v59  ;;  %v6749_v59 = vpop.eup %6748 }
 0x493   : > { %5524 = vst.msk [vmem:[#allocation2 + $0x8] sm:$0xff] %vm13892_vm9, %v12399_v34  ;;  %v2849_v34 = vsel %vm2848_vm10, %v2847_v63, %v2477_v8  ;;  %v2798_v8 = vand.u32 65535, %v12259_v56  ;;  %v5595_v63 = vmin.f32 %v12424_v3, 0.0  ;;  %v6751_v2 = vpop.eup %6750  ;;  %v5617_v38 = vmul.f32 1.442695, %v5594_v42 }
 0x494   : > { %5528 = vst.msk [vmem:[#allocation2 + $0x28] sm:$0xff] %vm13892_vm9, %v12401_v27  ;;  %6752 = vpow2.f32 %v5633_v39  ;;  %vm2850_vm15 = vcmp.lt.s32.totalorder %v2849_v34, %v2478_v16  ;;  %v14602_v39 = vld [vmem:[#allocation105_spill] sm:$0xff] }
 0x495   : > { %6754 = vpow2.f32 %v5627_v1  ;;  %vm2356_vm1 = vcmp.eq.f32.partialorder %v14602_v39, %v14589_v45  ;;  %v2851_v35 = vsel %vm2850_vm15, %v2849_v34, %v2478_v16  ;;  %v2800_v26 = vcvt.s32.f32 %v2798_v8  ;;  %v14604_v16 = vld [vmem:[#allocation108_spill] sm:$0xff]  ;;  %v14605_v39 = vld [vmem:[#allocation30_spill] sm:$0xff] }
 0x496   : > { %v12437_v36 = vpop.xlane.xlu0 %4735  ;;  %v12441_v56 = vld [vmem:[#allocation2 + $0x48] sm:$0xff]  ;;  %6756 = vpow2.f32 %v5625_v49  ;;  %v2479_v34 = vsel %vm2351_vm0, %v14548_v31, 1024  ;;  %vm2357_vm2 = vcmp.eq.f32.partialorder %v14604_v16, %v14589_v45  ;;  %v2484_v49 = vsel %vm2356_vm1, %v14479_v25, 1024 }
 0x497   : > { %14603 = vst [vmem:[#allocation171_spill] sm:$0xff] %v12437_v36  ;;  %v5596_v1 = vmin.f32 %v12441_v56, 0.0  ;;  %6758 = vpow2.f32 %v5623_v44  ;;  %vm2852_vm3 = vcmp.lt.s32.totalorder %v2851_v35, %v2479_v34  ;;  %v5619_v0 = vmul.f32 1.442695, %v5595_v63 }
 0x498   : > { %5529 = vst.msk [vmem:[#allocation2 + $0x30] sm:$0xff] %vm13892_vm9, %v12437_v36  ;;  %v6395_v8 = vadd.f32 -1.0, %v6749_v59  ;;  %vm2874_vm4 = vcmp.lt.s32.totalorder %v2873_v22, %v2484_v49  ;;  %vm2358_vm6 = vcmp.eq.f32.partialorder %v14605_v39, %v14589_v45  ;;  %v12467_v20 = vsel %vm2852_vm3, %v2851_v35, %v2479_v34 }
 0x499   : > { %v5621_v48 = vmul.f32 1.442695, %v5596_v1  ;;  %v6394_v1 = vadd.f32 -1.0, %v6751_v2  ;;  %v2485_v63 = vsel %vm2357_vm2, %v14497_v24, 1024  ;;  %v2875_v42 = vsel %vm2874_vm4, %v2873_v22, %v2484_v49 }
 0x49a   : > { %v12432_v58 = vpop.xlane.xlu2 %4699  ;;  %v6753_v36 = vpop.eup %6752  ;;  %v5665_v2 = vsel %vm5585_vm8, %v12378_v37, %v6395_v8  ;;  %vm2876_vm13 = vcmp.lt.s32.totalorder %v2875_v42, %v2485_v63  ;;  %vm5582_vm15 = vcmp.gt.f32.partialorder %v12395_v5, 0.0  ;;  %vm5581_vm0 = vcmp.gt.f32.partialorder %v12410_v9, 0.0 }
 0x49b   : > { %5525 = vst.msk [vmem:[#allocation2 + $0x10] sm:$0xff] %vm13892_vm9, %v12432_v58  ;;  %v12447_v30 = vld [vmem:[#allocation2 + $0x28] sm:$0xff]  ;;  %v6396_v47 = vadd.f32 -1.0, %v6753_v36  ;;  %v6755_v6 = vpop.eup %6754  ;;  %6760 = vpow2.f32 %v5621_v48  ;;  %v5591_v48 = vmin.f32 %v12461_v50, 0.0  ;;  %v5664_v37 = vsel %vm5584_vm12, %v12383_v43, %v6394_v1 }
 0x49c   : > { %v5592_v19 = vmin.f32 %v12447_v30, 0.0  ;;  %v6757_v36 = vpop.eup %6756  ;;  %6762 = vpow2.f32 %v5619_v0  ;;  %v6393_v35 = vadd.f32 -1.0, %v6755_v6  ;;  %vm5580_vm11 = vcmp.gt.f32.partialorder %v12441_v56, 0.0 }
 0x49d   : > { %v5666_v44 = vsel %vm5586_vm5, %v12408_v60, %v6396_v47  ;;  %6764 = vpow2.f32 %v5617_v38  ;;  %v6392_v0 = vadd.f32 -1.0, %v6757_v36  ;;  %v2826_v39 = vand.u32 65535, %v12309_v62 }
 0x49e   : > { %5695 = vmatpush.msra.mxu0 %v5666_v44  ;;  %v5613_v16 = vmul.f32 1.442695, %v5592_v19  ;;  %v6759_v44 = vpop.eup %6758  ;;  %v2855_v19 = vshra.s32 %v12467_v20, 16  ;;  %v5663_v38 = vsel %vm5583_vm14, %v12393_v15, %v6393_v35  ;;  %vm5579_vm2 = vcmp.gt.f32.partialorder %v12424_v3, 0.0 }
 0x49f   : > { %v12478_v60 = vpop.xlane.xlu0 %4708  ;;  %v12483_v34 = vld [vmem:[#allocation2 + $0x30] sm:$0xff]  ;;  %v5662_v1 = vsel %vm5582_vm15, %v12395_v5, %v6392_v0  ;;  %vm5578_vm4 = vcmp.gt.f32.partialorder %v12430_v40, 0.0  ;;  %vm5575_vm12 = vcmp.gt.f32.partialorder %v12461_v50, 0.0 }
 0x4a0   : > { %14606 = vst [vmem:[#allocation79_spill] sm:$0xff] %v12478_v60  ;;  %5696 = vmatpush.msra.mxu0 %v5665_v2  ;;  %v5593_v49 = vmin.f32 %v12483_v34, 0.0  ;;  %v5611_v2 = vmul.f32 1.442695, %v5591_v48  ;;  %6766 = vpow2.f32 %v5613_v16  ;;  %v2486_v48 = vsel %vm2358_vm6, %v14525_v41, 1024 }
 0x4a1   : > { %5526 = vst.msk [vmem:[#allocation2 + $0x18] sm:$0xff] %vm13892_vm9, %v12478_v60  ;;  %v6761_v8 = vpop.eup %6760  ;;  %v6391_v60 = vadd.f32 -1.0, %v6759_v44  ;;  %v12510_v44 = vcvt.s32.f32 %v2855_v19  ;;  %v14607_v19 = vld [vmem:[#allocation110_spill] sm:$0xff]  ;;  %vm5577_vm5 = vcmp.gt.f32.partialorder %v12483_v34, 0.0 }
 0x4a2   : > { %v12473_v59 = vpop.xlane.xlu2 %2802  ;;  %v12485_v47 = vld [vmem:[#allocation2 + $0x10] sm:$0xff]  ;;  %5697 = vmatpush.msra.mxu0 %v5664_v37  ;;  %v5615_v6 = vmul.f32 1.442695, %v5593_v49  ;;  %v6763_v43 = vpop.eup %6762  ;;  %v6390_v36 = vadd.f32 -1.0, %v6761_v8  ;;  %vm2359_vm3 = vcmp.eq.f32.partialorder %v14607_v19, %v14589_v45 }
 0x4a3   : > { %vm2804_vm10 = vcmp.eq.f32.partialorder %v12287_v33, %v12473_v59  ;;  %v12491_v33 = vld [vmem:[#allocation2 + $0x8] sm:$0xff]  ;;  %v6765_v49 = vpop.eup %6764  ;;  %v5661_v16 = vsel %vm5581_vm0, %v12410_v9, %v6391_v60  ;;  %v6389_v5 = vadd.f32 -1.0, %v6763_v43  ;;  %v2487_v43 = vsel %vm2359_vm3, %v14548_v31, 1024 }
 0x4a4   : > { %v2805_v22 = vsel %vm2804_vm10, %v2800_v26, inf  ;;  %v5589_v26 = vmin.f32 %v12485_v47, 0.0  ;;  %v5588_v13 = vmin.f32 %v12491_v33, 0.0  ;;  %5698 = vmatpush.msra.mxu0 %v5663_v38  ;;  %6768 = vpow2.f32 %v5615_v6 }
 0x4a5   : > { %2806 = vmin.xlane.f32.xlu1 %v2805_v22  ;;  %v2877_v22 = vsel %vm2876_vm13, %v2875_v42, %v2485_v63  ;;  %6770 = vpow2.f32 %v5611_v2  ;;  %v5660_v8 = vsel %vm5580_vm11, %v12441_v56, %v6390_v36  ;;  %v6388_v9 = vadd.f32 -1.0, %v6765_v49 }
 0x4a6   : > { %5699 = vmatpush.msra.mxu0 %v5662_v1  ;;  %v5607_v15 = vmul.f32 1.442695, %v5589_v26  ;;  %v5605_v63 = vmul.f32 1.442695, %v5588_v13  ;;  %vm2878_vm1 = vcmp.lt.s32.totalorder %v2877_v22, %v2486_v48  ;;  %v6767_v0 = vpop.eup %6766  ;;  %v5659_v6 = vsel %vm5579_vm2, %v12424_v3, %v6389_v5 }
 0x4a7   : > { %v12507_v35 = vpop.xlane.xlu0 %4681  ;;  %v2879_v26 = vsel %vm2878_vm1, %v2877_v22, %v2486_v48  ;;  %v5658_v56 = vsel %vm5578_vm4, %v12430_v40, %v6388_v9  ;;  %v6386_v38 = vadd.f32 -1.0, %v6767_v0  ;;  %v2828_v1 = vcvt.s32.f32 %v2826_v39 }
 0x4a8   : > { %v5558_v37 = vld [vmem:[#allocation2 + $0x18] sm:$0xff]  ;;  %5523 = vst.msk [vmem:[#allocation2] sm:$0xff] %vm13892_vm9, %v12507_v35  ;;  %5700 = vmatpush.msra.mxu0 %v5661_v16  ;;  %6772 = vpow2.f32 %v5607_v15  ;;  %vm2880_vm6 = vcmp.lt.s32.totalorder %v2879_v26, %v2487_v43  ;;  %vm5576_vm10 = vcmp.gt.f32.partialorder %v12447_v30, 0.0  ;;  %vm5573_vm14 = vcmp.gt.f32.partialorder %v12485_v47, 0.0 }
 0x4a9   : > { %v5590_v42 = vmin.f32 %v5558_v37, 0.0  ;;  %6774 = vpow2.f32 %v5605_v63  ;;  %v5656_v16 = vsel %vm5576_vm10, %v12447_v30, %v6386_v38  ;;  %v12533_v5 = vsel %vm2880_vm6, %v2879_v26, %v2487_v43  ;;  %v14612_v43 = vld [vmem:[#allocation28_spill] sm:$0xff] }
 0x4aa   : > { %v6769_v60 = vpop.eup %6768  ;;  %5701 = vmatpush.msra.mxu0 %v5660_v8  ;;  %vm5574_vm13 = vcmp.gt.f32.partialorder %v5558_v37, 0.0  ;;  %v2883_v39 = vshra.s32 %v12533_v5, 16  ;;  %vm5572_vm15 = vcmp.gt.f32.partialorder %v12491_v33, 0.0 }
 0x4ab   : > { %v5609_v13 = vmul.f32 1.442695, %v5590_v42  ;;  %v6387_v2 = vadd.f32 -1.0, %v6769_v60  ;;  %v6771_v62 = vpop.eup %6770 }
 0x4ac   : > { %5702 = vmatpush.msra.mxu0 %v5659_v6  ;;  %v6385_v36 = vadd.f32 -1.0, %v6771_v62  ;;  %v12540_v60 = vcvt.s32.f32 %v2883_v39  ;;  %v14608_v6 = vld [vmem:[#allocation70_spill] sm:$0xff] }
 0x4ad   : > { %2858 = vmin.xlane.f32.xlu1 %v12510_v44  ;;  %6776 = vpow2.f32 %v5609_v13  ;;  %v5657_v3 = vsel %vm5577_vm5, %v12483_v34, %v6387_v2  ;;  %v14609_v2 = vld [vmem:[#allocation21_spill] sm:$0xff]  ;;  %vm2363_vm5 = vcmp.eq.f32.partialorder %v14612_v43, %v14608_v6  ;;  %v2854_v43 = vand.u32 65535, %v12467_v20 }
 0x4ae   : > { %5703 = vmatpush.msra.mxu0 %v5658_v56  ;;  %v6773_v49 = vpop.eup %6772  ;;  %v5655_v42 = vsel %vm5575_vm12, %v12461_v50, %v6385_v36  ;;  %vm2360_vm11 = vcmp.eq.f32.partialorder %v14609_v2, %v14608_v6  ;;  %v14613_v36 = vld [vmem:[#allocation77_spill] sm:$0xff] }
 0x4af   : > { %v12526_v45 = vpop.xlane.xlu0 %2830  ;;  %v5555_v22 = vld [vmem:[#allocation2] sm:$0xff]  ;;  %v6775_v15 = vpop.eup %6774  ;;  %v2488_v26 = vsel %vm2360_vm11, %v14434_v17, 1024 }
 0x4b0   : > { %vm2832_vm8 = vcmp.eq.f32.partialorder %v12312_v21, %v12526_v45  ;;  %5704 = vmatpush.msra.mxu0 %v5657_v3  ;;  %v5587_v40 = vmin.f32 %v5555_v22, 0.0  ;;  %v6383_v21 = vadd.f32 -1.0, %v6773_v49  ;;  %v6382_v9 = vadd.f32 -1.0, %v6775_v15  ;;  %v14615_v49 = vld [vmem:[#allocation34_spill] sm:$0xff] }
 0x4b1   : > { %v2833_v48 = vsel %vm2832_vm8, %v2828_v1, inf  ;;  %vm5571_vm0 = vcmp.gt.f32.partialorder %v5555_v22, 0.0  ;;  %v2491_v1 = vsel %vm2363_vm5, %v14470_v53, 1024  ;;  %vm2369_vm8 = vcmp.eq.f32.partialorder %v14615_v49, %v14613_v36 }
 0x4b2   : > { %2834 = vmin.xlane.f32.xlu2 %v2833_v48  ;;  %5705 = vmatpush.msra.mxu0 %v5656_v16  ;;  %v5603_v34 = vmul.f32 1.442695, %v5587_v40  ;;  %v5653_v30 = vsel %vm5573_vm14, %v12485_v47, %v6383_v21  ;;  %v5652_v50 = vsel %vm5572_vm15, %v12491_v33, %v6382_v9  ;;  %v14610_v47 = vld [vmem:[#allocation12_spill] sm:$0xff]  ;;  %v14611_v33 = vld [vmem:[#allocation9_spill] sm:$0xff]  ;;  %v2497_v48 = vsel %vm2369_vm8, %v14435_v55, 1024  ;;  %v14619_v9 = vld [vmem:[#allocation10_spill] sm:$0xff] }
 0x4b3   : > { %v6777_v63 = vpop.eup %6776  ;;  %vm2361_vm1 = vcmp.eq.f32.partialorder %v14610_v47, %v14608_v6  ;;  %vm2362_vm3 = vcmp.eq.f32.partialorder %v14611_v33, %v14608_v6  ;;  %v14616_v40 = vld [vmem:[#allocation109_spill] sm:$0xff]  ;;  %v14621_v33 = vld [vmem:[#allocation114_spill] sm:$0xff] }
 0x4b4   : > { %v6384_v0 = vadd.f32 -1.0, %v6777_v63  ;;  %5706 = vmatpush.msra.mxu0 %v5655_v42  ;;  %6778 = vpow2.f32 %v5603_v34  ;;  %v2489_v62 = vsel %vm2361_vm1, %v14435_v55, 1024  ;;  %v2490_v38 = vsel %vm2362_vm3, %v14456_v7, 1024  ;;  %v14617_v34 = vld [vmem:[#allocation24_spill] sm:$0xff] }
 0x4b5   : > { %vm2896_vm2 = vcmp.lt.s32.totalorder %v2488_v26, %v2489_v62  ;;  %vm2364_vm12 = vcmp.eq.f32.partialorder %v14616_v40, %v14608_v6  ;;  %vm2370_vm15 = vcmp.eq.f32.partialorder %v14617_v34, %v14613_v36  ;;  %v14618_v42 = vld [vmem:[#allocation112_spill] sm:$0xff] }
 0x4b6   : > { %v5654_v8 = vsel %vm5574_vm13, %v5558_v37, %v6384_v0  ;;  %v2897_v56 = vsel %vm2896_vm2, %v2488_v26, %v2489_v62  ;;  %v2492_v63 = vsel %vm2364_vm12, %v14479_v25, 1024  ;;  %v2498_v39 = vsel %vm2370_vm15, %v14456_v7, 1024 }
 0x4b7   : > { %5707 = vmatpush.msra.mxu0 %v5654_v8  ;;  %vm2898_vm4 = vcmp.lt.s32.totalorder %v2897_v56, %v2490_v38  ;;  %vm2371_vm2 = vcmp.eq.f32.partialorder %v14619_v9, %v14613_v36 }
 0x4b8   : > { %v2899_v3 = vsel %vm2898_vm4, %v2897_v56, %v2490_v38 }
 0x4b9   : > { %5708 = vmatpush.msra.mxu0 %v5653_v30  ;;  %vm2900_vm10 = vcmp.lt.s32.totalorder %v2899_v3, %v2491_v1  ;;  %v2809_v30 = vcvt.f32.s32 %v12473_v59  ;;  %v14622_v59 = vld [vmem:[#allocation115_spill] sm:$0xff] }
 0x4ba   : > { %v6779_v13 = vpop.eup %6778  ;;  %2886 = vmin.xlane.f32.xlu2 %v12540_v60  ;;  %v2901_v16 = vsel %vm2900_vm10, %v2899_v3, %v2491_v1  ;;  %vm2367_vm8 = vcmp.eq.f32.partialorder %v14622_v59, %v14608_v6  ;;  %v5667_v1 = vld [vmem:[%s13449_s5] sm:$0xff] }
 0x4bb   : > { %5709 = vmatpush.msra.mxu0 %v5652_v50  ;;  %v6381_v19 = vadd.f32 -1.0, %v6779_v13  ;;  %vm2902_vm14 = vcmp.lt.s32.totalorder %v2901_v16, %v2492_v63  ;;  %v14620_v50 = vld [vmem:[#allocation113_spill] sm:$0xff]  ;;  %v2810_v26 = vshll.u32 %v2809_v30, 16  ;;  %v2495_v49 = vsel %vm2367_vm8, %v14548_v31, 1024 }
 0x4bc   : > { %v2903_v21 = vsel %vm2902_vm14, %v2901_v16, %v2492_v63  ;;  %vm2366_vm3 = vcmp.eq.f32.partialorder %v14620_v50, %v14608_v6 }
 0x4bd   : > { %v5651_v37 = vsel %vm5571_vm0, %v5555_v22, %v6381_v19  ;;  %v14614_v22 = vld [vmem:[#allocation14_spill] sm:$0xff]  ;;  %vm2365_vm0 = vcmp.eq.f32.partialorder %v14618_v42, %v14608_v6  ;;  %v2494_v47 = vsel %vm2366_vm3, %v14525_v41, 1024  ;;  %v2856_v6 = vcvt.s32.f32 %v2854_v43  ;;  %v14628_v43 = vld [vmem:[#allocation163_spill] sm:$0xff] }
 0x4be   : > { %5710 = vmatpush.msra.mxu0 %v5651_v37  ;;  %vm2368_vm6 = vcmp.eq.f32.partialorder %v14614_v22, %v14613_v36  ;;  %v2493_v8 = vsel %vm2365_vm0, %v14497_v24, 1024  ;;  %v2499_v37 = vsel %vm2371_vm2, %v14470_v53, 1024  ;;  %v2837_v42 = vcvt.f32.s32 %v12526_v45 }
 0x4bf   : > { %v2496_v15 = vsel %vm2368_vm6, %v14434_v17, 1024  ;;  %vm2904_vm1 = vcmp.lt.s32.totalorder %v2903_v21, %v2493_v8  ;;  %vm2372_vm6 = vcmp.eq.f32.partialorder %v14621_v33, %v14613_v36  ;;  %5711 = vmatmul.f32.vlgmr.msra.gmra.mxu0 %v5667_v1  ;;  %v2882_v45 = vand.u32 65535, %v12533_v5  ;;  %v14626_v5 = vld [vmem:[#allocation158_spill] sm:$0xff]  ;;  %v14630_v1 = vld [vmem:[#allocation167_spill] sm:$0xff] }
 0x4c0   : > { %vm2924_vm13 = vcmp.lt.s32.totalorder %v2496_v15, %v2497_v48  ;;  %v2905_v19 = vsel %vm2904_vm1, %v2903_v21, %v2493_v8  ;;  %v2500_v22 = vsel %vm2372_vm6, %v14479_v25, 1024  ;;  %v2838_v9 = vshll.u32 %v2837_v42, 16  ;;  %v14633_v42 = vld [vmem:[#allocation53_spill] sm:$0xff] }
 0x4c1   : > { %v2925_v0 = vsel %vm2924_vm13, %v2496_v15, %v2497_v48  ;;  %vm2906_vm5 = vcmp.lt.s32.totalorder %v2905_v19, %v2494_v47  ;;  %v14623_v15 = vld [vmem:[#allocation116_spill] sm:$0xff]  ;;  %vm4836_vm8 = vcmp.eq.f32.partialorder %v14628_v43, %v12432_v58 }
 0x4c2   : > { %vm2926_vm11 = vcmp.lt.s32.totalorder %v2925_v0, %v2498_v39  ;;  %v2907_v3 = vsel %vm2906_vm5, %v2905_v19, %v2494_v47  ;;  %vm2373_vm13 = vcmp.eq.f32.partialorder %v14623_v15, %v14613_v36  ;;  %v2884_v47 = vcvt.s32.f32 %v2882_v45  ;;  %v14635_v45 = vld [vmem:[#allocation164_spill] sm:$0xff] }
 0x4c3   : > { %v2927_v13 = vsel %vm2926_vm11, %v2925_v0, %v2498_v39  ;;  %vm2908_vm12 = vcmp.lt.s32.totalorder %v2907_v3, %v2495_v49  ;;  %v2501_v63 = vsel %vm2373_vm13, %v14497_v24, 1024  ;;  %v14624_v0 = vld [vmem:[#allocation119_spill] sm:$0xff] }
 0x4c4   : > { %vm2928_vm4 = vcmp.lt.s32.totalorder %v2927_v13, %v2499_v37  ;;  %v12596_v16 = vsel %vm2908_vm12, %v2907_v3, %v2495_v49  ;;  %vm2374_vm0 = vcmp.eq.f32.partialorder %v14624_v0, %v14613_v36  ;;  %v14629_v3 = vld [vmem:[#allocation120_spill] sm:$0xff]  ;;  %vm4859_vm12 = vcmp.eq.f32.partialorder %v14630_v1, %v12401_v27 }
 0x4c5   : > { %v2929_v38 = vsel %vm2928_vm4, %v2927_v13, %v2499_v37  ;;  %v2911_v34 = vshra.s32 %v12596_v16, 16  ;;  %v14625_v13 = vld [vmem:[#allocation123_spill] sm:$0xff]  ;;  %vm4834_vm4 = vcmp.eq.f32.partialorder %v14626_v5, %v12432_v58 }
 0x4c6   : > { %vm2930_vm10 = vcmp.lt.s32.totalorder %v2929_v38, %v2500_v22  ;;  %vm2375_vm1 = vcmp.eq.f32.partialorder %v14625_v13, %v14613_v36  ;;  %v4962_v59 = vsel %vm4834_vm4, %v14434_v17, 1024  ;;  %v14634_v13 = vld [vmem:[#allocation125_spill] sm:$0xff] }
 0x4c7   : > { %v2931_v20 = vsel %vm2930_vm10, %v2929_v38, %v2500_v22  ;;  %v12603_v8 = vcvt.s32.f32 %v2911_v34  ;;  %v2503_v37 = vsel %vm2375_vm1, %v14548_v31, 1024  ;;  %vm4858_vm10 = vcmp.eq.f32.partialorder %v14629_v3, %v12401_v27  ;;  %v5785_v22 = vld [vmem:[%s13451_s7 + $0x10] sm:$0xff]  ;;  %v14632_v34 = vld [vmem:[#allocation7_spill] sm:$0xff] }
 0x4c8   : > { %vm2932_vm15 = vcmp.lt.s32.totalorder %v2931_v20, %v2501_v63  ;;  %v4986_v15 = vsel %vm4858_vm10, %v14434_v17, 1024  ;;  %vm4883_vm1 = vcmp.eq.f32.partialorder %v14633_v42, %v12372_v46  ;;  %vm4884_vm10 = vcmp.eq.f32.partialorder %v11840_v61, %v12372_v46 }
 0x4c9   : > { %v2933_v21 = vsel %vm2932_vm15, %v2931_v20, %v2501_v63  ;;  %v4987_v20 = vsel %vm4859_vm12, %v14435_v55, 1024  ;;  %v14631_v63 = vld [vmem:[#allocation23_spill] sm:$0xff]  ;;  %vm4898_vm12 = vcmp.eq.f32.partialorder %v14634_v13, %v12325_v10 }
 0x4ca   : > { %vm5214_vm15 = vcmp.lt.s32.totalorder %v4986_v15, %v4987_v20 }
 0x518   : > { %v2807_v2 = vpop.xlane.xlu1 %2806 }
 0x519   : > { %v2808_v62 = vcvt.f32.s32 %v2807_v2 }
 0x51b   : > { %v2811_v56 = vadd.s32 %v2810_v26, %v2808_v62 }
 0x51d   : > { %2979 = vst.msk [vmem:[#allocation3 + $0x50] sm:$0xff] %vm13893_vm7, %v2811_v56  ;;  %v14627_v56 = vld [vmem:[#allocation157_spill] sm:$0xff] }
 0x51e   : > { %vm4835_vm5 = vcmp.eq.f32.partialorder %v14627_v56, %v12432_v58  ;;  %v14636_v56 = vld [vmem:[#allocation165_spill] sm:$0xff] }
 0x51f   : > { %v4963_v38 = vsel %vm4835_vm5, %v14435_v55, 1024  ;;  %vm4861_vm5 = vcmp.eq.f32.partialorder %v11674_v23, %v12401_v27 }
 0x520   : > { %v12590_v40 = vpop.xlane.xlu1 %2858  ;;  %vm5130_vm6 = vcmp.lt.s32.totalorder %v4962_v59, %v4963_v38 }
 0x521   : > { %vm2860_vm14 = vcmp.eq.f32.partialorder %v12510_v44, %v12590_v40  ;;  %v2502_v44 = vsel %vm2374_vm0, %v14525_v41, 1024  ;;  %v5131_v49 = vsel %vm5130_vm6, %v4962_v59, %v4963_v38  ;;  %vm4860_vm0 = vcmp.eq.f32.partialorder %v14631_v63, %v12401_v27  ;;  %v14640_v63 = vld [vmem:[#allocation84_spill] sm:$0xff] }
 0x522   : > { %v2861_v48 = vsel %vm2860_vm14, %v2856_v6, inf  ;;  %vm2934_vm11 = vcmp.lt.s32.totalorder %v2933_v21, %v2502_v44  ;;  %v4964_v6 = vsel %vm4836_vm8, %v14456_v7, 1024  ;;  %vm4837_vm14 = vcmp.eq.f32.partialorder %v11601_v51, %v12432_v58 }
 0x523   : > { %2862 = vmin.xlane.f32.xlu0 %v2861_v48  ;;  %v2935_v19 = vsel %vm2934_vm11, %v2933_v21, %v2502_v44  ;;  %vm5132_vm13 = vcmp.lt.s32.totalorder %v5131_v49, %v4964_v6  ;;  %vm4882_vm11 = vcmp.eq.f32.partialorder %v14632_v34, %v12372_v46  ;;  %v4965_v0 = vsel %vm4837_vm14, %v14470_v53, 1024  ;;  %v5668_v34 = vld [vmem:[%s13449_s5 + $0x8] sm:$0xff] }
 0x524   : > { %vm2936_vm2 = vcmp.lt.s32.totalorder %v2935_v19, %v2503_v37  ;;  %v5133_v48 = vsel %vm5132_vm13, %v5131_v49, %v4964_v6  ;;  %v5215_v21 = vsel %vm5214_vm15, %v4986_v15, %v4987_v20  ;;  %v5010_v44 = vsel %vm4882_vm11, %v14434_v17, 1024  ;;  %5714 = vmatmul.f32.gmra.mxu0 %v5668_v34 }
 0x525   : > { %v2835_v39 = vpop.xlane.xlu2 %2834  ;;  %v12616_v62 = vsel %vm2936_vm2, %v2935_v19, %v2503_v37  ;;  %vm5134_vm2 = vcmp.lt.s32.totalorder %v5133_v48, %v4965_v0  ;;  %v5011_v51 = vsel %vm4883_vm1, %v14435_v55, 1024  ;;  %vm4899_vm13 = vcmp.eq.f32.partialorder %v14635_v45, %v12325_v10 }
 0x526   : > { %v2836_v30 = vcvt.f32.s32 %v2835_v39  ;;  %v2939_v36 = vshra.s32 %v12616_v62, 16  ;;  %v4988_v39 = vsel %vm4860_vm0, %v14456_v7, 1024  ;;  %vm5298_vm6 = vcmp.lt.s32.totalorder %v5010_v44, %v5011_v51 }
 0x527   : > { %vm5216_vm4 = vcmp.lt.s32.totalorder %v5215_v21, %v4988_v39  ;;  %v5299_v19 = vsel %vm5298_vm6, %v5010_v44, %v5011_v51  ;;  %vm4839_vm14 = vcmp.eq.f32.partialorder %v12170_v52, %v12432_v58  ;;  %v5012_v37 = vsel %vm4884_vm10, %v14456_v7, 1024 }
 0x528   : > { %v2839_v50 = vadd.s32 %v2838_v9, %v2836_v30  ;;  %v12619_v33 = vcvt.s32.f32 %v2939_v36  ;;  %v5135_v9 = vsel %vm5134_vm2, %v5133_v48, %v4965_v0  ;;  %v5027_v61 = vsel %vm4899_vm13, %v14435_v55, 1024 }
 0x529   : > { %vm4862_vm0 = vcmp.eq.f32.partialorder %v12006_v32, %v12401_v27  ;;  %vm5300_vm11 = vcmp.lt.s32.totalorder %v5299_v19, %v5012_v37  ;;  %vm4885_vm2 = vcmp.eq.f32.partialorder %v11780_v18, %v12372_v46  ;;  %v14637_v32 = vld [vmem:[#allocation60_spill] sm:$0xff] }
 0x52a   : > { %2980 = vst.msk [vmem:[#allocation3 + $0x58] sm:$0xff] %vm13893_vm7, %v2839_v50  ;;  %v5217_v50 = vsel %vm5216_vm4, %v5215_v21, %v4988_v39  ;;  %v4990_v52 = vsel %vm4862_vm0, %v14479_v25, 1024  ;;  %v5301_v5 = vsel %vm5300_vm11, %v5299_v19, %v5012_v37  ;;  %vm4900_vm4 = vcmp.eq.f32.partialorder %v14636_v56, %v12325_v10  ;;  %v14641_v21 = vld [vmem:[#allocation170_spill] sm:$0xff]  ;;  %v14644_v19 = vld [vmem:[#allocation136_spill] sm:$0xff] }
 0x52b   : > { %2914 = vmin.xlane.f32.xlu0 %v12603_v8  ;;  %vm4923_vm10 = vcmp.eq.f32.partialorder %v14637_v32, %v12344_v12  ;;  %v5013_v18 = vsel %vm4885_vm2, %v14470_v53, 1024  ;;  %v5028_v38 = vsel %vm4900_vm4, %v14456_v7, 1024  ;;  %vm4841_vm11 = vcmp.eq.f32.partialorder %v12237_v57, %v12432_v58 }
 0x52c   : > { %vm5302_vm13 = vcmp.lt.s32.totalorder %v5301_v5, %v5013_v18  ;;  %vm4864_vm4 = vcmp.eq.f32.partialorder %v12121_v28, %v12401_v27  ;;  %v4969_v20 = vsel %vm4841_vm11, %v14548_v31, 1024 }
 0x52d   : > { %v12612_v2 = vpop.xlane.xlu2 %2886  ;;  %v4992_v28 = vsel %vm4864_vm4, %v14525_v41, 1024 }
 0x52e   : > { %vm2888_vm3 = vcmp.eq.f32.partialorder %v12540_v60, %v12612_v2  ;;  %v5671_v60 = vld [vmem:[%s13450_s6] sm:$0xff] }
 0x52f   : > { %v2889_v26 = vsel %vm2888_vm3, %v2884_v47, inf  ;;  %vm4838_vm3 = vcmp.eq.f32.partialorder %v11944_v54, %v12432_v58  ;;  %v4989_v54 = vsel %vm4861_vm5, %v14470_v53, 1024  ;;  %v5026_v47 = vsel %vm4898_vm12, %v14434_v17, 1024 }
 0x530   : > { %2890 = vmin.xlane.f32.xlu1 %v2889_v26  ;;  %v4966_v30 = vsel %vm4838_vm3, %v14479_v25, 1024  ;;  %vm5218_vm15 = vcmp.lt.s32.totalorder %v5217_v50, %v4989_v54  ;;  %v4967_v26 = vsel %vm4839_vm14, %v14497_v24, 1024  ;;  %vm5354_vm3 = vcmp.lt.s32.totalorder %v5026_v47, %v5027_v61 }
 0x531   : > { %vm5136_vm8 = vcmp.lt.s32.totalorder %v5135_v9, %v4966_v30  ;;  %v5219_v36 = vsel %vm5218_vm15, %v5217_v50, %v4989_v54  ;;  %vm4840_vm5 = vcmp.eq.f32.partialorder %v12187_v11, %v12432_v58  ;;  %v5355_v59 = vsel %vm5354_vm3, %v5026_v47, %v5027_v61  ;;  %v14645_v61 = vld [vmem:[#allocation172_spill] sm:$0xff] }
 0x532   : > { %v5137_v23 = vsel %vm5136_vm8, %v5135_v9, %v4966_v30  ;;  %vm5220_vm6 = vcmp.lt.s32.totalorder %v5219_v36, %v4990_v52  ;;  %vm4922_vm8 = vcmp.eq.f32.partialorder %v11800_v14, %v12344_v12  ;;  %vm4863_vm12 = vcmp.eq.f32.partialorder %v12108_v29, %v12401_v27  ;;  %v14638_v29 = vld [vmem:[#allocation8_spill] sm:$0xff]  ;;  %v14642_v9 = vld [vmem:[#allocation141_spill] sm:$0xff]  ;;  %v14643_v30 = vld [vmem:[#allocation91_spill] sm:$0xff] }
 0x533   : > { %vm5138_vm1 = vcmp.lt.s32.totalorder %v5137_v23, %v4967_v26  ;;  %v4968_v43 = vsel %vm4840_vm5, %v14525_v41, 1024  ;;  %v5221_v11 = vsel %vm5220_vm6, %v5219_v36, %v4990_v52  ;;  %v5050_v3 = vsel %vm4922_vm8, %v14434_v17, 1024 }
 0x534   : > { %v5051_v14 = vsel %vm4923_vm10, %v14435_v55, 1024  ;;  %vm4886_vm15 = vcmp.eq.f32.partialorder %v12019_v4, %v12372_v46  ;;  %vm5356_vm0 = vcmp.lt.s32.totalorder %v5355_v59, %v5028_v38  ;;  %v4991_v1 = vsel %vm4863_vm12, %v14497_v24, 1024  ;;  %v14639_v4 = vld [vmem:[#allocation55_spill] sm:$0xff] }
 0x535   : > { %vm4901_vm2 = vcmp.eq.f32.partialorder %v14638_v29, %v12325_v10  ;;  %vm5438_vm3 = vcmp.lt.s32.totalorder %v5050_v3, %v5051_v14  ;;  %v5014_v6 = vsel %vm4886_vm15, %v14479_v25, 1024  ;;  %v5357_v15 = vsel %vm5356_vm0, %v5355_v59, %v5028_v38 }
 0x536   : > { %vm4924_vm6 = vcmp.eq.f32.partialorder %v14639_v4, %v12344_v12  ;;  %v5029_v57 = vsel %vm4901_vm2, %v14470_v53, 1024  ;;  %v5439_v58 = vsel %vm5438_vm3, %v5050_v3, %v5051_v14  ;;  %vm4887_vm10 = vcmp.eq.f32.partialorder %v14640_v63, %v12372_v46 }
 0x537   : > { %vm5358_vm12 = vcmp.lt.s32.totalorder %v5357_v15, %v5029_v57  ;;  %v5052_v0 = vsel %vm4924_vm6, %v14456_v7, 1024  ;;  %v5015_v44 = vsel %vm4887_vm10, %v14497_v24, 1024  ;;  %vm4865_vm0 = vcmp.eq.f32.partialorder %v14642_v9, %v12401_v27 }
 0x538   : > { %2942 = vmin.xlane.f32.xlu1 %v12619_v33  ;;  %vm5440_vm15 = vcmp.lt.s32.totalorder %v5439_v58, %v5052_v0  ;;  %v5359_v51 = vsel %vm5358_vm12, %v5357_v15, %v5029_v57  ;;  %vm4888_vm2 = vcmp.eq.f32.partialorder %v14644_v19, %v12372_v46  ;;  %v4993_v27 = vsel %vm4865_vm0, %v14548_v31, 1024  ;;  %v14650_v15 = vld [vmem:[#allocation45_spill] sm:$0xff] }
 0x539   : > { %v5441_v45 = vsel %vm5440_vm15, %v5439_v58, %v5052_v0  ;;  %v2865_v63 = vcvt.f32.s32 %v12590_v40 }
 0x53b   : > { %v2866_v0 = vshll.u32 %v2865_v63, 16  ;;  %v5673_v63 = vld [vmem:[%s13450_s6 + $0x10] sm:$0xff] }
 0x551   : > { %5677 = vperm.xlu1 %6490, %v5671_v60   ;;  %v5139_v60 = vsel %vm5138_vm1, %v5137_v23, %v4967_v26  ;;  %vm5222_vm1 = vcmp.lt.s32.totalorder %v5221_v11, %v4991_v1  ;;  %v5669_v23 = vld [vmem:[%s13449_s5 + $0x10] sm:$0xff]  ;;  %v5016_v26 = vsel %vm4888_vm2, %v14525_v41, 1024  ;;  %vm4905_vm2 = vcmp.eq.f32.partialorder %v14650_v15, %v12325_v10 }
 0x552   : > { %vm5140_vm14 = vcmp.lt.s32.totalorder %v5139_v60, %v4968_v43  ;;  %v5223_v48 = vsel %vm5222_vm1, %v5221_v11, %v4991_v1  ;;  %vm4925_vm1 = vcmp.eq.f32.partialorder %v14643_v30, %v12344_v12  ;;  %5717 = vmatmul.f32.gmra.mxu0 %v5669_v23  ;;  %v14648_v11 = vld [vmem:[#allocation173_spill] sm:$0xff]  ;;  %v14649_v1 = vld [vmem:[#allocation179_spill] sm:$0xff]  ;;  %v5033_v57 = vsel %vm4905_vm2, %v14548_v31, 1024 }
 0x553   : > { %v5141_v49 = vsel %vm5140_vm14, %v5139_v60, %v4968_v43  ;;  %vm4902_vm14 = vcmp.eq.f32.partialorder %v14641_v21, %v12325_v10  ;;  %v5053_v47 = vsel %vm4925_vm1, %v14470_v53, 1024  ;;  %v2910_v30 = vand.u32 65535, %v12596_v16  ;;  %v5670_v23 = vld [vmem:[%s13449_s5 + $0x18] sm:$0xff] }
 0x554   : > { %vm5142_vm8 = vcmp.lt.s32.totalorder %v5141_v49, %v4969_v20  ;;  %v5030_v13 = vsel %vm4902_vm14, %v14479_v25, 1024  ;;  %vm5442_vm6 = vcmp.lt.s32.totalorder %v5441_v45, %v5053_v47  ;;  %vm4904_vm14 = vcmp.eq.f32.partialorder %v14648_v11, %v12325_v10 }
 0x555   : > { %v12716_v39 = vsel %vm5142_vm8, %v5141_v49, %v4969_v20  ;;  %vm5360_vm3 = vcmp.lt.s32.totalorder %v5359_v51, %v5030_v13  ;;  %v5443_v60 = vsel %vm5442_vm6, %v5441_v45, %v5053_v47 }
 0x556   : > { %v5145_v54 = vshra.s32 %v12716_v39, 16  ;;  %v5361_v36 = vsel %vm5360_vm3, %v5359_v51, %v5030_v13 }
 0x558   : > { %v12735_v52 = vcvt.s32.f32 %v5145_v54  ;;  %v2912_v54 = vcvt.s32.f32 %v2910_v30 }
 0x559   : > { %5799 = vperm.xlu1 %6490, %v5785_v22   ;;  %v5303_v22 = vsel %vm5302_vm13, %v5301_v5, %v5013_v18  ;;  %vm5224_vm13 = vcmp.lt.s32.totalorder %v5223_v48, %v4992_v28  ;;  %v14646_v5 = vld [vmem:[#allocation63_spill] sm:$0xff]  ;;  %v14647_v18 = vld [vmem:[#allocation86_spill] sm:$0xff] }
 0x55a   : > { %vm5304_vm5 = vcmp.lt.s32.totalorder %v5303_v22, %v5014_v6  ;;  %v5225_v50 = vsel %vm5224_vm13, %v5223_v48, %v4992_v28  ;;  %vm4926_vm10 = vcmp.eq.f32.partialorder %v14646_v5, %v12344_v12  ;;  %vm4889_vm12 = vcmp.eq.f32.partialorder %v14647_v18, %v12372_v46  ;;  %v14651_v48 = vld [vmem:[#allocation180_spill] sm:$0xff]  ;;  %5720 = vmatmul.f32.gmra.mxu0 %v5670_v23  ;;  %v14657_v18 = vld [vmem:[#allocation41_spill] sm:$0xff]  ;;  %v14668_v23 = vld [vmem:[#allocation111_spill] sm:$0xff] }
 0x55b   : > { %v5305_v42 = vsel %vm5304_vm5, %v5303_v22, %v5014_v6  ;;  %vm5226_vm4 = vcmp.lt.s32.totalorder %v5225_v50, %v4993_v27  ;;  %vm4903_vm5 = vcmp.eq.f32.partialorder %v14645_v61, %v12325_v10  ;;  %v5054_v38 = vsel %vm4926_vm10, %v14479_v25, 1024 }
 0x55c   : > { %vm5306_vm11 = vcmp.lt.s32.totalorder %v5305_v42, %v5015_v44  ;;  %v12739_v56 = vsel %vm5226_vm4, %v5225_v50, %v4993_v27  ;;  %v5031_v32 = vsel %vm4903_vm5, %v14497_v24, 1024  ;;  %vm5444_vm15 = vcmp.lt.s32.totalorder %v5443_v60, %v5054_v38 }
 0x55d   : > { %v5307_v37 = vsel %vm5306_vm11, %v5305_v42, %v5015_v44  ;;  %vm5362_vm13 = vcmp.lt.s32.totalorder %v5361_v36, %v5031_v32  ;;  %v5229_v43 = vshra.s32 %v12739_v56, 16  ;;  %v5017_v3 = vsel %vm4889_vm12, %v14548_v31, 1024  ;;  %v14652_v44 = vld [vmem:[#allocation182_spill] sm:$0xff] }
 0x55e   : > { %vm5308_vm8 = vcmp.lt.s32.totalorder %v5307_v37, %v5016_v26  ;;  %v5363_v14 = vsel %vm5362_vm13, %v5361_v36, %v5031_v32  ;;  %vm4927_vm11 = vcmp.eq.f32.partialorder %v14649_v1, %v12344_v12  ;;  %v5032_v22 = vsel %vm4904_vm14, %v14525_v41, 1024  ;;  %v14654_v36 = vld [vmem:[#allocation43_spill] sm:$0xff] }
 0x55f   : > { %v5309_v59 = vsel %vm5308_vm8, %v5307_v37, %v5016_v26  ;;  %v5445_v46 = vsel %vm5444_vm15, %v5443_v60, %v5054_v38  ;;  %v12753_v29 = vcvt.s32.f32 %v5229_v43  ;;  %vm5364_vm1 = vcmp.lt.s32.totalorder %v5363_v14, %v5032_v22  ;;  %v14653_v26 = vld [vmem:[#allocation128_spill] sm:$0xff]  ;;  %v14655_v32 = vld [vmem:[#allocation79_spill] sm:$0xff] }
 0x560   : > { %vm5310_vm0 = vcmp.lt.s32.totalorder %v5309_v59, %v5017_v3  ;;  %v5055_v6 = vsel %vm4927_vm11, %v14497_v24, 1024  ;;  %v5365_v4 = vsel %vm5364_vm1, %v5363_v14, %v5032_v22  ;;  %vm4928_vm4 = vcmp.eq.f32.partialorder %v14651_v48, %v12344_v12  ;;  %v14656_v60 = vld [vmem:[#allocation159_spill] sm:$0xff]  ;;  %v14659_v22 = vld [vmem:[#allocation17_spill] sm:$0xff] }
 0x561   : > { %v12755_v49 = vsel %vm5310_vm0, %v5309_v59, %v5017_v3  ;;  %vm5446_vm3 = vcmp.lt.s32.totalorder %v5445_v46, %v5055_v6  ;;  %vm5366_vm5 = vcmp.lt.s32.totalorder %v5365_v4, %v5033_v57  ;;  %v5056_v34 = vsel %vm4928_vm4, %v14525_v41, 1024  ;;  %v14658_v1 = vld [vmem:[#allocation171_spill] sm:$0xff] }
 0x562   : > { %v5313_v20 = vshra.s32 %v12755_v49, 16  ;;  %v5447_v58 = vsel %vm5446_vm3, %v5445_v46, %v5055_v6  ;;  %v12769_v10 = vsel %vm5366_vm5, %v5365_v4, %v5033_v57  ;;  %vm4929_vm8 = vcmp.eq.f32.partialorder %v14652_v44, %v12344_v12  ;;  %v14660_v46 = vld [vmem:[#allocation168_spill] sm:$0xff] }
 0x563   : > { %vm5448_vm6 = vcmp.lt.s32.totalorder %v5447_v58, %v5056_v34  ;;  %v5369_v40 = vshra.s32 %v12769_v10, 16  ;;  %v5057_v50 = vsel %vm4929_vm8, %v14548_v31, 1024  ;;  %v2893_v27 = vcvt.f32.s32 %v12612_v2  ;;  %v14661_v6 = vld [vmem:[#allocation132_spill] sm:$0xff] }
 0x564   : > { %v12767_v28 = vcvt.s32.f32 %v5313_v20  ;;  %v5449_v51 = vsel %vm5448_vm6, %v5447_v58, %v5056_v34  ;;  %vm4818_vm13 = vcmp.eq.f32.partialorder %v14653_v26, %v12507_v35  ;;  %vm4819_vm14 = vcmp.eq.f32.partialorder %v14654_v36, %v12507_v35  ;;  %v14662_v4 = vld [vmem:[#allocation20_spill] sm:$0xff]  ;;  %v14663_v34 = vld [vmem:[#allocation134_spill] sm:$0xff]  ;;  %v14671_v26 = vld [vmem:[#allocation155_spill] sm:$0xff] }
 0x565   : > { %vm5450_vm10 = vcmp.lt.s32.totalorder %v5449_v51, %v5057_v50  ;;  %v12778_v13 = vcvt.s32.f32 %v5369_v40  ;;  %v2894_v61 = vshll.u32 %v2893_v27, 16  ;;  %vm4842_vm15 = vcmp.eq.f32.partialorder %v14656_v60, %v14655_v32 }
 0x566   : > { %v12782_v19 = vsel %vm5450_vm10, %v5449_v51, %v5057_v50  ;;  %vm4843_vm0 = vcmp.eq.f32.partialorder %v14657_v18, %v14655_v32  ;;  %v2938_v2 = vand.u32 65535, %v12616_v62  ;;  %v4946_v59 = vsel %vm4818_vm13, %v14434_v17, 1024  ;;  %v14666_v50 = vld [vmem:[#allocation144_spill] sm:$0xff] }
 0x567   : > { %v5453_v16 = vshra.s32 %v12782_v19, 16  ;;  %v4947_v38 = vsel %vm4819_vm14, %v14435_v55, 1024  ;;  %v4970_v43 = vsel %vm4842_vm15, %v14434_v17, 1024  ;;  %v4971_v11 = vsel %vm4843_vm0, %v14435_v55, 1024 }
 0x568   : > { %v2940_v14 = vcvt.s32.f32 %v2938_v2  ;;  %vm5074_vm11 = vcmp.lt.s32.totalorder %v4946_v59, %v4947_v38  ;;  %vm4866_vm1 = vcmp.eq.f32.partialorder %v14659_v22, %v14658_v1  ;;  %vm4867_vm2 = vcmp.eq.f32.partialorder %v14660_v46, %v14658_v1 }
 0x569   : > { %v12792_v37 = vcvt.s32.f32 %v5453_v16  ;;  %vm5158_vm4 = vcmp.lt.s32.totalorder %v4970_v43, %v4971_v11  ;;  %vm4820_vm5 = vcmp.eq.f32.partialorder %v14661_v6, %v12507_v35  ;;  %v5075_v15 = vsel %vm5074_vm11, %v4946_v59, %v4947_v38  ;;  %v5672_v59 = vld [vmem:[%s13450_s6 + $0x8] sm:$0xff]  ;;  %v14672_v38 = vld [vmem:[#allocation151_spill] sm:$0xff] }
 0x56a   : > { %vm4844_vm6 = vcmp.eq.f32.partialorder %v14662_v4, %v14655_v32  ;;  %v4994_v20 = vsel %vm4866_vm1, %v14434_v17, 1024  ;;  %v4995_v48 = vsel %vm4867_vm2, %v14435_v55, 1024  ;;  %v5159_v57 = vsel %vm5158_vm4, %v4970_v43, %v4971_v11  ;;  %v14673_v43 = vld [vmem:[#allocation147_spill] sm:$0xff] }
 0x56b   : > { %v4948_v58 = vsel %vm4820_vm5, %v14456_v7, 1024  ;;  %vm5242_vm10 = vcmp.lt.s32.totalorder %v4994_v20, %v4995_v48  ;;  %vm4821_vm13 = vcmp.eq.f32.partialorder %v14663_v34, %v12507_v35  ;;  %vm4822_vm2 = vcmp.eq.f32.partialorder %v14666_v50, %v12507_v35  ;;  %v14680_v50 = vld [vmem:[#allocation95_spill] sm:$0xff] }
 0x56c   : > { %vm5076_vm8 = vcmp.lt.s32.totalorder %v5075_v15, %v4948_v58  ;;  %v5243_v44 = vsel %vm5242_vm10, %v4994_v20, %v4995_v48  ;;  %vm4846_vm4 = vcmp.eq.f32.partialorder %v14668_v23, %v14655_v32  ;;  %v4950_v36 = vsel %vm4822_vm2, %v14479_v25, 1024  ;;  %v14675_v20 = vld [vmem:[#allocation161_spill] sm:$0xff] }
 0x56d   : > { %v4974_v60 = vsel %vm4846_vm4, %v14479_v25, 1024 }
 0x583   : > { %5148 = vmin.xlane.f32.xlu1 %v12735_v52 }
 0x58b   : > { %5232 = vmin.xlane.f32.xlu1 %v12753_v29 }
 0x593   : > { %5316 = vmin.xlane.f32.xlu1 %v12767_v28 }
 0x596   : > { %v2863_v42 = vpop.xlane.xlu0 %2862 }
 0x597   : > { %v2864_v21 = vcvt.f32.s32 %v2863_v42  ;;  %v14664_v42 = vld [vmem:[#allocation51_spill] sm:$0xff] }
 0x598   : > { %vm4868_vm14 = vcmp.eq.f32.partialorder %v14664_v42, %v14658_v1 }
 0x599   : > { %v2867_v9 = vadd.s32 %v2866_v0, %v2864_v21  ;;  %v5077_v0 = vsel %vm5076_vm8, %v5075_v15, %v4948_v58  ;;  %v14665_v21 = vld [vmem:[#allocation75_spill] sm:$0xff]  ;;  %v4996_v40 = vsel %vm4868_vm14, %v14456_v7, 1024  ;;  %vm4870_vm14 = vcmp.eq.f32.partialorder %v14673_v43, %v14658_v1  ;;  %v14677_v58 = vld [vmem:[#allocation154_spill] sm:$0xff] }
 0x59a   : > { %vm4845_vm15 = vcmp.eq.f32.partialorder %v14665_v21, %v14655_v32  ;;  %vm5244_vm11 = vcmp.lt.s32.totalorder %v5243_v44, %v4996_v40  ;;  %v4998_v15 = vsel %vm4870_vm14, %v14479_v25, 1024 }
 0x59b   : > { %2981 = vst.msk [vmem:[#allocation3 + $0x60] sm:$0xff] %vm13893_vm7, %v2867_v9  ;;  %5372 = vmin.xlane.f32.xlu1 %v12778_v13  ;;  %v4949_v9 = vsel %vm4821_vm13, %v14470_v53, 1024  ;;  %v4973_v30 = vsel %vm4845_vm15, %v14470_v53, 1024  ;;  %v5245_v27 = vsel %vm5244_vm11, %v5243_v44, %v4996_v40  ;;  %vm4823_vm13 = vcmp.eq.f32.partialorder %v14672_v38, %v12507_v35  ;;  %v14679_v40 = vld [vmem:[#allocation162_spill] sm:$0xff] }
 0x59c   : > { %vm5078_vm0 = vcmp.lt.s32.totalorder %v5077_v0, %v4949_v9  ;;  %v4951_v6 = vsel %vm4823_vm13, %v14497_v24, 1024 }
 0x59d   : > { %v5079_v16 = vsel %vm5078_vm0, %v5077_v0, %v4949_v9  ;;  %v5674_v0 = vld [vmem:[%s13450_s6 + $0x18] sm:$0xff] }
 0x59e   : > { %v12780_v45 = vpop.xlane.xlu0 %2914  ;;  %vm5080_vm8 = vcmp.lt.s32.totalorder %v5079_v16, %v4950_v36 }
 0x59f   : > { %vm2916_vm12 = vcmp.eq.f32.partialorder %v12603_v8, %v12780_v45  ;;  %v5081_v11 = vsel %vm5080_vm8, %v5079_v16, %v4950_v36  ;;  %v14682_v16 = vld [vmem:[#allocation129_spill] sm:$0xff]  ;;  %v14683_v36 = vld [vmem:[#allocation11_spill] sm:$0xff] }
 0x5a0   : > { %v2917_v12 = vsel %vm2916_vm12, %v2912_v54, inf  ;;  %v14667_v54 = vld [vmem:[#allocation47_spill] sm:$0xff]  ;;  %vm5082_vm11 = vcmp.lt.s32.totalorder %v5081_v11, %v4951_v6 }
 0x5a1   : > { %2918 = vmin.xlane.f32.xlu2 %v2917_v12  ;;  %v5783_v12 = vld [vmem:[%s13451_s7] sm:$0xff] }
 0x5a3   : > { %5456 = vmin.xlane.f32.xlu1 %v12792_v37  ;;  %v2891_v47 = vpop.xlane.xlu1 %2890 }
 0x5a4   : > { %v2892_v8 = vcvt.f32.s32 %v2891_v47 }
 0x5a6   : > { %v2895_v5 = vadd.s32 %v2894_v61, %v2892_v8  ;;  %v14669_v61 = vld [vmem:[#allocation37_spill] sm:$0xff]  ;;  %v14670_v8 = vld [vmem:[#allocation156_spill] sm:$0xff] }
 0x5a7   : > { %vm4826_vm5 = vcmp.eq.f32.partialorder %v14670_v8, %v14669_v61  ;;  %vm4828_vm2 = vcmp.eq.f32.partialorder %v14675_v20, %v14669_v61  ;;  %vm4829_vm13 = vcmp.eq.f32.partialorder %v14679_v40, %v14669_v61  ;;  %v14691_v20 = vld [vmem:[#allocation107_spill] sm:$0xff] }
 0x5a8   : > { %2982 = vst.msk [vmem:[#allocation3 + $0x68] sm:$0xff] %vm13893_vm7, %v2895_v5  ;;  %v4954_v18 = vsel %vm4826_vm5, %v14434_v17, 1024  ;;  %vm4871_vm5 = vcmp.eq.f32.partialorder %v14677_v58, %v14658_v1  ;;  %v4956_v42 = vsel %vm4828_vm2, %v14456_v7, 1024  ;;  %v14692_v58 = vld [vmem:[#allocation58_spill] sm:$0xff] }
 0x5ab   : > { %v12809_v3 = vpop.xlane.xlu1 %2942 }
 0x5ac   : > { %vm2944_vm3 = vcmp.eq.f32.partialorder %v12619_v33, %v12809_v3  ;;  %v4972_v33 = vsel %vm4844_vm6, %v14456_v7, 1024  ;;  %vm4827_vm6 = vcmp.eq.f32.partialorder %v14671_v26, %v14669_v61 }
 0x5ad   : > { %v2945_v62 = vsel %vm2944_vm3, %v2940_v14, inf  ;;  %vm5160_vm12 = vcmp.lt.s32.totalorder %v5159_v57, %v4972_v33  ;;  %vm4869_vm3 = vcmp.eq.f32.partialorder %v14667_v54, %v14658_v1  ;;  %v4955_v2 = vsel %vm4827_vm6, %v14435_v55, 1024  ;;  %v14674_v14 = vld [vmem:[#allocation96_spill] sm:$0xff]  ;;  %v14681_v54 = vld [vmem:[#allocation93_spill] sm:$0xff] }
 0x5ae   : > { %2946 = vmin.xlane.f32.xlu0 %v2945_v62  ;;  %v5161_v51 = vsel %vm5160_vm12, %v5159_v57, %v4972_v33  ;;  %v4997_v5 = vsel %vm4869_vm3, %v14470_v53, 1024  ;;  %vm4847_vm15 = vcmp.eq.f32.partialorder %v14674_v14, %v14655_v32  ;;  %vm5102_vm0 = vcmp.lt.s32.totalorder %v4954_v18, %v4955_v2  ;;  %v5811_v62 = vld [vmem:[%s13452_s8] sm:$0xff]  ;;  %v14676_v57 = vld [vmem:[#allocation146_spill] sm:$0xff] }
 0x5af   : > { %vm5162_vm1 = vcmp.lt.s32.totalorder %v5161_v51, %v4973_v30  ;;  %vm5246_vm10 = vcmp.lt.s32.totalorder %v5245_v27, %v4997_v5  ;;  %v4975_v4 = vsel %vm4847_vm15, %v14497_v24, 1024  ;;  %v5103_v48 = vsel %vm5102_vm0, %v4954_v18, %v4955_v2  ;;  %v14686_v18 = vld [vmem:[#allocation87_spill] sm:$0xff] }
 0x5b0   : > { %v5163_v47 = vsel %vm5162_vm1, %v5161_v51, %v4973_v30  ;;  %v5247_v22 = vsel %vm5246_vm10, %v5245_v27, %v4997_v5  ;;  %vm4824_vm4 = vcmp.eq.f32.partialorder %v14676_v57, %v12507_v35  ;;  %v5083_v33 = vsel %vm5082_vm11, %v5081_v11, %v4951_v6  ;;  %v14684_v5 = vld [vmem:[#allocation104_spill] sm:$0xff]  ;;  %v14688_v6 = vld [vmem:[#allocation150_spill] sm:$0xff] }
 0x5b1   : > { %vm5164_vm12 = vcmp.lt.s32.totalorder %v5163_v47, %v4974_v60  ;;  %vm5248_vm1 = vcmp.lt.s32.totalorder %v5247_v22, %v4998_v15  ;;  %vm5104_vm8 = vcmp.lt.s32.totalorder %v5103_v48, %v4956_v42  ;;  %v4952_v44 = vsel %vm4824_vm4, %v14525_v41, 1024 }
 0x5b2   : > { %v5165_v46 = vsel %vm5164_vm12, %v5163_v47, %v4974_v60  ;;  %v5249_v34 = vsel %vm5248_vm1, %v5247_v22, %v4998_v15  ;;  %v4999_v51 = vsel %vm4871_vm5, %v14497_v24, 1024  ;;  %vm5084_vm10 = vcmp.lt.s32.totalorder %v5083_v33, %v4952_v44  ;;  %v5784_v60 = vld [vmem:[%s13451_s7 + $0x8] sm:$0xff]  ;;  %v14689_v15 = vld [vmem:[#allocation26_spill] sm:$0xff] }
 0x5b3   : > { %vm5166_vm3 = vcmp.lt.s32.totalorder %v5165_v46, %v4975_v4  ;;  %vm5250_vm12 = vcmp.lt.s32.totalorder %v5249_v34, %v4999_v51  ;;  %v5105_v30 = vsel %vm5104_vm8, %v5103_v48, %v4956_v42  ;;  %vm4825_vm15 = vcmp.eq.f32.partialorder %v14680_v50, %v12507_v35  ;;  %v14685_v35 = vld [vmem:[#allocation82_spill] sm:$0xff]  ;;  %v14695_v42 = vld [vmem:[#allocation137_spill] sm:$0xff] }
 0x5b4   : > { %v5167_v21 = vsel %vm5166_vm3, %v5165_v46, %v4975_v4  ;;  %vm4872_vm0 = vcmp.eq.f32.partialorder %v14681_v54, %v14658_v1  ;;  %vm4849_vm11 = vcmp.eq.f32.partialorder %v14682_v16, %v14655_v32  ;;  %v5251_v23 = vsel %vm5250_vm12, %v5249_v34, %v4999_v51  ;;  %v14690_v4 = vld [vmem:[#allocation160_spill] sm:$0xff]  ;;  %v5786_v34 = vld [vmem:[%s13451_s7 + $0x18] sm:$0xff] }
 0x5b5   : > { %v4957_v27 = vsel %vm4829_vm13, %v14470_v53, 1024  ;;  %v4953_v8 = vsel %vm4825_vm15, %v14548_v31, 1024  ;;  %v5000_v26 = vsel %vm4872_vm0, %v14525_v41, 1024  ;;  %vm4890_vm2 = vcmp.eq.f32.partialorder %v14684_v5, %v14683_v36  ;;  %v14699_v5 = vld [vmem:[#allocation48_spill] sm:$0xff] }
 0x5b6   : > { %vm5106_vm1 = vcmp.lt.s32.totalorder %v5105_v30, %v4957_v27  ;;  %vm4891_vm3 = vcmp.eq.f32.partialorder %v14685_v35, %v14683_v36  ;;  %vm5252_vm5 = vcmp.lt.s32.totalorder %v5251_v23, %v5000_v26  ;;  %v5018_v38 = vsel %vm4890_vm2, %v14434_v17, 1024  ;;  %v14700_v35 = vld [vmem:[#allocation126_spill] sm:$0xff] }
 0x5b7   : > { %v5107_v2 = vsel %vm5106_vm1, %v5105_v30, %v4957_v27  ;;  %v5019_v43 = vsel %vm4891_vm3, %v14435_v55, 1024  ;;  %v5253_v14 = vsel %vm5252_vm5, %v5251_v23, %v5000_v26  ;;  %vm4831_vm13 = vcmp.eq.f32.partialorder %v14688_v6, %v14669_v61 }
 0x5b8   : > { %vm4850_vm0 = vcmp.eq.f32.partialorder %v14690_v4, %v14689_v15  ;;  %vm4892_vm1 = vcmp.eq.f32.partialorder %v14692_v58, %v14683_v36  ;;  %vm4832_vm3 = vcmp.eq.f32.partialorder %v14695_v42, %v14669_v61  ;;  %v14711_v58 = vld [vmem:[#allocation59_spill] sm:$0xff] }
 0x5b9   : > { %5687 = vperm.xlu2 %6491, %v5673_v63   ;;  %v14678_v63 = vld [vmem:[#allocation90_spill] sm:$0xff]  ;;  %v4978_v40 = vsel %vm4850_vm0, %v14434_v17, 1024  ;;  %v5020_v54 = vsel %vm4892_vm1, %v14456_v7, 1024  ;;  %v4960_v23 = vsel %vm4832_vm3, %v14525_v41, 1024 }
 0x5ba   : > { %vm4848_vm6 = vcmp.eq.f32.partialorder %v14678_v63, %v14655_v32  ;;  %v4977_v32 = vsel %vm4849_vm11, %v14548_v31, 1024  ;;  %vm4851_vm11 = vcmp.eq.f32.partialorder %v14691_v20, %v14689_v15  ;;  %v14694_v63 = vld [vmem:[#allocation25_spill] sm:$0xff] }
 0x5bb   : > { %v4976_v9 = vsel %vm4848_vm6, %v14525_v41, 1024  ;;  %vm4830_vm6 = vcmp.eq.f32.partialorder %v14686_v18, %v14669_v61  ;;  %v4979_v30 = vsel %vm4851_vm11, %v14435_v55, 1024  ;;  %v14703_v18 = vld [vmem:[#allocation166_spill] sm:$0xff] }
 0x5bc   : > { %vm5168_vm14 = vcmp.lt.s32.totalorder %v5167_v21, %v4976_v9  ;;  %v4958_v22 = vsel %vm4830_vm6, %v14479_v25, 1024  ;;  %vm4897_vm11 = vcmp.eq.f32.partialorder %v14703_v18, %v14683_v36 }
 0x5bd   : > { %v5169_v47 = vsel %vm5168_vm14, %v5167_v21, %v4976_v9  ;;  %vm5108_vm12 = vcmp.lt.s32.totalorder %v5107_v2, %v4958_v22  ;;  %vm5326_vm14 = vcmp.lt.s32.totalorder %v5018_v38, %v5019_v43  ;;  %v4959_v9 = vsel %vm4831_vm13, %v14497_v24, 1024 }
 0x5be   : > { %vm5170_vm8 = vcmp.lt.s32.totalorder %v5169_v47, %v4977_v32  ;;  %v5109_v57 = vsel %vm5108_vm12, %v5107_v2, %v4958_v22  ;;  %v5327_v21 = vsel %vm5326_vm14, %v5018_v38, %v5019_v43  ;;  %vm5186_vm12 = vcmp.lt.s32.totalorder %v4978_v40, %v4979_v30  ;;  %v14705_v38 = vld [vmem:[#allocation174_spill] sm:$0xff] }
 0x5bf   : > { %v12913_v46 = vsel %vm5170_vm8, %v5169_v47, %v4977_v32  ;;  %vm5110_vm6 = vcmp.lt.s32.totalorder %v5109_v57, %v4959_v9  ;;  %vm4893_vm13 = vcmp.eq.f32.partialorder %v14699_v5, %v14683_v36  ;;  %vm4894_vm14 = vcmp.eq.f32.partialorder %v14700_v35, %v14683_v36  ;;  %v14702_v32 = vld [vmem:[#allocation148_spill] sm:$0xff]  ;;  %v14707_v22 = vld [vmem:[#allocation102_spill] sm:$0xff] }
 0x5c0   : > { %v5173_v48 = vshra.s32 %v12913_v46, 16  ;;  %v5111_v26 = vsel %vm5110_vm6, %v5109_v57, %v4959_v9  ;;  %vm4896_vm0 = vcmp.eq.f32.partialorder %v14702_v32, %v14683_v36  ;;  %v5187_v43 = vsel %vm5186_vm12, %v4978_v40, %v4979_v30  ;;  %v14710_v57 = vld [vmem:[#allocation117_spill] sm:$0xff]  ;;  %v14712_v9 = vld [vmem:[#allocation127_spill] sm:$0xff]  ;;  %v14716_v5 = vld [vmem:[#allocation50_spill] sm:$0xff] }
 0x5c1   : > { %5789 = vperm.xlu2 %6491, %v5783_v12   ;;  %v5085_v12 = vsel %vm5084_vm10, %v5083_v33, %v4952_v44  ;;  %v14693_v33 = vld [vmem:[#allocation35_spill] sm:$0xff]  ;;  %vm5112_vm6 = vcmp.lt.s32.totalorder %v5111_v26, %v4960_v23  ;;  %v5022_v4 = vsel %vm4894_vm14, %v14479_v25, 1024  ;;  %v13008_v40 = vsel %vm4897_vm11, %v14548_v31, 1024  ;;  %v14717_v35 = vld [vmem:[#allocation94_spill] sm:$0xff]  ;;  %v14719_v32 = vld [vmem:[#allocation40_spill] sm:$0xff] }
 0x5c2   : > { %5682 = vperm.xlu0 %6489, %v5672_v59   ;;  %vm5086_vm4 = vcmp.lt.s32.totalorder %v5085_v12, %v4953_v8  ;;  %v14687_v59 = vld [vmem:[#allocation29_spill] sm:$0xff]  ;;  %vm4906_vm2 = vcmp.eq.f32.partialorder %v14694_v63, %v14693_v33  ;;  %v14697_v44 = vld [vmem:[#allocation99_spill] sm:$0xff]  ;;  %v12950_v16 = vcvt.s32.f32 %v5173_v48  ;;  %v14709_v48 = vld [vmem:[#allocation118_spill] sm:$0xff] }
 0x5c3   : > { %vm4873_vm10 = vcmp.eq.f32.partialorder %v14687_v59, %v14658_v1  ;;  %v12910_v11 = vsel %vm5086_vm4, %v5085_v12, %v4953_v8  ;;  %vm4907_vm5 = vcmp.eq.f32.partialorder %v14697_v44, %v14693_v33  ;;  %v14698_v12 = vld [vmem:[#allocation169_spill] sm:$0xff]  ;;  %v5034_v47 = vsel %vm4906_vm2, %v14434_v17, 1024 }
 0x5c4   : > { %v5089_v1 = vshra.s32 %v12910_v11, 16  ;;  %vm4908_vm8 = vcmp.eq.f32.partialorder %v14698_v12, %v14693_v33  ;;  %v5035_v8 = vsel %vm4907_vm5, %v14435_v55, 1024  ;;  %v14704_v59 = vld [vmem:[#allocation5_spill] sm:$0xff]  ;;  %vm4909_vm2 = vcmp.eq.f32.partialorder %v14705_v38, %v14693_v33 }
 0x5c5   : > { %vm4852_vm1 = vcmp.eq.f32.partialorder %v14704_v59, %v14689_v15  ;;  %vm5382_vm3 = vcmp.lt.s32.totalorder %v5034_v47, %v5035_v8  ;;  %vm4930_vm12 = vcmp.eq.f32.partialorder %v14710_v57, %v14709_v48  ;;  %vm4931_vm9 = vcmp.eq.f32.partialorder %v14711_v58, %v14709_v48 }
 0x5c6   : > { %v12945_v50 = vcvt.s32.f32 %v5089_v1  ;;  %v5021_v1 = vsel %vm4893_vm13, %v14470_v53, 1024  ;;  %v4980_v20 = vsel %vm4852_vm1, %v14456_v7, 1024  ;;  %v5383_v63 = vsel %vm5382_vm3, %v5034_v47, %v5035_v8  ;;  %v14713_v8 = vld [vmem:[#allocation175_spill] sm:$0xff] }
 0x5c7   : > { %vm5188_vm7 = vcmp.lt.s32.totalorder %v5187_v43, %v4980_v20  ;;  %v13000_v44 = vsel %vm4896_vm0, %v14525_v41, 1024  ;;  %vm4853_vm13 = vcmp.eq.f32.partialorder %v14712_v9, %v14689_v15  ;;  %v5036_v30 = vsel %vm4908_vm8, %v14456_v7, 1024 }
 0x5c8   : > { %v5189_v47 = vsel %vm5188_vm7, %v5187_v43, %v4980_v20  ;;  %vm4910_vm14 = vcmp.eq.f32.partialorder %v14713_v8, %v14693_v33  ;;  %v4981_v12 = vsel %vm4853_vm13, %v14470_v53, 1024  ;;  %v14720_v43 = vld [vmem:[#allocation124_spill] sm:$0xff] }
 0x5c9   : > { %5817 = vperm.xlu2 %6491, %v5811_v62   ;;  %v5001_v62 = vsel %vm4873_vm10, %v14548_v31, 1024  ;;  %vm5328_vm10 = vcmp.lt.s32.totalorder %v5327_v21, %v5020_v54 }
 0x5ca   : > { %5692 = vperm.xlu0 %6489, %v5674_v0   ;;  %vm5254_vm15 = vcmp.lt.s32.totalorder %v5253_v14, %v5001_v62  ;;  %v14696_v0 = vld [vmem:[#allocation140_spill] sm:$0xff]  ;;  %v5329_v2 = vsel %vm5328_vm10, %v5327_v21, %v5020_v54  ;;  %v5058_v54 = vsel %vm4930_vm12, %v14434_v17, 1024 }
 0x5cb   : > { %vm4833_vm4 = vcmp.eq.f32.partialorder %v14696_v0, %v14669_v61  ;;  %v12937_v51 = vsel %vm5254_vm15, %v5253_v14, %v5001_v62  ;;  %v14706_v14 = vld [vmem:[#allocation121_spill] sm:$0xff]  ;;  %vm5330_vm10 = vcmp.lt.s32.totalorder %v5329_v2, %v5021_v1  ;;  %v5113_v0 = vsel %vm5112_vm6, %v5111_v26, %v4960_v23  ;;  %v14715_v26 = vld [vmem:[#allocation42_spill] sm:$0xff] }
 0x5cc   : > { %v4961_v61 = vsel %vm4833_vm4, %v14548_v31, 1024  ;;  %v5257_v27 = vshra.s32 %v12937_v51, 16  ;;  %vm4874_vm4 = vcmp.eq.f32.partialorder %v14707_v22, %v14706_v14  ;;  %v14708_v62 = vld [vmem:[#allocation49_spill] sm:$0xff]  ;;  %v5059_v23 = vsel %vm4931_vm9, %v14435_v55, 1024 }
 0x5cd   : > { %vm4875_vm5 = vcmp.eq.f32.partialorder %v14708_v62, %v14706_v14  ;;  %vm5114_vm1 = vcmp.lt.s32.totalorder %v5113_v0, %v4961_v61  ;;  %vm4855_vm3 = vcmp.eq.f32.partialorder %v14715_v26, %v14689_v15  ;;  %vm4876_vm9 = vcmp.eq.f32.partialorder %v14716_v5, %v14706_v14  ;;  %v14721_v62 = vld [vmem:[#allocation85_spill] sm:$0xff]  ;;  %v14728_v26 = vld [vmem:[#allocation122_spill] sm:$0xff] }
 0x5ce   : > { %v12981_v6 = vcvt.s32.f32 %v5257_v27  ;;  %v5003_v42 = vsel %vm4875_vm5, %v14435_v55, 1024  ;;  %v5331_v27 = vsel %vm5330_vm10, %v5329_v2, %v5021_v1  ;;  %vm5466_vm8 = vcmp.lt.s32.totalorder %v5058_v54, %v5059_v23 }
 0x5cf   : > { %vm5332_vm5 = vcmp.lt.s32.totalorder %v5331_v27, %v5022_v4  ;;  %vm5190_vm6 = vcmp.lt.s32.totalorder %v5189_v47, %v4981_v12  ;;  %v13030_v59 = vsel %vm5114_vm1, %v5113_v0, %v4961_v61  ;;  %vm4856_vm10 = vcmp.eq.f32.partialorder %v14720_v43, %v14689_v15  ;;  %v14732_v43 = vld [vmem:[#allocation54_spill] sm:$0xff] }
 0x5d0   : > { %v5037_v22 = vsel %vm4909_vm2, %v14470_v53, 1024  ;;  %vm4932_vm12 = vcmp.eq.f32.partialorder %v14721_v62, %v14709_v48  ;;  %v5004_v1 = vsel %vm4876_vm9, %v14456_v7, 1024  ;;  %v5467_v20 = vsel %vm5466_vm8, %v5058_v54, %v5059_v23 }
 0x5d1   : > { %v5333_v61 = vsel %vm5332_vm5, %v5331_v27, %v5022_v4  ;;  %v5117_v38 = vshra.s32 %v13030_v59, 16  ;;  %v5060_v9 = vsel %vm4932_vm12, %v14456_v7, 1024  ;;  %v4983_v4 = vsel %vm4855_vm3, %v14497_v24, 1024  ;;  %v14725_v27 = vld [vmem:[#allocation65_spill] sm:$0xff] }
 0x5d2   : > { %5794 = vperm.xlu0 %6489, %v5784_v60   ;;  %v14701_v60 = vld [vmem:[#allocation130_spill] sm:$0xff]  ;;  %vm5468_vm9 = vcmp.lt.s32.totalorder %v5467_v20, %v5060_v9  ;;  %v5038_v5 = vsel %vm4910_vm14, %v14479_v25, 1024  ;;  %v4984_v8 = vsel %vm4856_vm10, %v14525_v41, 1024  ;;  %vm4917_vm10 = vcmp.eq.f32.partialorder %v14732_v43, %v14717_v35 }
 0x5d3   : > { %vm4895_vm15 = vcmp.eq.f32.partialorder %v14701_v60, %v14683_v36  ;;  %v14714_v36 = vld [vmem:[#allocation73_spill] sm:$0xff]  ;;  %v14718_v60 = vld [vmem:[#allocation52_spill] sm:$0xff] }
 0x5d4   : > { %v5023_v21 = vsel %vm4895_vm15, %v14497_v24, 1024  ;;  %vm5384_vm15 = vcmp.lt.s32.totalorder %v5383_v63, %v5036_v30  ;;  %vm4854_vm11 = vcmp.eq.f32.partialorder %v14714_v36, %v14689_v15  ;;  %vm4914_vm7 = vcmp.eq.f32.partialorder %v14718_v60, %v14717_v35  ;;  %v14727_v36 = vld [vmem:[#allocation74_spill] sm:$0xff] }
 0x5d5   : > { %v5385_v18 = vsel %vm5384_vm15, %v5383_v63, %v5036_v30  ;;  %v5042_v57 = vsel %vm4914_vm7, %v14434_v17, 1024  ;;  %v5191_v63 = vsel %vm5190_vm6, %v5189_v47, %v4981_v12  ;;  %v4982_v0 = vsel %vm4854_vm11, %v14479_v25, 1024  ;;  %v14724_v30 = vld [vmem:[#allocation33_spill] sm:$0xff]  ;;  %v14726_v47 = vld [vmem:[#allocation176_spill] sm:$0xff] }
 0x5d6   : > { %vm5386_vm15 = vcmp.lt.s32.totalorder %v5385_v18, %v5037_v22  ;;  %vm4877_vm1 = vcmp.eq.f32.partialorder %v14724_v30, %v14706_v14  ;;  %vm5334_vm7 = vcmp.lt.s32.totalorder %v5333_v61, %v5023_v21  ;;  %vm4933_vm11 = vcmp.eq.f32.partialorder %v14725_v27, %v14709_v48  ;;  %v14729_v12 = vld [vmem:[#allocation72_spill] sm:$0xff] }
 0x5d7   : > { %v5387_v54 = vsel %vm5386_vm15, %v5385_v18, %v5037_v22  ;;  %vm4916_vm5 = vcmp.eq.f32.partialorder %v14726_v47, %v14717_v35  ;;  %vm4938_vm3 = vcmp.eq.f32.partialorder %v14728_v26, %v14727_v36  ;;  %vm4939_vm6 = vcmp.eq.f32.partialorder %v14729_v12, %v14727_v36  ;;  %v14734_v47 = vld [vmem:[#allocation57_spill] sm:$0xff]  ;;  %v14735_v26 = vld [vmem:[#allocation78_spill] sm:$0xff] }
 0x5d8   : > { %v5005_v60 = vsel %vm4877_vm1, %v14470_v53, 1024  ;;  %vm5388_vm12 = vcmp.lt.s32.totalorder %v5387_v54, %v5038_v5  ;;  %v5061_v62 = vsel %vm4933_vm11, %v14470_v53, 1024  ;;  %v5066_v30 = vsel %vm4938_vm3, %v14434_v17, 1024 }
 0x5d9   : > { %v5067_v27 = vsel %vm4939_vm6, %v14435_v55, 1024  ;;  %vm4879_vm3 = vcmp.eq.f32.partialorder %v14735_v26, %v14706_v14 }
 0x5da   : > { %5804 = vperm.xlu0 %6489, %v5786_v34   ;;  %v5002_v34 = vsel %vm4874_vm4, %v14434_v17, 1024  ;;  %vm4915_vm4 = vcmp.eq.f32.partialorder %v14719_v32, %v14717_v35  ;;  %v5469_v32 = vsel %vm5468_vm9, %v5467_v20, %v5060_v9  ;;  %v14730_v20 = vld [vmem:[#allocation69_spill] sm:$0xff]  ;;  %v5389_v17 = vsel %vm5388_vm12, %v5387_v54, %v5038_v5 }
 0x5db   : > { %vm5270_vm0 = vcmp.lt.s32.totalorder %v5002_v34, %v5003_v42  ;;  %v5043_v58 = vsel %vm4915_vm4, %v14435_v55, 1024  ;;  %vm5192_vm4 = vcmp.lt.s32.totalorder %v5191_v63, %v4982_v0  ;;  %vm4878_vm14 = vcmp.eq.f32.partialorder %v14730_v20, %v14706_v14 }
 0x5dc   : > { %v5271_v2 = vsel %vm5270_vm0, %v5002_v34, %v5003_v42  ;;  %v14722_v34 = vld [vmem:[#allocation177_spill] sm:$0xff]  ;;  %v14723_v42 = vld [vmem:[#allocation80_spill] sm:$0xff]  ;;  %vm5410_vm8 = vcmp.lt.s32.totalorder %v5042_v57, %v5043_v58  ;;  %v5193_v22 = vsel %vm5192_vm4, %v5191_v63, %v4982_v0  ;;  %vm5494_vm4 = vcmp.lt.s32.totalorder %v5066_v30, %v5067_v27 }
 0x5dd   : > { %vm4911_vm13 = vcmp.eq.f32.partialorder %v14722_v34, %v14693_v33  ;;  %vm5272_vm0 = vcmp.lt.s32.totalorder %v5271_v2, %v5004_v1  ;;  %vm4857_vm2 = vcmp.eq.f32.partialorder %v14723_v42, %v14689_v15  ;;  %v5411_v18 = vsel %vm5410_vm8, %v5042_v57, %v5043_v58  ;;  %v14731_v57 = vld [vmem:[#allocation181_spill] sm:$0xff]  ;;  %v14733_v0 = vld [vmem:[#allocation36_spill] sm:$0xff] }
 0x5de   : > { %v5273_v23 = vsel %vm5272_vm0, %v5271_v2, %v5004_v1  ;;  %v5335_v2 = vsel %vm5334_vm7, %v5333_v61, %v5023_v21  ;;  %v5044_v1 = vsel %vm4916_vm5, %v14456_v7, 1024  ;;  %vm5470_vm0 = vcmp.lt.s32.totalorder %v5469_v32, %v5061_v62 }
 0x5df   : > { %vm5274_vm15 = vcmp.lt.s32.totalorder %v5273_v23, %v5005_v60  ;;  %vm5412_vm1 = vcmp.lt.s32.totalorder %v5411_v18, %v5044_v1  ;;  %vm5336_vm9 = vcmp.lt.s32.totalorder %v5335_v2, %v13000_v44  ;;  %v13088_v21 = vsel %vm4857_vm2, %v14548_v31, 1024 }
 0x5e0   : > { %v5275_v55 = vsel %vm5274_vm15, %v5273_v23, %v5005_v60  ;;  %vm5194_vm8 = vcmp.lt.s32.totalorder %v5193_v22, %v4983_v4  ;;  %vm4934_vm7 = vcmp.eq.f32.partialorder %v14731_v57, %v14709_v48  ;;  %v5039_v58 = vsel %vm4911_vm13, %v14497_v24, 1024  ;;  %v14737_v60 = vld [vmem:[#allocation62_spill] sm:$0xff] }
 0x5e1   : > { %v5006_v61 = vsel %vm4878_vm14, %v14479_v25, 1024  ;;  %v5471_v15 = vsel %vm5470_vm0, %v5469_v32, %v5061_v62  ;;  %v5413_v63 = vsel %vm5412_vm1, %v5411_v18, %v5044_v1  ;;  %v5337_v42 = vsel %vm5336_vm9, %v5335_v2, %v13000_v44 }
 0x5e2   : > { %vm5390_vm2 = vcmp.lt.s32.totalorder %v5389_v17, %v5039_v58  ;;  %vm5276_vm11 = vcmp.lt.s32.totalorder %v5275_v55, %v5006_v61  ;;  %vm4940_vm5 = vcmp.eq.f32.partialorder %v14733_v0, %v14727_v36  ;;  %v5195_v9 = vsel %vm5194_vm8, %v5193_v22, %v4983_v4  ;;  %v14736_v4 = vld [vmem:[#allocation32_spill] sm:$0xff] }
 0x5e3   : > { %v5062_v54 = vsel %vm4934_vm7, %v14479_v25, 1024  ;;  %v5045_v23 = vsel %vm4917_vm10, %v14470_v53, 1024  ;;  %v5495_v34 = vsel %vm5494_vm4, %v5066_v30, %v5067_v27  ;;  %vm4912_vm13 = vcmp.eq.f32.partialorder %v14734_v47, %v14693_v33 }
 0x5e4   : > { %vm5472_vm6 = vcmp.lt.s32.totalorder %v5471_v15, %v5062_v54  ;;  %vm5414_vm12 = vcmp.lt.s32.totalorder %v5413_v63, %v5045_v23  ;;  %vm5338_vm15 = vcmp.lt.s32.totalorder %v5337_v42, %v13008_v40  ;;  %v5391_v44 = vsel %vm5390_vm2, %v5389_v17, %v5039_v58  ;;  %v14739_v17 = vld [vmem:[#allocation81_spill] sm:$0xff]  ;;  %v14741_v58 = vld [vmem:[#allocation67_spill] sm:$0xff] }
 0x5e5   : > { %v5277_v12 = vsel %vm5276_vm11, %v5275_v55, %v5006_v61  ;;  %v5068_v5 = vsel %vm4940_vm5, %v14456_v7, 1024  ;;  %vm5196_vm14 = vcmp.lt.s32.totalorder %v5195_v9, %v4984_v8  ;;  %vm4935_vm0 = vcmp.eq.f32.partialorder %v14736_v4, %v14709_v48  ;;  %v14738_v7 = vld [vmem:[#allocation15_spill] sm:$0xff]  ;;  %v14740_v55 = vld [vmem:[#allocation89_spill] sm:$0xff]  ;;  %v14742_v61 = vld [vmem:[#allocation56_spill] sm:$0xff] }
 0x5e6   : > { %vm4918_vm1 = vcmp.eq.f32.partialorder %v14737_v60, %v14717_v35  ;;  %vm5496_vm9 = vcmp.lt.s32.totalorder %v5495_v34, %v5068_v5  ;;  %v5040_v32 = vsel %vm4912_vm13, %v14525_v41, 1024  ;;  %v5007_v18 = vsel %vm4879_vm3, %v14497_v24, 1024  ;;  %v14746_v4 = vld [vmem:[#allocation61_spill] sm:$0xff] }
 0x5e7   : > { %v5473_v2 = vsel %vm5472_vm6, %v5471_v15, %v5062_v54  ;;  %v5415_v22 = vsel %vm5414_vm12, %v5413_v63, %v5045_v23  ;;  %v13118_v62 = vsel %vm5338_vm15, %v5337_v42, %v13008_v40  ;;  %vm5392_vm8 = vcmp.lt.s32.totalorder %v5391_v44, %v5040_v32 }
 0x5e8   : > { %vm5278_vm7 = vcmp.lt.s32.totalorder %v5277_v12, %v5007_v18  ;;  %vm4941_vm10 = vcmp.eq.f32.partialorder %v14738_v7, %v14727_v36  ;;  %v5197_v1 = vsel %vm5196_vm14, %v5195_v9, %v4984_v8  ;;  %v5063_v30 = vsel %vm4935_vm0, %v14497_v24, 1024 }
 0x5e9   : > { %v5046_v27 = vsel %vm4918_vm1, %v14479_v25, 1024  ;;  %v5497_v20 = vsel %vm5496_vm9, %v5495_v34, %v5068_v5  ;;  %vm4913_vm4 = vcmp.eq.f32.partialorder %v14739_v17, %v14693_v33  ;;  %vm4880_vm2 = vcmp.eq.f32.partialorder %v14740_v55, %v14706_v14  ;;  %v14745_v5 = vld [vmem:[#allocation92_spill] sm:$0xff] }
 0x5ea   : > { %vm5474_vm11 = vcmp.lt.s32.totalorder %v5473_v2, %v5063_v30  ;;  %vm5416_vm5 = vcmp.lt.s32.totalorder %v5415_v22, %v5046_v27  ;;  %v5341_v40 = vshra.s32 %v13118_v62, 16  ;;  %v5393_v57 = vsel %vm5392_vm8, %v5391_v44, %v5040_v32 }
 0x5eb   : > { %v5279_v43 = vsel %vm5278_vm7, %v5277_v12, %v5007_v18  ;;  %v5069_v8 = vsel %vm4941_vm10, %v14470_v53, 1024  ;;  %vm5198_vm13 = vcmp.lt.s32.totalorder %v5197_v1, %v13088_v21  ;;  %vm4936_vm3 = vcmp.eq.f32.partialorder %v14741_v58, %v14709_v48  ;;  %v14743_v53 = vld [vmem:[#allocation143_spill] sm:$0xff] }
 0x5ec   : > { %vm4919_vm6 = vcmp.eq.f32.partialorder %v14742_v61, %v14717_v35  ;;  %vm5498_vm12 = vcmp.lt.s32.totalorder %v5497_v20, %v5069_v8  ;;  %v5041_v33 = vsel %vm4913_vm4, %v14548_v31, 1024  ;;  %v5008_v15 = vsel %vm4880_vm2, %v14525_v41, 1024 }
 0x5ed   : > { %v5475_v63 = vsel %vm5474_vm11, %v5473_v2, %v5063_v30  ;;  %v5417_v42 = vsel %vm5416_vm5, %v5415_v22, %v5046_v27  ;;  %v13140_v0 = vcvt.s32.f32 %v5117_v38  ;;  %vm5394_vm15 = vcmp.lt.s32.totalorder %v5393_v57, %v5041_v33  ;;  %v14744_v38 = vld [vmem:[#allocation6_spill] sm:$0xff] }
 0x5ee   : > { %vm5280_vm14 = vcmp.lt.s32.totalorder %v5279_v43, %v5008_v15  ;;  %vm4942_vm0 = vcmp.eq.f32.partialorder %v14743_v53, %v14727_v36  ;;  %v13145_v9 = vsel %vm5198_vm13, %v5197_v1, %v13088_v21  ;;  %v5064_v54 = vsel %vm4936_vm3, %v14525_v41, 1024 }
 0x5ef   : > { %v5047_v23 = vsel %vm4919_vm6, %v14497_v24, 1024  ;;  %v5499_v34 = vsel %vm5498_vm12, %v5497_v20, %v5069_v8  ;;  %v13150_v47 = vcvt.s32.f32 %v5341_v40  ;;  %vm4881_vm1 = vcmp.eq.f32.partialorder %v14744_v38, %v14706_v14  ;;  %v14748_v20 = vld [vmem:[#allocation178_spill] sm:$0xff] }
 0x5f0   : > { %vm5476_vm9 = vcmp.lt.s32.totalorder %v5475_v63, %v5064_v54  ;;  %vm5418_vm8 = vcmp.lt.s32.totalorder %v5417_v42, %v5047_v23  ;;  %v13154_v26 = vsel %vm5394_vm15, %v5393_v57, %v5041_v33  ;;  %v5281_v44 = vsel %vm5280_vm14, %v5279_v43, %v5008_v15  ;;  %v14749_v43 = vld [vmem:[#allocation153_spill] sm:$0xff] }
 0x5f1   : > { %v5070_v21 = vsel %vm4942_vm0, %v14479_v25, 1024  ;;  %v5201_v12 = vshra.s32 %v13145_v9, 16  ;;  %vm4937_vm7 = vcmp.eq.f32.partialorder %v14745_v5, %v14709_v48  ;;  %vm4920_vm10 = vcmp.eq.f32.partialorder %v14746_v4, %v14717_v35  ;;  %v14747_v25 = vld [vmem:[#allocation142_spill] sm:$0xff]  ;;  %v5712_v4 = vpop.f32.mrf.mxu0 }
 0x5f2   : > { %5092 = vmin.xlane.f32.xlu2 %v12945_v50  ;;  %vm5500_vm4 = vcmp.lt.s32.totalorder %v5499_v34, %v5070_v21  ;;  %v5009_v14 = vsel %vm4881_vm1, %v14548_v31, 1024  ;;  %v5477_v60 = vsel %vm5476_vm9, %v5475_v63, %v5064_v54  ;;  %v5419_v32 = vsel %vm5418_vm8, %v5417_v42, %v5047_v23  ;;  %v14750_v23 = vld [vmem:[#allocation31_spill] sm:$0xff] }
 0x5f3   : > { %v5397_v18 = vshra.s32 %v13154_v26, 16  ;;  %vm5282_vm2 = vcmp.lt.s32.totalorder %v5281_v44, %v5009_v14  ;;  %vm4943_vm11 = vcmp.eq.f32.partialorder %v14747_v25, %v14727_v36  ;;  %v5065_v2 = vsel %vm4937_vm7, %v14548_v31, 1024 }
 0x5f4   : > { %v5048_v22 = vsel %vm4920_vm10, %v14525_v41, 1024  ;;  %v5501_v7 = vsel %vm5500_vm4, %v5499_v34, %v5070_v21  ;;  %v13169_v48 = vcvt.s32.f32 %v5201_v12  ;;  %vm5478_vm5 = vcmp.lt.s32.totalorder %v5477_v60, %v5065_v2 }
 0x5f5   : > { %vm5420_vm13 = vcmp.lt.s32.totalorder %v5419_v32, %v5048_v22  ;;  %v13171_v1 = vsel %vm5282_vm2, %v5281_v44, %v5009_v14  ;;  %v5071_v30 = vsel %vm4943_vm11, %v14497_v24, 1024  ;;  %v13175_v27 = vcvt.s32.f32 %v5397_v18  ;;  %v5678_v24 = vpop.permute.xlu1 %5677 }
 0x5f6   : > { %vm4921_vm3 = vcmp.eq.f32.partialorder %v14748_v20, %v14717_v35  ;;  %vm5502_vm6 = vcmp.lt.s32.totalorder %v5501_v7, %v5071_v30  ;;  %v2921_v17 = vcvt.f32.s32 %v12780_v45  ;;  %v13180_v55 = vsel %vm5478_vm5, %v5477_v60, %v5065_v2 }
 0x5f7   : > { %v5421_v40 = vsel %vm5420_vm13, %v5419_v32, %v5048_v22  ;;  %v5285_v57 = vshra.s32 %v13171_v1, 16  ;;  %vm4944_vm12 = vcmp.eq.f32.partialorder %v14749_v43, %v14727_v36  ;;  %v5049_v8 = vsel %vm4921_vm3, %v14548_v31, 1024 }
 0x5f8   : > { %v5503_v58 = vsel %vm5502_vm6, %v5501_v7, %v5071_v30  ;;  %v5481_v35 = vshra.s32 %v13180_v55, 16  ;;  %vm5422_vm15 = vcmp.lt.s32.totalorder %v5421_v40, %v5049_v8  ;;  %v2922_v33 = vshll.u32 %v2921_v17, 16 }
 0x5f9   : > { %v5072_v15 = vsel %vm4944_vm12, %v14525_v41, 1024  ;;  %v13189_v63 = vcvt.s32.f32 %v5285_v57  ;;  %v13191_v53 = vsel %vm5422_vm15, %v5421_v40, %v5049_v8  ;;  %vm4945_vm0 = vcmp.eq.f32.partialorder %v14750_v23, %v14727_v36 }
 0x5fa   : > { %5176 = vmin.xlane.f32.xlu2 %v12950_v16  ;;  %vm5504_vm14 = vcmp.lt.s32.totalorder %v5503_v58, %v5072_v15  ;;  %v13194_v54 = vcvt.s32.f32 %v5481_v35  ;;  %vm14751_vm1 = vcmask 7168   ;;  %v5425_v41 = vshra.s32 %v13191_v53, 16 }
 0x5fb   : > { %v5505_v34 = vsel %vm5504_vm14, %v5503_v58, %v5072_v15  ;;  %v5073_v38 = vsel %vm4945_vm0, %v14548_v31, 1024  ;;  %v2949_v36 = vcvt.f32.s32 %v12809_v3  ;;  %v5144_v2 = vand.u32 65535, %v12716_v39  ;;  %vm14752_vm8 = vmmov %vm14751_vm1  ;;  %v5715_v3 = vpop.f32.mrf.mxu0 }
 0x5fc   : > { %vm5506_vm9 = vcmp.lt.s32.totalorder %v5505_v34, %v5073_v38  ;;  %v13204_v21 = vcvt.s32.f32 %v5425_v41  ;;  %v5228_v20 = vand.u32 65535, %v12739_v56  ;;  %v6843_v57 = vmov 32.0  }
 0x5fd   : > { %v13202_v44 = vpop.permute.xlu1 %5799  ;;  %v13206_v12 = vsel %vm5506_vm9, %v5505_v34, %v5073_v38  ;;  %v2950_v32 = vshll.u32 %v2949_v36, 16  ;;  %v5146_v22 = vcvt.s32.f32 %v5144_v2  ;;  %6780 = vrcp.f32 %v6843_v57 }
 0x5fe   : > { %v5509_v5 = vshra.s32 %v13206_v12, 16  ;;  %v5230_v17 = vcvt.s32.f32 %v5228_v20  ;;  %v5713_v8 = vadd.f32 %v5712_v4, %v5678_v24  ;;  %vm5724_vm4 = vcmask 15360  }
 0x600   : > { %v13213_v31 = vcvt.s32.f32 %v5509_v5 }
 0x602   : > { %5260 = vmin.xlane.f32.xlu2 %v12981_v6 }
 0x603   : > { %v5718_v40 = vpop.f32.mrf.mxu0 }
 0x604   : > { %5120 = vmin.xlane.f32.xlu0 %v13140_v0 }
 0x605   : > { %v13211_v14 = vpop.xlane.xlu1 %5148 }
 0x606   : > { %vm5150_vm7 = vcmp.eq.f32.partialorder %v12735_v52, %v13211_v14 }
 0x607   : > { %v5151_v30 = vsel %vm5150_vm7, %v5146_v22, inf }
 0x60a   : > { %5344 = vmin.xlane.f32.xlu2 %v13150_v47 }
 0x60b   : > { %v5721_v23 = vpop.f32.mrf.mxu0 }
 0x60c   : > { %5204 = vmin.xlane.f32.xlu0 %v13169_v48 }
 0x60d   : > { %v13220_v7 = vpop.xlane.xlu1 %5232 }
 0x60e   : > { %vm5234_vm10 = vcmp.eq.f32.partialorder %v12753_v29, %v13220_v7  ;;  %v5725_v29 = vsel %vm5724_vm4, %v5713_v8, 0.0 }
 0x60f   : > { %v5235_v39 = vsel %vm5234_vm10, %v5230_v17, inf }
 0x612   : > { %5400 = vmin.xlane.f32.xlu2 %v13175_v27 }
 0x614   : > { %v2919_v61 = vpop.xlane.xlu2 %2918  ;;  %5288 = vmin.xlane.f32.xlu0 %v13189_v63 }
 0x615   : > { %v2920_v45 = vcvt.f32.s32 %v2919_v61  ;;  %v13225_v52 = vpop.xlane.xlu1 %5316  ;;  %v5312_v61 = vand.u32 65535, %v12755_v49 }
 0x616   : > { %vm5318_vm2 = vcmp.eq.f32.partialorder %v12767_v28, %v13225_v52 }
 0x617   : > { %v2923_v42 = vadd.s32 %v2922_v33, %v2920_v45  ;;  %v6781_v33 = vpop.eup %6780  ;;  %v5314_v15 = vcvt.s32.f32 %v5312_v61 }
 0x618   : > { %v5739_v24 = vmul.f32 32.0, %v6781_v33  ;;  %vm5743_vm11 = vweird.f32 %v6781_v33 }
 0x619   : > { %2983 = vst.msk [vmem:[#allocation3 + $0x70] sm:$0xff] %vm14751_vm1, %v2923_v42  ;;  %v5319_v34 = vsel %vm5318_vm2, %v5314_v15, inf }
 0x61a   : > { %5484 = vmin.xlane.f32.xlu2 %v13194_v54  ;;  %v5740_v5 = vsub.f32 1.0, %v5739_v24 }
 0x61c   : > { %5428 = vmin.xlane.f32.xlu0 %v13204_v21  ;;  %v5688_v35 = vpop.permute.xlu2 %5687  ;;  %v5741_v28 = vmul.f32 %v6781_v33, %v5740_v5 }
 0x61d   : > { %v5719_v45 = vadd.f32 %v5718_v40, %v5688_v35 }
 0x61e   : > { %v5742_v2 = vadd.f32 %v6781_v33, %v5741_v28 }
 0x61f   : > { %v5728_v49 = vsel %vm5724_vm4, %v5719_v45, 0.0 }
 0x621   : > { %v2947_v60 = vpop.xlane.xlu0 %2946 }
 0x622   : > { %v2948_v18 = vcvt.f32.s32 %v2947_v60 }
 0x624   : > { %v2951_v25 = vadd.s32 %v2950_v32, %v2948_v18  ;;  %5512 = vmin.xlane.f32.xlu0 %v13213_v31  ;;  %v13242_v61 = vpop.permute.xlu2 %5789 }
 0x626   : > { %2984 = vst.msk [vmem:[#allocation3 + $0x78] sm:$0xff] %vm14752_vm8, %v2951_v25 }
 0x62c   : > { %5152 = vmin.xlane.f32.xlu0 %v5151_v30  ;;  %v5744_v30 = vsel %vm5743_vm11, %v6781_v33, %v5742_v2 }
 0x634   : > { %v5683_v43 = vpop.permute.xlu0 %5682  ;;  %5236 = vmin.xlane.f32.xlu0 %v5235_v39 }
 0x635   : > { %v5716_v58 = vadd.f32 %v5715_v3, %v5683_v43 }
 0x637   : > { %v5726_v56 = vsel %vm5724_vm4, %v5716_v58, 0.0 }
 0x638   : > { %v5727_v42 = vadd.f32 %v5726_v56, %v5725_v29 }
 0x63a   : > { %v5729_v36 = vadd.f32 %v5728_v49, %v5727_v42 }
 0x63c   : > { %v5693_v41 = vpop.permute.xlu0 %5692  ;;  %5320 = vmin.xlane.f32.xlu0 %v5319_v34  ;;  %v13256_v34 = vpop.permute.xlu2 %5817 }
 0x63d   : > { %v5722_v38 = vadd.f32 %v5721_v23, %v5693_v41 }
 0x63f   : > { %v5730_v4 = vsel %vm5724_vm4, %v5722_v38, 0.0 }
 0x640   : > { %v5731_v60 = vadd.f32 %v5730_v4, %v5729_v36  ;;  %v5088_v36 = vand.u32 65535, %v12910_v11 }
 0x642   : > { %v5732_v32 = vrot.slane %v5731_v60, 4 }
 0x644   : > { %v5733_v18 = vadd.f32 %v5732_v32, %v5731_v60  ;;  %v5090_v32 = vcvt.s32.f32 %v5088_v36  ;;  %v5795_v28 = vpop.permute.xlu0 %5794 }
 0x646   : > { %v5734_v25 = vrot.slane %v5733_v18, 2 }
 0x648   : > { %v5735_v3 = vadd.f32 %v5734_v25, %v5733_v18 }
 0x64a   : > { %v5736_v22 = vrot.slane %v5735_v3, 1 }
 0x64c   : > { %v5737_v20 = vadd.f32 %v5736_v22, %v5735_v3  ;;  %v5172_v3 = vand.u32 65535, %v12913_v46  ;;  %v5116_v46 = vand.u32 65535, %v13030_v59 }
 0x64e   : > { %v5745_v17 = vmul.f32 %v5744_v30, %v5737_v20  ;;  %v5174_v11 = vcvt.s32.f32 %v5172_v3 }
 0x650   : > { %v13234_v40 = vsub.f32 %v5719_v45, %v5745_v17  ;;  %v13236_v57 = vsub.f32 %v5722_v38, %v5745_v17  ;;  %v13238_v39 = vsub.f32 %v5713_v8, %v5745_v17  ;;  %v13240_v43 = vsub.f32 %v5716_v58, %v5745_v17 }
 0x652   : > { %v5750_v35 = vmul.f32 %v13238_v39, %v13238_v39  ;;  %v5751_v56 = vmul.f32 %v13240_v43, %v13240_v43  ;;  %v5752_v33 = vmul.f32 %v13234_v40, %v13234_v40  ;;  %v5753_v29 = vmul.f32 %v13236_v57, %v13236_v57 }
 0x654   : > { %v5754_v45 = vsel %vm5724_vm4, %v5750_v35, 0.0  ;;  %v5755_v8 = vsel %vm5724_vm4, %v5751_v56, 0.0  ;;  %v5757_v15 = vsel %vm5724_vm4, %v5752_v33, 0.0  ;;  %v5759_v23 = vsel %vm5724_vm4, %v5753_v29, 0.0  ;;  %v5805_v35 = vpop.permute.xlu0 %5804 }
 0x655   : > { %v5756_v58 = vadd.f32 %v5755_v8, %v5754_v45 }
 0x657   : > { %v5758_v42 = vadd.f32 %v5757_v15, %v5756_v58  ;;  %v5118_v15 = vcvt.s32.f32 %v5116_v46 }
 0x659   : > { %v5760_v24 = vadd.f32 %v5759_v23, %v5758_v42  ;;  %v5340_v42 = vand.u32 65535, %v13118_v62 }
 0x65b   : > { %v5761_v41 = vrot.slane %v5760_v24, 4 }
 0x65d   : > { %v5762_v49 = vadd.f32 %v5761_v41, %v5760_v24  ;;  %v5200_v41 = vand.u32 65535, %v13145_v9 }
 0x65f   : > { %v5763_v38 = vrot.slane %v5762_v49, 2  ;;  %v5202_v9 = vcvt.s32.f32 %v5200_v41  ;;  %v5814_v41 = vld [vmem:[%s13452_s8 + $0x18] sm:$0xff] }
 0x661   : > { %v5764_v5 = vadd.f32 %v5763_v38, %v5762_v49 }
 0x663   : > { %v5765_v4 = vrot.slane %v5764_v5, 1 }
 0x665   : > { %v13259_v60 = vpop.xlane.xlu2 %5092  ;;  %v5766_v18 = vadd.f32 %v5765_v4, %v5764_v5 }
 0x666   : > { %vm5094_vm5 = vcmp.eq.f32.partialorder %v12945_v50, %v13259_v60  ;;  %v5256_v50 = vand.u32 65535, %v12937_v51 }
 0x667   : > { %v5095_v25 = vsel %vm5094_vm5, %v5090_v32, inf  ;;  %v5767_v2 = vmul.f32 %v5766_v18, %v5744_v30  ;;  %v5396_v32 = vand.u32 65535, %v13154_v26  ;;  %v5480_v26 = vand.u32 65535, %v13180_v55 }
 0x668   : > { %5096 = vmin.xlane.f32.xlu1 %v5095_v25  ;;  %v5258_v30 = vcvt.s32.f32 %v5256_v50 }
 0x669   : > { %v5768_v22 = vadd.f32 1e-05, %v5767_v2  ;;  %v5398_v18 = vcvt.s32.f32 %v5396_v32 }
 0x66b   : > { %6782 = vrsqrt.f32 %v5768_v22  ;;  %vm5775_vm15 = vweird.f32 %v5768_v22 }
 0x66d   : > { %v13264_v20 = vpop.xlane.xlu2 %5176 }
 0x66e   : > { %vm5178_vm13 = vcmp.eq.f32.partialorder %v12950_v16, %v13264_v20 }
 0x66f   : > { %v5179_v17 = vsel %vm5178_vm13, %v5174_v11, inf  ;;  %v5368_v11 = vand.u32 65535, %v12769_v10  ;;  %vm14753_vm13 = vcmask 15368  }
 0x670   : > { %5180 = vmin.xlane.f32.xlu1 %v5179_v17  ;;  %v5424_v17 = vand.u32 65535, %v13191_v53 }
 0x671   : > { %v6783_v56 = vpop.eup %6782 }
 0x672   : > { %v5770_v33 = vmul.f32 %v6783_v56, %v5768_v22  ;;  %vm5776_vm6 = vweird.f32 %v6783_v56  ;;  %v5426_v50 = vcvt.s32.f32 %v5424_v17 }
 0x673   : > { %vm5777_vm14 = vmor %vm5775_vm15, %vm5776_vm6 }
 0x674   : > { %v5771_v45 = vmul.f32 %v6783_v56, %v5770_v33 }
 0x675   : > { %v13269_v29 = vpop.xlane.xlu2 %5260 }
 0x676   : > { %vm5262_vm3 = vcmp.eq.f32.partialorder %v12981_v6, %v13269_v29  ;;  %v5772_v58 = vmul.f32 0.5, %v5771_v45  ;;  %v5342_v6 = vcvt.s32.f32 %v5340_v42 }
 0x677   : > { %v5263_v8 = vsel %vm5262_vm3, %v5258_v30, inf  ;;  %v13274_v16 = vpop.xlane.xlu0 %5120  ;;  %vm14754_vm3 = vmmov %vm14753_vm13 }
 0x678   : > { %5264 = vmin.xlane.f32.xlu1 %v5263_v8  ;;  %v5773_v51 = vsub.f32 1.5, %v5772_v58  ;;  %vm5122_vm12 = vcmp.eq.f32.partialorder %v13140_v0, %v13274_v16  ;;  %vm14755_vm6 = vmmov %vm14754_vm3 }
 0x679   : > { %v5123_v23 = vsel %vm5122_vm12, %v5118_v15, inf  ;;  %vm14756_vm12 = vmmov %vm14754_vm3 }
 0x67a   : > { %v5774_v24 = vmul.f32 %v6783_v56, %v5773_v51  ;;  %5124 = vmin.xlane.f32.xlu2 %v5123_v23  ;;  %vm14757_vm15 = vmmov %vm14754_vm3 }
 0x67c   : > { %v13282_v49 = vsel %vm5777_vm14, %v6783_v56, %v5774_v24  ;;  %vm14758_vm14 = vmmov %vm14754_vm3 }
 0x67d   : > { %v13279_v59 = vpop.xlane.xlu2 %5344  ;;  %v5780_v62 = vmul.f32 %v13282_v49, %v13240_v43  ;;  %v5782_v0 = vmul.f32 %v13282_v49, %v13236_v57  ;;  %v5284_v57 = vand.u32 65535, %v13171_v1  ;;  %v5779_v1 = vmul.f32 %v13282_v49, %v13238_v39 }
 0x67e   : > { %vm5346_vm0 = vcmp.eq.f32.partialorder %v13150_v47, %v13279_v59  ;;  %v5370_v39 = vcvt.s32.f32 %v5368_v11 }
 0x67f   : > { %v5347_v38 = vsel %vm5346_vm0, %v5342_v6, inf  ;;  %v13290_v36 = vmul.f32 %v5795_v28, %v5780_v62  ;;  %v13292_v5 = vmul.f32 %v5805_v35, %v5782_v0  ;;  %v13294_v4 = vpop.xlane.xlu0 %5204  ;;  %v5286_v2 = vcvt.s32.f32 %v5284_v57  ;;  %vm14759_vm0 = vmmov %vm14754_vm3 }
 0x680   : > { %5348 = vmin.xlane.f32.xlu1 %v5347_v38  ;;  %vm5206_vm1 = vcmp.eq.f32.partialorder %v13169_v48, %v13294_v4  ;;  %v13309_v48 = vpop.xlane.xlu1 %5372  ;;  %v5323_v6 = vcvt.f32.s32 %v13225_v52  ;;  %v5812_v38 = vld [vmem:[%s13452_s8 + $0x8] sm:$0xff] }
 0x681   : > { %v5207_v47 = vsel %vm5206_vm1, %v5202_v9, inf  ;;  %vm5374_vm10 = vcmp.eq.f32.partialorder %v12778_v13, %v13309_v48  ;;  %vm14760_vm1 = vmmov %vm14759_vm0 }
 0x682   : > { %5208 = vmin.xlane.f32.xlu2 %v5207_v47  ;;  %v5375_v10 = vsel %vm5374_vm10, %v5370_v39, inf  ;;  %v5324_v62 = vshll.u32 %v5323_v6, 16  ;;  %v5099_v47 = vcvt.f32.s32 %v13259_v60  ;;  %v5127_v39 = vcvt.f32.s32 %v13274_v16  ;;  %vm14764_vm10 = vmmov %vm14759_vm0 }
 0x684   : > { %v5100_v57 = vshll.u32 %v5099_v47, 16 }
 0x685   : > { %v13299_v43 = vpop.xlane.xlu2 %5400 }
 0x686   : > { %vm5402_vm9 = vcmp.eq.f32.partialorder %v13175_v27, %v13299_v43  ;;  %v5482_v27 = vcvt.s32.f32 %v5480_v26  ;;  %v5183_v26 = vcvt.f32.s32 %v13264_v20 }
 0x687   : > { %v5403_v28 = vsel %vm5402_vm9, %v5398_v18, inf  ;;  %v13304_v25 = vpop.xlane.xlu0 %5288  ;;  %vm14761_vm9 = vmmov %vm14759_vm0 }
 0x688   : > { %5404 = vmin.xlane.f32.xlu0 %v5403_v28  ;;  %vm5290_vm8 = vcmp.eq.f32.partialorder %v13189_v63, %v13304_v25  ;;  %v5807_v63 = vmul.f32 %v13242_v61, %v5779_v1  ;;  %v13326_v53 = vpop.xlane.xlu1 %5456  ;;  %v5508_v61 = vand.u32 65535, %v13206_v12  ;;  %v5184_v1 = vshll.u32 %v5183_v26, 16 }
 0x689   : > { %v5291_v3 = vsel %vm5290_vm8, %v5286_v2, inf  ;;  %vm5458_vm11 = vcmp.eq.f32.partialorder %v12792_v37, %v13326_v53  ;;  %v5813_v37 = vld [vmem:[%s13452_s8 + $0x10] sm:$0xff]  ;;  %vm14762_vm8 = vmmov %vm14759_vm0 }
 0x68a   : > { %5292 = vmin.xlane.f32.xlu2 %v5291_v3  ;;  %v5835_v13 = vadd.f32 %v13256_v34, %v5807_v63  ;;  %v5510_v30 = vcvt.s32.f32 %v5508_v61 }
 0x68c   : > { %6784 = vtanh.f32 %v5835_v13  ;;  %v5128_v13 = vshll.u32 %v5127_v39, 16 }
 0x68d   : > { %v13313_v22 = vpop.xlane.xlu2 %5484 }
 0x68e   : > { %vm5486_vm7 = vcmp.eq.f32.partialorder %v13194_v54, %v13313_v22  ;;  %v5452_v54 = vand.u32 65535, %v12782_v19  ;;  %v5155_v19 = vcvt.f32.s32 %v13211_v14  ;;  %v5239_v14 = vcvt.f32.s32 %v13220_v7 }
 0x68f   : > { %v5487_v55 = vsel %vm5486_vm7, %v5482_v27, inf  ;;  %v13322_v35 = vpop.xlane.xlu0 %5428  ;;  %vm14763_vm7 = vmmov %vm14759_vm0 }
 0x690   : > { %5488 = vmin.xlane.f32.xlu0 %v5487_v55  ;;  %vm5430_vm2 = vcmp.eq.f32.partialorder %v13204_v21, %v13322_v35  ;;  %v5454_v21 = vcvt.s32.f32 %v5452_v54  ;;  %v5240_v42 = vshll.u32 %v5239_v14, 16  ;;  %v5267_v55 = vcvt.f32.s32 %v13269_v29 }
 0x691   : > { %v5431_v56 = vsel %vm5430_vm2, %v5426_v50, inf  ;;  %v5351_v54 = vcvt.f32.s32 %v13279_v59  ;;  %v5407_v59 = vcvt.f32.s32 %v13299_v43  ;;  %v5295_v14 = vcvt.f32.s32 %v13304_v25  ;;  %vm14765_vm2 = vmmov %vm14759_vm0 }
 0x692   : > { %5376 = vmin.xlane.f32.xlu2 %v5375_v10  ;;  %5432 = vmin.xlane.f32.xlu1 %v5431_v56  ;;  %v5459_v46 = vsel %vm5458_vm11, %v5454_v21, inf  ;;  %v6785_v12 = vpop.eup %6784  ;;  %v5268_v63 = vshll.u32 %v5267_v55, 16  ;;  %vm14766_vm11 = vmmov %vm14759_vm0 }
 0x693   : > { %5843 = vst.msk [vmem:[%s13346_s22] sm:$0xff] %vm5724_vm4, %v6785_v12 }
 0x697   : > { %v13333_v33 = vpop.xlane.xlu0 %5512 }
 0x698   : > { %vm5514_vm5 = vcmp.eq.f32.partialorder %v13213_v31, %v13333_v33  ;;  %v5156_v31 = vshll.u32 %v5155_v19, 16 }
 0x699   : > { %v5515_v45 = vsel %vm5514_vm5, %v5510_v30, inf  ;;  %v5352_v30 = vshll.u32 %v5351_v54, 16  ;;  %vm14767_vm5 = vmmov %vm14759_vm0 }
 0x69a   : > { %5460 = vmin.xlane.f32.xlu2 %v5459_v46  ;;  %5516 = vmin.xlane.f32.xlu1 %v5515_v45  ;;  %v5211_v46 = vcvt.f32.s32 %v13294_v4  ;;  %v5408_v4 = vshll.u32 %v5407_v59, 16 }
 0x69f   : > { %v5153_v34 = vpop.xlane.xlu0 %5152 }
 0x6a0   : > { %v5154_v8 = vcvt.f32.s32 %v5153_v34  ;;  %v5212_v34 = vshll.u32 %v5211_v46, 16 }
 0x6a2   : > { %v5157_v58 = vadd.s32 %v5156_v31, %v5154_v8 }
 0x6a4   : > { %5827 = vperm.xlu0 %6489, %v5813_v37   ;;  %5541 = vst.msk [vmem:[#allocation3 + $0x10] sm:$0xff] %vm14753_vm13, %v5157_v58  ;;  %vm14768_vm13 = vmmov %vm14759_vm0 }
 0x6a7   : > { %v5237_v15 = vpop.xlane.xlu0 %5236 }
 0x6a8   : > { %v5238_v51 = vcvt.f32.s32 %v5237_v15 }
 0x6aa   : > { %v5241_v23 = vadd.s32 %v5240_v42, %v5238_v51 }
 0x6ab   : > { %v5849_v24 = vld [vmem:[#allocation3 + $0x10] sm:$0xff] }
 0x6ac   : > { %5544 = vst.msk [vmem:[#allocation3 + $0x28] sm:$0xff] %vm14754_vm3, %v5241_v23  ;;  %v5296_v23 = vshll.u32 %v5295_v14, 16 }
 0x6ad   : > { %5865 = vst.msk [vmem:[%s13355_s26 + $0x10] sm:$0xff] %vm5724_vm4, %v5849_v24  ;;  %v5491_v24 = vcvt.f32.s32 %v13313_v22 }
 0x6af   : > { %v5321_v7 = vpop.xlane.xlu0 %5320 }
 0x6b0   : > { %v5322_v0 = vcvt.f32.s32 %v5321_v7 }
 0x6b2   : > { %v5325_v9 = vadd.s32 %v5324_v62, %v5322_v0  ;;  %5832 = vperm.xlu2 %6491, %v5814_v41   ;;  %v5379_v62 = vcvt.f32.s32 %v13309_v48  ;;  %v5492_v0 = vshll.u32 %v5491_v24, 16 }
 0x6b3   : > { %v5852_v32 = vld [vmem:[#allocation3 + $0x28] sm:$0xff]  ;;  %5822 = vperm.xlu1 %6490, %v5812_v38   ;;  %v5435_v38 = vcvt.f32.s32 %v13322_v35 }
 0x6b4   : > { %5547 = vst.msk [vmem:[#allocation3 + $0x40] sm:$0xff] %vm14755_vm6, %v5325_v9 }
 0x6b5   : > { %5868 = vst.msk [vmem:[%s13355_s26 + $0x28] sm:$0xff] %vm5724_vm4, %v5852_v32 }
 0x6bb   : > { %v5855_v52 = vld [vmem:[#allocation3 + $0x40] sm:$0xff] }
 0x6bc   : > { %5871 = vst.msk [vmem:[%s13355_s26 + $0x40] sm:$0xff] %vm5724_vm4, %v5855_v52 }
 0x6db   : > { %v5097_v18 = vpop.xlane.xlu1 %5096 }
 0x6dc   : > { %v5098_v28 = vcvt.f32.s32 %v5097_v18  ;;  %v5380_v18 = vshll.u32 %v5379_v62, 16 }
 0x6de   : > { %v5101_v2 = vadd.s32 %v5100_v57, %v5098_v28  ;;  %v5436_v57 = vshll.u32 %v5435_v38, 16 }
 0x6e0   : > { %5539 = vst.msk [vmem:[#allocation3] sm:$0xff] %vm14756_vm12, %v5101_v2 }
 0x6e3   : > { %v5181_v3 = vpop.xlane.xlu1 %5180 }
 0x6e4   : > { %v5182_v27 = vcvt.f32.s32 %v5181_v3  ;;  %v5463_v3 = vcvt.f32.s32 %v13326_v53  ;;  %v5781_v53 = vmul.f32 %v13282_v49, %v13234_v40 }
 0x6e6   : > { %v5185_v11 = vadd.s32 %v5184_v1, %v5182_v27  ;;  %v5519_v1 = vcvt.f32.s32 %v13333_v33  ;;  %v5464_v55 = vshll.u32 %v5463_v3, 16 }
 0x6e7   : > { %v5847_v17 = vld [vmem:[#allocation3] sm:$0xff] }
 0x6e8   : > { %5542 = vst.msk [vmem:[#allocation3 + $0x18] sm:$0xff] %vm14757_vm15, %v5185_v11 }
 0x6e9   : > { %5863 = vst.msk [vmem:[%s13355_s26] sm:$0xff] %vm5724_vm4, %v5847_v17 }
 0x6eb   : > { %v5265_v60 = vpop.xlane.xlu1 %5264 }
 0x6ec   : > { %v5266_v50 = vcvt.f32.s32 %v5265_v60  ;;  %v5520_v60 = vshll.u32 %v5519_v1, 16 }
 0x6ed   : > { %v5125_v56 = vpop.xlane.xlu2 %5124 }
 0x6ee   : > { %v5269_v20 = vadd.s32 %v5268_v63, %v5266_v50  ;;  %v5126_v61 = vcvt.f32.s32 %v5125_v56  ;;  %v5809_v56 = vmul.f32 %v13202_v44, %v5781_v53 }
 0x6ef   : > { %v5850_v10 = vld [vmem:[#allocation3 + $0x18] sm:$0xff] }
 0x6f0   : > { %5545 = vst.msk [vmem:[#allocation3 + $0x30] sm:$0xff] %vm14758_vm14, %v5269_v20  ;;  %v5129_v29 = vadd.s32 %v5128_v13, %v5126_v61 }
 0x6f1   : > { %5866 = vst.msk [vmem:[%s13355_s26 + $0x18] sm:$0xff] %vm5724_vm4, %v5850_v10 }
 0x6f2   : > { %5540 = vst.msk [vmem:[#allocation3 + $0x8] sm:$0xff] %vm14759_vm0, %v5129_v29 }
 0x6f3   : > { %v5349_v21 = vpop.xlane.xlu1 %5348 }
 0x6f4   : > { %v5350_v16 = vcvt.f32.s32 %v5349_v21 }
 0x6f5   : > { %v5209_v12 = vpop.xlane.xlu2 %5208 }
 0x6f6   : > { %v5353_v45 = vadd.s32 %v5352_v30, %v5350_v16  ;;  %v5210_v37 = vcvt.f32.s32 %v5209_v12 }
 0x6f7   : > { %v5853_v19 = vld [vmem:[#allocation3 + $0x30] sm:$0xff] }
 0x6f8   : > { %5548 = vst.msk [vmem:[#allocation3 + $0x48] sm:$0xff] %vm14760_vm1, %v5353_v45  ;;  %v5213_v31 = vadd.s32 %v5212_v34, %v5210_v37 }
 0x6f9   : > { %5869 = vst.msk [vmem:[%s13355_s26 + $0x30] sm:$0xff] %vm5724_vm4, %v5853_v19  ;;  %v5848_v8 = vld [vmem:[#allocation3 + $0x8] sm:$0xff] }
 0x6fa   : > { %5543 = vst.msk [vmem:[#allocation3 + $0x20] sm:$0xff] %vm14761_vm9, %v5213_v31 }
 0x6fb   : > { %v5405_v58 = vpop.xlane.xlu0 %5404  ;;  %5864 = vst.msk [vmem:[%s13355_s26 + $0x8] sm:$0xff] %vm5724_vm4, %v5848_v8 }
 0x6fc   : > { %v5406_v15 = vcvt.f32.s32 %v5405_v58 }
 0x6fd   : > { %v5293_v51 = vpop.xlane.xlu2 %5292 }
 0x6fe   : > { %v5409_v42 = vadd.s32 %v5408_v4, %v5406_v15  ;;  %v5294_v6 = vcvt.f32.s32 %v5293_v51 }
 0x6ff   : > { %v5856_v43 = vld [vmem:[#allocation3 + $0x48] sm:$0xff] }
 0x700   : > { %5550 = vst.msk [vmem:[#allocation3 + $0x58] sm:$0xff] %vm14762_vm8, %v5409_v42  ;;  %v5297_v7 = vadd.s32 %v5296_v23, %v5294_v6 }
 0x701   : > { %5872 = vst.msk [vmem:[%s13355_s26 + $0x48] sm:$0xff] %vm5724_vm4, %v5856_v43  ;;  %v5851_v41 = vld [vmem:[#allocation3 + $0x20] sm:$0xff] }
 0x702   : > { %5546 = vst.msk [vmem:[#allocation3 + $0x38] sm:$0xff] %vm14763_vm7, %v5297_v7 }
 0x703   : > { %v5489_v25 = vpop.xlane.xlu0 %5488  ;;  %5867 = vst.msk [vmem:[%s13355_s26 + $0x20] sm:$0xff] %vm5724_vm4, %v5851_v41 }
 0x704   : > { %v5490_v9 = vcvt.f32.s32 %v5489_v25 }
 0x705   : > { %v5433_v52 = vpop.xlane.xlu1 %5432  ;;  %v5377_v47 = vpop.xlane.xlu2 %5376 }
 0x706   : > { %v5493_v22 = vadd.s32 %v5492_v0, %v5490_v9  ;;  %v5434_v28 = vcvt.f32.s32 %v5433_v52  ;;  %v5378_v2 = vcvt.f32.s32 %v5377_v47 }
 0x707   : > { %v5858_v32 = vld [vmem:[#allocation3 + $0x58] sm:$0xff] }
 0x708   : > { %5553 = vst.msk [vmem:[#allocation3 + $0x70] sm:$0xff] %vm14764_vm10, %v5493_v22  ;;  %v5437_v48 = vadd.s32 %v5436_v57, %v5434_v28  ;;  %v5381_v35 = vadd.s32 %v5380_v18, %v5378_v2 }
 0x709   : > { %5874 = vst.msk [vmem:[%s13355_s26 + $0x58] sm:$0xff] %vm5724_vm4, %v5858_v32  ;;  %v5854_v26 = vld [vmem:[#allocation3 + $0x38] sm:$0xff] }
 0x70a   : > { %5551 = vst.msk [vmem:[#allocation3 + $0x60] sm:$0xff] %vm14765_vm2, %v5437_v48 }
 0x70b   : > { %5549 = vst.msk [vmem:[#allocation3 + $0x50] sm:$0xff] %vm14766_vm11, %v5381_v35 }
 0x70c   : > { %5870 = vst.msk [vmem:[%s13355_s26 + $0x38] sm:$0xff] %vm5724_vm4, %v5854_v26 }
 0x70d   : > { %v5517_v11 = vpop.xlane.xlu1 %5516  ;;  %v5461_v17 = vpop.xlane.xlu2 %5460 }
 0x70e   : > { %v5518_v63 = vcvt.f32.s32 %v5517_v11  ;;  %v5462_v39 = vcvt.f32.s32 %v5461_v17 }
 0x70f   : > { %v5861_v27 = vld [vmem:[#allocation3 + $0x70] sm:$0xff] }
 0x710   : > { %5877 = vst.msk [vmem:[%s13355_s26 + $0x70] sm:$0xff] %vm5724_vm4, %v5861_v27  ;;  %v5521_v33 = vadd.s32 %v5520_v60, %v5518_v63  ;;  %v5465_v50 = vadd.s32 %v5464_v55, %v5462_v39 }
 0x711   : > { %v5859_v20 = vld [vmem:[#allocation3 + $0x60] sm:$0xff] }
 0x712   : > { %v5857_v10 = vld [vmem:[#allocation3 + $0x50] sm:$0xff]  ;;  %5554 = vst.msk [vmem:[#allocation3 + $0x78] sm:$0xff] %vm14767_vm5, %v5521_v33 }
 0x713   : > { %5552 = vst.msk [vmem:[#allocation3 + $0x68] sm:$0xff] %vm14768_vm13, %v5465_v50 }
 0x714   : > { %5875 = vst.msk [vmem:[%s13355_s26 + $0x60] sm:$0xff] %vm5724_vm4, %v5859_v20 }
 0x715   : > { %5873 = vst.msk [vmem:[%s13355_s26 + $0x50] sm:$0xff] %vm5724_vm4, %v5857_v10  ;;  %v5833_v40 = vpop.permute.xlu2 %5832 }
 0x716   : > { %v5828_v13 = vpop.permute.xlu0 %5827  ;;  %v5838_v49 = vadd.f32 %v5833_v40, %v13292_v5 }
 0x717   : > { %v5837_v54 = vadd.f32 %v5828_v13, %v5809_v56 }
 0x719   : > { %6786 = vtanh.f32 %v5837_v54  ;;  %v5862_v61 = vld [vmem:[#allocation3 + $0x78] sm:$0xff] }
 0x71a   : > { %6788 = vtanh.f32 %v5838_v49  ;;  %v5860_v29 = vld [vmem:[#allocation3 + $0x68] sm:$0xff]  ;;  %5878 = vst.msk [vmem:[%s13355_s26 + $0x78] sm:$0xff] %vm5724_vm4, %v5862_v61 }
 0x71b   : > { %5876 = vst.msk [vmem:[%s13355_s26 + $0x68] sm:$0xff] %vm5724_vm4, %v5860_v29 }
 0x71f   : > { %v6787_v44 = vpop.eup %6786 }
 0x720   : > { %v6789_v21 = vpop.eup %6788  ;;  %5845 = vst.msk [vmem:[%s13346_s22 + $0x10] sm:$0xff] %vm5724_vm4, %v6787_v44 }
 0x721   : > { %5846 = vst.msk [vmem:[%s13346_s22 + $0x18] sm:$0xff] %vm5724_vm4, %v6789_v21 }
 0x725   : > { %v5823_v30 = vpop.permute.xlu1 %5822 }
 0x726   : > { %v5836_v46 = vadd.f32 %v5823_v30, %v13290_v36 }
 0x728   : > { %6790 = vtanh.f32 %v5836_v46 }
 0x72e   : > { %v6791_v16 = vpop.eup %6790 }
 0x72f   : > { %5844 = vst.msk [vmem:[%s13346_s22 + $0x8] sm:$0xff] %vm5724_vm4, %v6791_v16 }
 0x730 PF: > { %s21_s15 = sadd.s32 1, %s6838_s15   ;;  %s14769_s13 = smov %s6834_s14 }
 0x731   : > { %p18_p6 = scmp.ge.s32.totalorder %s21_s15, 4   ;;  %s14770_s14 = smov %s14772_s16 }
 0x733   :  { %20 = sbr.rel (!%p18_p6) target bundleno = 2 (0x2), region = 99 }

</bundles_post_ra>
